<compile_context>
chip_gen: v5e
topology: v5e:2x2
jax: 0.10.0
libtpu: 0.0.40
codegen_flags: <defaults>
</compile_context>

<pallas_src>
import jax
import jax.numpy as jnp
from jax.experimental import pallas as pl
from jax.experimental.pallas import tpu as pltpu


def _make_kernel(tile_m, tile_k):
    def kernel(a_ref, ys0_hbm, last_ref, rs_ref, out_ref, acc_sc, y_a, y_b):
        l = pl.program_id(0)          # propagation layer
        i = pl.program_id(1)          # output row block
        k = pl.program_id(2)          # reduction (column) block
        nk = pl.num_programs(2)

        # One-time: DMA the right-normalized initial labels (bf16, HBM) into
        # the layer-0 read buffer.  ys0 is NOT pipelined, so it costs no
        # resident VMEM beyond this single copy.
        @pl.when((l == 0) & (i == 0) & (k == 0))
        def _init():
            pltpu.sync_copy(ys0_hbm, y_b)

        # Zero the row-block accumulator at the start of each reduction sweep.
        @pl.when(k == 0)
        def _zero():
            acc_sc[...] = jnp.zeros_like(acc_sc)

        def step(src, dst):
            # src / dst: (npad, cpad) bf16 ping-pong buffers holding nr * y.
            koff = pl.multiple_of(k * tile_k, tile_k)
            y_blk = src[pl.ds(koff, tile_k), :]          # bf16 (tile_k, cpad)
            # bf16 x bf16 MXU matmul, f32 accumulation.
            acc_sc[...] += jnp.dot(a_ref[...], y_blk,
                                   preferred_element_type=jnp.float32)

            @pl.when(k == nk - 1)
            def _finalize():
                rs = rs_ref[...]                          # (tile_m, 2) f32
                scale_l = rs[:, 0:1]                      # alpha * left-norm
                norm_r = rs[:, 1:2]                       # right-norm (next layer)
                y_new = jnp.clip(last_ref[...] + scale_l * acc_sc[...],
                                 0.0, 1.0)
                out_ref[...] = y_new                      # raw (unscaled) estimate
                roff = pl.multiple_of(i * tile_m, tile_m)
                dst[pl.ds(roff, tile_m), :] = (norm_r * y_new).astype(dst.dtype)

        even = (l % 2) == 0

        @pl.when(even)
        def _even_layer():            # even layers: read y_b, write y_a
            step(y_b, y_a)

        @pl.when(jnp.logical_not(even))
        def _odd_layer():             # odd layers: read y_a, write y_b
            step(y_a, y_b)

    return kernel


def label_propagation(adj_mat, labels, *, num_layers, alpha, adj="DAD",
                      mask=None, num_classes=None):
    """JAX/Pallas equivalent of LabelPropagation.forward.

    adj_mat : (N, N) dense 0/1 adjacency, A[v, u] = 1 iff edge u -> v.
    labels  : (N,) int labels (one-hot encoded here) or (N, C) float32.
    mask    : optional (N,) bool -- only labeled rows kept, others zeroed.
    """
    assert adj in ("DAD", "DA", "AD")
    adj_mat = adj_mat.astype(jnp.float32)

    if jnp.issubdtype(labels.dtype, jnp.integer):
        assert num_classes is not None, "num_classes required for int labels"
        y0 = jax.nn.one_hot(labels.reshape(-1), num_classes, dtype=jnp.float32)
    else:
        y0 = labels.astype(jnp.float32)
    if mask is not None:
        y0 = jnp.where(mask[:, None], y0, 0.0)

    N, C = y0.shape
    if num_layers <= 0:               # torch loop body never runs -> return y0
        return y0

    # ---- tiling -------------------------------------------------------------
    tile_m = 512                                      # output row block
    npad = ((N + tile_m - 1) // tile_m) * tile_m      # multiple of tile_m
    cpad = max(128, ((C + 127) // 128) * 128)         # lane-dense classes
    tile_k = tile_m                                   # reduction chunk of A
    for cand in (4096, 2048, 1024, 512):              # largest dividing npad
        if cand <= npad and npad % cand == 0:
            tile_k = cand
            break
    nbm = npad // tile_m
    nbk = npad // tile_k

    # Zero padding: padded nodes have no edges and zero labels -> stay zero.
    a_pad = jnp.pad(adj_mat, ((0, npad - N), (0, npad - N)))
    y0_pad = jnp.pad(y0, ((0, npad - N), (0, cpad - C)))

    # ---- norms / residual precomputed in plain XLA ---------------------------
    degs = jnp.maximum(jnp.sum(a_pad, axis=1), 1.0)   # in-degrees, >= 1
    if adj == "DAD":
        n_half = degs ** -0.5
        nl, nr = n_half, n_half
    elif adj == "DA":
        nl, nr = 1.0 / degs, jnp.ones_like(degs)
    else:  # "AD"
        nl, nr = jnp.ones_like(degs), 1.0 / degs

    row_scales = jnp.stack([alpha * nl, nr], axis=-1).astype(jnp.float32)
    last = ((1.0 - alpha) * y0_pad).astype(jnp.float32)       # residual
    # A is 0/1 (unweighted message passing in the reference module) -> bf16 exact.
    a_bf16 = a_pad.astype(jnp.bfloat16)
    ys0_bf16 = (nr[:, None] * y0_pad).astype(jnp.bfloat16)    # nr * y0 (HBM only)

    grid = (num_layers, nbm, nbk)

    # ---- VMEM budget (per generation) ----------------------------------------
    vmem_bytes = (
        2 * tile_m * tile_k * 2        # A blocks (bf16, double buffered)
        + 2 * tile_m * cpad * 4        # `last` blocks
        + 2 * tile_m * 128 * 4         # row_scales blocks (lane-padded)
        + 2 * tile_m * cpad * 4        # output blocks
        + tile_m * cpad * 4            # f32 accumulator
        + 2 * npad * cpad * 2          # resident bf16 y ping-pong
    )
    try:
        phys_vmem = int(pltpu.get_tpu_info().vmem_capacity_bytes)
    except Exception:
        phys_vmem = 64 << 20           # conservative fallback (v7x per-TC VMEM)
    if phys_vmem <= 0:
        phys_vmem = 64 << 20
    vmem_limit = int(min(max(2 * vmem_bytes, 32 << 20), (phys_vmem * 7) // 8))

    out = pl.pallas_call(
        _make_kernel(tile_m, tile_k),
        out_shape=jax.ShapeDtypeStruct((npad, cpad), jnp.float32),
        grid_spec=pltpu.PrefetchScalarGridSpec(
            num_scalar_prefetch=0,
            grid=grid,
            in_specs=[
                pl.BlockSpec((tile_m, tile_k), lambda l, i, k: (i, k)),   # A (bf16)
                pl.BlockSpec(memory_space=pl.ANY),                        # ys0 (HBM)
                pl.BlockSpec((tile_m, cpad), lambda l, i, k: (i, 0)),     # last
                pl.BlockSpec((tile_m, 2), lambda l, i, k: (i, 0)),        # scales
            ],
            out_specs=pl.BlockSpec((tile_m, cpad), lambda l, i, k: (i, 0)),
            scratch_shapes=[
                pltpu.VMEM((tile_m, cpad), jnp.float32),     # f32 accumulator
                pltpu.VMEM((npad, cpad), jnp.bfloat16),      # y ping-pong A
                pltpu.VMEM((npad, cpad), jnp.bfloat16),      # y ping-pong B
            ],
        ),
        # All "arbitrary": the y ping-pong scratch is shared across row blocks
        # and layers, so megacore sharding of any axis would be incorrect.
        # TODO(synk): v7x 2-TC sharding of the row-block axis (core_map +
        # per-core halves with a barrier/exchange between layers) not implemented.
        compiler_params=pltpu.CompilerParams(
            dimension_semantics=("arbitrary", "arbitrary", "arbitrary"),
            vmem_limit_bytes=vmem_limit,
        ),
    )(a_bf16, ys0_bf16, last, row_scales)

    return out[:N, :C]


def _reference(A, y0, num_layers, alpha, adj="DAD", emulate_bf16=True):
    """Pure-JAX reference.  With emulate_bf16=True it applies exactly the
    bf16 rounding the kernel applies to A and to the carried nr*y values."""
    y = y0
    last = (1.0 - alpha) * y
    degs = jnp.maximum(A.sum(axis=1), 1.0)
    norm = (degs ** (-0.5 if adj == "DAD" else -1.0))[:, None]
    A_mm = A.astype(jnp.bfloat16).astype(jnp.float32) if emulate_bf16 else A
    for _ in range(num_layers):
        ys = norm * y if adj in ("DAD", "AD") else y
        if emulate_bf16:
            ys = ys.astype(jnp.bfloat16).astype(jnp.float32)
        y = alpha * (A_mm @ ys)
        if adj in ("DAD", "DA"):
            y = y * norm
        y = jnp.clip(last + y, 0.0, 1.0)
    return y


if __name__ == "__main__":
    key = jax.random.PRNGKey(0)
    k_adj, k_lab, k_mask = jax.random.split(key, 3)

    # ---- test 1: small graph (single row/reduction block), DAD + mask -------
    N, C = 128, 16
    NUM_LAYERS, ALPHA = 3, 0.9

    A = (jax.random.uniform(k_adj, (N, N)) < 0.05).astype(jnp.float32)
    labels = jax.random.randint(k_lab, (N,), 0, C, dtype=jnp.int32)
    mask = jax.random.uniform(k_mask, (N,)) < 0.5

    out = label_propagation(A, labels, num_layers=NUM_LAYERS, alpha=ALPHA,
                            adj="DAD", mask=mask, num_classes=C)
    out = jax.block_until_ready(out)

    y0 = jnp.where(mask[:, None],
                   jax.nn.one_hot(labels, C, dtype=jnp.float32), 0.0)
    ref = _reference(A, y0, NUM_LAYERS, ALPHA, adj="DAD", emulate_bf16=True)
    assert out.shape == (N, C) and out.dtype == jnp.float32
    assert jnp.allclose(out, ref, atol=2e-3, rtol=0.0), \
        float(jnp.max(jnp.abs(out - ref)))

    # ---- test 2: multi row-block / multi reduction-block path, DA, no mask ---
    N2, C2 = 1500, 7                    # npad = 1536 -> 3 row blocks, 3 k blocks
    A2 = (jax.random.uniform(jax.random.PRNGKey(1), (N2, N2)) < 0.01
          ).astype(jnp.float32)
    labels2 = jax.random.randint(jax.random.PRNGKey(2), (N2,), 0, C2,
                                 dtype=jnp.int32)
    out2 = label_propagation(A2, labels2, num_layers=3, alpha=0.8, adj="DA",
                             num_classes=C2)
    out2 = jax.block_until_ready(out2)
    y02 = jax.nn.one_hot(labels2, C2, dtype=jnp.float32)
    ref2 = _reference(A2, y02, 3, 0.8, adj="DA", emulate_bf16=True)
    assert out2.shape == (N2, C2)
    assert jnp.allclose(out2, ref2, atol=2e-3, rtol=0.0), \
        float(jnp.max(jnp.abs(out2 - ref2)))

    print("KERNEL_OK")
</pallas_src>

<mosaic_0001>
module attributes {stable_mosaic.version = 11 : i64} {
  func.func @kernel(%arg0: i32, %arg1: i32, %arg2: i32, %arg3: memref<512x512xbf16, #tpu.memory_space<vmem>>, %arg4: memref<512x128xbf16, #tpu.memory_space<any>>, %arg5: memref<512x128xf32, #tpu.memory_space<vmem>>, %arg6: memref<512x2xf32, #tpu.memory_space<vmem>>, %arg7: memref<512x128xf32, #tpu.memory_space<vmem>>, %arg8: memref<512x128xf32, #tpu.memory_space<vmem>>, %arg9: memref<512x128xbf16, #tpu.memory_space<vmem>>, %arg10: memref<512x128xbf16, #tpu.memory_space<vmem>>) attributes {dimension_semantics = [#tpu.dimension_semantics<arbitrary>, #tpu.dimension_semantics<arbitrary>, #tpu.dimension_semantics<arbitrary>], iteration_bounds = array<i64: 3, 1, 1>, scalar_prefetch = 0 : i64, scratch_operands = 3 : i64, tpu.core_type = #tpu.core_type<tc>, window_params = [{transform_indices = @transform_0, window_bounds = array<i64: 512, 512>}, {}, {transform_indices = @transform_2, window_bounds = array<i64: 512, 128>}, {transform_indices = @transform_3, window_bounds = array<i64: 512, 2>}, {transform_indices = @transform_4, window_bounds = array<i64: 512, 128>}]} {
    %c0_i32 = arith.constant 0 : i32
    %0 = arith.cmpi eq, %arg0, %c0_i32 : i32
    %c0_i32_0 = arith.constant 0 : i32
    %1 = arith.cmpi eq, %arg1, %c0_i32_0 : i32
    %2 = arith.andi %0, %1 : i1
    %c0_i32_1 = arith.constant 0 : i32
    %3 = arith.cmpi eq, %arg2, %c0_i32_1 : i32
    %4 = arith.andi %2, %3 : i1
    %5 = arith.extui %4 : i1 to i32
    %c0_i32_2 = arith.constant 0 : i32
    %6 = arith.cmpi ne, %5, %c0_i32_2 : i32
    scf.if %6 {
      "tpu.region"() ({
        %26 = tpu.sem_alloc : memref<!tpu.dma_semaphore, #tpu.memory_space<semaphore_mem>>
        tpu.enqueue_dma source(%arg4 : memref<512x128xbf16, #tpu.memory_space<any>>) target(%arg10 : memref<512x128xbf16, #tpu.memory_space<vmem>>) target_semaphore(%26 : memref<!tpu.dma_semaphore, #tpu.memory_space<semaphore_mem>>)
        tpu.wait_dma2 semaphore(%26 : memref<!tpu.dma_semaphore, #tpu.memory_space<semaphore_mem>>) src(%arg4 : memref<512x128xbf16, #tpu.memory_space<any>>) dst(%arg10 : memref<512x128xbf16, #tpu.memory_space<vmem>>)
        tpu.yield
      }) : () -> ()
    } else {
    }
    %c0_i32_3 = arith.constant 0 : i32
    %7 = arith.cmpi eq, %arg2, %c0_i32_3 : i32
    %8 = arith.extui %7 : i1 to i32
    %c0_i32_4 = arith.constant 0 : i32
    %9 = arith.cmpi ne, %8, %c0_i32_4 : i32
    scf.if %9 {
      %cst = arith.constant 0.000000e+00 : f32
      %26 = vector.broadcast %cst : f32 to vector<512x128xf32>
      %c0 = arith.constant 0 : index
      %c0_12 = arith.constant 0 : index
      %27 = vector.load %arg8[%c0, %c0_12] : memref<512x128xf32, #tpu.memory_space<vmem>>, vector<512x128xf32>
      tpu.vector_store %arg8[%c0, %c0_12], %26 {strides = array<i32>} : memref<512x128xf32, #tpu.memory_space<vmem>>, vector<512x128xf32>,
    } else {
    }
    %c2_i32 = arith.constant 2 : i32
    %c0_i32_5 = arith.constant 0 : i32
    %10 = arith.cmpi eq, %c2_i32, %c0_i32_5 : i32
    %c1_i32 = arith.constant 1 : i32
    %11 = arith.select %10, %c1_i32, %c2_i32 : i32
    %12 = arith.remsi %arg0, %11 : i32
    %c0_i32_6 = arith.constant 0 : i32
    %13 = arith.cmpi ne, %12, %c0_i32_6 : i32
    %c0_i32_7 = arith.constant 0 : i32
    %14 = arith.cmpi slt, %12, %c0_i32_7 : i32
    %c0_i32_8 = arith.constant 0 : i32
    %15 = arith.cmpi slt, %11, %c0_i32_8 : i32
    %16 = arith.xori %14, %15 : i1
    %17 = arith.andi %16, %13 : i1
    %18 = arith.addi %12, %11 : i32
    %19 = arith.select %17, %18, %12 : i32
    %c0_i32_9 = arith.constant 0 : i32
    %20 = arith.cmpi eq, %19, %c0_i32_9 : i32
    %21 = arith.extui %20 : i1 to i32
    %c0_i32_10 = arith.constant 0 : i32
    %22 = arith.cmpi ne, %21, %c0_i32_10 : i32
    scf.if %22 {
      %c512_i32 = arith.constant 512 : i32
      %26 = arith.muli %arg2, %c512_i32 : i32
      %27 = tpu.assume_multiple %26, 512 : i32
      %28 = arith.index_cast %27 : i32 to index
      %c0 = arith.constant 0 : index
      %29 = vector.load %arg10[%28, %c0] : memref<512x128xbf16, #tpu.memory_space<vmem>>, vector<512x128xbf16>
      %c0_12 = arith.constant 0 : index
      %c0_13 = arith.constant 0 : index
      %30 = vector.load %arg8[%c0_12, %c0_13] : memref<512x128xf32, #tpu.memory_space<vmem>>, vector<512x128xf32>
      %c0_14 = arith.constant 0 : index
      %c0_15 = arith.constant 0 : index
      %31 = vector.load %arg3[%c0_14, %c0_15] : memref<512x512xbf16, #tpu.memory_space<vmem>>, vector<512x512xbf16>
      %cst = arith.constant dense<0.000000e+00> : vector<512x128xf32>
      %32 = tpu.matmul %31, %29, %cst {dimension_numbers = #tpu.dot_dimension_numbers<[1], [0], [0], [1], [0, 0, 1, 1], [], []>} : vector<512x512xbf16>, vector<512x128xbf16>, vector<512x128xf32> -> vector<512x128xf32>
      %33 = arith.addf %30, %32 : vector<512x128xf32>
      %c0_16 = arith.constant 0 : index
      %c0_17 = arith.constant 0 : index
      %34 = vector.load %arg8[%c0_16, %c0_17] : memref<512x128xf32, #tpu.memory_space<vmem>>, vector<512x128xf32>
      tpu.vector_store %arg8[%c0_16, %c0_17], %33 {strides = array<i32>} : memref<512x128xf32, #tpu.memory_space<vmem>>, vector<512x128xf32>,
      %c0_i32_18 = arith.constant 0 : i32
      %35 = arith.cmpi eq, %arg2, %c0_i32_18 : i32
      %36 = arith.extui %35 : i1 to i32
      %c0_i32_19 = arith.constant 0 : i32
      %37 = arith.cmpi ne, %36, %c0_i32_19 : i32
      scf.if %37 {
        %c0_20 = arith.constant 0 : index
        %c0_21 = arith.constant 0 : index
        %38 = vector.load %arg6[%c0_20, %c0_21] : memref<512x2xf32, #tpu.memory_space<vmem>>, vector<512x2xf32>
        %39 = vector.extract_strided_slice %38 {offsets = [0, 0], sizes = [512, 1], strides = [1, 1]} : vector<512x2xf32> to vector<512x1xf32>
        %40 = vector.extract_strided_slice %38 {offsets = [0, 1], sizes = [512, 1], strides = [1, 1]} : vector<512x2xf32> to vector<512x1xf32>
        %c0_22 = arith.constant 0 : index
        %c0_23 = arith.constant 0 : index
        %41 = vector.load %arg5[%c0_22, %c0_23] : memref<512x128xf32, #tpu.memory_space<vmem>>, vector<512x128xf32>
        %c0_24 = arith.constant 0 : index
        %c0_25 = arith.constant 0 : index
        %42 = vector.load %arg8[%c0_24, %c0_25] : memref<512x128xf32, #tpu.memory_space<vmem>>, vector<512x128xf32>
        %43 = vector.broadcast %39 : vector<512x1xf32> to vector<512x128xf32>
        %44 = arith.mulf %43, %42 : vector<512x128xf32>
        %45 = arith.addf %41, %44 : vector<512x128xf32>
        %cst_26 = arith.constant 0.000000e+00 : f32
        %cst_27 = arith.constant 1.000000e+00 : f32
        %46 = vector.broadcast %cst_26 : f32 to vector<512x128xf32>
        %47 = arith.maximumf %46, %45 : vector<512x128xf32>
        %48 = vector.broadcast %cst_27 : f32 to vector<512x128xf32>
        %49 = arith.minimumf %48, %47 : vector<512x128xf32>
        %c0_28 = arith.constant 0 : index
        %c0_29 = arith.constant 0 : index
        %50 = vector.load %arg7[%c0_28, %c0_29] : memref<512x128xf32, #tpu.memory_space<vmem>>, vector<512x128xf32>
        tpu.vector_store %arg7[%c0_28, %c0_29], %49 {strides = array<i32>} : memref<512x128xf32, #tpu.memory_space<vmem>>, vector<512x128xf32>,
        %c512_i32_30 = arith.constant 512 : i32
        %51 = arith.muli %arg1, %c512_i32_30 : i32
        %52 = tpu.assume_multiple %51, 512 : i32
        %53 = vector.broadcast %40 : vector<512x1xf32> to vector<512x128xf32>
        %54 = arith.mulf %53, %49 : vector<512x128xf32>
        %55 = arith.truncf %54 : vector<512x128xf32> to vector<512x128xbf16>
        %56 = arith.index_cast %52 : i32 to index
        %c0_31 = arith.constant 0 : index
        %57 = vector.load %arg9[%56, %c0_31] : memref<512x128xbf16, #tpu.memory_space<vmem>>, vector<512x128xbf16>
        tpu.vector_store %arg9[%56, %c0_31], %55 {strides = array<i32>} : memref<512x128xbf16, #tpu.memory_space<vmem>>, vector<512x128xbf16>,
      } else {
      }
    } else {
    }
    %true = arith.constant true
    %23 = arith.xori %20, %true : i1
    %24 = arith.extui %23 : i1 to i32
    %c0_i32_11 = arith.constant 0 : i32
    %25 = arith.cmpi ne, %24, %c0_i32_11 : i32
    scf.if %25 {
      %c512_i32 = arith.constant 512 : i32
      %26 = arith.muli %arg2, %c512_i32 : i32
      %27 = tpu.assume_multiple %26, 512 : i32
      %28 = arith.index_cast %27 : i32 to index
      %c0 = arith.constant 0 : index
      %29 = vector.load %arg9[%28, %c0] : memref<512x128xbf16, #tpu.memory_space<vmem>>, vector<512x128xbf16>
      %c0_12 = arith.constant 0 : index
      %c0_13 = arith.constant 0 : index
      %30 = vector.load %arg8[%c0_12, %c0_13] : memref<512x128xf32, #tpu.memory_space<vmem>>, vector<512x128xf32>
      %c0_14 = arith.constant 0 : index
      %c0_15 = arith.constant 0 : index
      %31 = vector.load %arg3[%c0_14, %c0_15] : memref<512x512xbf16, #tpu.memory_space<vmem>>, vector<512x512xbf16>
      %cst = arith.constant dense<0.000000e+00> : vector<512x128xf32>
      %32 = tpu.matmul %31, %29, %cst {dimension_numbers = #tpu.dot_dimension_numbers<[1], [0], [0], [1], [0, 0, 1, 1], [], []>} : vector<512x512xbf16>, vector<512x128xbf16>, vector<512x128xf32> -> vector<512x128xf32>
      %33 = arith.addf %30, %32 : vector<512x128xf32>
      %c0_16 = arith.constant 0 : index
      %c0_17 = arith.constant 0 : index
      %34 = vector.load %arg8[%c0_16, %c0_17] : memref<512x128xf32, #tpu.memory_space<vmem>>, vector<512x128xf32>
      tpu.vector_store %arg8[%c0_16, %c0_17], %33 {strides = array<i32>} : memref<512x128xf32, #tpu.memory_space<vmem>>, vector<512x128xf32>,
      %c0_i32_18 = arith.constant 0 : i32
      %35 = arith.cmpi eq, %arg2, %c0_i32_18 : i32
      %36 = arith.extui %35 : i1 to i32
      %c0_i32_19 = arith.constant 0 : i32
      %37 = arith.cmpi ne, %36, %c0_i32_19 : i32
      scf.if %37 {
        %c0_20 = arith.constant 0 : index
        %c0_21 = arith.constant 0 : index
        %38 = vector.load %arg6[%c0_20, %c0_21] : memref<512x2xf32, #tpu.memory_space<vmem>>, vector<512x2xf32>
        %39 = vector.extract_strided_slice %38 {offsets = [0, 0], sizes = [512, 1], strides = [1, 1]} : vector<512x2xf32> to vector<512x1xf32>
        %40 = vector.extract_strided_slice %38 {offsets = [0, 1], sizes = [512, 1], strides = [1, 1]} : vector<512x2xf32> to vector<512x1xf32>
        %c0_22 = arith.constant 0 : index
        %c0_23 = arith.constant 0 : index
        %41 = vector.load %arg5[%c0_22, %c0_23] : memref<512x128xf32, #tpu.memory_space<vmem>>, vector<512x128xf32>
        %c0_24 = arith.constant 0 : index
        %c0_25 = arith.constant 0 : index
        %42 = vector.load %arg8[%c0_24, %c0_25] : memref<512x128xf32, #tpu.memory_space<vmem>>, vector<512x128xf32>
        %43 = vector.broadcast %39 : vector<512x1xf32> to vector<512x128xf32>
        %44 = arith.mulf %43, %42 : vector<512x128xf32>
        %45 = arith.addf %41, %44 : vector<512x128xf32>
        %cst_26 = arith.constant 0.000000e+00 : f32
        %cst_27 = arith.constant 1.000000e+00 : f32
        %46 = vector.broadcast %cst_26 : f32 to vector<512x128xf32>
        %47 = arith.maximumf %46, %45 : vector<512x128xf32>
        %48 = vector.broadcast %cst_27 : f32 to vector<512x128xf32>
        %49 = arith.minimumf %48, %47 : vector<512x128xf32>
        %c0_28 = arith.constant 0 : index
        %c0_29 = arith.constant 0 : index
        %50 = vector.load %arg7[%c0_28, %c0_29] : memref<512x128xf32, #tpu.memory_space<vmem>>, vector<512x128xf32>
        tpu.vector_store %arg7[%c0_28, %c0_29], %49 {strides = array<i32>} : memref<512x128xf32, #tpu.memory_space<vmem>>, vector<512x128xf32>,
        %c512_i32_30 = arith.constant 512 : i32
        %51 = arith.muli %arg1, %c512_i32_30 : i32
        %52 = tpu.assume_multiple %51, 512 : i32
        %53 = vector.broadcast %40 : vector<512x1xf32> to vector<512x128xf32>
        %54 = arith.mulf %53, %49 : vector<512x128xf32>
        %55 = arith.truncf %54 : vector<512x128xf32> to vector<512x128xbf16>
        %56 = arith.index_cast %52 : i32 to index
        %c0_31 = arith.constant 0 : index
        %57 = vector.load %arg10[%56, %c0_31] : memref<512x128xbf16, #tpu.memory_space<vmem>>, vector<512x128xbf16>
        tpu.vector_store %arg10[%56, %c0_31], %55 {strides = array<i32>} : memref<512x128xbf16, #tpu.memory_space<vmem>>, vector<512x128xbf16>,
      } else {
      }
    } else {
    }
    return
  }
  func.func @transform_0(%arg0: i32, %arg1: i32, %arg2: i32) -> (i32, i32) {
    %c0_i32 = arith.constant 0 : i32
    return %arg1, %arg2 : i32, i32
  }
  func.func @transform_2(%arg0: i32, %arg1: i32, %arg2: i32) -> (i32, i32) {
    %c0_i32 = arith.constant 0 : i32
    %c0_i32_0 = arith.constant 0 : i32
    return %arg1, %c0_i32 : i32, i32
  }
  func.func @transform_3(%arg0: i32, %arg1: i32, %arg2: i32) -> (i32, i32) {
    %c0_i32 = arith.constant 0 : i32
    %c0_i32_0 = arith.constant 0 : i32
    return %arg1, %c0_i32 : i32, i32
  }
  func.func @transform_4(%arg0: i32, %arg1: i32, %arg2: i32) -> (i32, i32) {
    %c0_i32 = arith.constant 0 : i32
    %c0_i32_0 = arith.constant 0 : i32
    return %arg1, %c0_i32 : i32, i32
  }
}

</mosaic_0001>

<bundles_post_ra>
// kernel: tpu_custom_call.1
= control target key start
LH: loop header
LB: loop body
LE: loop exit
PB: predicated region body
PF: predicated region fallthrough
CT: control target
= control target key end

     0   :  { %9 = vsyncpa [#allocation6], 0  ;;  %s10980_s0 = inlined_call_operand.hbm [shape: bf16[512,512], index: 0, kind: input, shape index: {}]   ;;  %s10981_s1 = inlined_call_operand.hbm [shape: bf16[512,128], index: 1, kind: input, shape index: {}]   ;;  %s10982_s2 = inlined_call_operand.vmem [shape: f32[512,128], index: 2, kind: input, shape index: {}]   ;;  %s10983_s3 = inlined_call_operand.vmem [shape: f32[512,2], index: 3, kind: input, shape index: {}]   ;;  %s10984_s4 = inlined_call_operand.hbm [shape: f32[512,128], index: 4, kind: output, shape index: {}]  }
   0x1   :  { %10 = vsyncpa [#allocation7], 0  ;;  %s9117_s15 = smov 0   ;;  %s9119_s16 = smov 0  }
   0x2   :  { %s9121_s17 = smov 0  }
   0x3 LB: > { %s6832_s18 = sadd.s32 4294967295, %s9078_s17   ;;  %s35_s19 = sadd.s32 1, %s9074_s16  ;;  %s9078_s17 = sphi %s9121_s17, %s16_s17   ;;  %s9074_s16 = sphi %s9119_s16, %s11132_s16   ;;  %s9070_s15 = sphi %s9117_s15, %s11131_s15  }
   0x4   : > { %p37_p0 = scmp.ge.s32.totalorder %s35_s19, 3  ;;  %p6833_p1 = scmp.ge.s32.totalorder %s9078_s17, 1 }
   0x5   : > { %p146_p2 = scmp.lt.s32.totalorder %s9078_s17, 4  ;;  %p8846_p4 = scmp.eq.s32.totalorder %s6832_s18, 0 }
   0x6   : > { %s11134_s19 = smov (%p37_p0, %s35_s19), 0  ;;  %s163_s22 = sshll.u32 %s10980_s0, 4  ;;  %s164_s22 = int_to_ptr.hbm [resolvable:$true] %s163_s22 }
   0x7   : > { %p147_p3 = pnand %p6833_p1, %p146_p2  ;;  %s9080_s23 = smov [#allocation5]  }
   0x8   : > { %s165_s24 = sshll.u32 %s9080_s23, 4  ;;  %s9081_s25 = smov 256   ;;  %s166_s24 = int_to_ptr.vmem [resolvable:$true] %s165_s24 }
   0x9   : > { %p8842_p5 = pneg %p147_p3  ;;  %s9082_s26 = smov 16  }
   0xa   : > { %199 = sbr.rel (%p147_p3) target bundleno = 1490 (0x5d2), region = 32 }
   0xb   : > { %p8843_p6 = pnand %p8846_p4, %p8842_p5 }
   0xd   : > { %8845 = dma.hbm_to_vmem [thread:$0]  (!%p8843_p6), %s164_s22, 16384, %s166_s24, [#allocation6], %s9081_s25, %s9081_s25, %s9082_s26  }
   0xf   : > { %9059 = dma.done.wait (%p8846_p4), [#allocation6], 16384  }
  0x10   : > { %9061 = vsyncadd (%p8846_p4), [#allocation6], 4294950912  ;;  %p239_p7 = scmp.eq.s32.totalorder %s9070_s15, 0 }
  0x12   : > { %247 = sbr.rel (!%p239_p7) target bundleno = 28 (0x1c), region = 40 }
  0x17   : > { %s255_s29 = sshll.u32 %s10981_s1, 4  ;;  %s9083_s30 = smov [#allocation4]   ;;  %s256_s29 = int_to_ptr.hbm [resolvable:$true] %s255_s29 }
  0x18   : > { %s257_s5 = sshll.u32 %s9083_s30, 4  ;;  %s258_s5 = int_to_ptr.vmem [resolvable:$true] %s257_s5 }
  0x19   : > { %260 = dma.hbm_to_vmem [thread:$0]  %s256_s29, 4096, %s258_s5, [#allocation9] }
  0x1a   : > { %9062 = dma.done.wait [#allocation9], 4096 }
  0x1b   : > { %9063 = vsyncadd [#allocation9], 4294963200 }
  0x1c PF: > { %p332_p8 = scmp.lt.s32.totalorder %s9070_s15, 0  ;;  %s333_s6 = ssub.s32 0, %s9070_s15  ;;  %v9084_v0 = vmov 0.0  }
  0x1d   : > { %268 = vst [vmem:[#allocation2 + $0xb0] sm:$0xff] %v9084_v0  ;;  %s6841_s7 = smin.u32 %s9070_s15, %s333_s6 }
  0x1e   : > { %269 = vst [vmem:[#allocation2 + $0x1b0] sm:$0xff] %v9084_v0  ;;  %s335_s8 = sand.u32 1, %s6841_s7  }
  0x1f   : > { %270 = vst [vmem:[#allocation2 + $0xd8] sm:$0xff] %v9084_v0  ;;  %s336_s9 = ssub.s32 0, %s335_s8 }
  0x20   : > { %271 = vst [vmem:[#allocation2 + $0x18] sm:$0xff] %v9084_v0  ;;  %s11136_s9 = smov (!%p332_p8, %s336_s9), %s335_s8 }
  0x21   : > { %272 = vst [vmem:[#allocation2 + $0x50] sm:$0xff] %v9084_v0  ;;  %p6843_p9 = scmp.lt.s32.totalorder %s11136_s9, 0  ;;  %s342_s10 = sadd.s32 2, %s11136_s9 }
  0x22   : > { %273 = vst [vmem:[#allocation2 + $0x168] sm:$0xff] %v9084_v0 }
  0x23   : > { %274 = vst [vmem:[#allocation2 + $0x130] sm:$0xff] %v9084_v0  ;;  %s11138_s10 = smov (!%p6843_p9, %s342_s10), %s11136_s9 }
  0x24   : > { %275 = vst [vmem:[#allocation2 + $0x48] sm:$0xff] %v9084_v0  ;;  %p6844_p10 = scmp.ne.s32.totalorder %s11138_s10, 0 }
  0x25   : > { %276 = vst [vmem:[#allocation2 + $0x180] sm:$0xff] %v9084_v0 }
  0x26   : > { %277 = vst [vmem:[#allocation2 + $0x110] sm:$0xff] %v9084_v0 }
  0x27   : > { %278 = vst [vmem:[#allocation2 + $0x118] sm:$0xff] %v9084_v0 }
  0x28   : > { %279 = vst [vmem:[#allocation2 + $0x98] sm:$0xff] %v9084_v0 }
  0x29   : > { %280 = vst [vmem:[#allocation2 + $0x120] sm:$0xff] %v9084_v0 }
  0x2a   : > { %281 = vst [vmem:[#allocation2 + $0x150] sm:$0xff] %v9084_v0 }
  0x2b   : > { %282 = vst [vmem:[#allocation2 + $0x108] sm:$0xff] %v9084_v0 }
  0x2c   : > { %283 = vst [vmem:[#allocation2 + $0x60] sm:$0xff] %v9084_v0 }
  0x2d   : > { %284 = vst [vmem:[#allocation2 + $0xe0] sm:$0xff] %v9084_v0 }
  0x2e   : > { %285 = vst [vmem:[#allocation2 + $0x188] sm:$0xff] %v9084_v0 }
  0x2f   : > { %286 = vst [vmem:[#allocation2 + $0x138] sm:$0xff] %v9084_v0 }
  0x30   : > { %287 = vst [vmem:[#allocation2 + $0x140] sm:$0xff] %v9084_v0 }
  0x31   : > { %288 = vst [vmem:[#allocation2 + $0x80] sm:$0xff] %v9084_v0 }
  0x32   : > { %289 = vst [vmem:[#allocation2 + $0x1a8] sm:$0xff] %v9084_v0 }
  0x33   : > { %290 = vst [vmem:[#allocation2 + $0x1b8] sm:$0xff] %v9084_v0 }
  0x34   : > { %291 = vst [vmem:[#allocation2 + $0x28] sm:$0xff] %v9084_v0 }
  0x35   : > { %292 = vst [vmem:[#allocation2 + $0x1e8] sm:$0xff] %v9084_v0 }
  0x36   : > { %293 = vst [vmem:[#allocation2 + $0xf8] sm:$0xff] %v9084_v0 }
  0x37   : > { %294 = vst [vmem:[#allocation2 + $0x160] sm:$0xff] %v9084_v0 }
  0x38   : > { %295 = vst [vmem:[#allocation2 + $0x30] sm:$0xff] %v9084_v0 }
  0x39   : > { %296 = vst [vmem:[#allocation2 + $0x1e0] sm:$0xff] %v9084_v0 }
  0x3a   : > { %297 = vst [vmem:[#allocation2] sm:$0xff] %v9084_v0 }
  0x3b   : > { %298 = vst [vmem:[#allocation2 + $0xf0] sm:$0xff] %v9084_v0 }
  0x3c   : > { %299 = vst [vmem:[#allocation2 + $0x8] sm:$0xff] %v9084_v0 }
  0x3d   : > { %300 = vst [vmem:[#allocation2 + $0x148] sm:$0xff] %v9084_v0 }
  0x3e   : > { %301 = vst [vmem:[#allocation2 + $0x1d0] sm:$0xff] %v9084_v0 }
  0x3f   : > { %302 = vst [vmem:[#allocation2 + $0x100] sm:$0xff] %v9084_v0 }
  0x40   : > { %303 = vst [vmem:[#allocation2 + $0xc8] sm:$0xff] %v9084_v0 }
  0x41   : > { %304 = vst [vmem:[#allocation2 + $0x40] sm:$0xff] %v9084_v0 }
  0x42   : > { %305 = vst [vmem:[#allocation2 + $0x1f8] sm:$0xff] %v9084_v0 }
  0x43   : > { %306 = vst [vmem:[#allocation2 + $0x20] sm:$0xff] %v9084_v0 }
  0x44   : > { %307 = vst [vmem:[#allocation2 + $0x128] sm:$0xff] %v9084_v0 }
  0x45   : > { %308 = vst [vmem:[#allocation2 + $0x1a0] sm:$0xff] %v9084_v0 }
  0x46   : > { %309 = vst [vmem:[#allocation2 + $0x1f0] sm:$0xff] %v9084_v0 }
  0x47   : > { %310 = vst [vmem:[#allocation2 + $0xe8] sm:$0xff] %v9084_v0 }
  0x48   : > { %311 = vst [vmem:[#allocation2 + $0x78] sm:$0xff] %v9084_v0 }
  0x49   : > { %312 = vst [vmem:[#allocation2 + $0x70] sm:$0xff] %v9084_v0 }
  0x4a   : > { %313 = vst [vmem:[#allocation2 + $0x90] sm:$0xff] %v9084_v0 }
  0x4b   : > { %314 = vst [vmem:[#allocation2 + $0x1d8] sm:$0xff] %v9084_v0 }
  0x4c   : > { %315 = vst [vmem:[#allocation2 + $0xd0] sm:$0xff] %v9084_v0 }
  0x4d   : > { %316 = vst [vmem:[#allocation2 + $0xb8] sm:$0xff] %v9084_v0 }
  0x4e   : > { %317 = vst [vmem:[#allocation2 + $0x88] sm:$0xff] %v9084_v0 }
  0x4f   : > { %318 = vst [vmem:[#allocation2 + $0xa8] sm:$0xff] %v9084_v0 }
  0x50   : > { %319 = vst [vmem:[#allocation2 + $0x1c8] sm:$0xff] %v9084_v0 }
  0x51   : > { %320 = vst [vmem:[#allocation2 + $0x170] sm:$0xff] %v9084_v0 }
  0x52   : > { %321 = vst [vmem:[#allocation2 + $0x178] sm:$0xff] %v9084_v0 }
  0x53   : > { %322 = vst [vmem:[#allocation2 + $0x68] sm:$0xff] %v9084_v0 }
  0x54   : > { %323 = vst [vmem:[#allocation2 + $0x190] sm:$0xff] %v9084_v0 }
  0x55   : > { %324 = vst [vmem:[#allocation2 + $0x198] sm:$0xff] %v9084_v0 }
  0x56   : > { %325 = vst [vmem:[#allocation2 + $0x38] sm:$0xff] %v9084_v0 }
  0x57   : > { %326 = vst [vmem:[#allocation2 + $0xc0] sm:$0xff] %v9084_v0 }
  0x58   : > { %327 = vst [vmem:[#allocation2 + $0x1c0] sm:$0xff] %v9084_v0  ;;  %347 = sbr.rel (%p6844_p10) target bundleno = 785 (0x311), region = 53 }
  0x59   : > { %328 = vst [vmem:[#allocation2 + $0x158] sm:$0xff] %v9084_v0 }
  0x5a   : > { %329 = vst [vmem:[#allocation2 + $0x10] sm:$0xff] %v9084_v0 }
  0x5b   : > { %330 = vst [vmem:[#allocation2 + $0x58] sm:$0xff] %v9084_v0 }
  0x5c   : > { %331 = vst [vmem:[#allocation2 + $0xa0] sm:$0xff] %v9084_v0 }
  0x5d   : > { %v9220_v1 = vld [vmem:[%s10983_s3 + $0x20] sm:$0xff]  ;;  %v9225_v2 = vld [vmem:[%s10983_s3 + $0x10] sm:$0xff]  ;;  %v9085_v4 = vmov 0   ;;  %v8139_v5 = vld [vmem:[#allocation4 + $0x38] sm:$0xff] }
  0x5e   : > { %v9230_v3 = vld [vmem:[%s10983_s3] sm:$0xff]  ;;  %8888 = vset.pattern.permute.xlu2 %v9085_v4  ;;  %8887 = vset.pattern.permute.xlu1 %v9085_v4  ;;  %v8147_v6 = vld [vmem:[#allocation4 + $0x78] sm:$0xff]  ;;  %v8138_v9 = vld [vmem:[#allocation4 + $0x30] sm:$0xff] }
  0x5f   : > { %v8155_v7 = vld [vmem:[#allocation4 + $0xb8] sm:$0xff]  ;;  %8886 = vset.pattern.permute.xlu0 %v9085_v4  ;;  %2462 = vperm.xlu2 %8888, %v9220_v1   ;;  %v8146_v10 = vld [vmem:[#allocation4 + $0x70] sm:$0xff]  ;;  %v9238_v13 = vld [vmem:[%s10983_s3 + $0x28] sm:$0xff] }
  0x60   : > { %v8163_v8 = vld [vmem:[#allocation4 + $0xf8] sm:$0xff]  ;;  %2452 = vperm.xlu1 %8887, %v9225_v2   ;;  %2442 = vperm.xlu0 %8886, %v9230_v3   ;;  %v8154_v11 = vld [vmem:[#allocation4 + $0xb0] sm:$0xff]  ;;  %v9248_v15 = vld [vmem:[%s10983_s3 + $0x8] sm:$0xff] }
  0x61   : > { %1441 = vmatpush.bf16.msra.mxu0 %v8139_v5  ;;  %1610 = vmatpush.bf16.msra.mxu1 %v8147_v6  ;;  %v8162_v12 = vld [vmem:[#allocation4 + $0xf0] sm:$0xff]  ;;  %v9243_v14 = vld [vmem:[%s10983_s3 + $0x18] sm:$0xff]  ;;  %v8137_v16 = vld [vmem:[#allocation4 + $0x28] sm:$0xff] }
  0x62   : > { %1779 = vmatpush.bf16.msra.mxu2 %v8155_v7  ;;  %1948 = vmatpush.bf16.msra.mxu3 %v8163_v8  ;;  %v8145_v17 = vld [vmem:[#allocation4 + $0x68] sm:$0xff]  ;;  %v8136_v20 = vld [vmem:[#allocation4 + $0x20] sm:$0xff]  ;;  %v9261_v25 = vld [vmem:[%s10983_s3 + $0x38] sm:$0xff] }
  0x63   : > { %v8153_v18 = vld [vmem:[#allocation4 + $0xa8] sm:$0xff]  ;;  %v8144_v21 = vld [vmem:[#allocation4 + $0x60] sm:$0xff]  ;;  %v9266_v26 = vld [vmem:[%s10983_s3 + $0x30] sm:$0xff] }
  0x64   : > { %v8161_v19 = vld [vmem:[#allocation4 + $0xe8] sm:$0xff]  ;;  %v8152_v22 = vld [vmem:[#allocation4 + $0xa0] sm:$0xff]  ;;  %v8135_v27 = vld [vmem:[#allocation4 + $0x18] sm:$0xff] }
  0x65   : > { %1442 = vmatpush.bf16.msra.mxu0 %v8138_v9  ;;  %1611 = vmatpush.bf16.msra.mxu1 %v8146_v10  ;;  %v8160_v23 = vld [vmem:[#allocation4 + $0xe0] sm:$0xff]  ;;  %v8143_v28 = vld [vmem:[#allocation4 + $0x58] sm:$0xff]  ;;  %v8134_v31 = vld [vmem:[#allocation4 + $0x10] sm:$0xff] }
  0x66   : > { %1780 = vmatpush.bf16.msra.mxu2 %v8154_v11  ;;  %1949 = vmatpush.bf16.msra.mxu3 %v8162_v12  ;;  %v9256_v24 = vld [vmem:[%s10983_s3 + $0x40] sm:$0xff]  ;;  %v8151_v29 = vld [vmem:[#allocation4 + $0x98] sm:$0xff]  ;;  %v8142_v32 = vld [vmem:[#allocation4 + $0x50] sm:$0xff] }
  0x67   : > { %2467 = vperm.xlu2 %8888, %v9238_v13   ;;  %v8159_v30 = vld [vmem:[#allocation4 + $0xd8] sm:$0xff]  ;;  %v8150_v33 = vld [vmem:[#allocation4 + $0x90] sm:$0xff]  ;;  %v9284_v37 = vld [vmem:[%s10983_s3 + $0x48] sm:$0xff] }
  0x68   : > { %2457 = vperm.xlu1 %8887, %v9243_v14   ;;  %2447 = vperm.xlu0 %8886, %v9248_v15   ;;  %v8158_v34 = vld [vmem:[#allocation4 + $0xd0] sm:$0xff]  ;;  %v9274_v35 = vld [vmem:[%s10983_s3 + $0x58] sm:$0xff]  ;;  %v8133_v38 = vld [vmem:[#allocation4 + $0x8] sm:$0xff] }
  0x69   : > { %1443 = vmatpush.bf16.msra.mxu0 %v8137_v16  ;;  %1612 = vmatpush.bf16.msra.mxu1 %v8145_v17  ;;  %v9279_v36 = vld [vmem:[%s10983_s3 + $0x50] sm:$0xff]  ;;  %v8141_v39 = vld [vmem:[#allocation4 + $0x48] sm:$0xff]  ;;  %v8132_v42 = vld [vmem:[#allocation4] sm:$0xff] }
  0x6a   : > { %1781 = vmatpush.bf16.msra.mxu2 %v8153_v18  ;;  %1950 = vmatpush.bf16.msra.mxu3 %v8161_v19  ;;  %v8149_v40 = vld [vmem:[#allocation4 + $0x88] sm:$0xff]  ;;  %v8140_v43 = vld [vmem:[#allocation4 + $0x40] sm:$0xff]  ;;  %v8166_v47 = vld [vmem:[#allocation5 + $0xc] sm:$0xf0] }
  0x6b   : > { %v8157_v41 = vld [vmem:[#allocation4 + $0xc8] sm:$0xff]  ;;  %v8148_v44 = vld [vmem:[#allocation4 + $0x80] sm:$0xff]  ;;  %v6849_v49 = vld [vmem:[#allocation5 + $0x10] sm:$0xf0] }
  0x6c   : > { %v8156_v45 = vld [vmem:[#allocation4 + $0xc0] sm:$0xff]  ;;  %v6855_v50 = vld [vmem:[#allocation5 + $0x8] sm:$0xf]  ;;  %v8167_v51 = vld [vmem:[#allocation5 + $0x14] sm:$0xf0] }
  0x6d   : > { %1444 = vmatpush.bf16.msra.mxu0 %v8136_v20  ;;  %1613 = vmatpush.bf16.msra.mxu1 %v8144_v21  ;;  %v6847_v46 = vld [vmem:[#allocation5] sm:$0xf]  ;;  %v8164_v48 = vld [vmem:[#allocation5 + $0x4] sm:$0xf]  ;;  %v8165_v52 = vld [vmem:[#allocation5 + $0xc] sm:$0xf]  ;;  %v6856_v59 = vor.u32 %v8167_v51, %v6855_v50 }
  0x6e   : > { %1782 = vmatpush.bf16.msra.mxu2 %v8152_v22  ;;  %1951 = vmatpush.bf16.msra.mxu3 %v8160_v23  ;;  %v6857_v53 = vld [vmem:[#allocation5 + $0x18] sm:$0xf0]  ;;  %v9292_v54 = vld [vmem:[%s10983_s3 + $0x70] sm:$0xff]  ;;  %v9297_v55 = vld [vmem:[%s10983_s3 + $0x68] sm:$0xff]  ;;  %v6848_v57 = vor.u32 %v8166_v47, %v6847_v46  ;;  %v6852_v58 = vor.u32 %v8164_v48, %v6849_v49 }
  0x6f   : > { %2482 = vperm.xlu2 %8888, %v9256_v24   ;;  %v9302_v56 = vld [vmem:[%s10983_s3 + $0x60] sm:$0xff]  ;;  %v6860_v60 = vor.u32 %v8165_v52, %v6857_v53  ;;  %v9310_v61 = vld [vmem:[%s10983_s3 + $0x88] sm:$0xff]  ;;  %v9320_v63 = vld [vmem:[%s10983_s3 + $0x78] sm:$0xff] }
  0x70   : > { %2477 = vperm.xlu1 %8887, %v9261_v25   ;;  %2472 = vperm.xlu0 %8886, %v9266_v26   ;;  %v9315_v62 = vld [vmem:[%s10983_s3 + $0x80] sm:$0xff]  ;;  %v8170_v4 = vld [vmem:[#allocation5 + $0x2c] sm:$0xf0]  ;;  %v6865_v6 = vld [vmem:[#allocation5 + $0x30] sm:$0xf0] }
  0x71   : > { %1445 = vmatpush.bf16.msra.mxu0 %v8135_v27  ;;  %1614 = vmatpush.bf16.msra.mxu1 %v8143_v28  ;;  %v6863_v0 = vld [vmem:[#allocation5 + $0x20] sm:$0xf]  ;;  %v8168_v5 = vld [vmem:[#allocation5 + $0x24] sm:$0xf]  ;;  %v6871_v7 = vld [vmem:[#allocation5 + $0x28] sm:$0xf] }
  0x72   : > { %1783 = vmatpush.bf16.msra.mxu2 %v8151_v29  ;;  %1952 = vmatpush.bf16.msra.mxu3 %v8159_v30  ;;  %v8171_v8 = vld [vmem:[#allocation5 + $0x34] sm:$0xf0]  ;;  %v8169_v9 = vld [vmem:[#allocation5 + $0x2c] sm:$0xf]  ;;  %v6873_v10 = vld [vmem:[#allocation5 + $0x38] sm:$0xf0]  ;;  %v6864_v17 = vor.u32 %v8170_v4, %v6863_v0  ;;  %v6868_v18 = vor.u32 %v8168_v5, %v6865_v6 }
  0x73   : > { %v9328_v11 = vld [vmem:[%s10983_s3 + $0xa0] sm:$0xff]  ;;  %v9333_v12 = vld [vmem:[%s10983_s3 + $0x98] sm:$0xff]  ;;  %v9338_v16 = vld [vmem:[%s10983_s3 + $0x90] sm:$0xff]  ;;  %v6872_v19 = vor.u32 %v8171_v8, %v6871_v7  ;;  %v6876_v20 = vor.u32 %v8169_v9, %v6873_v10 }
  0x74   : > { %v9346_v21 = vld [vmem:[%s10983_s3 + $0xb8] sm:$0xff]  ;;  %v9351_v22 = vld [vmem:[%s10983_s3 + $0xb0] sm:$0xff]  ;;  %v9356_v23 = vld [vmem:[%s10983_s3 + $0xa8] sm:$0xff] }
  0x75   : > { %1446 = vmatpush.bf16.msra.mxu0 %v8134_v31  ;;  %1615 = vmatpush.bf16.msra.mxu1 %v8142_v32  ;;  %v6879_v27 = vld [vmem:[#allocation5 + $0x40] sm:$0xf]  ;;  %v8174_v28 = vld [vmem:[#allocation5 + $0x4c] sm:$0xf0]  ;;  %v8172_v29 = vld [vmem:[#allocation5 + $0x44] sm:$0xf] }
  0x76   : > { %1784 = vmatpush.bf16.msra.mxu2 %v8150_v33  ;;  %1953 = vmatpush.bf16.msra.mxu3 %v8158_v34  ;;  %v6881_v30 = vld [vmem:[#allocation5 + $0x50] sm:$0xf0]  ;;  %v6887_v31 = vld [vmem:[#allocation5 + $0x48] sm:$0xf]  ;;  %v8175_v32 = vld [vmem:[#allocation5 + $0x54] sm:$0xf0] }
  0x77   : > { %2497 = vperm.xlu2 %8888, %v9274_v35   ;;  %v8173_v33 = vld [vmem:[#allocation5 + $0x4c] sm:$0xf]  ;;  %v6889_v34 = vld [vmem:[#allocation5 + $0x58] sm:$0xf0]  ;;  %v9385_v46 = vld [vmem:[%s10983_s3 + $0xe0] sm:$0xff] }
  0x78   : > { %2492 = vperm.xlu1 %8887, %v9279_v36   ;;  %2487 = vperm.xlu0 %8886, %v9284_v37   ;;  %10991 = vst [vmem:[#allocation17_spill] sm:$0xff] %v9385_v46  ;;  %v9390_v47 = vld [vmem:[%s10983_s3 + $0xd8] sm:$0xff]  ;;  %v6895_v48 = vld [vmem:[#allocation5 + $0x60] sm:$0xf]  ;;  %v8178_v49 = vld [vmem:[#allocation5 + $0x6c] sm:$0xf0] }
  0x79   : > { %1447 = vmatpush.bf16.msra.mxu0 %v8133_v38  ;;  %1616 = vmatpush.bf16.msra.mxu1 %v8141_v39  ;;  %v9364_v38 = vld [vmem:[%s10983_s3 + $0xd0] sm:$0xff]  ;;  %v9369_v39 = vld [vmem:[%s10983_s3 + $0xc8] sm:$0xff]  ;;  %v8176_v50 = vld [vmem:[#allocation5 + $0x64] sm:$0xf]  ;;  %v6896_v4 = vor.u32 %v8178_v49, %v6895_v48 }
  0x7a   : > { %1785 = vmatpush.bf16.msra.mxu2 %v8149_v40  ;;  %1954 = vmatpush.bf16.msra.mxu3 %v8157_v41  ;;  %v9374_v40 = vld [vmem:[%s10983_s3 + $0xc0] sm:$0xff]  ;;  %v6880_v41 = vor.u32 %v8174_v28, %v6879_v27  ;;  %v6897_v51 = vld [vmem:[#allocation5 + $0x70] sm:$0xf0]  ;;  %v6903_v52 = vld [vmem:[#allocation5 + $0x68] sm:$0xf] }
  0x7b   : > { %v8179_v53 = vld [vmem:[#allocation5 + $0x74] sm:$0xf0]  ;;  %v9405_v0 = vld [vmem:[%s10983_s3 + $0xf0] sm:$0xff]  ;;  %v6900_v5 = vor.u32 %v8176_v50, %v6897_v51  ;;  %v2281_v10 = vld [vmem:[%s10983_s3 + $0x108] sm:$0xff] }
  0x7c   : > { %10993 = vst [vmem:[#allocation19_spill] sm:$0xff] %v9405_v0  ;;  %v6904_v6 = vor.u32 %v8179_v53, %v6903_v52  ;;  %v2283_v8 = vld [vmem:[%s10983_s3 + $0x118] sm:$0xff]  ;;  %v2282_v9 = vld [vmem:[%s10983_s3 + $0x110] sm:$0xff]  ;;  %v6919_v28 = vld [vmem:[#allocation5 + $0x88] sm:$0xf] }
  0x7d   : > { %1448 = vmatpush.bf16.msra.mxu0 %v8132_v42  ;;  %1617 = vmatpush.bf16.msra.mxu1 %v8140_v43  ;;  %v6884_v42 = vor.u32 %v8172_v29, %v6881_v30  ;;  %v6888_v43 = vor.u32 %v8175_v32, %v6887_v31  ;;  %v6913_v27 = vld [vmem:[#allocation5 + $0x90] sm:$0xf0]  ;;  %v8183_v29 = vld [vmem:[#allocation5 + $0x94] sm:$0xf0]  ;;  %v8181_v30 = vld [vmem:[#allocation5 + $0x8c] sm:$0xf] }
  0x7e   : > { %1786 = vmatpush.bf16.msra.mxu2 %v8148_v44  ;;  %1955 = vmatpush.bf16.msra.mxu3 %v8156_v45  ;;  %v6892_v44 = vor.u32 %v8173_v33, %v6889_v34  ;;  %v2277_v45 = vld [vmem:[%s10983_s3 + $0xe8] sm:$0xff]  ;;  %v6921_v31 = vld [vmem:[#allocation5 + $0x98] sm:$0xf0]  ;;  %v2286_v32 = vld [vmem:[%s10983_s3 + $0x130] sm:$0xff] }
  0x7f   : > { %2512 = vperm.xlu2 %8888, %v9292_v54   ;;  %v2285_v33 = vld [vmem:[%s10983_s3 + $0x128] sm:$0xff]  ;;  %v2284_v34 = vld [vmem:[%s10983_s3 + $0x120] sm:$0xff]  ;;  %v2287_v50 = vld [vmem:[%s10983_s3 + $0x138] sm:$0xff] }
  0x80   : > { %2507 = vperm.xlu1 %8887, %v9297_v55   ;;  %2502 = vperm.xlu0 %8886, %v9302_v56   ;;  %v2289_v48 = vld [vmem:[%s10983_s3 + $0x148] sm:$0xff]  ;;  %v2288_v49 = vld [vmem:[%s10983_s3 + $0x140] sm:$0xff]  ;;  %v8186_v53 = vld [vmem:[#allocation5 + $0xac] sm:$0xf0] }
  0x81   : > { %1449 = vmatmul.bf16.vlgmr.msra.gmra.mxu0 %v6848_v57  ;;  %1618 = vmatmul.bf16.vlgmr.msra.gmra.mxu1 %v6852_v58  ;;  %v8177_v57 = vld [vmem:[#allocation5 + $0x6c] sm:$0xf]  ;;  %v6905_v58 = vld [vmem:[#allocation5 + $0x78] sm:$0xf0]  ;;  %v6927_v52 = vld [vmem:[#allocation5 + $0xa0] sm:$0xf] }
  0x82   : > { %1787 = vmatmul.bf16.vlgmr.msra.gmra.mxu2 %v6856_v59  ;;  %1956 = vmatmul.bf16.vlgmr.msra.gmra.mxu3 %v6860_v60  ;;  %v2280_v59 = vld [vmem:[%s10983_s3 + $0x100] sm:$0xff]  ;;  %v9400_v60 = vld [vmem:[%s10983_s3 + $0xf8] sm:$0xff]  ;;  %v6908_v7 = vor.u32 %v8177_v57, %v6905_v58  ;;  %v6929_v58 = vld [vmem:[#allocation5 + $0xb0] sm:$0xf0] }
  0x83   : > { %10992 = vst [vmem:[#allocation18_spill] sm:$0xff] %v9400_v60  ;;  %v8184_v57 = vld [vmem:[#allocation5 + $0xa4] sm:$0xf] }
  0x87   : > { %2527 = vperm.xlu2 %8888, %v9310_v61  }
  0x88   : > { %2522 = vperm.xlu1 %8887, %v9315_v62   ;;  %2517 = vperm.xlu0 %8886, %v9320_v63  }
  0x8f   : > { %2542 = vperm.xlu2 %8888, %v9328_v11  }
  0x90   : > { %2537 = vperm.xlu1 %8887, %v9333_v12   ;;  %2532 = vperm.xlu0 %8886, %v9338_v16  }
  0x91   : > { %1454 = vmatmul.bf16.gmra.mxu0 %v6864_v17  ;;  %1623 = vmatmul.bf16.gmra.mxu1 %v6868_v18  ;;  %v6911_v18 = vld [vmem:[#allocation5 + $0x80] sm:$0xf] }
  0x92   : > { %1792 = vmatmul.bf16.gmra.mxu2 %v6872_v19  ;;  %1961 = vmatmul.bf16.gmra.mxu3 %v6876_v20  ;;  %v8182_v19 = vld [vmem:[#allocation5 + $0x8c] sm:$0xf0]  ;;  %v8180_v20 = vld [vmem:[#allocation5 + $0x84] sm:$0xf] }
  0x97   : > { %2557 = vperm.xlu2 %8888, %v9346_v21  }
  0x98   : > { %2552 = vperm.xlu1 %8887, %v9351_v22   ;;  %2547 = vperm.xlu0 %8886, %v9356_v23  }
  0x9f   : > { %2572 = vperm.xlu2 %8888, %v9364_v38  }
  0xa0   : > { %2567 = vperm.xlu1 %8887, %v9369_v39   ;;  %2562 = vperm.xlu0 %8886, %v9374_v40  }
  0xa1   : > { %1459 = vmatmul.bf16.gmra.mxu0 %v6880_v41  ;;  %1628 = vmatmul.bf16.gmra.mxu1 %v6884_v42  ;;  %v6912_v41 = vor.u32 %v8182_v19, %v6911_v18  ;;  %v6916_v42 = vor.u32 %v8180_v20, %v6913_v27  ;;  %v6932_v18 = vor.u32 %v8184_v57, %v6929_v58  ;;  %v2298_v57 = vld [vmem:[%s10983_s3 + $0x190] sm:$0xff]  ;;  %v2297_v58 = vld [vmem:[%s10983_s3 + $0x188] sm:$0xff] }
  0xa2   : > { %1797 = vmatmul.bf16.gmra.mxu2 %v6888_v43  ;;  %1966 = vmatmul.bf16.gmra.mxu3 %v6892_v44  ;;  %v6920_v43 = vor.u32 %v8183_v29, %v6919_v28  ;;  %v6924_v44 = vor.u32 %v8181_v30, %v6921_v31  ;;  %v2295_v30 = vld [vmem:[%s10983_s3 + $0x178] sm:$0xff]  ;;  %v2294_v31 = vld [vmem:[%s10983_s3 + $0x170] sm:$0xff] }
  0xa7   : > { %2587 = vperm.xlu2 %8888, %v2277_v45  }
  0xa8   : > { %2582 = vperm.xlu1 %8887, %v9385_v46   ;;  %2577 = vperm.xlu0 %8886, %v9390_v47  }
  0xaf   : > { %2602 = vperm.xlu2 %8888, %v2280_v59   ;;  %v6935_v59 = vld [vmem:[#allocation5 + $0xa8] sm:$0xf] }
  0xb0   : > { %2597 = vperm.xlu1 %8887, %v9400_v60   ;;  %2592 = vperm.xlu0 %8886, %v9405_v0  }
  0xb1   : > { %1464 = vmatmul.bf16.gmra.mxu0 %v6896_v4  ;;  %1633 = vmatmul.bf16.gmra.mxu1 %v6900_v5  ;;  %v8187_v4 = vld [vmem:[#allocation5 + $0xb4] sm:$0xf0]  ;;  %v8185_v5 = vld [vmem:[#allocation5 + $0xac] sm:$0xf] }
  0xb2   : > { %1802 = vmatmul.bf16.gmra.mxu2 %v6904_v6  ;;  %1971 = vmatmul.bf16.gmra.mxu3 %v6908_v7  ;;  %v6937_v6 = vld [vmem:[#allocation5 + $0xb8] sm:$0xf0]  ;;  %v2292_v7 = vld [vmem:[%s10983_s3 + $0x160] sm:$0xff]  ;;  %v6936_v19 = vor.u32 %v8187_v4, %v6935_v59 }
  0xb3   : > { %v6940_v20 = vor.u32 %v8185_v5, %v6937_v6  ;;  %v2296_v59 = vld [vmem:[%s10983_s3 + $0x180] sm:$0xff] }
  0xb7   : > { %2617 = vperm.xlu2 %8888, %v2283_v8   ;;  %v2291_v8 = vld [vmem:[%s10983_s3 + $0x158] sm:$0xff] }
  0xb8   : > { %2612 = vperm.xlu1 %8887, %v2282_v9   ;;  %2607 = vperm.xlu0 %8886, %v2281_v10   ;;  %v2290_v9 = vld [vmem:[%s10983_s3 + $0x150] sm:$0xff]  ;;  %v6928_v10 = vor.u32 %v8186_v53, %v6927_v52  ;;  %v8189_v52 = vld [vmem:[#allocation5 + $0xcc] sm:$0xf]  ;;  %v6953_v53 = vld [vmem:[#allocation5 + $0xd8] sm:$0xf0] }
  0xb9   : > { %v9418_v17 = vpop.permute.xlu2 %2462 }
  0xbf   : > { %2632 = vperm.xlu2 %8888, %v2286_v32   ;;  %v2293_v32 = vld [vmem:[%s10983_s3 + $0x168] sm:$0xff] }
  0xc0   : > { %2627 = vperm.xlu1 %8887, %v2285_v33   ;;  %2622 = vperm.xlu0 %8886, %v2284_v34   ;;  %v6943_v34 = vld [vmem:[#allocation5 + $0xc0] sm:$0xf] }
  0xc1   : > { %1469 = vmatmul.bf16.gmra.mxu0 %v6912_v41  ;;  %1638 = vmatmul.bf16.gmra.mxu1 %v6916_v42  ;;  %v9429_v45 = vpop.permute.xlu2 %2467  ;;  %v8190_v41 = vld [vmem:[#allocation5 + $0xcc] sm:$0xf0] }
  0xc2   : > { %1807 = vmatmul.bf16.gmra.mxu2 %v6920_v43  ;;  %1976 = vmatmul.bf16.gmra.mxu3 %v6924_v44  ;;  %v8188_v44 = vld [vmem:[#allocation5 + $0xc4] sm:$0xf]  ;;  %v6944_v4 = vor.u32 %v8190_v41, %v6943_v34 }
  0xc7   : > { %2647 = vperm.xlu2 %8888, %v2289_v48   ;;  %v6945_v48 = vld [vmem:[#allocation5 + $0xd0] sm:$0xf0] }
  0xc8   : > { %2642 = vperm.xlu1 %8887, %v2288_v49   ;;  %2637 = vperm.xlu0 %8886, %v2287_v50   ;;  %v6951_v49 = vld [vmem:[#allocation5 + $0xc8] sm:$0xf]  ;;  %v8191_v50 = vld [vmem:[#allocation5 + $0xd4] sm:$0xf0]  ;;  %v6948_v5 = vor.u32 %v8188_v44, %v6945_v48  ;;  %v8192_v44 = vld [vmem:[#allocation5 + $0xe4] sm:$0xf] }
  0xc9   : > { %v9440_v51 = vpop.permute.xlu2 %2482  ;;  %v6952_v6 = vor.u32 %v8191_v50, %v6951_v49  ;;  %v6961_v48 = vld [vmem:[#allocation5 + $0xf0] sm:$0xf0]  ;;  %v6967_v49 = vld [vmem:[#allocation5 + $0xe8] sm:$0xf]  ;;  %v8195_v50 = vld [vmem:[#allocation5 + $0xf4] sm:$0xf0] }
  0xcf   : > { %2662 = vperm.xlu2 %8888, %v2292_v7   ;;  %v6956_v7 = vor.u32 %v8189_v52, %v6953_v53  ;;  %v8193_v52 = vld [vmem:[#allocation5 + $0xec] sm:$0xf]  ;;  %v6969_v53 = vld [vmem:[#allocation5 + $0xf8] sm:$0xf0] }
  0xd0   : > { %2657 = vperm.xlu1 %8887, %v2291_v8   ;;  %2652 = vperm.xlu0 %8886, %v2290_v9  }
  0xd1   : > { %1474 = vmatmul.bf16.gmra.mxu0 %v6928_v10  ;;  %1643 = vmatmul.bf16.gmra.mxu1 %v6932_v18  ;;  %v9451_v27 = vpop.permute.xlu2 %2497  ;;  %v2301_v18 = vld [vmem:[%s10983_s3 + $0x1a8] sm:$0xff] }
  0xd2   : > { %10994 = vst [vmem:[#allocation20_spill] sm:$0xff] %v9451_v27  ;;  %1812 = vmatmul.bf16.gmra.mxu2 %v6936_v19  ;;  %1981 = vmatmul.bf16.gmra.mxu3 %v6940_v20  ;;  %v9453_v28 = vpop.permute.xlu1 %2452  ;;  %v9455_v29 = vpop.permute.xlu0 %2442  ;;  %v2300_v19 = vld [vmem:[%s10983_s3 + $0x1a0] sm:$0xff]  ;;  %v2299_v20 = vld [vmem:[%s10983_s3 + $0x198] sm:$0xff] }
  0xd7   : > { %2677 = vperm.xlu2 %8888, %v2295_v30  }
  0xd8   : > { %2672 = vperm.xlu1 %8887, %v2294_v31   ;;  %2667 = vperm.xlu0 %8886, %v2293_v32   ;;  %v6959_v31 = vld [vmem:[#allocation5 + $0xe0] sm:$0xf]  ;;  %v8194_v32 = vld [vmem:[#allocation5 + $0xec] sm:$0xf0] }
  0xd9   : > { %v9466_v33 = vpop.permute.xlu2 %2512 }
  0xda   : > { %10995 = vst [vmem:[#allocation21_spill] sm:$0xff] %v9466_v33  ;;  %v9468_v42 = vpop.permute.xlu1 %2457  ;;  %v9470_v43 = vpop.permute.xlu0 %2447 }
  0xdf   : > { %2692 = vperm.xlu2 %8888, %v2298_v57   ;;  %v2304_v57 = vld [vmem:[%s10983_s3 + $0x1c0] sm:$0xff] }
  0xe0   : > { %2687 = vperm.xlu1 %8887, %v2297_v58   ;;  %2682 = vperm.xlu0 %8886, %v2296_v59   ;;  %v2303_v58 = vld [vmem:[%s10983_s3 + $0x1b8] sm:$0xff]  ;;  %v2302_v59 = vld [vmem:[%s10983_s3 + $0x1b0] sm:$0xff] }
  0xe1   : > { %1479 = vmatmul.bf16.gmra.mxu0 %v6944_v4  ;;  %1648 = vmatmul.bf16.gmra.mxu1 %v6948_v5  ;;  %v9481_v8 = vpop.permute.xlu2 %2527  ;;  %v6960_v4 = vor.u32 %v8194_v32, %v6959_v31  ;;  %v6964_v5 = vor.u32 %v8192_v44, %v6961_v48  ;;  %v2307_v31 = vld [vmem:[%s10983_s3 + $0x1d8] sm:$0xff]  ;;  %v2306_v32 = vld [vmem:[%s10983_s3 + $0x1d0] sm:$0xff]  ;;  %v2305_v44 = vld [vmem:[%s10983_s3 + $0x1c8] sm:$0xff] }
  0xe2   : > { %10996 = vst [vmem:[#allocation22_spill] sm:$0xff] %v9481_v8  ;;  %1817 = vmatmul.bf16.gmra.mxu2 %v6952_v6  ;;  %1986 = vmatmul.bf16.gmra.mxu3 %v6956_v7  ;;  %v9483_v9 = vpop.permute.xlu1 %2477  ;;  %v9485_v10 = vpop.permute.xlu0 %2472  ;;  %v6968_v6 = vor.u32 %v8195_v50, %v6967_v49  ;;  %v6972_v7 = vor.u32 %v8193_v52, %v6969_v53  ;;  %v6975_v49 = vld [vmem:[#allocation5 + $0x100] sm:$0xf]  ;;  %v8198_v50 = vld [vmem:[#allocation5 + $0x10c] sm:$0xf0] }
  0xe7   : > { %2707 = vperm.xlu2 %8888, %v2301_v18  }
  0xe8   : > { %2702 = vperm.xlu1 %8887, %v2300_v19   ;;  %2697 = vperm.xlu0 %8886, %v2299_v20  }
  0xe9   : > { %v9496_v30 = vpop.permute.xlu2 %2542 }
  0xea   : > { %10997 = vst [vmem:[#allocation23_spill] sm:$0xff] %v9496_v30  ;;  %v9498_v34 = vpop.permute.xlu1 %2492  ;;  %v9500_v41 = vpop.permute.xlu0 %2487 }
  0xeb   : > { %10998 = vst [vmem:[#allocation24_spill] sm:$0xff] %v9498_v34  ;;  %v418_v34 = vld [vmem:[#allocation2 + $0x1b0] sm:$0xff] }
  0xef   : > { %2722 = vperm.xlu2 %8888, %v2304_v57   ;;  %v8196_v57 = vld [vmem:[#allocation5 + $0x104] sm:$0xf] }
  0xf0   : > { %2717 = vperm.xlu1 %8887, %v2303_v58   ;;  %2712 = vperm.xlu0 %8886, %v2302_v59   ;;  %v6977_v58 = vld [vmem:[#allocation5 + $0x110] sm:$0xf0]  ;;  %v6983_v59 = vld [vmem:[#allocation5 + $0x108] sm:$0xf] }
  0xf1   : > { %1484 = vmatmul.bf16.gmra.mxu0 %v6960_v4  ;;  %1653 = vmatmul.bf16.gmra.mxu1 %v6964_v5  ;;  %v9511_v18 = vpop.permute.xlu2 %2557  ;;  %v8199_v4 = vld [vmem:[#allocation5 + $0x114] sm:$0xf0]  ;;  %v8197_v5 = vld [vmem:[#allocation5 + $0x10c] sm:$0xf] }
  0xf2   : > { %10999 = vst [vmem:[#allocation25_spill] sm:$0xff] %v9511_v18  ;;  %1822 = vmatmul.bf16.gmra.mxu2 %v6968_v6  ;;  %1991 = vmatmul.bf16.gmra.mxu3 %v6972_v7  ;;  %v9513_v19 = vpop.permute.xlu1 %2507  ;;  %v9515_v20 = vpop.permute.xlu0 %2502  ;;  %v6985_v6 = vld [vmem:[#allocation5 + $0x118] sm:$0xf0]  ;;  %v2310_v7 = vld [vmem:[%s10983_s3 + $0x1f0] sm:$0xff]  ;;  %v6984_v8 = vor.u32 %v8199_v4, %v6983_v59 }
  0xf3   : > { %11000 = vst [vmem:[#allocation26_spill] sm:$0xff] %v9513_v19 }
  0xf4   : > { %11001 = vst [vmem:[#allocation27_spill] sm:$0xff] %v9515_v20 }
  0xf7   : > { %2737 = vperm.xlu2 %8888, %v2307_v31   ;;  %v2309_v31 = vld [vmem:[%s10983_s3 + $0x1e8] sm:$0xff] }
  0xf8   : > { %2732 = vperm.xlu1 %8887, %v2306_v32   ;;  %2727 = vperm.xlu0 %8886, %v2305_v44   ;;  %v2308_v32 = vld [vmem:[%s10983_s3 + $0x1e0] sm:$0xff]  ;;  %v6976_v44 = vor.u32 %v8198_v50, %v6975_v49 }
  0xf9   : > { %v9526_v48 = vpop.permute.xlu2 %2572 }
  0xfa   : > { %11002 = vst [vmem:[#allocation28_spill] sm:$0xff] %v9526_v48  ;;  %v9528_v52 = vpop.permute.xlu1 %2522  ;;  %v9530_v53 = vpop.permute.xlu0 %2517  ;;  %v6980_v48 = vor.u32 %v8196_v57, %v6977_v58  ;;  %v2311_v57 = vld [vmem:[%s10983_s3 + $0x1f8] sm:$0xff] }
  0xfb   : > { %11003 = vst [vmem:[#allocation29_spill] sm:$0xff] %v9528_v52  ;;  %v6988_v52 = vor.u32 %v8197_v5, %v6985_v6  ;;  %v417_v5 = vld [vmem:[#allocation2 + $0xb0] sm:$0xff] }
  0xfc   : > { %11004 = vst [vmem:[#allocation30_spill] sm:$0xff] %v9530_v53 }
  0xfe   : > { %v1450_v18 = vpop.f32.mrf.mxu0  ;;  %v1619_v30 = vpop.f32.mrf.mxu1 }
  0xff   : > { %2752 = vperm.xlu2 %8888, %v2310_v7   ;;  %v1620_v33 = vadd.f32 %v1619_v30, %v1450_v18  ;;  %v6991_v30 = vld [vmem:[#allocation5 + $0x120] sm:$0xf]  ;;  %v8202_v18 = vld [vmem:[#allocation5 + $0x12c] sm:$0xf0] }
 0x100   : > { %2747 = vperm.xlu1 %8887, %v2309_v31   ;;  %2742 = vperm.xlu0 %8886, %v2308_v32   ;;  %v8200_v32 = vld [vmem:[#allocation5 + $0x124] sm:$0xf] }
 0x101   : > { %1489 = vmatmul.bf16.gmra.mxu0 %v6976_v44  ;;  %1658 = vmatmul.bf16.gmra.mxu1 %v6980_v48  ;;  %v9541_v53 = vpop.permute.xlu2 %2587  ;;  %v9086_v48 = vmov 1   ;;  %v6993_v44 = vld [vmem:[#allocation5 + $0x130] sm:$0xf0] }
 0x102   : > { %11005 = vst [vmem:[#allocation31_spill] sm:$0xff] %v9541_v53  ;;  %1827 = vmatmul.bf16.gmra.mxu2 %v6984_v8  ;;  %1996 = vmatmul.bf16.gmra.mxu3 %v6988_v52  ;;  %v9543_v19 = vpop.permute.xlu1 %2537  ;;  %v9545_v20 = vpop.permute.xlu0 %2532 }
 0x103   : > { %11006 = vst [vmem:[#allocation32_spill] sm:$0xff] %v9543_v19  ;;  %v6992_v19 = vor.u32 %v8202_v18, %v6991_v30 }
 0x104   : > { %11007 = vst [vmem:[#allocation33_spill] sm:$0xff] %v9545_v20  ;;  %v6996_v20 = vor.u32 %v8200_v32, %v6993_v44  ;;  %v8204_v32 = vld [vmem:[#allocation5 + $0x144] sm:$0xf] }
 0x105   : > { %v1788_v49 = vpop.f32.mrf.mxu2  ;;  %v1957_v50 = vpop.f32.mrf.mxu3 }
 0x106   : > { %v1789_v58 = vadd.f32 %v1788_v49, %v1620_v33  ;;  %v1452_v59 = vpop.f32.mrf.mxu0  ;;  %v1621_v4 = vpop.f32.mrf.mxu1  ;;  %v2312_v33 = vld [vmem:[%s10982_s2] sm:$0xff]  ;;  %v6999_v49 = vld [vmem:[#allocation5 + $0x128] sm:$0xf] }
 0x107   : > { %8890 = vset.pattern.permute.xlu2 %v9086_v48 }
 0x108   : > { %v1958_v6 = vadd.f32 %v1957_v50, %v1789_v58  ;;  %8889 = vset.pattern.permute.xlu1 %v9086_v48  ;;  %2757 = vperm.xlu0 %8886, %v2311_v57   ;;  %v8203_v50 = vld [vmem:[#allocation5 + $0x134] sm:$0xf0]  ;;  %v7001_v57 = vld [vmem:[#allocation5 + $0x138] sm:$0xf0] }
 0x109   : > { %3086 = vperm.xlu2 %8890, %v9248_v15   ;;  %3082 = vperm.xlu1 %8889, %v9230_v3   ;;  %v9552_v8 = vpop.permute.xlu2 %2602  ;;  %v8201_v15 = vld [vmem:[#allocation5 + $0x12c] sm:$0xf]  ;;  %v1622_v3 = vadd.f32 %v1621_v4, %v1452_v59 }
 0x10a   : > { %11008 = vst [vmem:[#allocation34_spill] sm:$0xff] %v9552_v8  ;;  %v2117_v52 = vadd.f32 %v1958_v6, %v417_v5  ;;  %v9557_v7 = vpop.permute.xlu1 %2552  ;;  %v9559_v31 = vpop.permute.xlu0 %2547  ;;  %v7004_v60 = vor.u32 %v8201_v15, %v7001_v57  ;;  %v2314_v57 = vld [vmem:[%s10982_s2 + $0x10] sm:$0xff] }
 0x10b   : > { %11009 = vst [vmem:[#allocation35_spill] sm:$0xff] %v9557_v7  ;;  %v7000_v7 = vor.u32 %v8203_v50, %v6999_v49  ;;  %v7009_v49 = vld [vmem:[#allocation5 + $0x150] sm:$0xf0]  ;;  %v7015_v50 = vld [vmem:[#allocation5 + $0x148] sm:$0xf] }
 0x10c   : > { %11010 = vst [vmem:[#allocation36_spill] sm:$0xff] %v9559_v31  ;;  %v2760_v58 = vmul.f32 %v9455_v29, %v2117_v52 }
 0x10d   : > { %2181 = vst [vmem:[#allocation2 + $0xb0] sm:$0xff] %v2117_v52  ;;  %v1790_v8 = vpop.f32.mrf.mxu2  ;;  %v1959_v53 = vpop.f32.mrf.mxu3 }
 0x10e   : > { %v1791_v27 = vadd.f32 %v1790_v8, %v1622_v3  ;;  %v1455_v5 = vpop.f32.mrf.mxu0  ;;  %v1624_v6 = vpop.f32.mrf.mxu1  ;;  %v2824_v31 = vadd.f32 %v2760_v58, %v2312_v33  ;;  %v8207_v3 = vld [vmem:[#allocation5 + $0x154] sm:$0xf0]  ;;  %v8205_v58 = vld [vmem:[#allocation5 + $0x14c] sm:$0xf] }
 0x10f   : > { %v1625_v29 = vadd.f32 %v1624_v6, %v1455_v5  ;;  %v7017_v5 = vld [vmem:[#allocation5 + $0x158] sm:$0xf0] }
 0x110   : > { %v1960_v0 = vadd.f32 %v1959_v53, %v1791_v27  ;;  %8891 = vset.pattern.permute.xlu0 %v9086_v48  ;;  %v2888_v59 = vmax.f32 %v2824_v31, 0.0  ;;  %v2313_v27 = vld [vmem:[%s10982_s2 + $0x8] sm:$0xff]  ;;  %v8206_v31 = vld [vmem:[#allocation5 + $0x14c] sm:$0xf0] }
 0x111   : > { %1494 = vmatmul.bf16.gmra.mxu0 %v6992_v19  ;;  %1663 = vmatmul.bf16.gmra.mxu1 %v6996_v20  ;;  %v9562_v46 = vpop.permute.xlu2 %2617 }
 0x112   : > { %v2118_v4 = vadd.f32 %v1960_v0, %v418_v34  ;;  %1832 = vmatmul.bf16.gmra.mxu2 %v7000_v7  ;;  %2001 = vmatmul.bf16.gmra.mxu3 %v7004_v60  ;;  %v9564_v30 = vpop.permute.xlu1 %2567  ;;  %v9566_v8 = vpop.permute.xlu0 %2562  ;;  %v9573_v19 = vmin.f32 %v2888_v59, 1.0  ;;  %v7007_v7 = vld [vmem:[#allocation5 + $0x140] sm:$0xf] }
 0x113   : > { %3098 = vperm.xlu2 %8890, %v9220_v1   ;;  %3094 = vperm.xlu1 %8889, %v9243_v14   ;;  %v419_v14 = vld [vmem:[#allocation2 + $0xd8] sm:$0xff] }
 0x114   : > { %2182 = vst [vmem:[#allocation2 + $0x1b0] sm:$0xff] %v2118_v4  ;;  %3090 = vperm.xlu0 %8891, %v9225_v2   ;;  %v2761_v0 = vmul.f32 %v9470_v43, %v2118_v4 }
 0x115   : > { %v1793_v60 = vpop.f32.mrf.mxu2  ;;  %v1962_v34 = vpop.f32.mrf.mxu3  ;;  %3016 = vst [vmem:[#allocation8] sm:$0xff] %v9573_v19 }
 0x116   : > { %v1794_v20 = vadd.f32 %v1793_v60, %v1625_v29  ;;  %v1457_v53 = vpop.f32.mrf.mxu0  ;;  %v1626_v1 = vpop.f32.mrf.mxu1  ;;  %v2825_v48 = vadd.f32 %v2761_v0, %v2313_v27  ;;  %v7008_v27 = vor.u32 %v8206_v31, %v7007_v7  ;;  %v7012_v0 = vor.u32 %v8204_v32, %v7009_v49  ;;  %v2315_v31 = vld [vmem:[%s10982_s2 + $0x18] sm:$0xff] }
 0x117   : > { %v1627_v6 = vadd.f32 %v1626_v1, %v1457_v53 }
 0x118   : > { %v1963_v18 = vadd.f32 %v1962_v34, %v1794_v20  ;;  %v2889_v33 = vmax.f32 %v2825_v48, 0.0  ;;  %v7016_v20 = vor.u32 %v8207_v3, %v7015_v50 }
 0x119   : > { %v9578_v52 = vpop.permute.xlu2 %2632 }
 0x11a   : > { %v2119_v44 = vadd.f32 %v1963_v18, %v419_v14  ;;  %v9580_v2 = vpop.permute.xlu1 %2582  ;;  %v9582_v43 = vpop.permute.xlu0 %2577  ;;  %v9584_v15 = vmin.f32 %v2889_v33, 1.0  ;;  %v420_v14 = vld [vmem:[#allocation2 + $0x18] sm:$0xff] }
 0x11b   : > { %3106 = vperm.xlu2 %8890, %v9266_v26   ;;  %3102 = vperm.xlu1 %8889, %v9238_v13   ;;  %v7020_v13 = vor.u32 %v8205_v58, %v7017_v5 }
 0x11c   : > { %2183 = vst [vmem:[#allocation2 + $0xd8] sm:$0xff] %v2119_v44  ;;  %3110 = vperm.xlu0 %8891, %v9261_v25   ;;  %v2762_v59 = vmul.f32 %v9453_v28, %v2119_v44 }
 0x11d   : > { %v1795_v4 = vpop.f32.mrf.mxu2  ;;  %v1964_v29 = vpop.f32.mrf.mxu3  ;;  %3017 = vst [vmem:[#allocation8 + $0x8] sm:$0xff] %v9584_v15 }
 0x11e   : > { %v1796_v60 = vadd.f32 %v1795_v4, %v1627_v6  ;;  %v1460_v34 = vpop.f32.mrf.mxu0  ;;  %v1629_v26 = vpop.f32.mrf.mxu1  ;;  %v2826_v48 = vadd.f32 %v2762_v59, %v2314_v57  ;;  %v7023_v4 = vld [vmem:[#allocation5 + $0x160] sm:$0xf] }
 0x11f   : > { %v1630_v1 = vadd.f32 %v1629_v26, %v1460_v34  ;;  %v7031_v34 = vld [vmem:[#allocation5 + $0x168] sm:$0xf]  ;;  %v2316_v26 = vld [vmem:[%s10982_s2 + $0x20] sm:$0xff] }
 0x120   : > { %v1965_v18 = vadd.f32 %v1964_v29, %v1796_v60  ;;  %v2890_v25 = vmax.f32 %v2826_v48, 0.0  ;;  %v8210_v29 = vld [vmem:[#allocation5 + $0x16c] sm:$0xf0]  ;;  %v7025_v60 = vld [vmem:[#allocation5 + $0x170] sm:$0xf0] }
 0x121   : > { %1499 = vmatmul.bf16.gmra.mxu0 %v7008_v27  ;;  %1668 = vmatmul.bf16.gmra.mxu1 %v7012_v0  ;;  %v9594_v53 = vpop.permute.xlu2 %2647  ;;  %v8208_v27 = vld [vmem:[#allocation5 + $0x164] sm:$0xf]  ;;  %v8209_v48 = vld [vmem:[#allocation5 + $0x16c] sm:$0xf] }
 0x122   : > { %v2120_v28 = vadd.f32 %v1965_v18, %v420_v14  ;;  %1837 = vmatmul.bf16.gmra.mxu2 %v7016_v20  ;;  %2006 = vmatmul.bf16.gmra.mxu3 %v7020_v13  ;;  %v9596_v33 = vpop.permute.xlu1 %2597  ;;  %v9598_v7 = vpop.permute.xlu0 %2592  ;;  %v9605_v32 = vmin.f32 %v2890_v25, 1.0  ;;  %v8211_v13 = vld [vmem:[#allocation5 + $0x174] sm:$0xf0]  ;;  %v7033_v14 = vld [vmem:[#allocation5 + $0x178] sm:$0xf0] }
 0x123   : > { %3118 = vperm.xlu2 %8890, %v9284_v37   ;;  %3114 = vperm.xlu1 %8889, %v9256_v24   ;;  %v421_v24 = vld [vmem:[#allocation2 + $0x50] sm:$0xff] }
 0x124   : > { %2184 = vst [vmem:[#allocation2 + $0x18] sm:$0xff] %v2120_v28  ;;  %3122 = vperm.xlu0 %8891, %v9279_v36   ;;  %v2763_v44 = vmul.f32 %v9468_v42, %v2120_v28 }
 0x125   : > { %v1798_v49 = vpop.f32.mrf.mxu2  ;;  %v1967_v50 = vpop.f32.mrf.mxu3  ;;  %3018 = vst [vmem:[#allocation8 + $0x10] sm:$0xff] %v9605_v32 }
 0x126   : > { %v1799_v57 = vadd.f32 %v1798_v49, %v1630_v1  ;;  %v1462_v3 = vpop.f32.mrf.mxu0  ;;  %v1631_v37 = vpop.f32.mrf.mxu1  ;;  %v2827_v58 = vadd.f32 %v2763_v44, %v2315_v31  ;;  %v7024_v31 = vor.u32 %v8210_v29, %v7023_v4  ;;  %v7028_v44 = vor.u32 %v8208_v27, %v7025_v60  ;;  %v2317_v27 = vld [vmem:[%s10982_s2 + $0x28] sm:$0xff] }
 0x127   : > { %v1632_v18 = vadd.f32 %v1631_v37, %v1462_v3 }
 0x128   : > { %v1968_v5 = vadd.f32 %v1967_v50, %v1799_v57  ;;  %v2891_v6 = vmax.f32 %v2827_v58, 0.0  ;;  %v7032_v57 = vor.u32 %v8211_v13, %v7031_v34 }
 0x129   : > { %v9610_v59 = vpop.permute.xlu2 %2662 }
 0x12a   : > { %v2121_v0 = vadd.f32 %v1968_v5, %v421_v24  ;;  %v9612_v36 = vpop.permute.xlu1 %2612  ;;  %v9614_v42 = vpop.permute.xlu0 %2607  ;;  %v9619_v20 = vmin.f32 %v2891_v6, 1.0  ;;  %v422_v24 = vld [vmem:[#allocation2 + $0x168] sm:$0xff] }
 0x12b   : > { %3130 = vperm.xlu2 %8890, %v9302_v56   ;;  %3126 = vperm.xlu1 %8889, %v9274_v35   ;;  %v7036_v35 = vor.u32 %v8209_v48, %v7033_v14 }
 0x12c   : > { %2185 = vst [vmem:[#allocation2 + $0x50] sm:$0xff] %v2121_v0  ;;  %3134 = vperm.xlu0 %8891, %v9297_v55   ;;  %v2764_v25 = vmul.f32 %v9418_v17, %v2121_v0 }
 0x12d   : > { %v1800_v28 = vpop.f32.mrf.mxu2  ;;  %v1969_v1 = vpop.f32.mrf.mxu3  ;;  %3019 = vst [vmem:[#allocation8 + $0x18] sm:$0xff] %v9619_v20 }
 0x12e   : > { %v1801_v49 = vadd.f32 %v1800_v28, %v1632_v18  ;;  %v1465_v50 = vpop.f32.mrf.mxu0  ;;  %v1634_v56 = vpop.f32.mrf.mxu1  ;;  %v2828_v58 = vadd.f32 %v2764_v25, %v2316_v26  ;;  %v7039_v28 = vld [vmem:[#allocation5 + $0x180] sm:$0xf] }
 0x12f   : > { %v1635_v37 = vadd.f32 %v1634_v56, %v1465_v50  ;;  %v7047_v50 = vld [vmem:[#allocation5 + $0x188] sm:$0xf]  ;;  %v2318_v56 = vld [vmem:[%s10982_s2 + $0x30] sm:$0xff] }
 0x130   : > { %v1970_v5 = vadd.f32 %v1969_v1, %v1801_v49  ;;  %v2892_v55 = vmax.f32 %v2828_v58, 0.0  ;;  %v8214_v1 = vld [vmem:[#allocation5 + $0x18c] sm:$0xf0]  ;;  %v7041_v49 = vld [vmem:[#allocation5 + $0x190] sm:$0xf0] }
 0x131   : > { %1504 = vmatmul.bf16.gmra.mxu0 %v7024_v31  ;;  %1673 = vmatmul.bf16.gmra.mxu1 %v7028_v44  ;;  %v9626_v3 = vpop.permute.xlu2 %2677  ;;  %v8212_v31 = vld [vmem:[#allocation5 + $0x184] sm:$0xf]  ;;  %v8213_v58 = vld [vmem:[#allocation5 + $0x18c] sm:$0xf] }
 0x132   : > { %v2122_v17 = vadd.f32 %v1970_v5, %v422_v24  ;;  %1842 = vmatmul.bf16.gmra.mxu2 %v7032_v57  ;;  %2011 = vmatmul.bf16.gmra.mxu3 %v7036_v35  ;;  %v9628_v6 = vpop.permute.xlu1 %2627  ;;  %v9630_v4 = vpop.permute.xlu0 %2622  ;;  %v9634_v29 = vmin.f32 %v2892_v55, 1.0  ;;  %v8215_v35 = vld [vmem:[#allocation5 + $0x194] sm:$0xf0]  ;;  %v7049_v24 = vld [vmem:[#allocation5 + $0x198] sm:$0xf0] }
 0x133   : > { %3138 = vperm.xlu1 %8889, %v9292_v54   ;;  %3142 = vperm.xlu2 %8890, %v9320_v63   ;;  %v423_v63 = vld [vmem:[#allocation2 + $0x130] sm:$0xff] }
 0x134   : > { %2186 = vst [vmem:[#allocation2 + $0x168] sm:$0xff] %v2122_v17  ;;  %3146 = vperm.xlu0 %8891, %v9315_v62   ;;  %v2765_v0 = vmul.f32 %v9429_v45, %v2122_v17 }
 0x135   : > { %v1803_v60 = vpop.f32.mrf.mxu2  ;;  %v1972_v34 = vpop.f32.mrf.mxu3  ;;  %3020 = vst [vmem:[#allocation8 + $0x20] sm:$0xff] %v9634_v29 }
 0x136   : > { %v1804_v26 = vadd.f32 %v1803_v60, %v1635_v37  ;;  %v1467_v13 = vpop.f32.mrf.mxu0  ;;  %v1636_v54 = vpop.f32.mrf.mxu1  ;;  %v2829_v48 = vadd.f32 %v2765_v0, %v2317_v27  ;;  %v7040_v27 = vor.u32 %v8214_v1, %v7039_v28  ;;  %v7044_v0 = vor.u32 %v8212_v31, %v7041_v49  ;;  %v2319_v1 = vld [vmem:[%s10982_s2 + $0x38] sm:$0xff] }
 0x137   : > { %v1637_v5 = vadd.f32 %v1636_v54, %v1467_v13 }
 0x138   : > { %v1973_v14 = vadd.f32 %v1972_v34, %v1804_v26  ;;  %v2893_v18 = vmax.f32 %v2829_v48, 0.0  ;;  %v7048_v26 = vor.u32 %v8215_v35, %v7047_v50  ;;  %v7052_v48 = vor.u32 %v8213_v58, %v7049_v24  ;;  %v425_v58 = vld [vmem:[#allocation2 + $0x180] sm:$0xff] }
 0x139   : > { %v9642_v25 = vpop.permute.xlu2 %2692 }
 0x13a   : > { %11011 = vst [vmem:[#allocation37_spill] sm:$0xff] %v9642_v25  ;;  %v2123_v44 = vadd.f32 %v1973_v14, %v423_v63  ;;  %v9644_v62 = vpop.permute.xlu1 %2642  ;;  %v9646_v45 = vpop.permute.xlu0 %2637  ;;  %v9651_v57 = vmin.f32 %v2893_v18, 1.0  ;;  %v424_v14 = vld [vmem:[#allocation2 + $0x48] sm:$0xff] }
 0x13b   : > { %3150 = vperm.xlu1 %8889, %v9310_v61   ;;  %3154 = vperm.xlu2 %8890, %v9338_v16  }
 0x13c   : > { %2187 = vst [vmem:[#allocation2 + $0x130] sm:$0xff] %v2123_v44  ;;  %3158 = vperm.xlu0 %8891, %v9333_v12   ;;  %v2766_v55 = vmul.f32 %v9485_v10, %v2123_v44 }
 0x13d   : > { %v1805_v17 = vpop.f32.mrf.mxu2  ;;  %v1974_v37 = vpop.f32.mrf.mxu3  ;;  %3021 = vst [vmem:[#allocation8 + $0x28] sm:$0xff] %v9651_v57 }
 0x13e   : > { %v1806_v60 = vadd.f32 %v1805_v17, %v1637_v5  ;;  %v1470_v34 = vpop.f32.mrf.mxu0  ;;  %v1639_v61 = vpop.f32.mrf.mxu1  ;;  %v2830_v63 = vadd.f32 %v2766_v55, %v2318_v56  ;;  %v7055_v5 = vld [vmem:[#allocation5 + $0x1a0] sm:$0xf]  ;;  %v8218_v17 = vld [vmem:[#allocation5 + $0x1ac] sm:$0xf0] }
 0x13f   : > { %v1640_v54 = vadd.f32 %v1639_v61, %v1470_v34  ;;  %v8219_v34 = vld [vmem:[#allocation5 + $0x1b4] sm:$0xf0] }
 0x140   : > { %v1975_v16 = vadd.f32 %v1974_v37, %v1806_v60  ;;  %v2894_v13 = vmax.f32 %v2830_v63, 0.0  ;;  %v8216_v37 = vld [vmem:[#allocation5 + $0x1a4] sm:$0xf] }
 0x141   : > { %1509 = vmatmul.bf16.gmra.mxu0 %v7040_v27  ;;  %1678 = vmatmul.bf16.gmra.mxu1 %v7044_v0  ;;  %v9669_v31 = vpop.permute.xlu2 %2707  ;;  %v7057_v27 = vld [vmem:[#allocation5 + $0x1b0] sm:$0xf0]  ;;  %v2320_v63 = vld [vmem:[%s10982_s2 + $0x40] sm:$0xff] }
 0x142   : > { %v2124_v12 = vadd.f32 %v1975_v16, %v424_v14  ;;  %1847 = vmatmul.bf16.gmra.mxu2 %v7048_v26  ;;  %2016 = vmatmul.bf16.gmra.mxu3 %v7052_v48  ;;  %v9658_v10 = vpop.permute.xlu1 %2657  ;;  %v9660_v18 = vpop.permute.xlu0 %2652  ;;  %v9664_v28 = vmin.f32 %v2894_v13, 1.0  ;;  %11012 = vst [vmem:[#allocation38_spill] sm:$0xff] %v9669_v31  ;;  %v8217_v26 = vld [vmem:[#allocation5 + $0x1ac] sm:$0xf]  ;;  %v7065_v48 = vld [vmem:[#allocation5 + $0x1b8] sm:$0xf0] }
 0x143   : > { %3162 = vperm.xlu1 %8889, %v9328_v11   ;;  %3166 = vperm.xlu2 %8890, %v9356_v23   ;;  %v428_v31 = vld [vmem:[#allocation2 + $0x98] sm:$0xff] }
 0x144   : > { %2188 = vst [vmem:[#allocation2 + $0x48] sm:$0xff] %v2124_v12  ;;  %3170 = vperm.xlu0 %8891, %v9351_v22   ;;  %v2767_v44 = vmul.f32 %v9483_v9, %v2124_v12  ;;  %v7063_v9 = vld [vmem:[#allocation5 + $0x1a8] sm:$0xf] }
 0x145   : > { %v1808_v49 = vpop.f32.mrf.mxu2  ;;  %v1977_v50 = vpop.f32.mrf.mxu3  ;;  %3022 = vst [vmem:[#allocation8 + $0x30] sm:$0xff] %v9664_v28 }
 0x146   : > { %v1809_v11 = vadd.f32 %v1808_v49, %v1640_v54  ;;  %v1472_v56 = vpop.f32.mrf.mxu0  ;;  %v1641_v23 = vpop.f32.mrf.mxu1  ;;  %v2831_v35 = vadd.f32 %v2767_v44, %v2319_v1  ;;  %v7056_v54 = vor.u32 %v8218_v17, %v7055_v5  ;;  %v7060_v1 = vor.u32 %v8216_v37, %v7057_v27  ;;  %v11015_v37 = vld [vmem:[#allocation17_spill] sm:$0xff] }
 0x147   : > { %v1642_v14 = vadd.f32 %v1641_v23, %v1472_v56 }
 0x148   : > { %v1978_v24 = vadd.f32 %v1977_v50, %v1809_v11  ;;  %v2895_v55 = vmax.f32 %v2831_v35, 0.0  ;;  %v7068_v50 = vor.u32 %v8217_v26, %v7065_v48 }
 0x149   : > { %v9688_v35 = vpop.permute.xlu2 %2722 }
 0x14a   : > { %v2125_v0 = vadd.f32 %v1978_v24, %v425_v58  ;;  %v9674_v60 = vpop.permute.xlu1 %2672  ;;  %v9676_v22 = vpop.permute.xlu0 %2667  ;;  %v9678_v61 = vmin.f32 %v2895_v55, 1.0  ;;  %11013 = vst [vmem:[#allocation39_spill] sm:$0xff] %v9688_v35  ;;  %v426_v58 = vld [vmem:[#allocation2 + $0x110] sm:$0xff]  ;;  %v2321_v55 = vld [vmem:[%s10982_s2 + $0x48] sm:$0xff] }
 0x14b   : > { %3174 = vperm.xlu1 %8889, %v9346_v21   ;;  %3178 = vperm.xlu2 %8890, %v9374_v40   ;;  %v7064_v40 = vor.u32 %v8219_v34, %v7063_v9 }
 0x14c   : > { %2189 = vst [vmem:[#allocation2 + $0x180] sm:$0xff] %v2125_v0  ;;  %3182 = vperm.xlu0 %8891, %v9369_v39   ;;  %v2768_v16 = vmul.f32 %v9440_v51, %v2125_v0 }
 0x14d   : > { %v1810_v13 = vpop.f32.mrf.mxu2  ;;  %v1979_v12 = vpop.f32.mrf.mxu3  ;;  %3023 = vst [vmem:[#allocation8 + $0x38] sm:$0xff] %v9678_v61 }
 0x14e   : > { %v1811_v44 = vadd.f32 %v1810_v13, %v1642_v14  ;;  %v1475_v21 = vpop.f32.mrf.mxu0  ;;  %v1644_v49 = vpop.f32.mrf.mxu1  ;;  %v2832_v11 = vadd.f32 %v2768_v16, %v2320_v63  ;;  %v7071_v16 = vld [vmem:[#allocation5 + $0x1c0] sm:$0xf] }
 0x14f   : > { %v1645_v51 = vadd.f32 %v1644_v49, %v1475_v21  ;;  %v7079_v49 = vld [vmem:[#allocation5 + $0x1c8] sm:$0xf] }
 0x150   : > { %v1980_v56 = vadd.f32 %v1979_v12, %v1811_v44  ;;  %v2896_v5 = vmax.f32 %v2832_v11, 0.0  ;;  %v8222_v12 = vld [vmem:[#allocation5 + $0x1cc] sm:$0xf0]  ;;  %v8221_v11 = vld [vmem:[#allocation5 + $0x1cc] sm:$0xf] }
 0x151   : > { %1514 = vmatmul.bf16.gmra.mxu0 %v7056_v54  ;;  %1683 = vmatmul.bf16.gmra.mxu1 %v7060_v1  ;;  %v7073_v54 = vld [vmem:[#allocation5 + $0x1d0] sm:$0xf0] }
 0x152   : > { %v2126_v39 = vadd.f32 %v1980_v56, %v426_v58  ;;  %1852 = vmatmul.bf16.gmra.mxu2 %v7064_v40  ;;  %2021 = vmatmul.bf16.gmra.mxu3 %v7068_v50  ;;  %v9690_v23 = vpop.permute.xlu1 %2687  ;;  %v9692_v24 = vpop.permute.xlu0 %2682  ;;  %v9701_v27 = vmin.f32 %v2896_v5, 1.0  ;;  %v8223_v40 = vld [vmem:[#allocation5 + $0x1d4] sm:$0xf0]  ;;  %v7081_v58 = vld [vmem:[#allocation5 + $0x1d8] sm:$0xf0]  ;;  %v8892_v56 = vld [vmem:[%s10983_s3 + $0xe8] sm:$0xff] }
 0x153   : > { %11014 = vst [vmem:[#allocation40_spill] sm:$0xff] %v9690_v23  ;;  %3186 = vperm.xlu1 %8889, %v9364_v38   ;;  %3190 = vperm.xlu2 %8890, %v9390_v47   ;;  %v427_v38 = vld [vmem:[#allocation2 + $0x118] sm:$0xff]  ;;  %v9704_v47 = vpop.permute.xlu2 %2737 }
 0x154   : > { %2190 = vst [vmem:[#allocation2 + $0x110] sm:$0xff] %v2126_v39  ;;  %v2769_v17 = vmul.f32 %v9500_v41, %v2126_v39  ;;  %3194 = vperm.xlu0 %8891, %v11015_v37   ;;  %v8220_v41 = vld [vmem:[#allocation5 + $0x1c4] sm:$0xf]  ;;  %v2322_v39 = vld [vmem:[%s10982_s2 + $0x50] sm:$0xff]  ;;  %v11021_v37 = vld [vmem:[#allocation18_spill] sm:$0xff] }
 0x155   : > { %v1813_v0 = vpop.f32.mrf.mxu2  ;;  %v1982_v9 = vpop.f32.mrf.mxu3  ;;  %3024 = vst [vmem:[#allocation8 + $0x40] sm:$0xff] %v9701_v27 }
 0x156   : > { %v1814_v34 = vadd.f32 %v1813_v0, %v1645_v51  ;;  %v1477_v26 = vpop.f32.mrf.mxu0  ;;  %v1646_v48 = vpop.f32.mrf.mxu1  ;;  %v2833_v63 = vadd.f32 %v2769_v17, %v2321_v55  ;;  %11016 = vst [vmem:[#allocation17_spill] sm:$0xff] %v9704_v47  ;;  %v11019_v51 = vld [vmem:[#allocation19_spill] sm:$0xff]  ;;  %v11020_v55 = vld [vmem:[#allocation24_spill] sm:$0xff]  ;;  %v7084_v47 = vor.u32 %v8221_v11, %v7081_v58 }
 0x157   : > { %v1647_v5 = vadd.f32 %v1646_v48, %v1477_v26 }
 0x158   : > { %v1983_v14 = vadd.f32 %v1982_v9, %v1814_v34  ;;  %v2897_v13 = vmax.f32 %v2833_v63, 0.0  ;;  %v7072_v34 = vor.u32 %v8222_v12, %v7071_v16  ;;  %v7076_v63 = vor.u32 %v8220_v41, %v7073_v54  ;;  %v2323_v41 = vld [vmem:[%s10982_s2 + $0x58] sm:$0xff] }
 0x159   : > { %v11025_v54 = vld [vmem:[#allocation20_spill] sm:$0xff] }
 0x15a   : > { %v2127_v1 = vadd.f32 %v1983_v14, %v427_v38  ;;  %v9706_v44 = vpop.permute.xlu1 %2702  ;;  %v9708_v21 = vpop.permute.xlu0 %2697  ;;  %v9710_v50 = vmin.f32 %v2897_v13, 1.0 }
 0x15b   : > { %11017 = vst [vmem:[#allocation41_spill] sm:$0xff] %v9706_v44  ;;  %3198 = vperm.xlu1 %8889, %v8892_v56   ;;  %3202 = vperm.xlu2 %8890, %v11019_v51   ;;  %v7080_v56 = vor.u32 %v8223_v40, %v7079_v49  ;;  %v8895_v49 = vld [vmem:[%s10983_s3 + $0x110] sm:$0xff] }
 0x15c   : > { %11018 = vst [vmem:[#allocation42_spill] sm:$0xff] %v9708_v21  ;;  %v2770_v17 = vmul.f32 %v11020_v55, %v2127_v1  ;;  %3206 = vperm.xlu0 %8891, %v11021_v37  }
 0x15d   : > { %2191 = vst [vmem:[#allocation2 + $0x118] sm:$0xff] %v2127_v1  ;;  %v1815_v0 = vpop.f32.mrf.mxu2  ;;  %v1984_v9 = vpop.f32.mrf.mxu3 }
 0x15e   : > { %3025 = vst [vmem:[#allocation8 + $0x48] sm:$0xff] %v9710_v50  ;;  %v1816_v38 = vadd.f32 %v1815_v0, %v1647_v5  ;;  %v1480_v14 = vpop.f32.mrf.mxu0  ;;  %v1649_v13 = vpop.f32.mrf.mxu1  ;;  %v2834_v35 = vadd.f32 %v2770_v17, %v2322_v39  ;;  %v429_v17 = vld [vmem:[#allocation2 + $0x120] sm:$0xff] }
 0x15f   : > { %v1650_v48 = vadd.f32 %v1649_v13, %v1480_v14 }
 0x160   : > { %v1985_v51 = vadd.f32 %v1984_v9, %v1816_v38  ;;  %v2898_v44 = vmax.f32 %v2834_v35, 0.0  ;;  %v8893_v35 = vld [vmem:[%s10983_s3 + $0x100] sm:$0xff] }
 0x161   : > { %1519 = vmatmul.bf16.gmra.mxu0 %v7072_v34  ;;  %1688 = vmatmul.bf16.gmra.mxu1 %v7076_v63  ;;  %v7087_v9 = vld [vmem:[#allocation5 + $0x1e0] sm:$0xf]  ;;  %v8226_v34 = vld [vmem:[#allocation5 + $0x1ec] sm:$0xf0]  ;;  %v8224_v63 = vld [vmem:[#allocation5 + $0x1e4] sm:$0xf] }
 0x162   : > { %v2128_v26 = vadd.f32 %v1985_v51, %v428_v31  ;;  %1857 = vmatmul.bf16.gmra.mxu2 %v7080_v56  ;;  %2026 = vmatmul.bf16.gmra.mxu3 %v7084_v47  ;;  %v9722_v1 = vpop.permute.xlu1 %2717  ;;  %v9724_v16 = vpop.permute.xlu0 %2712  ;;  %v9726_v12 = vmin.f32 %v2898_v44, 1.0  ;;  %v8894_v31 = vld [vmem:[%s10983_s3 + $0x108] sm:$0xff]  ;;  %v7089_v56 = vld [vmem:[#allocation5 + $0x1f0] sm:$0xf0] }
 0x163   : > { %11022 = vst [vmem:[#allocation19_spill] sm:$0xff] %v9722_v1  ;;  %3210 = vperm.xlu1 %8889, %v8893_v35   ;;  %3214 = vperm.xlu2 %8890, %v8894_v31   ;;  %v9737_v47 = vpop.permute.xlu2 %2752  ;;  %v7095_v51 = vld [vmem:[#allocation5 + $0x1e8] sm:$0xf]  ;;  %v8225_v35 = vld [vmem:[#allocation5 + $0x1ec] sm:$0xf] }
 0x164   : > { %11023 = vst [vmem:[#allocation24_spill] sm:$0xff] %v9724_v16  ;;  %v2771_v44 = vmul.f32 %v11025_v54, %v2128_v26  ;;  %3218 = vperm.xlu0 %8891, %v8895_v49   ;;  %v7097_v31 = vld [vmem:[#allocation5 + $0x1f8] sm:$0xf0] }
 0x165   : > { %11024 = vst [vmem:[#allocation18_spill] sm:$0xff] %v9737_v47  ;;  %v1818_v40 = vpop.f32.mrf.mxu2  ;;  %v1987_v11 = vpop.f32.mrf.mxu3  ;;  %v8896_v54 = vld [vmem:[%s10983_s3 + $0x118] sm:$0xff] }
 0x166   : > { %2192 = vst [vmem:[#allocation2 + $0x98] sm:$0xff] %v2128_v26  ;;  %v1819_v58 = vadd.f32 %v1818_v40, %v1650_v48  ;;  %v1482_v39 = vpop.f32.mrf.mxu0  ;;  %v1651_v5 = vpop.f32.mrf.mxu1  ;;  %v2835_v55 = vadd.f32 %v2771_v44, %v2323_v41  ;;  %v2324_v26 = vld [vmem:[%s10982_s2 + $0x60] sm:$0xff]  ;;  %v8227_v41 = vld [vmem:[#allocation5 + $0x1f4] sm:$0xf0]  ;;  %v11028_v40 = vld [vmem:[#allocation27_spill] sm:$0xff] }
 0x167   : > { %3026 = vst [vmem:[#allocation8 + $0x50] sm:$0xff] %v9726_v12  ;;  %v8897_v44 = vld [vmem:[%s10983_s3 + $0x120] sm:$0xff]  ;;  %v1652_v49 = vadd.f32 %v1651_v5, %v1482_v39  ;;  %v430_v39 = vld [vmem:[#allocation2 + $0x150] sm:$0xff] }
 0x168   : > { %v1988_v37 = vadd.f32 %v1987_v11, %v1819_v58  ;;  %v2899_v0 = vmax.f32 %v2835_v55, 0.0  ;;  %v8898_v58 = vld [vmem:[%s10983_s3 + $0x128] sm:$0xff] }
 0x16a   : > { %v2129_v38 = vadd.f32 %v1988_v37, %v429_v17  ;;  %v9744_v14 = vpop.permute.xlu1 %2732  ;;  %v9746_v13 = vpop.permute.xlu0 %2727  ;;  %v9751_v48 = vmin.f32 %v2899_v0, 1.0  ;;  %v7088_v17 = vor.u32 %v8226_v34, %v7087_v9  ;;  %v7092_v37 = vor.u32 %v8224_v63, %v7089_v56  ;;  %v2325_v56 = vld [vmem:[%s10982_s2 + $0x68] sm:$0xff] }
 0x16b   : > { %11026 = vst [vmem:[#allocation20_spill] sm:$0xff] %v9744_v14  ;;  %3222 = vperm.xlu1 %8889, %v8896_v54   ;;  %3226 = vperm.xlu2 %8890, %v8897_v44   ;;  %v7096_v14 = vor.u32 %v8227_v41, %v7095_v51  ;;  %v3087_v1 = vpop.permute.xlu2 %3086  ;;  %v8899_v51 = vld [vmem:[%s10983_s3 + $0x130] sm:$0xff] }
 0x16c   : > { %11027 = vst [vmem:[#allocation43_spill] sm:$0xff] %v9746_v13  ;;  %v2772_v11 = vmul.f32 %v11028_v40, %v2129_v38  ;;  %3230 = vperm.xlu0 %8891, %v8898_v58   ;;  %v7100_v13 = vor.u32 %v8225_v35, %v7097_v31 }
 0x16d   : > { %2193 = vst [vmem:[#allocation2 + $0x120] sm:$0xff] %v2129_v38  ;;  %v1820_v55 = vpop.f32.mrf.mxu2  ;;  %v1989_v54 = vpop.f32.mrf.mxu3 }
 0x16e   : > { %3027 = vst [vmem:[#allocation8 + $0x58] sm:$0xff] %v9751_v48  ;;  %v1821_v0 = vadd.f32 %v1820_v55, %v1652_v49  ;;  %v1485_v47 = vpop.f32.mrf.mxu0  ;;  %v2836_v44 = vadd.f32 %v2772_v11, %v2324_v26  ;;  %v1654_v5 = vpop.f32.mrf.mxu1  ;;  %v8901_v26 = vld [vmem:[%s10983_s3 + $0x140] sm:$0xff]  ;;  %v431_v55 = vld [vmem:[#allocation2 + $0x108] sm:$0xff] }
 0x16f   : > { %v1655_v58 = vadd.f32 %v1654_v5, %v1485_v47  ;;  %v8900_v47 = vld [vmem:[%s10983_s3 + $0x138] sm:$0xff]  ;;  %v7105_v5 = vld [vmem:[#allocation5 + $0x210] sm:$0xf0] }
 0x170   : > { %v1990_v38 = vadd.f32 %v1989_v54, %v1821_v0  ;;  %v2900_v40 = vmax.f32 %v2836_v44, 0.0  ;;  %v7103_v0 = vld [vmem:[#allocation5 + $0x200] sm:$0xf] }
 0x171   : > { %1524 = vmatmul.bf16.gmra.mxu0 %v7088_v17  ;;  %1693 = vmatmul.bf16.gmra.mxu1 %v7092_v37 }
 0x172   : > { %v2130_v16 = vadd.f32 %v1990_v38, %v430_v39  ;;  %1862 = vmatmul.bf16.gmra.mxu2 %v7096_v14  ;;  %2031 = vmatmul.bf16.gmra.mxu3 %v7100_v13  ;;  %v9764_v9 = vpop.permute.xlu1 %2747  ;;  %v9766_v34 = vpop.permute.xlu0 %2742  ;;  %v9768_v63 = vmin.f32 %v2900_v40, 1.0  ;;  %v11031_v14 = vld [vmem:[#allocation26_spill] sm:$0xff]  ;;  %v8228_v39 = vld [vmem:[#allocation5 + $0x204] sm:$0xf] }
 0x173   : > { %11029 = vst [vmem:[#allocation27_spill] sm:$0xff] %v9764_v9  ;;  %3234 = vperm.xlu1 %8889, %v8899_v51   ;;  %3238 = vperm.xlu2 %8890, %v8900_v47   ;;  %v9784_v44 = vpop.permute.xlu2 %3098  ;;  %v7111_v40 = vld [vmem:[#allocation5 + $0x208] sm:$0xf]  ;;  %v8231_v51 = vld [vmem:[#allocation5 + $0x214] sm:$0xf0]  ;;  %v7108_v9 = vor.u32 %v8228_v39, %v7105_v5 }
 0x174   : > { %11030 = vst [vmem:[#allocation44_spill] sm:$0xff] %v9766_v34  ;;  %v2773_v13 = vmul.f32 %v11031_v14, %v2130_v16  ;;  %3242 = vperm.xlu0 %8891, %v8901_v26   ;;  %v8229_v26 = vld [vmem:[#allocation5 + $0x20c] sm:$0xf]  ;;  %v7112_v34 = vor.u32 %v8231_v51, %v7111_v40  ;;  %v2327_v39 = vld [vmem:[%s10982_s2 + $0x78] sm:$0xff]  ;;  %v8905_v40 = vld [vmem:[%s10983_s3 + $0x160] sm:$0xff] }
 0x175   : > { %2194 = vst [vmem:[#allocation2 + $0x150] sm:$0xff] %v2130_v16  ;;  %v1823_v41 = vpop.f32.mrf.mxu2  ;;  %v1992_v31 = vpop.f32.mrf.mxu3  ;;  %v8230_v16 = vld [vmem:[#allocation5 + $0x20c] sm:$0xf0] }
 0x176   : > { %3028 = vst [vmem:[#allocation8 + $0x60] sm:$0xff] %v9768_v63  ;;  %v1824_v35 = vadd.f32 %v1823_v41, %v1655_v58  ;;  %v1487_v49 = vpop.f32.mrf.mxu0  ;;  %v2837_v11 = vadd.f32 %v2773_v13, %v2325_v56  ;;  %v1656_v17 = vpop.f32.mrf.mxu1  ;;  %v3338_v58 = vmul.f32 %v3087_v1, %v9584_v15  ;;  %v7113_v56 = vld [vmem:[#allocation5 + $0x218] sm:$0xf0]  ;;  %v2326_v13 = vld [vmem:[%s10982_s2 + $0x70] sm:$0xff]  ;;  %v8902_v41 = vld [vmem:[%s10983_s3 + $0x148] sm:$0xff] }
 0x178   : > { %v1993_v37 = vadd.f32 %v1992_v31, %v1824_v35  ;;  %v2901_v54 = vmax.f32 %v2837_v11, 0.0  ;;  %v8903_v35 = vld [vmem:[%s10983_s3 + $0x150] sm:$0xff]  ;;  %v1657_v31 = vadd.f32 %v1656_v17, %v1487_v49  ;;  %v11033_v11 = vld [vmem:[#allocation21_spill] sm:$0xff] }
 0x17a   : > { %v2131_v38 = vadd.f32 %v1993_v37, %v431_v55  ;;  %v9786_v47 = vmin.f32 %v2901_v54, 1.0  ;;  %v9799_v1 = vpop.permute.xlu0 %2757  ;;  %v8904_v37 = vld [vmem:[%s10983_s3 + $0x158] sm:$0xff] }
 0x17b   : > { %v3083_v14 = vpop.permute.xlu1 %3082  ;;  %3246 = vperm.xlu1 %8889, %v8902_v41   ;;  %3250 = vperm.xlu2 %8890, %v8903_v35   ;;  %11032 = vst [vmem:[#allocation26_spill] sm:$0xff] %v9799_v1  ;;  %v7104_v41 = vor.u32 %v8230_v16, %v7103_v0  ;;  %v432_v1 = vld [vmem:[#allocation2 + $0x60] sm:$0xff]  ;;  %v3107_v0 = vpop.permute.xlu2 %3106 }
 0x17c   : > { %2195 = vst [vmem:[#allocation2 + $0x108] sm:$0xff] %v2131_v38  ;;  %v3337_v15 = vmul.f32 %v3083_v14, %v9573_v19  ;;  %v2774_v55 = vmul.f32 %v11033_v11, %v2131_v38  ;;  %3254 = vperm.xlu0 %8891, %v8904_v37   ;;  %v7116_v19 = vor.u32 %v8229_v26, %v7113_v56 }
 0x17d   : > { %v1825_v54 = vpop.f32.mrf.mxu2  ;;  %3029 = vst [vmem:[#allocation8 + $0x68] sm:$0xff] %v9786_v47  ;;  %v1994_v49 = vpop.f32.mrf.mxu3 }
 0x17e   : > { %v8455_v35 = vpack.c.bf16 %v3338_v58, %v3337_v15  ;;  %v1826_v21 = vadd.f32 %v1825_v54, %v1657_v31  ;;  %v1490_v17 = vpop.f32.mrf.mxu0  ;;  %v2838_v14 = vadd.f32 %v2774_v55, %v2326_v13  ;;  %v1659_v25 = vpop.f32.mrf.mxu1  ;;  %v433_v54 = vld [vmem:[#allocation2 + $0xe0] sm:$0xff] }
 0x17f   : > { %v1660_v16 = vadd.f32 %v1659_v25, %v1490_v17  ;;  %v8907_v25 = vld [vmem:[%s10983_s3 + $0x170] sm:$0xff] }
 0x180   : > { %8456 = vst [vmem:[#allocation3 + $0x68] sm:$0xff] %v8455_v35   ;;  %v1995_v38 = vadd.f32 %v1994_v49, %v1826_v21  ;;  %v2902_v11 = vmax.f32 %v2838_v14, 0.0  ;;  %v8906_v21 = vld [vmem:[%s10983_s3 + $0x168] sm:$0xff]  ;;  %v7119_v35 = vld [vmem:[#allocation5 + $0x220] sm:$0xf] }
 0x181   : > { %1529 = vmatmul.bf16.gmra.mxu0 %v7104_v41  ;;  %1698 = vmatmul.bf16.gmra.mxu1 %v7108_v9  ;;  %v11034_v9 = vld [vmem:[#allocation30_spill] sm:$0xff]  ;;  %v8234_v14 = vld [vmem:[#allocation5 + $0x22c] sm:$0xf0] }
 0x182   : > { %v2132_v37 = vadd.f32 %v1995_v38, %v432_v1  ;;  %1867 = vmatmul.bf16.gmra.mxu2 %v7112_v34  ;;  %2036 = vmatmul.bf16.gmra.mxu3 %v7116_v19  ;;  %v9809_v5 = vmin.f32 %v2902_v11, 1.0  ;;  %v8232_v38 = vld [vmem:[#allocation5 + $0x224] sm:$0xf]  ;;  %v7121_v11 = vld [vmem:[#allocation5 + $0x230] sm:$0xf0] }
 0x183   : > { %3258 = vperm.xlu1 %8889, %v8905_v40   ;;  %3262 = vperm.xlu2 %8890, %v8906_v21   ;;  %v8235_v40 = vld [vmem:[#allocation5 + $0x234] sm:$0xf0]  ;;  %v8233_v21 = vld [vmem:[#allocation5 + $0x22c] sm:$0xf] }
 0x184   : > { %2196 = vst [vmem:[#allocation2 + $0x60] sm:$0xff] %v2132_v37  ;;  %v2775_v34 = vmul.f32 %v11034_v9, %v2132_v37  ;;  %3266 = vperm.xlu0 %8891, %v8907_v25   ;;  %v7127_v37 = vld [vmem:[#allocation5 + $0x228] sm:$0xf]  ;;  %v8909_v9 = vld [vmem:[%s10983_s3 + $0x180] sm:$0xff] }
 0x185   : > { %v3095_v51 = vpop.permute.xlu1 %3094  ;;  %3030 = vst [vmem:[#allocation8 + $0x70] sm:$0xff] %v9809_v5  ;;  %v1828_v56 = vpop.f32.mrf.mxu2  ;;  %v8910_v25 = vld [vmem:[%s10983_s3 + $0x188] sm:$0xff] }
 0x186   : > { %v3340_v58 = vmul.f32 %v3095_v51, %v9619_v20  ;;  %v3091_v26 = vpop.permute.xlu0 %3090  ;;  %v2839_v13 = vadd.f32 %v2775_v34, %v2327_v39  ;;  %v1829_v15 = vadd.f32 %v1828_v56, %v1660_v16  ;;  %v1997_v1 = vpop.f32.mrf.mxu3  ;;  %v8908_v16 = vld [vmem:[%s10983_s3 + $0x178] sm:$0xff]  ;;  %v2328_v34 = vld [vmem:[%s10982_s2 + $0x80] sm:$0xff]  ;;  %v7120_v56 = vor.u32 %v8234_v14, %v7119_v35 }
 0x187   : > { %v3339_v31 = vmul.f32 %v3091_v26, %v9605_v32  ;;  %v1492_v55 = vpop.f32.mrf.mxu0  ;;  %v1661_v41 = vpop.f32.mrf.mxu1  ;;  %v7129_v32 = vld [vmem:[#allocation5 + $0x238] sm:$0xf0] }
 0x188   : > { %v2903_v49 = vmax.f32 %v2839_v13, 0.0  ;;  %v1998_v19 = vadd.f32 %v1997_v1, %v1829_v15  ;;  %v3119_v51 = vpop.permute.xlu2 %3118  ;;  %v7124_v13 = vor.u32 %v8232_v38, %v7121_v11  ;;  %v3341_v1 = vmul.f32 %v9784_v44, %v9634_v29  ;;  %v434_v38 = vld [vmem:[#allocation2 + $0x188] sm:$0xff] }
 0x189   : > { %v8460_v17 = vpack.c.bf16 %v3340_v58, %v3339_v31  ;;  %v1662_v58 = vadd.f32 %v1661_v41, %v1492_v55  ;;  %v11035_v31 = vld [vmem:[#allocation29_spill] sm:$0xff] }
 0x18a   : > { %v9824_v20 = vmin.f32 %v2903_v49, 1.0  ;;  %v2133_v39 = vadd.f32 %v1998_v19, %v433_v54  ;;  %v7128_v19 = vor.u32 %v8235_v40, %v7127_v37  ;;  %v8913_v37 = vld [vmem:[%s10983_s3 + $0x1a0] sm:$0xff] }
 0x18b   : > { %8772 = vst [vmem:[#allocation3 + $0x50] sm:$0xff] %v8460_v17   ;;  %3270 = vperm.xlu1 %8889, %v8908_v16   ;;  %3274 = vperm.xlu2 %8890, %v8909_v9   ;;  %v7132_v16 = vor.u32 %v8233_v21, %v7129_v32  ;;  %v3343_v9 = vmul.f32 %v3107_v0, %v9664_v28  ;;  %v2329_v0 = vld [vmem:[%s10982_s2 + $0x88] sm:$0xff] }
 0x18c   : > { %3031 = vst [vmem:[#allocation8 + $0x78] sm:$0xff] %v9824_v20  ;;  %3278 = vperm.xlu0 %8891, %v8910_v25   ;;  %v2776_v15 = vmul.f32 %v11035_v31, %v2133_v39  ;;  %v11036_v21 = vld [vmem:[#allocation22_spill] sm:$0xff] }
 0x18d   : > { %2197 = vst [vmem:[#allocation2 + $0xe0] sm:$0xff] %v2133_v39  ;;  %v3103_v26 = vpop.permute.xlu1 %3102  ;;  %v1830_v17 = vpop.f32.mrf.mxu2 }
 0x18e   : > { %v3342_v54 = vmul.f32 %v3103_v26, %v9651_v57  ;;  %v3111_v49 = vpop.permute.xlu0 %3110  ;;  %v1831_v23 = vadd.f32 %v1830_v17, %v1662_v58  ;;  %v1999_v55 = vpop.f32.mrf.mxu3  ;;  %v2840_v35 = vadd.f32 %v2776_v15, %v2328_v34  ;;  %v3346_v34 = vmul.f32 %v3119_v51, %v9710_v50  ;;  %v435_v17 = vld [vmem:[#allocation2 + $0x138] sm:$0xff] }
 0x18f   : > { %v3344_v25 = vmul.f32 %v3111_v49, %v9678_v61  ;;  %v1495_v41 = vpop.f32.mrf.mxu0  ;;  %v1664_v11 = vpop.f32.mrf.mxu1  ;;  %v8911_v61 = vld [vmem:[%s10983_s3 + $0x190] sm:$0xff]  ;;  %v8239_v51 = vld [vmem:[#allocation5 + $0x254] sm:$0xf0] }
 0x190   : > { %v8465_v14 = vpack.c.bf16 %v3342_v54, %v3341_v1  ;;  %v2000_v31 = vadd.f32 %v1999_v55, %v1831_v23  ;;  %v2904_v29 = vmax.f32 %v2840_v35, 0.0  ;;  %v1665_v28 = vadd.f32 %v1664_v11, %v1495_v41  ;;  %v8912_v23 = vld [vmem:[%s10983_s3 + $0x198] sm:$0xff]  ;;  %v8236_v41 = vld [vmem:[#allocation5 + $0x244] sm:$0xf]  ;;  %v7137_v35 = vld [vmem:[#allocation5 + $0x250] sm:$0xf0] }
 0x191   : > { %v8470_v39 = vpack.c.bf16 %v3344_v25, %v3343_v9  ;;  %1534 = vmatmul.bf16.gmra.mxu0 %v7120_v56  ;;  %1703 = vmatmul.bf16.gmra.mxu1 %v7124_v13  ;;  %v8238_v9 = vld [vmem:[#allocation5 + $0x24c] sm:$0xf0]  ;;  %v3131_v25 = vpop.permute.xlu2 %3130  ;;  %v7145_v11 = vld [vmem:[#allocation5 + $0x258] sm:$0xf0] }
 0x192   : > { %8773 = vst [vmem:[#allocation3 + $0x70] sm:$0xff] %v8465_v14   ;;  %1872 = vmatmul.bf16.gmra.mxu2 %v7128_v19  ;;  %2041 = vmatmul.bf16.gmra.mxu3 %v7132_v16  ;;  %v2134_v57 = vadd.f32 %v2000_v31, %v434_v38  ;;  %v9845_v44 = vmin.f32 %v2904_v29, 1.0  ;;  %v7135_v16 = vld [vmem:[#allocation5 + $0x240] sm:$0xf]  ;;  %v8237_v38 = vld [vmem:[#allocation5 + $0x24c] sm:$0xf] }
 0x193   : > { %8774 = vst [vmem:[#allocation3 + $0x60] sm:$0xff] %v8470_v39   ;;  %3282 = vperm.xlu1 %8889, %v8911_v61   ;;  %3286 = vperm.xlu2 %8890, %v8912_v23   ;;  %v8914_v31 = vld [vmem:[%s10983_s3 + $0x1a8] sm:$0xff]  ;;  %v8915_v29 = vld [vmem:[%s10983_s3 + $0x1b0] sm:$0xff] }
 0x194   : > { %3290 = vperm.xlu0 %8891, %v8913_v37   ;;  %2198 = vst [vmem:[#allocation2 + $0x188] sm:$0xff] %v2134_v57  ;;  %v2777_v32 = vmul.f32 %v11036_v21, %v2134_v57  ;;  %v2330_v57 = vld [vmem:[%s10982_s2 + $0x90] sm:$0xff]  ;;  %v7140_v37 = vor.u32 %v8236_v41, %v7137_v35 }
 0x195   : > { %v3115_v40 = vpop.permute.xlu1 %3114  ;;  %v1833_v56 = vpop.f32.mrf.mxu2  ;;  %3032 = vst [vmem:[#allocation8 + $0x80] sm:$0xff] %v9845_v44 }
 0x196   : > { %v3345_v58 = vmul.f32 %v3115_v40, %v9701_v27  ;;  %v3123_v26 = vpop.permute.xlu0 %3122  ;;  %v1834_v13 = vadd.f32 %v1833_v56, %v1665_v28  ;;  %v2002_v15 = vpop.f32.mrf.mxu3  ;;  %v2841_v54 = vadd.f32 %v2777_v32, %v2329_v0  ;;  %v7143_v27 = vld [vmem:[#allocation5 + $0x248] sm:$0xf]  ;;  %v8916_v28 = vld [vmem:[%s10983_s3 + $0x1b8] sm:$0xff]  ;;  %v7136_v0 = vor.u32 %v8238_v9, %v7135_v16  ;;  %v11037_v40 = vld [vmem:[#allocation33_spill] sm:$0xff] }
 0x197   : > { %v1497_v1 = vpop.f32.mrf.mxu0  ;;  %v1666_v19 = vpop.f32.mrf.mxu1  ;;  %v3347_v32 = vmul.f32 %v3123_v26, %v9726_v12 }
 0x198   : > { %v8475_v49 = vpack.c.bf16 %v3346_v34, %v3345_v58  ;;  %v2003_v55 = vadd.f32 %v2002_v15, %v1834_v13  ;;  %v2905_v50 = vmax.f32 %v2841_v54, 0.0  ;;  %v1667_v61 = vadd.f32 %v1666_v19, %v1497_v1 }
 0x199   : > { %v7144_v13 = vor.u32 %v8239_v51, %v7143_v27  ;;  %v7148_v15 = vor.u32 %v8237_v38, %v7145_v11  ;;  %v3349_v54 = vmul.f32 %v3131_v25, %v9768_v63  ;;  %v3143_v35 = vpop.permute.xlu2 %3142  ;;  %v8918_v27 = vld [vmem:[%s10983_s3 + $0x1c8] sm:$0xff]  ;;  %v2331_v51 = vld [vmem:[%s10982_s2 + $0x98] sm:$0xff] }
 0x19a   : > { %8775 = vst [vmem:[#allocation3 + $0xd0] sm:$0xff] %v8475_v49   ;;  %v2135_v14 = vadd.f32 %v2003_v55, %v435_v17  ;;  %v9863_v39 = vmin.f32 %v2905_v50, 1.0  ;;  %v436_v55 = vld [vmem:[#allocation2 + $0x140] sm:$0xff]  ;;  %v11038_v11 = vld [vmem:[#allocation32_spill] sm:$0xff] }
 0x19b   : > { %3294 = vperm.xlu1 %8889, %v8914_v31   ;;  %3298 = vperm.xlu2 %8890, %v8915_v29   ;;  %v8917_v50 = vld [vmem:[%s10983_s3 + $0x1c0] sm:$0xff]  ;;  %v3352_v29 = vmul.f32 %v3143_v35, %v9824_v20  ;;  %v7159_v20 = vld [vmem:[#allocation5 + $0x268] sm:$0xf] }
 0x19c   : > { %3302 = vperm.xlu0 %8891, %v8916_v28   ;;  %2199 = vst [vmem:[#allocation2 + $0x138] sm:$0xff] %v2135_v14  ;;  %v2778_v21 = vmul.f32 %v11037_v40, %v2135_v14  ;;  %v8919_v14 = vld [vmem:[%s10983_s3 + $0x1d0] sm:$0xff] }
 0x19d   : > { %v3127_v23 = vpop.permute.xlu1 %3126  ;;  %v1835_v56 = vpop.f32.mrf.mxu2  ;;  %3033 = vst [vmem:[#allocation8 + $0x88] sm:$0xff] %v9863_v39 }
 0x19e   : > { %v3348_v34 = vmul.f32 %v3127_v23, %v9751_v48  ;;  %v3135_v58 = vpop.permute.xlu0 %3134  ;;  %v1836_v1 = vadd.f32 %v1835_v56, %v1667_v61  ;;  %v2004_v17 = vpop.f32.mrf.mxu3  ;;  %v2842_v16 = vadd.f32 %v2778_v21, %v2330_v57  ;;  %v8242_v56 = vld [vmem:[#allocation5 + $0x26c] sm:$0xf0] }
 0x19f   : > { %v3350_v49 = vmul.f32 %v3135_v58, %v9786_v47  ;;  %v1500_v19 = vpop.f32.mrf.mxu0  ;;  %v1669_v41 = vpop.f32.mrf.mxu1  ;;  %v7151_v58 = vld [vmem:[#allocation5 + $0x260] sm:$0xf] }
 0x1a0   : > { %v8480_v9 = vpack.c.bf16 %v3348_v34, %v3347_v32  ;;  %v2005_v26 = vadd.f32 %v2004_v17, %v1836_v1  ;;  %v2906_v48 = vmax.f32 %v2842_v16, 0.0  ;;  %v1670_v25 = vadd.f32 %v1669_v41, %v1500_v19  ;;  %v437_v32 = vld [vmem:[#allocation2 + $0x80] sm:$0xff]  ;;  %v8243_v1 = vld [vmem:[#allocation5 + $0x274] sm:$0xf0]  ;;  %v8241_v17 = vld [vmem:[#allocation5 + $0x26c] sm:$0xf] }
 0x1a1   : > { %v8485_v12 = vpack.c.bf16 %v3350_v49, %v3349_v54  ;;  %1539 = vmatmul.bf16.gmra.mxu0 %v7136_v0  ;;  %1708 = vmatmul.bf16.gmra.mxu1 %v7140_v37  ;;  %v7153_v54 = vld [vmem:[#allocation5 + $0x270] sm:$0xf0]  ;;  %v7161_v19 = vld [vmem:[#allocation5 + $0x278] sm:$0xf0]  ;;  %v3155_v41 = vpop.permute.xlu2 %3154 }
 0x1a2   : > { %8776 = vst [vmem:[#allocation3 + $0xd8] sm:$0xff] %v8480_v9   ;;  %1877 = vmatmul.bf16.gmra.mxu2 %v7144_v13  ;;  %2046 = vmatmul.bf16.gmra.mxu3 %v7148_v15  ;;  %v2136_v63 = vadd.f32 %v2005_v26, %v436_v55  ;;  %v2970_v47 = vmin.f32 %v2906_v48, 1.0  ;;  %v8240_v15 = vld [vmem:[#allocation5 + $0x264] sm:$0xf]  ;;  %v8920_v9 = vld [vmem:[%s10983_s3 + $0x1d8] sm:$0xff]  ;;  %v8922_v26 = vld [vmem:[%s10983_s3 + $0x1e8] sm:$0xff] }
 0x1a3   : > { %8777 = vst [vmem:[#allocation3 + $0xe0] sm:$0xff] %v8485_v12   ;;  %3306 = vperm.xlu1 %8889, %v8917_v50   ;;  %3310 = vperm.xlu2 %8890, %v8918_v27   ;;  %v8921_v55 = vld [vmem:[%s10983_s3 + $0x1e0] sm:$0xff]  ;;  %v11039_v50 = vld [vmem:[#allocation23_spill] sm:$0xff] }
 0x1a4   : > { %3314 = vperm.xlu0 %8891, %v8919_v14   ;;  %2200 = vst [vmem:[#allocation2 + $0x140] sm:$0xff] %v2136_v63  ;;  %v2779_v31 = vmul.f32 %v11038_v11, %v2136_v63  ;;  %v2332_v12 = vld [vmem:[%s10982_s2 + $0xa0] sm:$0xff]  ;;  %v7152_v63 = vor.u32 %v8242_v56, %v7151_v58  ;;  %v7160_v11 = vor.u32 %v8243_v1, %v7159_v20 }
 0x1a5   : > { %v3139_v38 = vpop.permute.xlu1 %3138  ;;  %v1838_v61 = vpop.f32.mrf.mxu2  ;;  %3034 = vst [vmem:[#allocation8 + $0x90] sm:$0xff] %v2970_v47 }
 0x1a6   : > { %v3351_v57 = vmul.f32 %v3139_v38, %v9809_v5  ;;  %v3147_v28 = vpop.permute.xlu0 %3146  ;;  %v1839_v23 = vadd.f32 %v1838_v61, %v1670_v25  ;;  %v2007_v0 = vpop.f32.mrf.mxu3  ;;  %v2843_v40 = vadd.f32 %v2779_v31, %v2331_v51  ;;  %v7156_v25 = vor.u32 %v8240_v15, %v7153_v54  ;;  %v8924_v15 = vld [vmem:[%s10983_s3 + $0x1f8] sm:$0xff]  ;;  %v2333_v54 = vld [vmem:[%s10982_s2 + $0xa8] sm:$0xff] }
 0x1a7   : > { %v1502_v37 = vpop.f32.mrf.mxu0  ;;  %v1671_v34 = vpop.f32.mrf.mxu1  ;;  %v3353_v51 = vmul.f32 %v3147_v28, %v9845_v44  ;;  %v7164_v31 = vor.u32 %v8241_v17, %v7161_v19 }
 0x1a8   : > { %v8490_v21 = vpack.c.bf16 %v3352_v29, %v3351_v57  ;;  %v2008_v13 = vadd.f32 %v2007_v0, %v1839_v23  ;;  %v2907_v49 = vmax.f32 %v2843_v40, 0.0  ;;  %v1672_v48 = vadd.f32 %v1671_v34, %v1502_v37 }
 0x1a9   : > { %v3355_v57 = vmul.f32 %v3155_v41, %v2970_v47  ;;  %v7167_v41 = vld [vmem:[#allocation5 + $0x280] sm:$0xf] }
 0x1aa   : > { %8778 = vst [vmem:[#allocation3 + $0x30] sm:$0xff] %v8490_v21   ;;  %v2137_v5 = vadd.f32 %v2008_v13, %v437_v32  ;;  %v2971_v16 = vmin.f32 %v2907_v49, 1.0  ;;  %v438_v32 = vld [vmem:[#allocation2 + $0x1a8] sm:$0xff]  ;;  %v8923_v13 = vld [vmem:[%s10983_s3 + $0x1f0] sm:$0xff]  ;;  %v11040_v49 = vld [vmem:[#allocation36_spill] sm:$0xff] }
 0x1ab   : > { %3318 = vperm.xlu1 %8889, %v8920_v9   ;;  %3322 = vperm.xlu2 %8890, %v8921_v55   ;;  %v439_v9 = vld [vmem:[#allocation2 + $0x1b8] sm:$0xff] }
 0x1ac   : > { %3326 = vperm.xlu0 %8891, %v8922_v26   ;;  %2201 = vst [vmem:[#allocation2 + $0x80] sm:$0xff] %v2137_v5  ;;  %v2780_v27 = vmul.f32 %v11039_v50, %v2137_v5  ;;  %v7175_v50 = vld [vmem:[#allocation5 + $0x288] sm:$0xf] }
 0x1ad   : > { %v3151_v35 = vpop.permute.xlu1 %3150  ;;  %v1840_v38 = vpop.f32.mrf.mxu2  ;;  %3035 = vst [vmem:[#allocation8 + $0x98] sm:$0xff] %v2971_v16 }
 0x1ae   : > { %v3354_v14 = vmul.f32 %v3151_v35, %v9863_v39  ;;  %v3159_v29 = vpop.permute.xlu0 %3158  ;;  %v1841_v61 = vadd.f32 %v1840_v38, %v1672_v48  ;;  %v2009_v23 = vpop.f32.mrf.mxu3  ;;  %v2844_v37 = vadd.f32 %v2780_v27, %v2332_v12  ;;  %v8246_v12 = vld [vmem:[#allocation5 + $0x28c] sm:$0xf0]  ;;  %v8244_v48 = vld [vmem:[#allocation5 + $0x284] sm:$0xf]  ;;  %v7169_v35 = vld [vmem:[#allocation5 + $0x290] sm:$0xf0] }
 0x1af   : > { %v1505_v0 = vpop.f32.mrf.mxu0  ;;  %v3356_v40 = vmul.f32 %v3159_v29, %v2971_v16  ;;  %v1674_v34 = vpop.f32.mrf.mxu1  ;;  %v8247_v27 = vld [vmem:[#allocation5 + $0x294] sm:$0xf0]  ;;  %v8245_v38 = vld [vmem:[#allocation5 + $0x28c] sm:$0xf]  ;;  %v7168_v29 = vor.u32 %v8246_v12, %v7167_v41 }
 0x1b0   : > { %v8495_v21 = vpack.c.bf16 %v3354_v14, %v3353_v51  ;;  %v2010_v58 = vadd.f32 %v2009_v23, %v1841_v61  ;;  %v2908_v28 = vmax.f32 %v2844_v37, 0.0  ;;  %v1675_v56 = vadd.f32 %v1674_v34, %v1505_v0  ;;  %v3167_v51 = vpop.permute.xlu2 %3166  ;;  %v2334_v61 = vld [vmem:[%s10982_s2 + $0xb0] sm:$0xff] }
 0x1b1   : > { %1544 = vmatmul.bf16.gmra.mxu0 %v7152_v63  ;;  %1713 = vmatmul.bf16.gmra.mxu1 %v7156_v25  ;;  %v8500_v44 = vpack.c.bf16 %v3356_v40, %v3355_v57  ;;  %v7172_v57 = vor.u32 %v8244_v48, %v7169_v35  ;;  %v11041_v37 = vld [vmem:[#allocation35_spill] sm:$0xff]  ;;  %v7176_v34 = vor.u32 %v8247_v27, %v7175_v50  ;;  %v441_v48 = vld [vmem:[#allocation2 + $0x1e8] sm:$0xff]  ;;  %v8248_v27 = vld [vmem:[#allocation5 + $0x2a4] sm:$0xf] }
 0x1b2   : > { %8779 = vst [vmem:[#allocation3 + $0x48] sm:$0xff] %v8495_v21   ;;  %1882 = vmatmul.bf16.gmra.mxu2 %v7160_v11  ;;  %2051 = vmatmul.bf16.gmra.mxu3 %v7164_v31  ;;  %v2138_v39 = vadd.f32 %v2010_v58, %v438_v32  ;;  %v2972_v47 = vmin.f32 %v2908_v28, 1.0  ;;  %v7177_v11 = vld [vmem:[#allocation5 + $0x298] sm:$0xf0] }
 0x1b3   : > { %8780 = vst [vmem:[#allocation3 + $0x8] sm:$0xff] %v8500_v44   ;;  %3330 = vperm.xlu1 %8889, %v8923_v13   ;;  %3334 = vperm.xlu2 %8890, %v8924_v15   ;;  %v7180_v58 = vor.u32 %v8245_v38, %v7177_v11  ;;  %v440_v15 = vld [vmem:[#allocation2 + $0x28] sm:$0xff] }
 0x1b4   : > { %2202 = vst [vmem:[#allocation2 + $0x1a8] sm:$0xff] %v2138_v39  ;;  %v2781_v20 = vmul.f32 %v11040_v49, %v2138_v39  ;;  %v7191_v11 = vld [vmem:[#allocation5 + $0x2a8] sm:$0xf] }
 0x1b5   : > { %v1843_v1 = vpop.f32.mrf.mxu2  ;;  %3036 = vst [vmem:[#allocation8 + $0xa0] sm:$0xff] %v2972_v47  ;;  %v3163_v25 = vpop.permute.xlu1 %3162 }
 0x1b6   : > { %v1844_v5 = vadd.f32 %v1843_v1, %v1675_v56  ;;  %v2012_v17 = vpop.f32.mrf.mxu3  ;;  %v2845_v16 = vadd.f32 %v2781_v20, %v2333_v54  ;;  %v3357_v0 = vmul.f32 %v3163_v25, %v2972_v47  ;;  %v8250_v25 = vld [vmem:[#allocation5 + $0x2ac] sm:$0xf0]  ;;  %v3171_v38 = vpop.permute.xlu0 %3170 }
 0x1b7   : > { %v1507_v19 = vpop.f32.mrf.mxu0  ;;  %v1676_v55 = vpop.f32.mrf.mxu1 }
 0x1b8   : > { %v2013_v26 = vadd.f32 %v2012_v17, %v1844_v5  ;;  %v2909_v63 = vmax.f32 %v2845_v16, 0.0  ;;  %v1677_v23 = vadd.f32 %v1676_v55, %v1507_v19  ;;  %v2335_v17 = vld [vmem:[%s10982_s2 + $0xb8] sm:$0xff]  ;;  %v11042_v19 = vld [vmem:[#allocation25_spill] sm:$0xff] }
 0x1ba   : > { %v2139_v14 = vadd.f32 %v2013_v26, %v439_v9  ;;  %v2973_v31 = vmin.f32 %v2909_v63, 1.0  ;;  %v7183_v63 = vld [vmem:[#allocation5 + $0x2a0] sm:$0xf] }
 0x1bc   : > { %2203 = vst [vmem:[#allocation2 + $0x1b8] sm:$0xff] %v2139_v14  ;;  %v3358_v40 = vmul.f32 %v3167_v51, %v2973_v31  ;;  %v2782_v21 = vmul.f32 %v11041_v37, %v2139_v14  ;;  %v7185_v51 = vld [vmem:[#allocation5 + $0x2b0] sm:$0xf0] }
 0x1bd   : > { %v1845_v32 = vpop.f32.mrf.mxu2  ;;  %3037 = vst [vmem:[#allocation8 + $0xa8] sm:$0xff] %v2973_v31  ;;  %v8251_v31 = vld [vmem:[#allocation5 + $0x2b4] sm:$0xf0]  ;;  %v7188_v37 = vor.u32 %v8248_v27, %v7185_v51  ;;  %v8254_v27 = vld [vmem:[#allocation5 + $0x2cc] sm:$0xf0] }
 0x1be   : > { %v1846_v44 = vadd.f32 %v1845_v32, %v1677_v23  ;;  %v2014_v28 = vpop.f32.mrf.mxu3  ;;  %v8505_v56 = vpack.c.bf16 %v3358_v40, %v3357_v0  ;;  %v2846_v13 = vadd.f32 %v2782_v21, %v2334_v61  ;;  %v8249_v61 = vld [vmem:[#allocation5 + $0x2ac] sm:$0xf]  ;;  %v7193_v23 = vld [vmem:[#allocation5 + $0x2b8] sm:$0xf0]  ;;  %v7184_v40 = vor.u32 %v8250_v25, %v7183_v63  ;;  %v2336_v21 = vld [vmem:[%s10982_s2 + $0xc0] sm:$0xff] }
 0x1bf   : > { %v1510_v39 = vpop.f32.mrf.mxu0  ;;  %v1679_v54 = vpop.f32.mrf.mxu1  ;;  %v443_v63 = vld [vmem:[#allocation2 + $0x160] sm:$0xff] }
 0x1c0   : > { %v2015_v49 = vadd.f32 %v2014_v28, %v1846_v44  ;;  %8781 = vst [vmem:[#allocation3 + $0xf0] sm:$0xff] %v8505_v56   ;;  %v2910_v20 = vmax.f32 %v2846_v13, 0.0  ;;  %v1680_v1 = vadd.f32 %v1679_v54, %v1510_v39  ;;  %v7192_v39 = vor.u32 %v8251_v31, %v7191_v11  ;;  %v3179_v31 = vpop.permute.xlu2 %3178 }
 0x1c1   : > { %1549 = vmatmul.bf16.gmra.mxu0 %v7168_v29  ;;  %1718 = vmatmul.bf16.gmra.mxu1 %v7172_v57  ;;  %v3175_v29 = vpop.permute.xlu1 %3174  ;;  %v7196_v56 = vor.u32 %v8249_v61, %v7193_v23  ;;  %v3183_v61 = vpop.permute.xlu0 %3182 }
 0x1c2   : > { %1887 = vmatmul.bf16.gmra.mxu2 %v7176_v34  ;;  %2056 = vmatmul.bf16.gmra.mxu3 %v7180_v58  ;;  %v2140_v47 = vadd.f32 %v2015_v49, %v440_v15  ;;  %v2974_v5 = vmin.f32 %v2910_v20, 1.0 }
 0x1c4   : > { %2204 = vst [vmem:[#allocation2 + $0x28] sm:$0xff] %v2140_v47  ;;  %v2783_v16 = vmul.f32 %v11042_v19, %v2140_v47  ;;  %v3359_v34 = vmul.f32 %v3171_v38, %v2974_v5  ;;  %v442_v47 = vld [vmem:[#allocation2 + $0xf8] sm:$0xff]  ;;  %v7201_v38 = vld [vmem:[#allocation5 + $0x2d0] sm:$0xf0] }
 0x1c5   : > { %v1848_v9 = vpop.f32.mrf.mxu2  ;;  %3038 = vst [vmem:[#allocation8 + $0xb0] sm:$0xff] %v2974_v5 }
 0x1c6   : > { %v1849_v55 = vadd.f32 %v1848_v9, %v1680_v1  ;;  %v2017_v41 = vpop.f32.mrf.mxu3  ;;  %v2847_v26 = vadd.f32 %v2783_v16, %v2335_v17  ;;  %v2337_v9 = vld [vmem:[%s10982_s2 + $0xc8] sm:$0xff] }
 0x1c7   : > { %v1512_v12 = vpop.f32.mrf.mxu0  ;;  %v1681_v35 = vpop.f32.mrf.mxu1 }
 0x1c8   : > { %v2018_v50 = vadd.f32 %v2017_v41, %v1849_v55  ;;  %v2911_v14 = vmax.f32 %v2847_v26, 0.0  ;;  %v1682_v32 = vadd.f32 %v1681_v35, %v1512_v12 }
 0x1ca   : > { %v2141_v57 = vadd.f32 %v2018_v50, %v441_v48  ;;  %v2975_v0 = vmin.f32 %v2911_v14, 1.0  ;;  %v7199_v50 = vld [vmem:[#allocation5 + $0x2c0] sm:$0xf]  ;;  %v8252_v14 = vld [vmem:[#allocation5 + $0x2c4] sm:$0xf] }
 0x1cc   : > { %2205 = vst [vmem:[#allocation2 + $0x1e8] sm:$0xff] %v2141_v57  ;;  %v3360_v58 = vmul.f32 %v3175_v29, %v2975_v0  ;;  %v2784_v44 = vmul.f32 %v9566_v8, %v2141_v57  ;;  %v7207_v29 = vld [vmem:[#allocation5 + $0x2c8] sm:$0xf]  ;;  %v8255_v57 = vld [vmem:[#allocation5 + $0x2d4] sm:$0xf0] }
 0x1cd   : > { %v1850_v28 = vpop.f32.mrf.mxu2  ;;  %3039 = vst [vmem:[#allocation8 + $0xb8] sm:$0xff] %v2975_v0  ;;  %v7209_v0 = vld [vmem:[#allocation5 + $0x2d8] sm:$0xf0] }
 0x1ce   : > { %v1851_v13 = vadd.f32 %v1850_v28, %v1682_v32  ;;  %v2019_v15 = vpop.f32.mrf.mxu3  ;;  %v8510_v49 = vpack.c.bf16 %v3360_v58, %v3359_v34  ;;  %v2848_v20 = vadd.f32 %v2784_v44, %v2336_v21  ;;  %v7204_v21 = vor.u32 %v8252_v14, %v7201_v38  ;;  %v2338_v32 = vld [vmem:[%s10982_s2 + $0xd0] sm:$0xff]  ;;  %v11043_v28 = vld [vmem:[#allocation28_spill] sm:$0xff] }
 0x1cf   : > { %v1515_v54 = vpop.f32.mrf.mxu0  ;;  %v1684_v1 = vpop.f32.mrf.mxu1  ;;  %v8258_v14 = vld [vmem:[#allocation5 + $0x2ec] sm:$0xf0] }
 0x1d0   : > { %v2020_v17 = vadd.f32 %v2019_v15, %v1851_v13  ;;  %8782 = vst [vmem:[#allocation3 + $0x88] sm:$0xff] %v8510_v49   ;;  %v2912_v19 = vmax.f32 %v2848_v20, 0.0  ;;  %v1685_v8 = vadd.f32 %v1684_v1, %v1515_v54  ;;  %v7208_v13 = vor.u32 %v8255_v57, %v7207_v29  ;;  %v3187_v57 = vpop.permute.xlu1 %3186 }
 0x1d1   : > { %1554 = vmatmul.bf16.gmra.mxu0 %v7184_v40  ;;  %1723 = vmatmul.bf16.gmra.mxu1 %v7188_v37  ;;  %v7200_v37 = vor.u32 %v8254_v27, %v7199_v50  ;;  %v445_v50 = vld [vmem:[#allocation2 + $0x1e0] sm:$0xff] }
 0x1d2   : > { %1892 = vmatmul.bf16.gmra.mxu2 %v7192_v39  ;;  %2061 = vmatmul.bf16.gmra.mxu3 %v7196_v56  ;;  %v2142_v5 = vadd.f32 %v2020_v17, %v442_v47  ;;  %v2976_v16 = vmin.f32 %v2912_v19, 1.0  ;;  %v444_v17 = vld [vmem:[#allocation2 + $0x30] sm:$0xff] }
 0x1d4   : > { %2206 = vst [vmem:[#allocation2 + $0xf8] sm:$0xff] %v2142_v5  ;;  %v2785_v55 = vmul.f32 %v9564_v30, %v2142_v5  ;;  %v8253_v30 = vld [vmem:[#allocation5 + $0x2cc] sm:$0xf]  ;;  %v3361_v58 = vmul.f32 %v3179_v31, %v2976_v16  ;;  %v7217_v31 = vld [vmem:[#allocation5 + $0x2f0] sm:$0xf0] }
 0x1d5   : > { %v1853_v41 = vpop.f32.mrf.mxu2  ;;  %3040 = vst [vmem:[#allocation8 + $0xc0] sm:$0xff] %v2976_v16  ;;  %v7212_v15 = vor.u32 %v8253_v30, %v7209_v0  ;;  %v3191_v30 = vpop.permute.xlu2 %3190 }
 0x1d6   : > { %v1854_v12 = vadd.f32 %v1853_v41, %v1685_v8  ;;  %v2022_v26 = vpop.f32.mrf.mxu3  ;;  %v2849_v35 = vadd.f32 %v2785_v55, %v2337_v9  ;;  %v2339_v41 = vld [vmem:[%s10982_s2 + $0xd8] sm:$0xff] }
 0x1d7   : > { %v1517_v48 = vpop.f32.mrf.mxu0  ;;  %v1686_v25 = vpop.f32.mrf.mxu1 }
 0x1d8   : > { %v2023_v51 = vadd.f32 %v2022_v26, %v1854_v12  ;;  %v2913_v11 = vmax.f32 %v2849_v35, 0.0  ;;  %v1687_v34 = vadd.f32 %v1686_v25, %v1517_v48 }
 0x1da   : > { %v2143_v23 = vadd.f32 %v2023_v51, %v443_v63  ;;  %v2977_v40 = vmin.f32 %v2913_v11, 1.0  ;;  %v7215_v51 = vld [vmem:[#allocation5 + $0x2e0] sm:$0xf]  ;;  %v8256_v11 = vld [vmem:[#allocation5 + $0x2e4] sm:$0xf] }
 0x1dc   : > { %2207 = vst [vmem:[#allocation2 + $0x160] sm:$0xff] %v2143_v23  ;;  %v3362_v44 = vmul.f32 %v3183_v61, %v2977_v40  ;;  %v2786_v39 = vmul.f32 %v11043_v28, %v2143_v23  ;;  %v7223_v61 = vld [vmem:[#allocation5 + $0x2e8] sm:$0xf]  ;;  %v8259_v23 = vld [vmem:[#allocation5 + $0x2f4] sm:$0xf0] }
 0x1dd   : > { %v1855_v56 = vpop.f32.mrf.mxu2  ;;  %3041 = vst [vmem:[#allocation8 + $0xc8] sm:$0xff] %v2977_v40  ;;  %v7225_v40 = vld [vmem:[#allocation5 + $0x2f8] sm:$0xf0] }
 0x1de   : > { %v1856_v54 = vadd.f32 %v1855_v56, %v1687_v34  ;;  %v2024_v49 = vpop.f32.mrf.mxu3  ;;  %v8515_v47 = vpack.c.bf16 %v3362_v44, %v3361_v58  ;;  %v2850_v1 = vadd.f32 %v2786_v39, %v2338_v32  ;;  %v7220_v32 = vor.u32 %v8256_v11, %v7217_v31  ;;  %v2340_v34 = vld [vmem:[%s10982_s2 + $0xe0] sm:$0xff]  ;;  %v7233_v31 = vld [vmem:[#allocation5 + $0x310] sm:$0xf0] }
 0x1df   : > { %v1520_v20 = vpop.f32.mrf.mxu0  ;;  %v1689_v19 = vpop.f32.mrf.mxu1  ;;  %v8260_v11 = vld [vmem:[#allocation5 + $0x304] sm:$0xf] }
 0x1e0   : > { %v2025_v5 = vadd.f32 %v2024_v49, %v1856_v54  ;;  %8783 = vst [vmem:[#allocation3 + $0x78] sm:$0xff] %v8515_v47   ;;  %v2914_v8 = vmax.f32 %v2850_v1, 0.0  ;;  %v1690_v9 = vadd.f32 %v1689_v19, %v1520_v20 }
 0x1e1   : > { %1559 = vmatmul.bf16.gmra.mxu0 %v7200_v37  ;;  %1728 = vmatmul.bf16.gmra.mxu1 %v7204_v21  ;;  %v7216_v21 = vor.u32 %v8258_v14, %v7215_v51  ;;  %v7231_v51 = vld [vmem:[#allocation5 + $0x300] sm:$0xf]  ;;  %v8262_v14 = vld [vmem:[#allocation5 + $0x30c] sm:$0xf0] }
 0x1e2   : > { %1897 = vmatmul.bf16.gmra.mxu2 %v7208_v13  ;;  %2066 = vmatmul.bf16.gmra.mxu3 %v7212_v15  ;;  %v2144_v16 = vadd.f32 %v2025_v5, %v444_v17  ;;  %v2978_v55 = vmin.f32 %v2914_v8, 1.0  ;;  %v7224_v13 = vor.u32 %v8259_v23, %v7223_v61  ;;  %v446_v17 = vld [vmem:[#allocation2] sm:$0xff]  ;;  %v7239_v61 = vld [vmem:[#allocation5 + $0x308] sm:$0xf]  ;;  %v8263_v23 = vld [vmem:[#allocation5 + $0x314] sm:$0xf0] }
 0x1e4   : > { %2208 = vst [vmem:[#allocation2 + $0x30] sm:$0xff] %v2144_v16  ;;  %v2787_v12 = vmul.f32 %v9582_v43, %v2144_v16  ;;  %v8257_v43 = vld [vmem:[#allocation5 + $0x2ec] sm:$0xf]  ;;  %v3363_v44 = vmul.f32 %v3187_v57, %v2978_v55  ;;  %v3195_v57 = vpop.permute.xlu0 %3194 }
 0x1e5   : > { %v1858_v26 = vpop.f32.mrf.mxu2  ;;  %3042 = vst [vmem:[#allocation8 + $0xd0] sm:$0xff] %v2978_v55  ;;  %v7228_v15 = vor.u32 %v8257_v43, %v7225_v40  ;;  %v2341_v55 = vld [vmem:[%s10982_s2 + $0xe8] sm:$0xff]  ;;  %v7241_v40 = vld [vmem:[#allocation5 + $0x318] sm:$0xf0] }
 0x1e6   : > { %v1859_v48 = vadd.f32 %v1858_v26, %v1690_v9  ;;  %v2027_v35 = vpop.f32.mrf.mxu3  ;;  %v2851_v25 = vadd.f32 %v2787_v12, %v2339_v41  ;;  %v11044_v41 = vld [vmem:[#allocation31_spill] sm:$0xff]  ;;  %v8261_v43 = vld [vmem:[#allocation5 + $0x30c] sm:$0xf] }
 0x1e7   : > { %v1522_v63 = vpop.f32.mrf.mxu0  ;;  %v1691_v27 = vpop.f32.mrf.mxu1 }
 0x1e8   : > { %v2028_v38 = vadd.f32 %v2027_v35, %v1859_v48  ;;  %v2915_v29 = vmax.f32 %v2851_v25, 0.0  ;;  %v1692_v58 = vadd.f32 %v1691_v27, %v1522_v63 }
 0x1ea   : > { %v2145_v0 = vadd.f32 %v2028_v38, %v445_v50  ;;  %v2979_v37 = vmin.f32 %v2915_v29, 1.0  ;;  %v447_v50 = vld [vmem:[#allocation2 + $0xf0] sm:$0xff] }
 0x1ec   : > { %2209 = vst [vmem:[#allocation2 + $0x1e0] sm:$0xff] %v2145_v0  ;;  %v3364_v28 = vmul.f32 %v3191_v30, %v2979_v37  ;;  %v2788_v39 = vmul.f32 %v9580_v2, %v2145_v0  ;;  %v3199_v30 = vpop.permute.xlu1 %3198 }
 0x1ed   : > { %v1860_v56 = vpop.f32.mrf.mxu2  ;;  %3043 = vst [vmem:[#allocation8 + $0xd8] sm:$0xff] %v2979_v37 }
 0x1ee   : > { %v1861_v54 = vadd.f32 %v1860_v56, %v1692_v58  ;;  %v2029_v49 = vpop.f32.mrf.mxu3  ;;  %v8520_v47 = vpack.c.bf16 %v3364_v28, %v3363_v44  ;;  %v2852_v1 = vadd.f32 %v2788_v39, %v2340_v34  ;;  %v2342_v34 = vld [vmem:[%s10982_s2 + $0xf0] sm:$0xff] }
 0x1ef   : > { %v1525_v20 = vpop.f32.mrf.mxu0  ;;  %v1694_v19 = vpop.f32.mrf.mxu1 }
 0x1f0   : > { %v2030_v5 = vadd.f32 %v2029_v49, %v1861_v54  ;;  %8784 = vst [vmem:[#allocation3 + $0x20] sm:$0xff] %v8520_v47   ;;  %v2916_v8 = vmax.f32 %v2852_v1, 0.0  ;;  %v1695_v2 = vadd.f32 %v1694_v19, %v1525_v20 }
 0x1f1   : > { %1564 = vmatmul.bf16.gmra.mxu0 %v7216_v21  ;;  %1733 = vmatmul.bf16.gmra.mxu1 %v7220_v32  ;;  %v7232_v21 = vor.u32 %v8262_v14, %v7231_v51  ;;  %v7236_v32 = vor.u32 %v8260_v11, %v7233_v31  ;;  %v8264_v14 = vld [vmem:[#allocation5 + $0x324] sm:$0xf]  ;;  %v3203_v31 = vpop.permute.xlu2 %3202 }
 0x1f2   : > { %1902 = vmatmul.bf16.gmra.mxu2 %v7224_v13  ;;  %2071 = vmatmul.bf16.gmra.mxu3 %v7228_v15  ;;  %v2146_v16 = vadd.f32 %v2030_v5, %v446_v17  ;;  %v2980_v9 = vmin.f32 %v2916_v8, 1.0  ;;  %v7240_v13 = vor.u32 %v8263_v23, %v7239_v61  ;;  %v7244_v15 = vor.u32 %v8261_v43, %v7241_v40  ;;  %v448_v17 = vld [vmem:[#allocation2 + $0x8] sm:$0xff]  ;;  %v3207_v61 = vpop.permute.xlu0 %3206 }
 0x1f4   : > { %2210 = vst [vmem:[#allocation2] sm:$0xff] %v2146_v16  ;;  %v2789_v12 = vmul.f32 %v11044_v41, %v2146_v16  ;;  %v3365_v44 = vmul.f32 %v3195_v57, %v2980_v9  ;;  %v8267_v57 = vld [vmem:[#allocation5 + $0x334] sm:$0xf0] }
 0x1f5   : > { %v1863_v26 = vpop.f32.mrf.mxu2  ;;  %3044 = vst [vmem:[#allocation8 + $0xe0] sm:$0xff] %v2980_v9  ;;  %v2343_v9 = vld [vmem:[%s10982_s2 + $0xf8] sm:$0xff] }
 0x1f6   : > { %v1864_v48 = vadd.f32 %v1863_v26, %v1695_v2  ;;  %v2032_v35 = vpop.f32.mrf.mxu3  ;;  %v2853_v25 = vadd.f32 %v2789_v12, %v2341_v55 }
 0x1f7   : > { %v1527_v63 = vpop.f32.mrf.mxu0  ;;  %v1696_v27 = vpop.f32.mrf.mxu1 }
 0x1f8   : > { %v2033_v38 = vadd.f32 %v2032_v35, %v1864_v48  ;;  %v2917_v29 = vmax.f32 %v2853_v25, 0.0  ;;  %v1697_v58 = vadd.f32 %v1696_v27, %v1527_v63  ;;  %v449_v63 = vld [vmem:[#allocation2 + $0x148] sm:$0xff]  ;;  %v8266_v27 = vld [vmem:[#allocation5 + $0x32c] sm:$0xf0] }
 0x1fa   : > { %v2147_v0 = vadd.f32 %v2033_v38, %v447_v50  ;;  %v2981_v37 = vmin.f32 %v2917_v29, 1.0  ;;  %v7247_v50 = vld [vmem:[#allocation5 + $0x320] sm:$0xf]  ;;  %v7249_v38 = vld [vmem:[#allocation5 + $0x330] sm:$0xf0] }
 0x1fb   : > { %v7255_v29 = vld [vmem:[#allocation5 + $0x328] sm:$0xf]  ;;  %v7248_v43 = vor.u32 %v8266_v27, %v7247_v50  ;;  %v7252_v40 = vor.u32 %v8264_v14, %v7249_v38  ;;  %v7265_v14 = vld [vmem:[#allocation5 + $0x350] sm:$0xf0]  ;;  %v3211_v38 = vpop.permute.xlu1 %3210 }
 0x1fc   : > { %2211 = vst [vmem:[#allocation2 + $0xf0] sm:$0xff] %v2147_v0  ;;  %v3366_v28 = vmul.f32 %v3199_v30, %v2981_v37  ;;  %v2790_v39 = vmul.f32 %v9598_v7, %v2147_v0  ;;  %v7257_v30 = vld [vmem:[#allocation5 + $0x338] sm:$0xf0] }
 0x1fd   : > { %v1865_v56 = vpop.f32.mrf.mxu2  ;;  %3045 = vst [vmem:[#allocation8 + $0xe8] sm:$0xff] %v2981_v37  ;;  %v2344_v37 = vld [vmem:[%s10982_s2 + $0x100] sm:$0xff] }
 0x1fe   : > { %v1866_v54 = vadd.f32 %v1865_v56, %v1697_v58  ;;  %v2034_v49 = vpop.f32.mrf.mxu3  ;;  %v8525_v47 = vpack.c.bf16 %v3366_v28, %v3365_v44  ;;  %v2854_v1 = vadd.f32 %v2790_v39, %v2342_v34  ;;  %v11045_v58 = vld [vmem:[#allocation34_spill] sm:$0xff]  ;;  %v7256_v39 = vor.u32 %v8267_v57, %v7255_v29 }
 0x1ff   : > { %v1530_v20 = vpop.f32.mrf.mxu0  ;;  %v1699_v19 = vpop.f32.mrf.mxu1 }
 0x200   : > { %v2035_v5 = vadd.f32 %v2034_v49, %v1866_v54  ;;  %8785 = vst [vmem:[#allocation3] sm:$0xff] %v8525_v47   ;;  %v2918_v8 = vmax.f32 %v2854_v1, 0.0  ;;  %v1700_v7 = vadd.f32 %v1699_v19, %v1530_v20  ;;  %v450_v47 = vld [vmem:[#allocation2 + $0x1d0] sm:$0xff] }
 0x201   : > { %1569 = vmatmul.bf16.gmra.mxu0 %v7232_v21  ;;  %1738 = vmatmul.bf16.gmra.mxu1 %v7236_v32 }
 0x202   : > { %1907 = vmatmul.bf16.gmra.mxu2 %v7240_v13  ;;  %2076 = vmatmul.bf16.gmra.mxu3 %v7244_v15  ;;  %v2148_v16 = vadd.f32 %v2035_v5, %v448_v17  ;;  %v2982_v2 = vmin.f32 %v2918_v8, 1.0 }
 0x204   : > { %2212 = vst [vmem:[#allocation2 + $0x8] sm:$0xff] %v2148_v16  ;;  %v2791_v55 = vmul.f32 %v9596_v33, %v2148_v16  ;;  %v8265_v33 = vld [vmem:[#allocation5 + $0x32c] sm:$0xf]  ;;  %v3367_v32 = vmul.f32 %v3203_v31, %v2982_v2  ;;  %v8271_v31 = vld [vmem:[#allocation5 + $0x354] sm:$0xf0] }
 0x205   : > { %v1868_v41 = vpop.f32.mrf.mxu2  ;;  %3046 = vst [vmem:[#allocation8 + $0xf0] sm:$0xff] %v2982_v2  ;;  %v7260_v56 = vor.u32 %v8265_v33, %v7257_v30 }
 0x206   : > { %v1869_v12 = vadd.f32 %v1868_v41, %v1700_v7  ;;  %v2037_v26 = vpop.f32.mrf.mxu3  ;;  %v2855_v35 = vadd.f32 %v2791_v55, %v2343_v9  ;;  %v2345_v7 = vld [vmem:[%s10982_s2 + $0x108] sm:$0xff] }
 0x207   : > { %v1532_v48 = vpop.f32.mrf.mxu0  ;;  %v1701_v25 = vpop.f32.mrf.mxu1 }
 0x208   : > { %v2038_v51 = vadd.f32 %v2037_v26, %v1869_v12  ;;  %v2919_v11 = vmax.f32 %v2855_v35, 0.0  ;;  %v1702_v21 = vadd.f32 %v1701_v25, %v1532_v48  ;;  %v451_v48 = vld [vmem:[#allocation2 + $0x100] sm:$0xff]  ;;  %v8270_v25 = vld [vmem:[#allocation5 + $0x34c] sm:$0xf0] }
 0x20a   : > { %v2149_v23 = vadd.f32 %v2038_v51, %v449_v63  ;;  %v2983_v0 = vmin.f32 %v2919_v11, 1.0  ;;  %v7263_v63 = vld [vmem:[#allocation5 + $0x340] sm:$0xf]  ;;  %v8268_v51 = vld [vmem:[#allocation5 + $0x344] sm:$0xf] }
 0x20b   : > { %v7271_v11 = vld [vmem:[#allocation5 + $0x348] sm:$0xf]  ;;  %v7264_v33 = vor.u32 %v8270_v25, %v7263_v63  ;;  %v7268_v30 = vor.u32 %v8268_v51, %v7265_v14  ;;  %v7281_v63 = vld [vmem:[#allocation5 + $0x370] sm:$0xf0]  ;;  %v3219_v25 = vpop.permute.xlu0 %3218 }
 0x20c   : > { %2213 = vst [vmem:[#allocation2 + $0x148] sm:$0xff] %v2149_v23  ;;  %v3368_v34 = vmul.f32 %v3207_v61, %v2983_v0  ;;  %v2792_v44 = vmul.f32 %v11045_v58, %v2149_v23  ;;  %v7273_v61 = vld [vmem:[#allocation5 + $0x358] sm:$0xf0]  ;;  %v3215_v23 = vpop.permute.xlu2 %3214 }
 0x20d   : > { %v1870_v28 = vpop.f32.mrf.mxu2  ;;  %3047 = vst [vmem:[#allocation8 + $0xf8] sm:$0xff] %v2983_v0  ;;  %v2346_v0 = vld [vmem:[%s10982_s2 + $0x110] sm:$0xff] }
 0x20e   : > { %v1871_v13 = vadd.f32 %v1870_v28, %v1702_v21  ;;  %v2039_v15 = vpop.f32.mrf.mxu3  ;;  %v8530_v49 = vpack.c.bf16 %v3368_v34, %v3367_v32  ;;  %v2856_v20 = vadd.f32 %v2792_v44, %v2344_v37  ;;  %v7272_v34 = vor.u32 %v8271_v31, %v7271_v11  ;;  %v3223_v11 = vpop.permute.xlu1 %3222 }
 0x20f   : > { %v1535_v54 = vpop.f32.mrf.mxu0  ;;  %v1704_v1 = vpop.f32.mrf.mxu1 }
 0x210   : > { %v2040_v17 = vadd.f32 %v2039_v15, %v1871_v13  ;;  %8786 = vst [vmem:[#allocation3 + $0x18] sm:$0xff] %v8530_v49   ;;  %v2920_v19 = vmax.f32 %v2856_v20, 0.0  ;;  %v1705_v8 = vadd.f32 %v1704_v1, %v1535_v54  ;;  %v452_v15 = vld [vmem:[#allocation2 + $0xc8] sm:$0xff] }
 0x211   : > { %1574 = vmatmul.bf16.gmra.mxu0 %v7248_v43  ;;  %1743 = vmatmul.bf16.gmra.mxu1 %v7252_v40 }
 0x212   : > { %1912 = vmatmul.bf16.gmra.mxu2 %v7256_v39  ;;  %2081 = vmatmul.bf16.gmra.mxu3 %v7260_v56  ;;  %v2150_v5 = vadd.f32 %v2040_v17, %v450_v47  ;;  %v2984_v16 = vmin.f32 %v2920_v19, 1.0  ;;  %v2347_v17 = vld [vmem:[%s10982_s2 + $0x118] sm:$0xff] }
 0x214   : > { %2214 = vst [vmem:[#allocation2 + $0x1d0] sm:$0xff] %v2150_v5  ;;  %v2793_v2 = vmul.f32 %v9614_v42, %v2150_v5  ;;  %v8269_v42 = vld [vmem:[#allocation5 + $0x34c] sm:$0xf]  ;;  %v3369_v37 = vmul.f32 %v3211_v38, %v2984_v16  ;;  %v7289_v38 = vld [vmem:[#allocation5 + $0x378] sm:$0xf0] }
 0x215   : > { %v1873_v9 = vpop.f32.mrf.mxu2  ;;  %3048 = vst [vmem:[#allocation8 + $0x100] sm:$0xff] %v2984_v16  ;;  %v7276_v58 = vor.u32 %v8269_v42, %v7273_v61 }
 0x216   : > { %v1874_v55 = vadd.f32 %v1873_v9, %v1705_v8  ;;  %v2042_v41 = vpop.f32.mrf.mxu3  ;;  %v2857_v26 = vadd.f32 %v2793_v2, %v2345_v7  ;;  %v453_v9 = vld [vmem:[#allocation2 + $0x40] sm:$0xff] }
 0x217   : > { %v1537_v12 = vpop.f32.mrf.mxu0  ;;  %v1706_v35 = vpop.f32.mrf.mxu1 }
 0x218   : > { %v2043_v50 = vadd.f32 %v2042_v41, %v1874_v55  ;;  %v2921_v27 = vmax.f32 %v2857_v26, 0.0  ;;  %v1707_v43 = vadd.f32 %v1706_v35, %v1537_v12  ;;  %v7279_v41 = vld [vmem:[#allocation5 + $0x360] sm:$0xf]  ;;  %v8274_v12 = vld [vmem:[#allocation5 + $0x36c] sm:$0xf0] }
 0x219   : > { %v8272_v35 = vld [vmem:[#allocation5 + $0x364] sm:$0xf]  ;;  %v7280_v31 = vor.u32 %v8274_v12, %v7279_v41  ;;  %v8279_v41 = vld [vmem:[#allocation5 + $0x394] sm:$0xf0] }
 0x21a   : > { %v2151_v29 = vadd.f32 %v2043_v50, %v451_v48  ;;  %v2985_v57 = vmin.f32 %v2921_v27, 1.0  ;;  %v7287_v50 = vld [vmem:[#allocation5 + $0x368] sm:$0xf]  ;;  %v8275_v27 = vld [vmem:[#allocation5 + $0x374] sm:$0xf0] }
 0x21c   : > { %2215 = vst [vmem:[#allocation2 + $0x100] sm:$0xff] %v2151_v29  ;;  %v3370_v40 = vmul.f32 %v3215_v23, %v2985_v57  ;;  %v2794_v21 = vmul.f32 %v9612_v36, %v2151_v29  ;;  %v7284_v29 = vor.u32 %v8272_v35, %v7281_v63  ;;  %v3227_v35 = vpop.permute.xlu2 %3226  ;;  %v2350_v63 = vld [vmem:[%s10982_s2 + $0x130] sm:$0xff] }
 0x21d   : > { %3049 = vst [vmem:[#allocation8 + $0x108] sm:$0xff] %v2985_v57  ;;  %v1875_v32 = vpop.f32.mrf.mxu2  ;;  %v2348_v57 = vld [vmem:[%s10982_s2 + $0x120] sm:$0xff] }
 0x21e   : > { %v8535_v44 = vpack.c.bf16 %v3370_v40, %v3369_v37  ;;  %v1876_v28 = vadd.f32 %v1875_v32, %v1707_v43  ;;  %v2044_v39 = vpop.f32.mrf.mxu3  ;;  %v2858_v13 = vadd.f32 %v2794_v21, %v2346_v0  ;;  %v7288_v0 = vor.u32 %v8275_v27, %v7287_v50 }
 0x21f   : > { %v1540_v56 = vpop.f32.mrf.mxu0  ;;  %v1709_v54 = vpop.f32.mrf.mxu1 }
 0x220   : > { %8787 = vst [vmem:[#allocation3 + $0x98] sm:$0xff] %v8535_v44   ;;  %v2045_v49 = vadd.f32 %v2044_v39, %v1876_v28  ;;  %v2922_v20 = vmax.f32 %v2858_v13, 0.0  ;;  %v1710_v36 = vadd.f32 %v1709_v54, %v1540_v56 }
 0x221   : > { %1579 = vmatmul.bf16.gmra.mxu0 %v7264_v33  ;;  %1748 = vmatmul.bf16.gmra.mxu1 %v7268_v30 }
 0x222   : > { %1917 = vmatmul.bf16.gmra.mxu2 %v7272_v34  ;;  %2086 = vmatmul.bf16.gmra.mxu3 %v7276_v58  ;;  %v2152_v47 = vadd.f32 %v2045_v49, %v452_v15  ;;  %v2986_v1 = vmin.f32 %v2922_v20, 1.0  ;;  %v454_v58 = vld [vmem:[#allocation2 + $0x1f8] sm:$0xff]  ;;  %v2349_v15 = vld [vmem:[%s10982_s2 + $0x128] sm:$0xff] }
 0x224   : > { %2216 = vst [vmem:[#allocation2 + $0xc8] sm:$0xff] %v2152_v47  ;;  %v2795_v19 = vmul.f32 %v9562_v46, %v2152_v47  ;;  %v8273_v46 = vld [vmem:[#allocation5 + $0x36c] sm:$0xf]  ;;  %v3371_v23 = vmul.f32 %v3219_v25, %v2986_v1  ;;  %v3231_v25 = vpop.permute.xlu0 %3230 }
 0x225   : > { %v1878_v5 = vpop.f32.mrf.mxu2  ;;  %3050 = vst [vmem:[#allocation8 + $0x110] sm:$0xff] %v2986_v1  ;;  %v7292_v43 = vor.u32 %v8273_v46, %v7289_v38 }
 0x226   : > { %v2859_v8 = vadd.f32 %v2795_v19, %v2347_v17  ;;  %v1879_v16 = vadd.f32 %v1878_v5, %v1710_v36  ;;  %v2047_v7 = vpop.f32.mrf.mxu3  ;;  %v455_v17 = vld [vmem:[#allocation2 + $0x20] sm:$0xff] }
 0x227   : > { %v1542_v2 = vpop.f32.mrf.mxu0  ;;  %v1711_v55 = vpop.f32.mrf.mxu1  ;;  %v7295_v5 = vld [vmem:[#allocation5 + $0x380] sm:$0xf] }
 0x228   : > { %v2923_v26 = vmax.f32 %v2859_v8, 0.0  ;;  %v2048_v48 = vadd.f32 %v2047_v7, %v1879_v16  ;;  %v1712_v61 = vadd.f32 %v1711_v55, %v1542_v2  ;;  %v8278_v8 = vld [vmem:[#allocation5 + $0x38c] sm:$0xf0]  ;;  %v8276_v2 = vld [vmem:[#allocation5 + $0x384] sm:$0xf] }
 0x229   : > { %v7303_v55 = vld [vmem:[#allocation5 + $0x388] sm:$0xf]  ;;  %v7296_v50 = vor.u32 %v8278_v8, %v7295_v5  ;;  %v8281_v8 = vld [vmem:[#allocation5 + $0x3ac] sm:$0xf] }
 0x22a   : > { %v2987_v51 = vmin.f32 %v2923_v26, 1.0  ;;  %v2153_v14 = vadd.f32 %v2048_v48, %v453_v9  ;;  %v7297_v9 = vld [vmem:[#allocation5 + $0x390] sm:$0xf0]  ;;  %v8277_v48 = vld [vmem:[#allocation5 + $0x38c] sm:$0xf] }
 0x22b   : > { %v7300_v27 = vor.u32 %v8276_v2, %v7297_v9  ;;  %v2352_v2 = vld [vmem:[%s10982_s2 + $0x140] sm:$0xff] }
 0x22c   : > { %3051 = vst [vmem:[#allocation8 + $0x118] sm:$0xff] %v2987_v51  ;;  %v3372_v42 = vmul.f32 %v3223_v11, %v2987_v51  ;;  %v2796_v33 = vmul.f32 %v9630_v4, %v2153_v14 }
 0x22d   : > { %2217 = vst [vmem:[#allocation2 + $0x40] sm:$0xff] %v2153_v14  ;;  %v1880_v30 = vpop.f32.mrf.mxu2 }
 0x22e   : > { %v8540_v40 = vpack.c.bf16 %v3372_v42, %v3371_v23  ;;  %v1881_v37 = vadd.f32 %v1880_v30, %v1712_v61  ;;  %v2049_v21 = vpop.f32.mrf.mxu3  ;;  %v2860_v34 = vadd.f32 %v2796_v33, %v2348_v57  ;;  %v456_v30 = vld [vmem:[#allocation2 + $0x128] sm:$0xff] }
 0x22f   : > { %v1545_v32 = vpop.f32.mrf.mxu0  ;;  %v1714_v44 = vpop.f32.mrf.mxu1 }
 0x230   : > { %8788 = vst [vmem:[#allocation3 + $0xa0] sm:$0xff] %v8540_v40   ;;  %v2050_v28 = vadd.f32 %v2049_v21, %v1881_v37  ;;  %v2924_v39 = vmax.f32 %v2860_v34, 0.0  ;;  %v1715_v4 = vadd.f32 %v1714_v44, %v1545_v32  ;;  %v2351_v32 = vld [vmem:[%s10982_s2 + $0x138] sm:$0xff] }
 0x231   : > { %1584 = vmatmul.bf16.gmra.mxu0 %v7280_v31  ;;  %1753 = vmatmul.bf16.gmra.mxu1 %v7284_v29  ;;  %v7304_v31 = vor.u32 %v8279_v41, %v7303_v55 }
 0x232   : > { %1922 = vmatmul.bf16.gmra.mxu2 %v7288_v0  ;;  %2091 = vmatmul.bf16.gmra.mxu3 %v7292_v43  ;;  %v2154_v56 = vadd.f32 %v2050_v28, %v454_v58  ;;  %v2988_v13 = vmin.f32 %v2924_v39, 1.0 }
 0x234   : > { %2218 = vst [vmem:[#allocation2 + $0x1f8] sm:$0xff] %v2154_v56  ;;  %v2797_v54 = vmul.f32 %v9628_v6, %v2154_v56  ;;  %v7305_v6 = vld [vmem:[#allocation5 + $0x398] sm:$0xf0]  ;;  %v3373_v46 = vmul.f32 %v3227_v35, %v2988_v13 }
 0x235   : > { %v1883_v49 = vpop.f32.mrf.mxu2  ;;  %3052 = vst [vmem:[#allocation8 + $0x120] sm:$0xff] %v2988_v13  ;;  %v7308_v29 = vor.u32 %v8277_v48, %v7305_v6 }
 0x236   : > { %v1884_v20 = vadd.f32 %v1883_v49, %v1715_v4  ;;  %v2052_v47 = vpop.f32.mrf.mxu3  ;;  %v2861_v1 = vadd.f32 %v2797_v54, %v2349_v15  ;;  %v457_v4 = vld [vmem:[#allocation2 + $0x1a0] sm:$0xff]  ;;  %v8282_v54 = vld [vmem:[#allocation5 + $0x3ac] sm:$0xf0] }
 0x237   : > { %v1547_v36 = vpop.f32.mrf.mxu0  ;;  %v1716_v19 = vpop.f32.mrf.mxu1  ;;  %v7311_v15 = vld [vmem:[#allocation5 + $0x3a0] sm:$0xf] }
 0x238   : > { %v2053_v16 = vadd.f32 %v2052_v47, %v1884_v20  ;;  %v2925_v7 = vmax.f32 %v2861_v1, 0.0  ;;  %v1717_v14 = vadd.f32 %v1716_v19, %v1547_v36  ;;  %v8280_v47 = vld [vmem:[#allocation5 + $0x3a4] sm:$0xf]  ;;  %v7313_v36 = vld [vmem:[#allocation5 + $0x3b0] sm:$0xf0]  ;;  %v7312_v9 = vor.u32 %v8282_v54, %v7311_v15  ;;  %v3243_v54 = vpop.permute.xlu0 %3242 }
 0x239   : > { %v7319_v1 = vld [vmem:[#allocation5 + $0x3a8] sm:$0xf]  ;;  %v7316_v55 = vor.u32 %v8280_v47, %v7313_v36 }
 0x23a   : > { %v2155_v12 = vadd.f32 %v2053_v16, %v455_v17  ;;  %v2989_v26 = vmin.f32 %v2925_v7, 1.0  ;;  %v8283_v17 = vld [vmem:[#allocation5 + $0x3b4] sm:$0xf0]  ;;  %v3239_v16 = vpop.permute.xlu2 %3238  ;;  %v3235_v7 = vpop.permute.xlu1 %3234 }
 0x23b   : > { %v7320_v35 = vor.u32 %v8283_v17, %v7319_v1 }
 0x23c   : > { %2219 = vst [vmem:[#allocation2 + $0x20] sm:$0xff] %v2155_v12  ;;  %v2798_v51 = vmul.f32 %v9578_v52, %v2155_v12  ;;  %v3374_v38 = vmul.f32 %v3231_v25, %v2989_v26 }
 0x23d   : > { %3053 = vst [vmem:[#allocation8 + $0x128] sm:$0xff] %v2989_v26  ;;  %v1885_v11 = vpop.f32.mrf.mxu2 }
 0x23e   : > { %v2862_v57 = vadd.f32 %v2798_v51, %v2350_v63  ;;  %v8545_v42 = vpack.c.bf16 %v3374_v38, %v3373_v46  ;;  %v1886_v61 = vadd.f32 %v1885_v11, %v1717_v14  ;;  %v2054_v23 = vpop.f32.mrf.mxu3  ;;  %v458_v46 = vld [vmem:[#allocation2 + $0x1f0] sm:$0xff] }
 0x23f   : > { %v1550_v33 = vpop.f32.mrf.mxu0  ;;  %v1719_v0 = vpop.f32.mrf.mxu1 }
 0x240   : > { %v2926_v43 = vmax.f32 %v2862_v57, 0.0  ;;  %8789 = vst [vmem:[#allocation3 + $0xf8] sm:$0xff] %v8545_v42   ;;  %v2055_v40 = vadd.f32 %v2054_v23, %v1886_v61  ;;  %v1720_v21 = vadd.f32 %v1719_v0, %v1550_v33  ;;  %v2353_v42 = vld [vmem:[%s10982_s2 + $0x148] sm:$0xff] }
 0x241   : > { %1589 = vmatmul.bf16.gmra.mxu0 %v7296_v50  ;;  %1758 = vmatmul.bf16.gmra.mxu1 %v7300_v27 }
 0x242   : > { %1927 = vmatmul.bf16.gmra.mxu2 %v7304_v31  ;;  %2096 = vmatmul.bf16.gmra.mxu3 %v7308_v29  ;;  %v2990_v52 = vmin.f32 %v2926_v43, 1.0  ;;  %v2156_v37 = vadd.f32 %v2055_v40, %v456_v30  ;;  %v459_v40 = vld [vmem:[#allocation2 + $0xe8] sm:$0xff]  ;;  %v3247_v15 = vpop.permute.xlu1 %3246 }
 0x244   : > { %3054 = vst [vmem:[#allocation8 + $0x130] sm:$0xff] %v2990_v52  ;;  %v2799_v34 = vmul.f32 %v9646_v45, %v2156_v37  ;;  %v7321_v45 = vld [vmem:[#allocation5 + $0x3b8] sm:$0xf0]  ;;  %v3375_v41 = vmul.f32 %v3235_v7, %v2990_v52 }
 0x245   : > { %2220 = vst [vmem:[#allocation2 + $0x128] sm:$0xff] %v2156_v37  ;;  %v1888_v58 = vpop.f32.mrf.mxu2  ;;  %v7324_v63 = vor.u32 %v8281_v8, %v7321_v45  ;;  %v7327_v37 = vld [vmem:[#allocation5 + $0x3c0] sm:$0xf] }
 0x246   : > { %v2863_v44 = vadd.f32 %v2799_v34, %v2351_v32  ;;  %v1889_v28 = vadd.f32 %v1888_v58, %v1720_v21  ;;  %v2057_v39 = vpop.f32.mrf.mxu3  ;;  %v8286_v21 = vld [vmem:[#allocation5 + $0x3cc] sm:$0xf0]  ;;  %v8284_v58 = vld [vmem:[#allocation5 + $0x3c4] sm:$0xf] }
 0x247   : > { %v1552_v56 = vpop.f32.mrf.mxu0  ;;  %v1721_v13 = vpop.f32.mrf.mxu1 }
 0x248   : > { %v2927_v49 = vmax.f32 %v2863_v44, 0.0  ;;  %v2058_v20 = vadd.f32 %v2057_v39, %v1889_v28  ;;  %v1722_v48 = vadd.f32 %v1721_v13, %v1552_v56  ;;  %v7329_v44 = vld [vmem:[#allocation5 + $0x3d0] sm:$0xf0]  ;;  %v7335_v28 = vld [vmem:[#allocation5 + $0x3c8] sm:$0xf] }
 0x249   : > { %v8287_v39 = vld [vmem:[#allocation5 + $0x3d4] sm:$0xf0]  ;;  %v8285_v13 = vld [vmem:[#allocation5 + $0x3cc] sm:$0xf]  ;;  %v7332_v47 = vor.u32 %v8284_v58, %v7329_v44 }
 0x24a   : > { %v2991_v19 = vmin.f32 %v2927_v49, 1.0  ;;  %v2157_v5 = vadd.f32 %v2058_v20, %v457_v4  ;;  %v2354_v49 = vld [vmem:[%s10982_s2 + $0x150] sm:$0xff]  ;;  %v7328_v20 = vor.u32 %v8286_v21, %v7327_v37  ;;  %v7336_v8 = vor.u32 %v8287_v39, %v7335_v28  ;;  %v2356_v37 = vld [vmem:[%s10982_s2 + $0x160] sm:$0xff] }
 0x24c   : > { %3055 = vst [vmem:[#allocation8 + $0x138] sm:$0xff] %v2991_v19  ;;  %v3376_v12 = vmul.f32 %v3239_v16, %v2991_v19  ;;  %v2800_v26 = vmul.f32 %v9644_v62, %v2157_v5 }
 0x24d   : > { %2221 = vst [vmem:[#allocation2 + $0x1a0] sm:$0xff] %v2157_v5  ;;  %v1890_v6 = vpop.f32.mrf.mxu2 }
 0x24e   : > { %v8550_v25 = vpack.c.bf16 %v3376_v12, %v3375_v41  ;;  %v2864_v50 = vadd.f32 %v2800_v26, %v2352_v2  ;;  %v1891_v27 = vadd.f32 %v1890_v6, %v1722_v48  ;;  %v2059_v51 = vpop.f32.mrf.mxu3  ;;  %v460_v41 = vld [vmem:[#allocation2 + $0x78] sm:$0xff] }
 0x24f   : > { %v1555_v14 = vpop.f32.mrf.mxu0  ;;  %v1724_v38 = vpop.f32.mrf.mxu1 }
 0x250   : > { %8790 = vst [vmem:[#allocation3 + $0x58] sm:$0xff] %v8550_v25   ;;  %v2928_v11 = vmax.f32 %v2864_v50, 0.0  ;;  %v2060_v31 = vadd.f32 %v2059_v51, %v1891_v27  ;;  %v1725_v57 = vadd.f32 %v1724_v38, %v1555_v14  ;;  %v461_v38 = vld [vmem:[#allocation2 + $0x70] sm:$0xff] }
 0x251   : > { %1594 = vmatmul.bf16.gmra.mxu0 %v7312_v9  ;;  %1763 = vmatmul.bf16.gmra.mxu1 %v7316_v55 }
 0x252   : > { %1932 = vmatmul.bf16.gmra.mxu2 %v7320_v35  ;;  %2101 = vmatmul.bf16.gmra.mxu3 %v7324_v63  ;;  %v2992_v62 = vmin.f32 %v2928_v11, 1.0  ;;  %v2158_v29 = vadd.f32 %v2060_v31, %v458_v46  ;;  %v2355_v63 = vld [vmem:[%s10982_s2 + $0x158] sm:$0xff]  ;;  %v7343_v31 = vld [vmem:[#allocation5 + $0x3e0] sm:$0xf] }
 0x254   : > { %3056 = vst [vmem:[#allocation8 + $0x140] sm:$0xff] %v2992_v62  ;;  %v2801_v61 = vmul.f32 %v9594_v53, %v2158_v29  ;;  %v7337_v53 = vld [vmem:[#allocation5 + $0x3d8] sm:$0xf0]  ;;  %v3377_v36 = vmul.f32 %v3243_v54, %v2992_v62  ;;  %v8290_v62 = vld [vmem:[#allocation5 + $0x3ec] sm:$0xf0] }
 0x255   : > { %2222 = vst [vmem:[#allocation2 + $0x1f0] sm:$0xff] %v2158_v29  ;;  %v1893_v23 = vpop.f32.mrf.mxu2  ;;  %v7340_v45 = vor.u32 %v8285_v13, %v7337_v53  ;;  %v7344_v21 = vor.u32 %v8290_v62, %v7343_v31  ;;  %v464_v62 = vld [vmem:[#allocation2 + $0xd0] sm:$0xff] }
 0x256   : > { %v2865_v33 = vadd.f32 %v2801_v61, %v2353_v42  ;;  %v1894_v30 = vadd.f32 %v1893_v23, %v1725_v57  ;;  %v2062_v0 = vpop.f32.mrf.mxu3  ;;  %v8288_v42 = vld [vmem:[#allocation5 + $0x3e4] sm:$0xf]  ;;  %v7345_v61 = vld [vmem:[#allocation5 + $0x3f0] sm:$0xf0]  ;;  %v7351_v23 = vld [vmem:[#allocation5 + $0x3e8] sm:$0xf] }
 0x257   : > { %v1557_v43 = vpop.f32.mrf.mxu0  ;;  %v1726_v52 = vpop.f32.mrf.mxu1 }
 0x258   : > { %v2929_v32 = vmax.f32 %v2865_v33, 0.0  ;;  %v2063_v34 = vadd.f32 %v2062_v0, %v1894_v30  ;;  %v1727_v19 = vadd.f32 %v1726_v52, %v1557_v43  ;;  %v8291_v33 = vld [vmem:[#allocation5 + $0x3f4] sm:$0xf0]  ;;  %v8289_v43 = vld [vmem:[#allocation5 + $0x3ec] sm:$0xf]  ;;  %v3255_v52 = vpop.permute.xlu0 %3254 }
 0x25a   : > { %v2993_v56 = vmin.f32 %v2929_v32, 1.0  ;;  %v2159_v4 = vadd.f32 %v2063_v34, %v459_v40  ;;  %v3251_v40 = vpop.permute.xlu2 %3250  ;;  %v7348_v32 = vor.u32 %v8288_v42, %v7345_v61 }
 0x25c   : > { %3057 = vst [vmem:[#allocation8 + $0x148] sm:$0xff] %v2993_v56  ;;  %v3378_v1 = vmul.f32 %v3247_v15, %v2993_v56  ;;  %v2802_v17 = vmul.f32 %v9660_v18, %v2159_v4  ;;  %v7352_v56 = vor.u32 %v8291_v33, %v7351_v23 }
 0x25d   : > { %2223 = vst [vmem:[#allocation2 + $0xe8] sm:$0xff] %v2159_v4  ;;  %v1895_v5 = vpop.f32.mrf.mxu2 }
 0x25e   : > { %v8555_v16 = vpack.c.bf16 %v3378_v1, %v3377_v36  ;;  %v2866_v7 = vadd.f32 %v2802_v17, %v2354_v49  ;;  %v1896_v2 = vadd.f32 %v1895_v5, %v1727_v19  ;;  %v2064_v9 = vpop.f32.mrf.mxu3  ;;  %v2357_v5 = vld [vmem:[%s10982_s2 + $0x168] sm:$0xff] }
 0x25f   : > { %v1560_v55 = vpop.f32.mrf.mxu0  ;;  %v1729_v12 = vpop.f32.mrf.mxu1 }
 0x260   : > { %8791 = vst [vmem:[#allocation3 + $0xc0] sm:$0xff] %v8555_v16   ;;  %v2930_v26 = vmax.f32 %v2866_v7, 0.0  ;;  %v2065_v48 = vadd.f32 %v2064_v9, %v1896_v2  ;;  %v1730_v35 = vadd.f32 %v1729_v12, %v1560_v55  ;;  %v463_v55 = vld [vmem:[#allocation2 + $0x1d8] sm:$0xff] }
 0x261   : > { %1599 = vmatmul.bf16.gmra.mxu0 %v7328_v20  ;;  %1768 = vmatmul.bf16.gmra.mxu1 %v7332_v47  ;;  %v462_v20 = vld [vmem:[#allocation2 + $0x90] sm:$0xff] }
 0x262   : > { %1937 = vmatmul.bf16.gmra.mxu2 %v7336_v8  ;;  %2106 = vmatmul.bf16.gmra.mxu3 %v7340_v45  ;;  %v2994_v18 = vmin.f32 %v2930_v26, 1.0  ;;  %v2160_v6 = vadd.f32 %v2065_v48, %v460_v41 }
 0x264   : > { %3058 = vst [vmem:[#allocation8 + $0x150] sm:$0xff] %v2994_v18  ;;  %v2803_v25 = vmul.f32 %v9658_v10, %v2160_v6  ;;  %v7353_v10 = vld [vmem:[#allocation5 + $0x3f8] sm:$0xf0]  ;;  %v3379_v34 = vmul.f32 %v3251_v40, %v2994_v18 }
 0x265   : > { %2224 = vst [vmem:[#allocation2 + $0x78] sm:$0xff] %v2160_v6  ;;  %v1898_v50 = vpop.f32.mrf.mxu2  ;;  %v7356_v4 = vor.u32 %v8289_v43, %v7353_v10  ;;  %v3263_v6 = vpop.permute.xlu2 %3262 }
 0x266   : > { %v2867_v27 = vadd.f32 %v2803_v25, %v2355_v63  ;;  %v1899_v51 = vadd.f32 %v1898_v50, %v1730_v35  ;;  %v2067_v14 = vpop.f32.mrf.mxu3  ;;  %v3259_v35 = vpop.permute.xlu1 %3258  ;;  %v2358_v63 = vld [vmem:[%s10982_s2 + $0x170] sm:$0xff] }
 0x267   : > { %v1562_v46 = vpop.f32.mrf.mxu0  ;;  %v1731_v11 = vpop.f32.mrf.mxu1 }
 0x268   : > { %v2931_v29 = vmax.f32 %v2867_v27, 0.0  ;;  %v2068_v57 = vadd.f32 %v2067_v14, %v1899_v51  ;;  %v1732_v28 = vadd.f32 %v1731_v11, %v1562_v46 }
 0x26a   : > { %v2995_v30 = vmin.f32 %v2931_v29, 1.0  ;;  %v2161_v0 = vadd.f32 %v2068_v57, %v461_v38 }
 0x26c   : > { %3059 = vst [vmem:[#allocation8 + $0x158] sm:$0xff] %v2995_v30  ;;  %v3380_v58 = vmul.f32 %v3255_v52, %v2995_v30  ;;  %v2804_v44 = vmul.f32 %v9610_v59, %v2161_v0 }
 0x26d   : > { %2225 = vst [vmem:[#allocation2 + $0x70] sm:$0xff] %v2161_v0  ;;  %v1900_v39 = vpop.f32.mrf.mxu2 }
 0x26e   : > { %v8560_v13 = vpack.c.bf16 %v3380_v58, %v3379_v34  ;;  %v2868_v53 = vadd.f32 %v2804_v44, %v2356_v37  ;;  %v1901_v15 = vadd.f32 %v1900_v39, %v1732_v28  ;;  %v2069_v54 = vpop.f32.mrf.mxu3  ;;  %v465_v37 = vld [vmem:[#allocation2 + $0xb8] sm:$0xff]  ;;  %v3271_v28 = vpop.permute.xlu1 %3270 }
 0x26f   : > { %v1565_v49 = vpop.f32.mrf.mxu0  ;;  %v1734_v47 = vpop.f32.mrf.mxu1 }
 0x270   : > { %8792 = vst [vmem:[#allocation3 + $0x38] sm:$0xff] %v8560_v13   ;;  %v2932_v36 = vmax.f32 %v2868_v53, 0.0  ;;  %v2070_v1 = vadd.f32 %v2069_v54, %v1901_v15  ;;  %v1735_v19 = vadd.f32 %v1734_v47, %v1565_v49  ;;  %v3267_v39 = vpop.permute.xlu0 %3266 }
 0x271   : > { %1604 = vmatmul.bf16.gmra.mxu0 %v7344_v21  ;;  %1773 = vmatmul.bf16.gmra.mxu1 %v7348_v32 }
 0x272   : > { %1942 = vmatmul.bf16.gmra.mxu2 %v7352_v56  ;;  %2111 = vmatmul.bf16.gmra.mxu3 %v7356_v4  ;;  %v2996_v59 = vmin.f32 %v2932_v36, 1.0  ;;  %v2162_v17 = vadd.f32 %v2070_v1, %v462_v20  ;;  %v2360_v56 = vld [vmem:[%s10982_s2 + $0x180] sm:$0xff]  ;;  %v466_v1 = vld [vmem:[#allocation2 + $0x88] sm:$0xff] }
 0x274   : > { %3060 = vst [vmem:[#allocation8 + $0x160] sm:$0xff] %v2996_v59  ;;  %v2805_v8 = vmul.f32 %v9676_v22, %v2162_v17  ;;  %v3381_v25 = vmul.f32 %v3259_v35, %v2996_v59 }
 0x275   : > { %2226 = vst [vmem:[#allocation2 + $0x90] sm:$0xff] %v2162_v17  ;;  %v1903_v45 = vpop.f32.mrf.mxu2 }
 0x276   : > { %v2869_v16 = vadd.f32 %v2805_v8, %v2357_v5  ;;  %v1904_v7 = vadd.f32 %v1903_v45, %v1735_v19  ;;  %v2072_v2 = vpop.f32.mrf.mxu3 }
 0x277   : > { %v1567_v9 = vpop.f32.mrf.mxu0  ;;  %v1736_v41 = vpop.f32.mrf.mxu1 }
 0x278   : > { %v2933_v12 = vmax.f32 %v2869_v16, 0.0  ;;  %v2073_v26 = vadd.f32 %v2072_v2, %v1904_v7  ;;  %v1737_v27 = vadd.f32 %v1736_v41, %v1567_v9  ;;  %v11046_v16 = vld [vmem:[#allocation40_spill] sm:$0xff] }
 0x27a   : > { %v2997_v48 = vmin.f32 %v2933_v12, 1.0  ;;  %v2163_v18 = vadd.f32 %v2073_v26, %v463_v55  ;;  %v467_v26 = vld [vmem:[#allocation2 + $0xa8] sm:$0xff] }
 0x27c   : > { %3061 = vst [vmem:[#allocation8 + $0x168] sm:$0xff] %v2997_v48  ;;  %v3382_v22 = vmul.f32 %v3263_v6, %v2997_v48  ;;  %v2806_v50 = vmul.f32 %v9674_v60, %v2163_v18  ;;  %v2359_v60 = vld [vmem:[%s10982_s2 + $0x178] sm:$0xff] }
 0x27d   : > { %2227 = vst [vmem:[#allocation2 + $0x1d8] sm:$0xff] %v2163_v18  ;;  %v1905_v51 = vpop.f32.mrf.mxu2 }
 0x27e   : > { %v8565_v14 = vpack.c.bf16 %v3382_v22, %v3381_v25  ;;  %v2870_v46 = vadd.f32 %v2806_v50, %v2358_v63  ;;  %v1906_v38 = vadd.f32 %v1905_v51, %v1737_v27  ;;  %v2074_v11 = vpop.f32.mrf.mxu3  ;;  %v3275_v25 = vpop.permute.xlu2 %3274  ;;  %v2362_v50 = vld [vmem:[%s10982_s2 + $0x190] sm:$0xff] }
 0x27f   : > { %v1570_v31 = vpop.f32.mrf.mxu0  ;;  %v1739_v29 = vpop.f32.mrf.mxu1 }
 0x280   : > { %8793 = vst [vmem:[#allocation3 + $0x28] sm:$0xff] %v8565_v14   ;;  %v2934_v57 = vmax.f32 %v2870_v46, 0.0  ;;  %v2075_v42 = vadd.f32 %v2074_v11, %v1906_v38  ;;  %v1740_v33 = vadd.f32 %v1739_v29, %v1570_v31  ;;  %v3279_v22 = vpop.permute.xlu0 %3278  ;;  %v11047_v14 = vld [vmem:[#allocation37_spill] sm:$0xff] }
 0x282   : > { %v2998_v61 = vmin.f32 %v2934_v57, 1.0  ;;  %v2164_v23 = vadd.f32 %v2075_v42, %v464_v62 }
 0x284   : > { %3062 = vst [vmem:[#allocation8 + $0x170] sm:$0xff] %v2998_v61  ;;  %v2807_v30 = vmul.f32 %v9626_v3, %v2164_v23  ;;  %v3383_v4 = vmul.f32 %v3267_v39, %v2998_v61  ;;  %v468_v61 = vld [vmem:[#allocation2 + $0x1c8] sm:$0xff] }
 0x285   : > { %2228 = vst [vmem:[#allocation2 + $0xd0] sm:$0xff] %v2164_v23  ;;  %v1908_v0 = vpop.f32.mrf.mxu2 }
 0x286   : > { %v2871_v43 = vadd.f32 %v2807_v30, %v2359_v60  ;;  %v1909_v10 = vadd.f32 %v1908_v0, %v1740_v33  ;;  %v2077_v40 = vpop.f32.mrf.mxu3 }
 0x287   : > { %v1572_v52 = vpop.f32.mrf.mxu0  ;;  %v1741_v21 = vpop.f32.mrf.mxu1 }
 0x288   : > { %v2935_v32 = vmax.f32 %v2871_v43, 0.0  ;;  %v2078_v34 = vadd.f32 %v2077_v40, %v1909_v10  ;;  %v1742_v53 = vadd.f32 %v1741_v21, %v1572_v52  ;;  %v2363_v10 = vld [vmem:[%s10982_s2 + $0x198] sm:$0xff]  ;;  %v11048_v40 = vld [vmem:[#allocation42_spill] sm:$0xff] }
 0x28a   : > { %v2999_v58 = vmin.f32 %v2935_v32, 1.0  ;;  %v2165_v44 = vadd.f32 %v2078_v34, %v465_v37 }
 0x28c   : > { %3063 = vst [vmem:[#allocation8 + $0x178] sm:$0xff] %v2999_v58  ;;  %v3384_v3 = vmul.f32 %v3271_v28, %v2999_v58  ;;  %v2808_v13 = vmul.f32 %v9692_v24, %v2165_v44  ;;  %v2361_v24 = vld [vmem:[%s10982_s2 + $0x188] sm:$0xff] }
 0x28d   : > { %2229 = vst [vmem:[#allocation2 + $0xb8] sm:$0xff] %v2165_v44  ;;  %v1910_v15 = vpop.f32.mrf.mxu2  ;;  %v469_v44 = vld [vmem:[#allocation2 + $0x170] sm:$0xff] }
 0x28e   : > { %v8570_v54 = vpack.c.bf16 %v3384_v3, %v3383_v4  ;;  %v2872_v49 = vadd.f32 %v2808_v13, %v2360_v56  ;;  %v1911_v20 = vadd.f32 %v1910_v15, %v1742_v53  ;;  %v2079_v47 = vpop.f32.mrf.mxu3  ;;  %v3287_v13 = vpop.permute.xlu2 %3286  ;;  %v2364_v15 = vld [vmem:[%s10982_s2 + $0x1a0] sm:$0xff] }
 0x28f   : > { %v1575_v36 = vpop.f32.mrf.mxu0  ;;  %v1744_v59 = vpop.f32.mrf.mxu1 }
 0x290   : > { %8794 = vst [vmem:[#allocation3 + $0xa8] sm:$0xff] %v8570_v54   ;;  %v2936_v17 = vmax.f32 %v2872_v49, 0.0  ;;  %v2080_v19 = vadd.f32 %v2079_v47, %v1911_v20  ;;  %v1745_v45 = vadd.f32 %v1744_v59, %v1575_v36  ;;  %v3283_v53 = vpop.permute.xlu1 %3282  ;;  %v11049_v20 = vld [vmem:[#allocation41_spill] sm:$0xff] }
 0x292   : > { %v3000_v5 = vmin.f32 %v2936_v17, 1.0  ;;  %v2166_v8 = vadd.f32 %v2080_v19, %v466_v1 }
 0x294   : > { %3064 = vst [vmem:[#allocation8 + $0x180] sm:$0xff] %v3000_v5  ;;  %v2809_v7 = vmul.f32 %v11046_v16, %v2166_v8  ;;  %v3385_v27 = vmul.f32 %v3275_v25, %v3000_v5  ;;  %v471_v25 = vld [vmem:[#allocation2 + $0x68] sm:$0xff] }
 0x295   : > { %2230 = vst [vmem:[#allocation2 + $0x88] sm:$0xff] %v2166_v8  ;;  %v1913_v2 = vpop.f32.mrf.mxu2 }
 0x296   : > { %v2873_v9 = vadd.f32 %v2809_v7, %v2361_v24  ;;  %v1914_v55 = vadd.f32 %v1913_v2, %v1745_v45  ;;  %v2082_v41 = vpop.f32.mrf.mxu3  ;;  %v470_v45 = vld [vmem:[#allocation2 + $0x178] sm:$0xff] }
 0x297   : > { %v1577_v12 = vpop.f32.mrf.mxu0  ;;  %v1746_v48 = vpop.f32.mrf.mxu1 }
 0x298   : > { %v2937_v18 = vmax.f32 %v2873_v9, 0.0  ;;  %v2083_v6 = vadd.f32 %v2082_v41, %v1914_v55  ;;  %v1747_v38 = vadd.f32 %v1746_v48, %v1577_v12  ;;  %v2365_v41 = vld [vmem:[%s10982_s2 + $0x1a8] sm:$0xff] }
 0x299   : > { %v11050_v12 = vld [vmem:[#allocation38_spill] sm:$0xff] }
 0x29a   : > { %v3001_v35 = vmin.f32 %v2937_v18, 1.0  ;;  %v2167_v63 = vadd.f32 %v2083_v6, %v467_v26 }
 0x29c   : > { %3065 = vst [vmem:[#allocation8 + $0x188] sm:$0xff] %v3001_v35  ;;  %v3386_v51 = vmul.f32 %v3279_v22, %v3001_v35  ;;  %v2810_v46 = vmul.f32 %v11047_v14, %v2167_v63 }
 0x29d   : > { %2231 = vst [vmem:[#allocation2 + $0xa8] sm:$0xff] %v2167_v63  ;;  %v1915_v11 = vpop.f32.mrf.mxu2 }
 0x29e   : > { %v8575_v31 = vpack.c.bf16 %v3386_v51, %v3385_v27  ;;  %v2874_v62 = vadd.f32 %v2810_v46, %v2362_v50  ;;  %v1916_v29 = vadd.f32 %v1915_v11, %v1747_v38  ;;  %v2084_v57 = vpop.f32.mrf.mxu3  ;;  %v3295_v46 = vpop.permute.xlu1 %3294  ;;  %v2366_v11 = vld [vmem:[%s10982_s2 + $0x1b0] sm:$0xff] }
 0x29f   : > { %v1580_v42 = vpop.f32.mrf.mxu0  ;;  %v1749_v23 = vpop.f32.mrf.mxu1 }
 0x2a0   : > { %8795 = vst [vmem:[#allocation3 + $0xe8] sm:$0xff] %v8575_v31   ;;  %v2938_v33 = vmax.f32 %v2874_v62, 0.0  ;;  %v2085_v60 = vadd.f32 %v2084_v57, %v1916_v29  ;;  %v1750_v43 = vadd.f32 %v1749_v23, %v1580_v42  ;;  %v3291_v38 = vpop.permute.xlu0 %3290  ;;  %v11051_v29 = vld [vmem:[#allocation24_spill] sm:$0xff] }
 0x2a2   : > { %v3002_v30 = vmin.f32 %v2938_v33, 1.0  ;;  %v2168_v0 = vadd.f32 %v2085_v60, %v468_v61 }
 0x2a4   : > { %3066 = vst [vmem:[#allocation8 + $0x190] sm:$0xff] %v3002_v30  ;;  %v2811_v52 = vmul.f32 %v11048_v40, %v2168_v0  ;;  %v3387_v54 = vmul.f32 %v3283_v53, %v3002_v30 }
 0x2a5   : > { %2232 = vst [vmem:[#allocation2 + $0x1c8] sm:$0xff] %v2168_v0  ;;  %v1918_v37 = vpop.f32.mrf.mxu2 }
 0x2a6   : > { %v2875_v21 = vadd.f32 %v2811_v52, %v2363_v10  ;;  %v1919_v32 = vadd.f32 %v1918_v37, %v1750_v43  ;;  %v2087_v34 = vpop.f32.mrf.mxu3  ;;  %v472_v43 = vld [vmem:[#allocation2 + $0x190] sm:$0xff] }
 0x2a7   : > { %v1582_v58 = vpop.f32.mrf.mxu0  ;;  %v1751_v28 = vpop.f32.mrf.mxu1 }
 0x2a8   : > { %v2939_v39 = vmax.f32 %v2875_v21, 0.0  ;;  %v2088_v56 = vadd.f32 %v2087_v34, %v1919_v32  ;;  %v1752_v36 = vadd.f32 %v1751_v28, %v1582_v58  ;;  %v2367_v34 = vld [vmem:[%s10982_s2 + $0x1b8] sm:$0xff]  ;;  %v11052_v58 = vld [vmem:[#allocation19_spill] sm:$0xff] }
 0x2aa   : > { %v3003_v4 = vmin.f32 %v2939_v39, 1.0  ;;  %v2169_v3 = vadd.f32 %v2088_v56, %v469_v44 }
 0x2ac   : > { %3067 = vst [vmem:[#allocation8 + $0x198] sm:$0xff] %v3003_v4  ;;  %v3388_v49 = vmul.f32 %v3287_v13, %v3003_v4  ;;  %v2812_v47 = vmul.f32 %v11049_v20, %v2169_v3  ;;  %v473_v13 = vld [vmem:[#allocation2 + $0x198] sm:$0xff] }
 0x2ad   : > { %2233 = vst [vmem:[#allocation2 + $0x170] sm:$0xff] %v2169_v3  ;;  %v1920_v1 = vpop.f32.mrf.mxu2 }
 0x2ae   : > { %v8580_v59 = vpack.c.bf16 %v3388_v49, %v3387_v54  ;;  %v2876_v17 = vadd.f32 %v2812_v47, %v2364_v15  ;;  %v1921_v19 = vadd.f32 %v1920_v1, %v1752_v36  ;;  %v2089_v5 = vpop.f32.mrf.mxu3  ;;  %v3299_v47 = vpop.permute.xlu2 %3298  ;;  %v2368_v1 = vld [vmem:[%s10982_s2 + $0x1c0] sm:$0xff] }
 0x2af   : > { %v1585_v8 = vpop.f32.mrf.mxu0  ;;  %v1754_v24 = vpop.f32.mrf.mxu1 }
 0x2b0   : > { %8796 = vst [vmem:[#allocation3 + $0xb0] sm:$0xff] %v8580_v59   ;;  %v2940_v16 = vmax.f32 %v2876_v17, 0.0  ;;  %v2090_v7 = vadd.f32 %v2089_v5, %v1921_v19  ;;  %v1755_v55 = vadd.f32 %v1754_v24, %v1585_v8  ;;  %v3303_v36 = vpop.permute.xlu0 %3302  ;;  %v11053_v19 = vld [vmem:[#allocation39_spill] sm:$0xff] }
 0x2b2   : > { %v3004_v2 = vmin.f32 %v2940_v16, 1.0  ;;  %v2170_v9 = vadd.f32 %v2090_v7, %v470_v45 }
 0x2b4   : > { %3068 = vst [vmem:[#allocation8 + $0x1a0] sm:$0xff] %v3004_v2  ;;  %v2813_v26 = vmul.f32 %v11050_v12, %v2170_v9  ;;  %v3389_v31 = vmul.f32 %v3291_v38, %v3004_v2 }
 0x2b5   : > { %2234 = vst [vmem:[#allocation2 + $0x178] sm:$0xff] %v2170_v9  ;;  %v1923_v48 = vpop.f32.mrf.mxu2 }
 0x2b6   : > { %v2877_v18 = vadd.f32 %v2813_v26, %v2365_v41  ;;  %v1924_v6 = vadd.f32 %v1923_v48, %v1755_v55  ;;  %v2092_v35 = vpop.f32.mrf.mxu3  ;;  %v474_v55 = vld [vmem:[#allocation2 + $0x38] sm:$0xff] }
 0x2b7   : > { %v1587_v63 = vpop.f32.mrf.mxu0  ;;  %v1756_v22 = vpop.f32.mrf.mxu1 }
 0x2b8   : > { %v2941_v50 = vmax.f32 %v2877_v18, 0.0  ;;  %v2093_v27 = vadd.f32 %v2092_v35, %v1924_v6  ;;  %v1757_v42 = vadd.f32 %v1756_v22, %v1587_v63  ;;  %v2369_v35 = vld [vmem:[%s10982_s2 + $0x1c8] sm:$0xff]  ;;  %v11054_v63 = vld [vmem:[#allocation43_spill] sm:$0xff] }
 0x2ba   : > { %v3005_v51 = vmin.f32 %v2941_v50, 1.0  ;;  %v2171_v14 = vadd.f32 %v2093_v27, %v471_v25 }
 0x2bc   : > { %3069 = vst [vmem:[#allocation8 + $0x1a8] sm:$0xff] %v3005_v51  ;;  %v3390_v62 = vmul.f32 %v3295_v46, %v3005_v51  ;;  %v2814_v57 = vmul.f32 %v11051_v29, %v2171_v14  ;;  %v475_v46 = vld [vmem:[#allocation2 + $0xc0] sm:$0xff] }
 0x2bd   : > { %2235 = vst [vmem:[#allocation2 + $0x68] sm:$0xff] %v2171_v14  ;;  %v1925_v61 = vpop.f32.mrf.mxu2 }
 0x2be   : > { %v8585_v23 = vpack.c.bf16 %v3390_v62, %v3389_v31  ;;  %v2878_v33 = vadd.f32 %v2814_v57, %v2366_v11  ;;  %v1926_v60 = vadd.f32 %v1925_v61, %v1757_v42  ;;  %v2094_v30 = vpop.f32.mrf.mxu3  ;;  %v3311_v57 = vpop.permute.xlu2 %3310  ;;  %v2370_v61 = vld [vmem:[%s10982_s2 + $0x1d0] sm:$0xff] }
 0x2bf   : > { %v1590_v0 = vpop.f32.mrf.mxu0  ;;  %v1759_v10 = vpop.f32.mrf.mxu1 }
 0x2c0   : > { %8797 = vst [vmem:[#allocation3 + $0x90] sm:$0xff] %v8585_v23   ;;  %v2942_v40 = vmax.f32 %v2878_v33, 0.0  ;;  %v2095_v52 = vadd.f32 %v2094_v30, %v1926_v60  ;;  %v1760_v32 = vadd.f32 %v1759_v10, %v1590_v0  ;;  %v3307_v42 = vpop.permute.xlu1 %3306  ;;  %v11055_v60 = vld [vmem:[#allocation20_spill] sm:$0xff] }
 0x2c2   : > { %v3006_v37 = vmin.f32 %v2942_v40, 1.0  ;;  %v2172_v21 = vadd.f32 %v2095_v52, %v472_v43 }
 0x2c4   : > { %3070 = vst [vmem:[#allocation8 + $0x1b0] sm:$0xff] %v3006_v37  ;;  %v2815_v44 = vmul.f32 %v11052_v58, %v2172_v21  ;;  %v3391_v59 = vmul.f32 %v3299_v47, %v3006_v37  ;;  %v477_v47 = vld [vmem:[#allocation2 + $0x158] sm:$0xff] }
 0x2c5   : > { %2236 = vst [vmem:[#allocation2 + $0x190] sm:$0xff] %v2172_v21  ;;  %v1928_v28 = vpop.f32.mrf.mxu2 }
 0x2c6   : > { %v2879_v39 = vadd.f32 %v2815_v44, %v2367_v34  ;;  %v1929_v56 = vadd.f32 %v1928_v28, %v1760_v32  ;;  %v2097_v4 = vpop.f32.mrf.mxu3  ;;  %v476_v32 = vld [vmem:[#allocation2 + $0x1c0] sm:$0xff] }
 0x2c7   : > { %v1592_v3 = vpop.f32.mrf.mxu0  ;;  %v1761_v53 = vpop.f32.mrf.mxu1 }
 0x2c8   : > { %v2943_v15 = vmax.f32 %v2879_v39, 0.0  ;;  %v2098_v54 = vadd.f32 %v2097_v4, %v1929_v56  ;;  %v1762_v8 = vadd.f32 %v1761_v53, %v1592_v3  ;;  %v2371_v4 = vld [vmem:[%s10982_s2 + $0x1d8] sm:$0xff]  ;;  %v11056_v3 = vld [vmem:[#allocation17_spill] sm:$0xff] }
 0x2ca   : > { %v3007_v49 = vmin.f32 %v2943_v15, 1.0  ;;  %v2173_v20 = vadd.f32 %v2098_v54, %v473_v13 }
 0x2cc   : > { %3071 = vst [vmem:[#allocation8 + $0x1b8] sm:$0xff] %v3007_v49  ;;  %v3392_v17 = vmul.f32 %v3303_v36, %v3007_v49  ;;  %v2816_v5 = vmul.f32 %v11053_v19, %v2173_v20 }
 0x2cd   : > { %2237 = vst [vmem:[#allocation2 + $0x198] sm:$0xff] %v2173_v20  ;;  %v1930_v45 = vpop.f32.mrf.mxu2 }
 0x2ce   : > { %v8590_v24 = vpack.c.bf16 %v3392_v17, %v3391_v59  ;;  %v2880_v16 = vadd.f32 %v2816_v5, %v2368_v1  ;;  %v1931_v7 = vadd.f32 %v1930_v45, %v1762_v8  ;;  %v2099_v2 = vpop.f32.mrf.mxu3  ;;  %v3319_v5 = vpop.permute.xlu1 %3318  ;;  %v2372_v45 = vld [vmem:[%s10982_s2 + $0x1e0] sm:$0xff] }
 0x2cf   : > { %v1595_v9 = vpop.f32.mrf.mxu0  ;;  %v1764_v41 = vpop.f32.mrf.mxu1 }
 0x2d0   : > { %8798 = vst [vmem:[#allocation3 + $0xb8] sm:$0xff] %v8590_v24   ;;  %v2944_v12 = vmax.f32 %v2880_v16, 0.0  ;;  %v2100_v26 = vadd.f32 %v2099_v2, %v1931_v7  ;;  %v1765_v6 = vadd.f32 %v1764_v41, %v1595_v9  ;;  %v3315_v8 = vpop.permute.xlu0 %3314  ;;  %v11057_v7 = vld [vmem:[#allocation44_spill] sm:$0xff] }
 0x2d2   : > { %v3008_v48 = vmin.f32 %v2944_v12, 1.0  ;;  %v2174_v18 = vadd.f32 %v2100_v26, %v474_v55 }
 0x2d4   : > { %3072 = vst [vmem:[#allocation8 + $0x1c0] sm:$0xff] %v3008_v48  ;;  %v2817_v25 = vmul.f32 %v11054_v63, %v2174_v18  ;;  %v3393_v23 = vmul.f32 %v3307_v42, %v3008_v48 }
 0x2d5   : > { %2238 = vst [vmem:[#allocation2 + $0x38] sm:$0xff] %v2174_v18  ;;  %v1933_v22 = vpop.f32.mrf.mxu2  ;;  %v478_v18 = vld [vmem:[#allocation2 + $0x10] sm:$0xff] }
 0x2d6   : > { %v2881_v50 = vadd.f32 %v2817_v25, %v2369_v35  ;;  %v1934_v27 = vadd.f32 %v1933_v22, %v1765_v6  ;;  %v2102_v51 = vpop.f32.mrf.mxu3 }
 0x2d7   : > { %v1597_v14 = vpop.f32.mrf.mxu0  ;;  %v1766_v38 = vpop.f32.mrf.mxu1 }
 0x2d8   : > { %v2945_v11 = vmax.f32 %v2881_v50, 0.0  ;;  %v2103_v31 = vadd.f32 %v2102_v51, %v1934_v27  ;;  %v1767_v0 = vadd.f32 %v1766_v38, %v1597_v14  ;;  %v2373_v51 = vld [vmem:[%s10982_s2 + $0x1e8] sm:$0xff]  ;;  %v11058_v14 = vld [vmem:[#allocation27_spill] sm:$0xff] }
 0x2da   : > { %v3009_v62 = vmin.f32 %v2945_v11, 1.0  ;;  %v2175_v29 = vadd.f32 %v2103_v31, %v475_v46 }
 0x2dc   : > { %3073 = vst [vmem:[#allocation8 + $0x1c8] sm:$0xff] %v3009_v62  ;;  %v3394_v33 = vmul.f32 %v3311_v57, %v3009_v62  ;;  %v2818_v30 = vmul.f32 %v11055_v60, %v2175_v29 }
 0x2dd   : > { %2239 = vst [vmem:[#allocation2 + $0xc0] sm:$0xff] %v2175_v29  ;;  %v1935_v43 = vpop.f32.mrf.mxu2  ;;  %v479_v29 = vld [vmem:[#allocation2 + $0x58] sm:$0xff] }
 0x2de   : > { %v8595_v10 = vpack.c.bf16 %v3394_v33, %v3393_v23  ;;  %v2882_v40 = vadd.f32 %v2818_v30, %v2370_v61  ;;  %v1936_v52 = vadd.f32 %v1935_v43, %v1767_v0  ;;  %v2104_v37 = vpop.f32.mrf.mxu3  ;;  %v3323_v30 = vpop.permute.xlu2 %3322  ;;  %v2374_v43 = vld [vmem:[%s10982_s2 + $0x1f0] sm:$0xff] }
 0x2df   : > { %v1600_v21 = vpop.f32.mrf.mxu0  ;;  %v1769_v34 = vpop.f32.mrf.mxu1 }
 0x2e0   : > { %8799 = vst [vmem:[#allocation3 + $0x10] sm:$0xff] %v8595_v10   ;;  %v2946_v58 = vmax.f32 %v2882_v40, 0.0  ;;  %v2105_v44 = vadd.f32 %v2104_v37, %v1936_v52  ;;  %v1770_v56 = vadd.f32 %v1769_v34, %v1600_v21  ;;  %v3327_v0 = vpop.permute.xlu0 %3326  ;;  %v11059_v52 = vld [vmem:[#allocation18_spill] sm:$0xff] }
 0x2e2   : > { %v3010_v28 = vmin.f32 %v2946_v58, 1.0  ;;  %v2176_v39 = vadd.f32 %v2105_v44, %v476_v32 }
 0x2e4   : > { %3074 = vst [vmem:[#allocation8 + $0x1d0] sm:$0xff] %v3010_v28  ;;  %v2819_v13 = vmul.f32 %v11056_v3, %v2176_v39  ;;  %v3395_v24 = vmul.f32 %v3315_v8, %v3010_v28  ;;  %v480_v28 = vld [vmem:[#allocation2 + $0xa0] sm:$0xff] }
 0x2e5   : > { %2240 = vst [vmem:[#allocation2 + $0x1c0] sm:$0xff] %v2176_v39  ;;  %v1938_v53 = vpop.f32.mrf.mxu2 }
 0x2e6   : > { %v2883_v15 = vadd.f32 %v2819_v13, %v2371_v4  ;;  %v1939_v54 = vadd.f32 %v1938_v53, %v1770_v56  ;;  %v2107_v49 = vpop.f32.mrf.mxu3  ;;  %v2375_v53 = vld [vmem:[%s10982_s2 + $0x1f8] sm:$0xff] }
 0x2e7   : > { %v1602_v20 = vpop.f32.mrf.mxu0  ;;  %v1771_v36 = vpop.f32.mrf.mxu1 }
 0x2e8   : > { %v2947_v1 = vmax.f32 %v2883_v15, 0.0  ;;  %v2108_v59 = vadd.f32 %v2107_v49, %v1939_v54  ;;  %v1772_v9 = vadd.f32 %v1771_v36, %v1602_v20  ;;  %v11060_v15 = vld [vmem:[#allocation26_spill] sm:$0xff]  ;;  %v3335_v36 = vpop.permute.xlu2 %3334 }
 0x2ea   : > { %v3011_v17 = vmin.f32 %v2947_v1, 1.0  ;;  %v2177_v19 = vadd.f32 %v2108_v59, %v477_v47  ;;  %v3331_v1 = vpop.permute.xlu1 %3330 }
 0x2ec   : > { %3075 = vst [vmem:[#allocation8 + $0x1d8] sm:$0xff] %v3011_v17  ;;  %v3396_v16 = vmul.f32 %v3319_v5, %v3011_v17  ;;  %v2820_v2 = vmul.f32 %v11057_v7, %v2177_v19 }
 0x2ed   : > { %2241 = vst [vmem:[#allocation2 + $0x158] sm:$0xff] %v2177_v19  ;;  %v1940_v55 = vpop.f32.mrf.mxu2 }
 0x2ee   : > { %v8600_v41 = vpack.c.bf16 %v3396_v16, %v3395_v24  ;;  %v2884_v12 = vadd.f32 %v2820_v2, %v2372_v45  ;;  %v1941_v26 = vadd.f32 %v1940_v55, %v1772_v9  ;;  %v2109_v48 = vpop.f32.mrf.mxu3 }
 0x2ef   : > { %v1605_v6 = vpop.f32.mrf.mxu0  ;;  %v1774_v35 = vpop.f32.mrf.mxu1 }
 0x2f0   : > { %8800 = vst [vmem:[#allocation3 + $0x80] sm:$0xff] %v8600_v41   ;;  %v2948_v63 = vmax.f32 %v2884_v12, 0.0  ;;  %v2110_v25 = vadd.f32 %v2109_v48, %v1941_v26  ;;  %v1775_v27 = vadd.f32 %v1774_v35, %v1605_v6 }
 0x2f2   : > { %v3012_v22 = vmin.f32 %v2948_v63, 1.0  ;;  %v2178_v50 = vadd.f32 %v2110_v25, %v478_v18 }
 0x2f4   : > { %3076 = vst [vmem:[#allocation8 + $0x1e0] sm:$0xff] %v3012_v22  ;;  %v2821_v46 = vmul.f32 %v11058_v14, %v2178_v50  ;;  %v3397_v10 = vmul.f32 %v3323_v30, %v3012_v22 }
 0x2f5   : > { %2242 = vst [vmem:[#allocation2 + $0x10] sm:$0xff] %v2178_v50  ;;  %v1943_v38 = vpop.f32.mrf.mxu2 }
 0x2f6   : > { %v2885_v11 = vadd.f32 %v2821_v46, %v2373_v51  ;;  %v1944_v31 = vadd.f32 %v1943_v38, %v1775_v27  ;;  %v2112_v62 = vpop.f32.mrf.mxu3 }
 0x2f7   : > { %v1607_v61 = vpop.f32.mrf.mxu0  ;;  %v1776_v23 = vpop.f32.mrf.mxu1 }
 0x2f8   : > { %v2949_v57 = vmax.f32 %v2885_v11, 0.0  ;;  %v2113_v42 = vadd.f32 %v2112_v62, %v1944_v31  ;;  %v1777_v21 = vadd.f32 %v1776_v23, %v1607_v61 }
 0x2fa   : > { %v3013_v33 = vmin.f32 %v2949_v57, 1.0  ;;  %v2179_v60 = vadd.f32 %v2113_v42, %v479_v29 }
 0x2fc   : > { %3077 = vst [vmem:[#allocation8 + $0x1e8] sm:$0xff] %v3013_v33  ;;  %v3398_v40 = vmul.f32 %v3327_v0, %v3013_v33  ;;  %v2822_v37 = vmul.f32 %v11059_v52, %v2179_v60 }
 0x2fd   : > { %2243 = vst [vmem:[#allocation2 + $0x58] sm:$0xff] %v2179_v60  ;;  %v1945_v32 = vpop.f32.mrf.mxu2 }
 0x2fe   : > { %v8605_v34 = vpack.c.bf16 %v3398_v40, %v3397_v10  ;;  %v2886_v58 = vadd.f32 %v2822_v37, %v2374_v43  ;;  %v1946_v44 = vadd.f32 %v1945_v32, %v1777_v21  ;;  %v2114_v39 = vpop.f32.mrf.mxu3 }
 0x300   : > { %8801 = vst [vmem:[#allocation3 + $0x40] sm:$0xff] %v8605_v34   ;;  %v2950_v56 = vmax.f32 %v2886_v58, 0.0  ;;  %v2115_v4 = vadd.f32 %v2114_v39, %v1946_v44 }
 0x302   : > { %v3014_v3 = vmin.f32 %v2950_v56, 1.0  ;;  %v2180_v13 = vadd.f32 %v2115_v4, %v480_v28 }
 0x304   : > { %3078 = vst [vmem:[#allocation8 + $0x1f0] sm:$0xff] %v3014_v3  ;;  %v2823_v54 = vmul.f32 %v11060_v15, %v2180_v13  ;;  %v3399_v59 = vmul.f32 %v3331_v1, %v3014_v3 }
 0x305   : > { %2244 = vst [vmem:[#allocation2 + $0xa0] sm:$0xff] %v2180_v13 }
 0x306   : > { %v2887_v49 = vadd.f32 %v2823_v54, %v2375_v53 }
 0x308   : > { %v2951_v20 = vmax.f32 %v2887_v49, 0.0 }
 0x30a   : > { %v3015_v47 = vmin.f32 %v2951_v20, 1.0 }
 0x30c   : > { %3079 = vst [vmem:[#allocation8 + $0x1f8] sm:$0xff] %v3015_v47  ;;  %v3400_v17 = vmul.f32 %v3335_v36, %v3015_v47 }
 0x30e   : > { %v8610_v19 = vpack.c.bf16 %v3400_v17, %v3399_v59 }
 0x310   : > { %8802 = vst [vmem:[#allocation3 + $0xc8] sm:$0xff] %v8610_v19  }
 0x311 PF: > { %p7485_p11 = scmp.eq.s32.totalorder %s11138_s10, 0 }
 0x313   : > { %3536 = sbr.rel (%p7485_p11) target bundleno = 1484 (0x5cc), region = 61 }
 0x318   : > { %v10095_v5 = vld [vmem:[%s10983_s3 + $0x20] sm:$0xff]  ;;  %v10100_v8 = vld [vmem:[%s10983_s3 + $0x10] sm:$0xff]  ;;  %v9087_v24 = vmov 0   ;;  %v8307_v7 = vld [vmem:[#allocation3 + $0x18] sm:$0xff] }
 0x319   : > { %v10105_v45 = vld [vmem:[%s10983_s3] sm:$0xff]  ;;  %8927 = vset.pattern.permute.xlu2 %v9087_v24  ;;  %8926 = vset.pattern.permute.xlu1 %v9087_v24  ;;  %v8299_v16 = vld [vmem:[#allocation3 + $0x30] sm:$0xff]  ;;  %v8315_v2 = vld [vmem:[#allocation3 + $0xa8] sm:$0xff] }
 0x31a   : > { %8925 = vset.pattern.permute.xlu0 %v9087_v24  ;;  %5651 = vperm.xlu2 %8927, %v10095_v5   ;;  %v8323_v9 = vld [vmem:[#allocation3 + $0xc8] sm:$0xff]  ;;  %v8298_v55 = vld [vmem:[#allocation3 + $0xe0] sm:$0xff]  ;;  %v10118_v18 = vld [vmem:[%s10983_s3 + $0x18] sm:$0xff] }
 0x31b   : > { %5641 = vperm.xlu1 %8926, %v10100_v8   ;;  %5631 = vperm.xlu0 %8925, %v10105_v45   ;;  %v8306_v41 = vld [vmem:[#allocation3] sm:$0xff]  ;;  %v8314_v12 = vld [vmem:[#allocation3 + $0x28] sm:$0xff]  ;;  %v8297_v35 = vld [vmem:[#allocation3 + $0xd8] sm:$0xff] }
 0x31c   : > { %4630 = vmatpush.bf16.msra.mxu0 %v8299_v16  ;;  %4799 = vmatpush.bf16.msra.mxu1 %v8307_v7  ;;  %v8322_v26 = vld [vmem:[#allocation3 + $0x40] sm:$0xff]  ;;  %v10113_v48 = vld [vmem:[%s10983_s3 + $0x28] sm:$0xff]  ;;  %v8313_v25 = vld [vmem:[#allocation3 + $0x38] sm:$0xff] }
 0x31d   : > { %4968 = vmatpush.bf16.msra.mxu2 %v8315_v2  ;;  %5137 = vmatpush.bf16.msra.mxu3 %v8323_v9  ;;  %v10123_v6 = vld [vmem:[%s10983_s3 + $0x8] sm:$0xff]  ;;  %v8305_v63 = vld [vmem:[#allocation3 + $0x20] sm:$0xff]  ;;  %v8296_v50 = vld [vmem:[#allocation3 + $0xd0] sm:$0xff] }
 0x31e   : > { %v8321_v22 = vld [vmem:[#allocation3 + $0x80] sm:$0xff]  ;;  %v8304_v27 = vld [vmem:[#allocation3 + $0x78] sm:$0xff]  ;;  %v8320_v14 = vld [vmem:[#allocation3 + $0x10] sm:$0xff] }
 0x31f   : > { %v8312_v51 = vld [vmem:[#allocation3 + $0xc0] sm:$0xff]  ;;  %v10136_v38 = vld [vmem:[%s10983_s3 + $0x38] sm:$0xff]  ;;  %v10141_v11 = vld [vmem:[%s10983_s3 + $0x30] sm:$0xff] }
 0x320   : > { %4631 = vmatpush.bf16.msra.mxu0 %v8298_v55  ;;  %4800 = vmatpush.bf16.msra.mxu1 %v8306_v41  ;;  %v10131_v46 = vld [vmem:[%s10983_s3 + $0x40] sm:$0xff]  ;;  %v8303_v62 = vld [vmem:[#allocation3 + $0x88] sm:$0xff]  ;;  %v8311_v29 = vld [vmem:[#allocation3 + $0x58] sm:$0xff] }
 0x321   : > { %4969 = vmatpush.bf16.msra.mxu2 %v8314_v12  ;;  %5138 = vmatpush.bf16.msra.mxu3 %v8322_v26  ;;  %v8295_v31 = vld [vmem:[#allocation3 + $0x60] sm:$0xff]  ;;  %v8319_v57 = vld [vmem:[#allocation3 + $0xb8] sm:$0xff]  ;;  %v8294_v42 = vld [vmem:[#allocation3 + $0x70] sm:$0xff] }
 0x322   : > { %5656 = vperm.xlu2 %8927, %v10113_v48   ;;  %v8302_v61 = vld [vmem:[#allocation3 + $0xf0] sm:$0xff]  ;;  %v8310_v23 = vld [vmem:[#allocation3 + $0xf8] sm:$0xff]  ;;  %v10159_v0 = vld [vmem:[%s10983_s3 + $0x48] sm:$0xff] }
 0x323   : > { %5646 = vperm.xlu1 %8926, %v10118_v18   ;;  %5636 = vperm.xlu0 %8925, %v10123_v6   ;;  %v8318_v33 = vld [vmem:[#allocation3 + $0x90] sm:$0xff]  ;;  %v10149_v60 = vld [vmem:[%s10983_s3 + $0x58] sm:$0xff]  ;;  %v8301_v10 = vld [vmem:[#allocation3 + $0x8] sm:$0xff] }
 0x324   : > { %4632 = vmatpush.bf16.msra.mxu0 %v8297_v35  ;;  %4801 = vmatpush.bf16.msra.mxu1 %v8305_v63  ;;  %v10154_v30 = vld [vmem:[%s10983_s3 + $0x50] sm:$0xff]  ;;  %v8309_v40 = vld [vmem:[#allocation3 + $0xa0] sm:$0xff]  ;;  %v8292_v37 = vld [vmem:[#allocation3 + $0x68] sm:$0xff] }
 0x325   : > { %4970 = vmatpush.bf16.msra.mxu2 %v8313_v25  ;;  %5139 = vmatpush.bf16.msra.mxu3 %v8321_v22  ;;  %v8293_v43 = vld [vmem:[#allocation3 + $0x50] sm:$0xff]  ;;  %v8300_v21 = vld [vmem:[#allocation3 + $0x48] sm:$0xff]  ;;  %v8308_v32 = vld [vmem:[#allocation3 + $0x98] sm:$0xff] }
 0x326   : > { %v8317_v52 = vld [vmem:[#allocation3 + $0xb0] sm:$0xff]  ;;  %v8316_v34 = vld [vmem:[#allocation3 + $0xe8] sm:$0xff]  ;;  %v7488_v58 = vld [vmem:[#allocation5] sm:$0xf] }
 0x327   : > { %v8326_v44 = vld [vmem:[#allocation5 + $0xc] sm:$0xf0]  ;;  %v8324_v28 = vld [vmem:[#allocation5 + $0x4] sm:$0xf]  ;;  %v7490_v39 = vld [vmem:[#allocation5 + $0x10] sm:$0xf0] }
 0x328   : > { %4633 = vmatpush.bf16.msra.mxu0 %v8296_v50  ;;  %4802 = vmatpush.bf16.msra.mxu1 %v8304_v27  ;;  %v7496_v56 = vld [vmem:[#allocation5 + $0x8] sm:$0xf]  ;;  %v8327_v4 = vld [vmem:[#allocation5 + $0x14] sm:$0xf0]  ;;  %v8325_v3 = vld [vmem:[#allocation5 + $0xc] sm:$0xf]  ;;  %v7489_v49 = vor.u32 %v8326_v44, %v7488_v58  ;;  %v7493_v20 = vor.u32 %v8324_v28, %v7490_v39 }
 0x329   : > { %4971 = vmatpush.bf16.msra.mxu2 %v8312_v51  ;;  %5140 = vmatpush.bf16.msra.mxu3 %v8320_v14  ;;  %v7498_v13 = vld [vmem:[#allocation5 + $0x18] sm:$0xf0]  ;;  %v10167_v53 = vld [vmem:[%s10983_s3 + $0x70] sm:$0xff]  ;;  %v10172_v15 = vld [vmem:[%s10983_s3 + $0x68] sm:$0xff]  ;;  %v7497_v47 = vor.u32 %v8327_v4, %v7496_v56 }
 0x32a   : > { %5671 = vperm.xlu2 %8927, %v10131_v46   ;;  %v10177_v54 = vld [vmem:[%s10983_s3 + $0x60] sm:$0xff]  ;;  %v7501_v36 = vor.u32 %v8325_v3, %v7498_v13  ;;  %v10185_v1 = vld [vmem:[%s10983_s3 + $0x88] sm:$0xff]  ;;  %v10195_v17 = vld [vmem:[%s10983_s3 + $0x78] sm:$0xff] }
 0x32b   : > { %5666 = vperm.xlu1 %8926, %v10136_v38   ;;  %5661 = vperm.xlu0 %8925, %v10141_v11   ;;  %v10190_v59 = vld [vmem:[%s10983_s3 + $0x80] sm:$0xff]  ;;  %v8330_v24 = vld [vmem:[#allocation5 + $0x2c] sm:$0xf0]  ;;  %v7506_v7 = vld [vmem:[#allocation5 + $0x30] sm:$0xf0] }
 0x32c   : > { %4634 = vmatpush.bf16.msra.mxu0 %v8295_v31  ;;  %4803 = vmatpush.bf16.msra.mxu1 %v8303_v62  ;;  %v7504_v19 = vld [vmem:[#allocation5 + $0x20] sm:$0xf]  ;;  %v8328_v16 = vld [vmem:[#allocation5 + $0x24] sm:$0xf]  ;;  %v7512_v2 = vld [vmem:[#allocation5 + $0x28] sm:$0xf] }
 0x32d   : > { %4972 = vmatpush.bf16.msra.mxu2 %v8311_v29  ;;  %5141 = vmatpush.bf16.msra.mxu3 %v8319_v57  ;;  %v8331_v9 = vld [vmem:[#allocation5 + $0x34] sm:$0xf0]  ;;  %v8329_v55 = vld [vmem:[#allocation5 + $0x2c] sm:$0xf]  ;;  %v7514_v41 = vld [vmem:[#allocation5 + $0x38] sm:$0xf0]  ;;  %v7505_v63 = vor.u32 %v8330_v24, %v7504_v19  ;;  %v7509_v25 = vor.u32 %v8328_v16, %v7506_v7 }
 0x32e   : > { %v10203_v12 = vld [vmem:[%s10983_s3 + $0xa0] sm:$0xff]  ;;  %v10208_v26 = vld [vmem:[%s10983_s3 + $0x98] sm:$0xff]  ;;  %v10213_v35 = vld [vmem:[%s10983_s3 + $0x90] sm:$0xff]  ;;  %v7513_v22 = vor.u32 %v8331_v9, %v7512_v2  ;;  %v7517_v50 = vor.u32 %v8329_v55, %v7514_v41 }
 0x32f   : > { %v10221_v27 = vld [vmem:[%s10983_s3 + $0xb8] sm:$0xff]  ;;  %v10226_v51 = vld [vmem:[%s10983_s3 + $0xb0] sm:$0xff]  ;;  %v10231_v14 = vld [vmem:[%s10983_s3 + $0xa8] sm:$0xff] }
 0x330   : > { %4635 = vmatpush.bf16.msra.mxu0 %v8294_v42  ;;  %4804 = vmatpush.bf16.msra.mxu1 %v8302_v61  ;;  %v7520_v31 = vld [vmem:[#allocation5 + $0x40] sm:$0xf]  ;;  %v8334_v62 = vld [vmem:[#allocation5 + $0x4c] sm:$0xf0]  ;;  %v8332_v29 = vld [vmem:[#allocation5 + $0x44] sm:$0xf] }
 0x331   : > { %4973 = vmatpush.bf16.msra.mxu2 %v8310_v23  ;;  %5142 = vmatpush.bf16.msra.mxu3 %v8318_v33  ;;  %v7522_v57 = vld [vmem:[#allocation5 + $0x50] sm:$0xf0]  ;;  %v7528_v42 = vld [vmem:[#allocation5 + $0x48] sm:$0xf]  ;;  %v8335_v61 = vld [vmem:[#allocation5 + $0x54] sm:$0xf0] }
 0x332   : > { %5686 = vperm.xlu2 %8927, %v10149_v60   ;;  %v8333_v23 = vld [vmem:[#allocation5 + $0x4c] sm:$0xf]  ;;  %v7530_v33 = vld [vmem:[#allocation5 + $0x58] sm:$0xf0]  ;;  %v10260_v58 = vld [vmem:[%s10983_s3 + $0xe0] sm:$0xff] }
 0x333   : > { %5681 = vperm.xlu1 %8926, %v10154_v30   ;;  %5676 = vperm.xlu0 %8925, %v10159_v0   ;;  %11061 = vst [vmem:[#allocation45_spill] sm:$0xff] %v10260_v58  ;;  %v10265_v44 = vld [vmem:[%s10983_s3 + $0xd8] sm:$0xff]  ;;  %v7536_v28 = vld [vmem:[#allocation5 + $0x60] sm:$0xf]  ;;  %v8338_v39 = vld [vmem:[#allocation5 + $0x6c] sm:$0xf0] }
 0x334   : > { %4636 = vmatpush.bf16.msra.mxu0 %v8293_v43  ;;  %4805 = vmatpush.bf16.msra.mxu1 %v8301_v10  ;;  %v10239_v43 = vld [vmem:[%s10983_s3 + $0xd0] sm:$0xff]  ;;  %v10244_v10 = vld [vmem:[%s10983_s3 + $0xc8] sm:$0xff]  ;;  %v8336_v56 = vld [vmem:[#allocation5 + $0x64] sm:$0xf]  ;;  %v7537_v24 = vor.u32 %v8338_v39, %v7536_v28 }
 0x335   : > { %4974 = vmatpush.bf16.msra.mxu2 %v8309_v40  ;;  %5143 = vmatpush.bf16.msra.mxu3 %v8317_v52  ;;  %v10249_v40 = vld [vmem:[%s10983_s3 + $0xc0] sm:$0xff]  ;;  %v7521_v52 = vor.u32 %v8334_v62, %v7520_v31  ;;  %v7538_v4 = vld [vmem:[#allocation5 + $0x70] sm:$0xf0]  ;;  %v7544_v3 = vld [vmem:[#allocation5 + $0x68] sm:$0xf] }
 0x336   : > { %v8339_v13 = vld [vmem:[#allocation5 + $0x74] sm:$0xf0]  ;;  %v10280_v19 = vld [vmem:[%s10983_s3 + $0xf0] sm:$0xff]  ;;  %v7541_v16 = vor.u32 %v8336_v56, %v7538_v4  ;;  %v5470_v41 = vld [vmem:[%s10983_s3 + $0x108] sm:$0xff] }
 0x337   : > { %11063 = vst [vmem:[#allocation47_spill] sm:$0xff] %v10280_v19  ;;  %v7545_v7 = vor.u32 %v8339_v13, %v7544_v3  ;;  %v5472_v9 = vld [vmem:[%s10983_s3 + $0x118] sm:$0xff]  ;;  %v5471_v55 = vld [vmem:[%s10983_s3 + $0x110] sm:$0xff]  ;;  %v7560_v62 = vld [vmem:[#allocation5 + $0x88] sm:$0xf] }
 0x338   : > { %4637 = vmatpush.bf16.msra.mxu0 %v8292_v37  ;;  %4806 = vmatpush.bf16.msra.mxu1 %v8300_v21  ;;  %v7525_v37 = vor.u32 %v8332_v29, %v7522_v57  ;;  %v7529_v21 = vor.u32 %v8335_v61, %v7528_v42  ;;  %v7554_v31 = vld [vmem:[#allocation5 + $0x90] sm:$0xf0]  ;;  %v8343_v29 = vld [vmem:[#allocation5 + $0x94] sm:$0xf0]  ;;  %v8341_v57 = vld [vmem:[#allocation5 + $0x8c] sm:$0xf] }
 0x339   : > { %4975 = vmatpush.bf16.msra.mxu2 %v8308_v32  ;;  %5144 = vmatpush.bf16.msra.mxu3 %v8316_v34  ;;  %v7533_v32 = vor.u32 %v8333_v23, %v7530_v33  ;;  %v5466_v34 = vld [vmem:[%s10983_s3 + $0xe8] sm:$0xff]  ;;  %v7562_v42 = vld [vmem:[#allocation5 + $0x98] sm:$0xf0]  ;;  %v5475_v61 = vld [vmem:[%s10983_s3 + $0x130] sm:$0xff] }
 0x33a   : > { %5701 = vperm.xlu2 %8927, %v10167_v53   ;;  %v5474_v23 = vld [vmem:[%s10983_s3 + $0x128] sm:$0xff]  ;;  %v5473_v33 = vld [vmem:[%s10983_s3 + $0x120] sm:$0xff]  ;;  %v5476_v56 = vld [vmem:[%s10983_s3 + $0x138] sm:$0xff] }
 0x33b   : > { %5696 = vperm.xlu1 %8926, %v10172_v15   ;;  %5691 = vperm.xlu0 %8925, %v10177_v54   ;;  %v5478_v28 = vld [vmem:[%s10983_s3 + $0x148] sm:$0xff]  ;;  %v5477_v39 = vld [vmem:[%s10983_s3 + $0x140] sm:$0xff]  ;;  %v8346_v13 = vld [vmem:[#allocation5 + $0xac] sm:$0xf0] }
 0x33c   : > { %4638 = vmatmul.bf16.vlgmr.msra.gmra.mxu0 %v7489_v49  ;;  %4807 = vmatmul.bf16.vlgmr.msra.gmra.mxu1 %v7493_v20  ;;  %v8337_v49 = vld [vmem:[#allocation5 + $0x6c] sm:$0xf]  ;;  %v7546_v20 = vld [vmem:[#allocation5 + $0x78] sm:$0xf0]  ;;  %v7568_v3 = vld [vmem:[#allocation5 + $0xa0] sm:$0xf] }
 0x33d   : > { %4976 = vmatmul.bf16.vlgmr.msra.gmra.mxu2 %v7497_v47  ;;  %5145 = vmatmul.bf16.vlgmr.msra.gmra.mxu3 %v7501_v36  ;;  %v5469_v47 = vld [vmem:[%s10983_s3 + $0x100] sm:$0xff]  ;;  %v10275_v36 = vld [vmem:[%s10983_s3 + $0xf8] sm:$0xff]  ;;  %v7549_v2 = vor.u32 %v8337_v49, %v7546_v20  ;;  %v7570_v20 = vld [vmem:[#allocation5 + $0xb0] sm:$0xf0] }
 0x33e   : > { %11062 = vst [vmem:[#allocation46_spill] sm:$0xff] %v10275_v36  ;;  %v8344_v49 = vld [vmem:[#allocation5 + $0xa4] sm:$0xf] }
 0x342   : > { %5716 = vperm.xlu2 %8927, %v10185_v1  }
 0x343   : > { %5711 = vperm.xlu1 %8926, %v10190_v59   ;;  %5706 = vperm.xlu0 %8925, %v10195_v17  }
 0x34a   : > { %5731 = vperm.xlu2 %8927, %v10203_v12  }
 0x34b   : > { %5726 = vperm.xlu1 %8926, %v10208_v26   ;;  %5721 = vperm.xlu0 %8925, %v10213_v35  }
 0x34c   : > { %4643 = vmatmul.bf16.gmra.mxu0 %v7505_v63  ;;  %4812 = vmatmul.bf16.gmra.mxu1 %v7509_v25  ;;  %v7552_v25 = vld [vmem:[#allocation5 + $0x80] sm:$0xf] }
 0x34d   : > { %4981 = vmatmul.bf16.gmra.mxu2 %v7513_v22  ;;  %5150 = vmatmul.bf16.gmra.mxu3 %v7517_v50  ;;  %v8342_v22 = vld [vmem:[#allocation5 + $0x8c] sm:$0xf0]  ;;  %v8340_v50 = vld [vmem:[#allocation5 + $0x84] sm:$0xf] }
 0x352   : > { %5746 = vperm.xlu2 %8927, %v10221_v27  }
 0x353   : > { %5741 = vperm.xlu1 %8926, %v10226_v51   ;;  %5736 = vperm.xlu0 %8925, %v10231_v14  }
 0x35a   : > { %5761 = vperm.xlu2 %8927, %v10239_v43  }
 0x35b   : > { %5756 = vperm.xlu1 %8926, %v10244_v10   ;;  %5751 = vperm.xlu0 %8925, %v10249_v40  }
 0x35c   : > { %4648 = vmatmul.bf16.gmra.mxu0 %v7521_v52  ;;  %4817 = vmatmul.bf16.gmra.mxu1 %v7525_v37  ;;  %v7553_v52 = vor.u32 %v8342_v22, %v7552_v25  ;;  %v7557_v37 = vor.u32 %v8340_v50, %v7554_v31  ;;  %v7573_v25 = vor.u32 %v8344_v49, %v7570_v20  ;;  %v5487_v49 = vld [vmem:[%s10983_s3 + $0x190] sm:$0xff]  ;;  %v5486_v20 = vld [vmem:[%s10983_s3 + $0x188] sm:$0xff] }
 0x35d   : > { %4986 = vmatmul.bf16.gmra.mxu2 %v7529_v21  ;;  %5155 = vmatmul.bf16.gmra.mxu3 %v7533_v32  ;;  %v7561_v21 = vor.u32 %v8343_v29, %v7560_v62  ;;  %v7565_v32 = vor.u32 %v8341_v57, %v7562_v42  ;;  %v5484_v57 = vld [vmem:[%s10983_s3 + $0x178] sm:$0xff]  ;;  %v5483_v42 = vld [vmem:[%s10983_s3 + $0x170] sm:$0xff] }
 0x362   : > { %5776 = vperm.xlu2 %8927, %v5466_v34  }
 0x363   : > { %5771 = vperm.xlu1 %8926, %v10260_v58   ;;  %5766 = vperm.xlu0 %8925, %v10265_v44  }
 0x36a   : > { %5791 = vperm.xlu2 %8927, %v5469_v47   ;;  %v7576_v47 = vld [vmem:[#allocation5 + $0xa8] sm:$0xf] }
 0x36b   : > { %5786 = vperm.xlu1 %8926, %v10275_v36   ;;  %5781 = vperm.xlu0 %8925, %v10280_v19  }
 0x36c   : > { %4653 = vmatmul.bf16.gmra.mxu0 %v7537_v24  ;;  %4822 = vmatmul.bf16.gmra.mxu1 %v7541_v16  ;;  %v8347_v24 = vld [vmem:[#allocation5 + $0xb4] sm:$0xf0]  ;;  %v8345_v16 = vld [vmem:[#allocation5 + $0xac] sm:$0xf] }
 0x36d   : > { %4991 = vmatmul.bf16.gmra.mxu2 %v7545_v7  ;;  %5160 = vmatmul.bf16.gmra.mxu3 %v7549_v2  ;;  %v7578_v7 = vld [vmem:[#allocation5 + $0xb8] sm:$0xf0]  ;;  %v5481_v2 = vld [vmem:[%s10983_s3 + $0x160] sm:$0xff]  ;;  %v7577_v22 = vor.u32 %v8347_v24, %v7576_v47 }
 0x36e   : > { %v7581_v50 = vor.u32 %v8345_v16, %v7578_v7  ;;  %v5485_v47 = vld [vmem:[%s10983_s3 + $0x180] sm:$0xff] }
 0x372   : > { %5806 = vperm.xlu2 %8927, %v5472_v9   ;;  %v5480_v9 = vld [vmem:[%s10983_s3 + $0x158] sm:$0xff] }
 0x373   : > { %5801 = vperm.xlu1 %8926, %v5471_v55   ;;  %5796 = vperm.xlu0 %8925, %v5470_v41   ;;  %v5479_v55 = vld [vmem:[%s10983_s3 + $0x150] sm:$0xff]  ;;  %v7569_v41 = vor.u32 %v8346_v13, %v7568_v3  ;;  %v8349_v3 = vld [vmem:[#allocation5 + $0xcc] sm:$0xf]  ;;  %v7594_v13 = vld [vmem:[#allocation5 + $0xd8] sm:$0xf0] }
 0x374   : > { %v10293_v63 = vpop.permute.xlu2 %5651 }
 0x37a   : > { %5821 = vperm.xlu2 %8927, %v5475_v61   ;;  %v5482_v61 = vld [vmem:[%s10983_s3 + $0x168] sm:$0xff] }
 0x37b   : > { %5816 = vperm.xlu1 %8926, %v5474_v23   ;;  %5811 = vperm.xlu0 %8925, %v5473_v33   ;;  %v7584_v33 = vld [vmem:[#allocation5 + $0xc0] sm:$0xf] }
 0x37c   : > { %4658 = vmatmul.bf16.gmra.mxu0 %v7553_v52  ;;  %4827 = vmatmul.bf16.gmra.mxu1 %v7557_v37  ;;  %v10304_v34 = vpop.permute.xlu2 %5656  ;;  %v8350_v52 = vld [vmem:[#allocation5 + $0xcc] sm:$0xf0] }
 0x37d   : > { %4996 = vmatmul.bf16.gmra.mxu2 %v7561_v21  ;;  %5165 = vmatmul.bf16.gmra.mxu3 %v7565_v32  ;;  %v8348_v32 = vld [vmem:[#allocation5 + $0xc4] sm:$0xf]  ;;  %v7585_v24 = vor.u32 %v8350_v52, %v7584_v33 }
 0x382   : > { %5836 = vperm.xlu2 %8927, %v5478_v28   ;;  %v7586_v28 = vld [vmem:[#allocation5 + $0xd0] sm:$0xf0] }
 0x383   : > { %5831 = vperm.xlu1 %8926, %v5477_v39   ;;  %5826 = vperm.xlu0 %8925, %v5476_v56   ;;  %v7592_v39 = vld [vmem:[#allocation5 + $0xc8] sm:$0xf]  ;;  %v8351_v56 = vld [vmem:[#allocation5 + $0xd4] sm:$0xf0]  ;;  %v7589_v16 = vor.u32 %v8348_v32, %v7586_v28  ;;  %v8352_v32 = vld [vmem:[#allocation5 + $0xe4] sm:$0xf] }
 0x384   : > { %v10315_v4 = vpop.permute.xlu2 %5671  ;;  %v7593_v7 = vor.u32 %v8351_v56, %v7592_v39  ;;  %v7602_v28 = vld [vmem:[#allocation5 + $0xf0] sm:$0xf0]  ;;  %v7608_v39 = vld [vmem:[#allocation5 + $0xe8] sm:$0xf]  ;;  %v8355_v56 = vld [vmem:[#allocation5 + $0xf4] sm:$0xf0] }
 0x38a   : > { %5851 = vperm.xlu2 %8927, %v5481_v2   ;;  %v7597_v2 = vor.u32 %v8349_v3, %v7594_v13  ;;  %v8353_v3 = vld [vmem:[#allocation5 + $0xec] sm:$0xf]  ;;  %v7610_v13 = vld [vmem:[#allocation5 + $0xf8] sm:$0xf0] }
 0x38b   : > { %5846 = vperm.xlu1 %8926, %v5480_v9   ;;  %5841 = vperm.xlu0 %8925, %v5479_v55  }
 0x38c   : > { %4663 = vmatmul.bf16.gmra.mxu0 %v7569_v41  ;;  %4832 = vmatmul.bf16.gmra.mxu1 %v7573_v25  ;;  %v10326_v31 = vpop.permute.xlu2 %5686  ;;  %v5490_v25 = vld [vmem:[%s10983_s3 + $0x1a8] sm:$0xff] }
 0x38d   : > { %11064 = vst [vmem:[#allocation48_spill] sm:$0xff] %v10326_v31  ;;  %5001 = vmatmul.bf16.gmra.mxu2 %v7577_v22  ;;  %5170 = vmatmul.bf16.gmra.mxu3 %v7581_v50  ;;  %v10328_v62 = vpop.permute.xlu1 %5641  ;;  %v10330_v29 = vpop.permute.xlu0 %5631  ;;  %v5489_v22 = vld [vmem:[%s10983_s3 + $0x1a0] sm:$0xff]  ;;  %v5488_v50 = vld [vmem:[%s10983_s3 + $0x198] sm:$0xff] }
 0x392   : > { %5866 = vperm.xlu2 %8927, %v5484_v57  }
 0x393   : > { %5861 = vperm.xlu1 %8926, %v5483_v42   ;;  %5856 = vperm.xlu0 %8925, %v5482_v61   ;;  %v7600_v42 = vld [vmem:[#allocation5 + $0xe0] sm:$0xf]  ;;  %v8354_v61 = vld [vmem:[#allocation5 + $0xec] sm:$0xf0] }
 0x394   : > { %v10341_v23 = vpop.permute.xlu2 %5701 }
 0x395   : > { %11065 = vst [vmem:[#allocation49_spill] sm:$0xff] %v10341_v23  ;;  %v10343_v37 = vpop.permute.xlu1 %5646  ;;  %v10345_v21 = vpop.permute.xlu0 %5636 }
 0x39a   : > { %5881 = vperm.xlu2 %8927, %v5487_v49   ;;  %v5493_v49 = vld [vmem:[%s10983_s3 + $0x1c0] sm:$0xff] }
 0x39b   : > { %5876 = vperm.xlu1 %8926, %v5486_v20   ;;  %5871 = vperm.xlu0 %8925, %v5485_v47   ;;  %v5492_v20 = vld [vmem:[%s10983_s3 + $0x1b8] sm:$0xff]  ;;  %v5491_v47 = vld [vmem:[%s10983_s3 + $0x1b0] sm:$0xff] }
 0x39c   : > { %4668 = vmatmul.bf16.gmra.mxu0 %v7585_v24  ;;  %4837 = vmatmul.bf16.gmra.mxu1 %v7589_v16  ;;  %v10356_v9 = vpop.permute.xlu2 %5716  ;;  %v7601_v24 = vor.u32 %v8354_v61, %v7600_v42  ;;  %v7605_v16 = vor.u32 %v8352_v32, %v7602_v28  ;;  %v5496_v42 = vld [vmem:[%s10983_s3 + $0x1d8] sm:$0xff]  ;;  %v5495_v61 = vld [vmem:[%s10983_s3 + $0x1d0] sm:$0xff]  ;;  %v5494_v32 = vld [vmem:[%s10983_s3 + $0x1c8] sm:$0xff] }
 0x39d   : > { %11066 = vst [vmem:[#allocation50_spill] sm:$0xff] %v10356_v9  ;;  %5006 = vmatmul.bf16.gmra.mxu2 %v7593_v7  ;;  %5175 = vmatmul.bf16.gmra.mxu3 %v7597_v2  ;;  %v10358_v55 = vpop.permute.xlu1 %5666  ;;  %v10360_v41 = vpop.permute.xlu0 %5661  ;;  %v7609_v7 = vor.u32 %v8355_v56, %v7608_v39  ;;  %v7613_v2 = vor.u32 %v8353_v3, %v7610_v13  ;;  %v7616_v39 = vld [vmem:[#allocation5 + $0x100] sm:$0xf]  ;;  %v8358_v56 = vld [vmem:[#allocation5 + $0x10c] sm:$0xf0] }
 0x3a2   : > { %5896 = vperm.xlu2 %8927, %v5490_v25  }
 0x3a3   : > { %5891 = vperm.xlu1 %8926, %v5489_v22   ;;  %5886 = vperm.xlu0 %8925, %v5488_v50  }
 0x3a4   : > { %v10371_v57 = vpop.permute.xlu2 %5731 }
 0x3a5   : > { %11067 = vst [vmem:[#allocation51_spill] sm:$0xff] %v10371_v57  ;;  %v10373_v33 = vpop.permute.xlu1 %5681  ;;  %v10375_v52 = vpop.permute.xlu0 %5676 }
 0x3a6   : > { %11068 = vst [vmem:[#allocation52_spill] sm:$0xff] %v10373_v33  ;;  %v3607_v33 = vld [vmem:[#allocation2 + $0x1b0] sm:$0xff] }
 0x3aa   : > { %5911 = vperm.xlu2 %8927, %v5493_v49   ;;  %v8356_v49 = vld [vmem:[#allocation5 + $0x104] sm:$0xf] }
 0x3ab   : > { %5906 = vperm.xlu1 %8926, %v5492_v20   ;;  %5901 = vperm.xlu0 %8925, %v5491_v47   ;;  %v7618_v20 = vld [vmem:[#allocation5 + $0x110] sm:$0xf0]  ;;  %v7624_v47 = vld [vmem:[#allocation5 + $0x108] sm:$0xf] }
 0x3ac   : > { %4673 = vmatmul.bf16.gmra.mxu0 %v7601_v24  ;;  %4842 = vmatmul.bf16.gmra.mxu1 %v7605_v16  ;;  %v10386_v25 = vpop.permute.xlu2 %5746  ;;  %v8359_v24 = vld [vmem:[#allocation5 + $0x114] sm:$0xf0]  ;;  %v8357_v16 = vld [vmem:[#allocation5 + $0x10c] sm:$0xf] }
 0x3ad   : > { %11069 = vst [vmem:[#allocation53_spill] sm:$0xff] %v10386_v25  ;;  %5011 = vmatmul.bf16.gmra.mxu2 %v7609_v7  ;;  %5180 = vmatmul.bf16.gmra.mxu3 %v7613_v2  ;;  %v10388_v22 = vpop.permute.xlu1 %5696  ;;  %v10390_v50 = vpop.permute.xlu0 %5691  ;;  %v7626_v7 = vld [vmem:[#allocation5 + $0x118] sm:$0xf0]  ;;  %v5499_v2 = vld [vmem:[%s10983_s3 + $0x1f0] sm:$0xff]  ;;  %v7625_v9 = vor.u32 %v8359_v24, %v7624_v47 }
 0x3ae   : > { %11070 = vst [vmem:[#allocation54_spill] sm:$0xff] %v10388_v22 }
 0x3af   : > { %11071 = vst [vmem:[#allocation55_spill] sm:$0xff] %v10390_v50 }
 0x3b2   : > { %5926 = vperm.xlu2 %8927, %v5496_v42   ;;  %v5498_v42 = vld [vmem:[%s10983_s3 + $0x1e8] sm:$0xff] }
 0x3b3   : > { %5921 = vperm.xlu1 %8926, %v5495_v61   ;;  %5916 = vperm.xlu0 %8925, %v5494_v32   ;;  %v5497_v61 = vld [vmem:[%s10983_s3 + $0x1e0] sm:$0xff]  ;;  %v7617_v32 = vor.u32 %v8358_v56, %v7616_v39 }
 0x3b4   : > { %v10401_v28 = vpop.permute.xlu2 %5761 }
 0x3b5   : > { %11072 = vst [vmem:[#allocation56_spill] sm:$0xff] %v10401_v28  ;;  %v10403_v3 = vpop.permute.xlu1 %5711  ;;  %v10405_v13 = vpop.permute.xlu0 %5706  ;;  %v7621_v28 = vor.u32 %v8356_v49, %v7618_v20  ;;  %v5500_v49 = vld [vmem:[%s10983_s3 + $0x1f8] sm:$0xff] }
 0x3b6   : > { %11073 = vst [vmem:[#allocation57_spill] sm:$0xff] %v10403_v3  ;;  %v7629_v3 = vor.u32 %v8357_v16, %v7626_v7  ;;  %v3606_v16 = vld [vmem:[#allocation2 + $0xb0] sm:$0xff] }
 0x3b7   : > { %11074 = vst [vmem:[#allocation58_spill] sm:$0xff] %v10405_v13 }
 0x3b9   : > { %v4639_v25 = vpop.f32.mrf.mxu0  ;;  %v4808_v57 = vpop.f32.mrf.mxu1 }
 0x3ba   : > { %5941 = vperm.xlu2 %8927, %v5499_v2   ;;  %v4809_v23 = vadd.f32 %v4808_v57, %v4639_v25  ;;  %v7632_v57 = vld [vmem:[#allocation5 + $0x120] sm:$0xf]  ;;  %v8362_v25 = vld [vmem:[#allocation5 + $0x12c] sm:$0xf0] }
 0x3bb   : > { %5936 = vperm.xlu1 %8926, %v5498_v42   ;;  %5931 = vperm.xlu0 %8925, %v5497_v61   ;;  %v8360_v61 = vld [vmem:[#allocation5 + $0x124] sm:$0xf] }
 0x3bc   : > { %4678 = vmatmul.bf16.gmra.mxu0 %v7617_v32  ;;  %4847 = vmatmul.bf16.gmra.mxu1 %v7621_v28  ;;  %v10416_v13 = vpop.permute.xlu2 %5776  ;;  %v9088_v28 = vmov 1   ;;  %v7634_v32 = vld [vmem:[#allocation5 + $0x130] sm:$0xf0] }
 0x3bd   : > { %11075 = vst [vmem:[#allocation59_spill] sm:$0xff] %v10416_v13  ;;  %5016 = vmatmul.bf16.gmra.mxu2 %v7625_v9  ;;  %5185 = vmatmul.bf16.gmra.mxu3 %v7629_v3  ;;  %v10418_v22 = vpop.permute.xlu1 %5726  ;;  %v10420_v50 = vpop.permute.xlu0 %5721 }
 0x3be   : > { %11076 = vst [vmem:[#allocation60_spill] sm:$0xff] %v10418_v22  ;;  %v7633_v22 = vor.u32 %v8362_v25, %v7632_v57 }
 0x3bf   : > { %11077 = vst [vmem:[#allocation61_spill] sm:$0xff] %v10420_v50  ;;  %v7637_v50 = vor.u32 %v8360_v61, %v7634_v32  ;;  %v8364_v61 = vld [vmem:[#allocation5 + $0x144] sm:$0xf] }
 0x3c0   : > { %v4977_v39 = vpop.f32.mrf.mxu2  ;;  %v5146_v56 = vpop.f32.mrf.mxu3 }
 0x3c1   : > { %v4978_v20 = vadd.f32 %v4977_v39, %v4809_v23  ;;  %v4641_v47 = vpop.f32.mrf.mxu0  ;;  %v4810_v24 = vpop.f32.mrf.mxu1  ;;  %v5501_v23 = vld [vmem:[%s10982_s2] sm:$0xff]  ;;  %v7640_v39 = vld [vmem:[#allocation5 + $0x128] sm:$0xf] }
 0x3c2   : > { %8929 = vset.pattern.permute.xlu2 %v9088_v28 }
 0x3c3   : > { %v5147_v7 = vadd.f32 %v5146_v56, %v4978_v20  ;;  %8928 = vset.pattern.permute.xlu1 %v9088_v28  ;;  %5946 = vperm.xlu0 %8925, %v5500_v49   ;;  %v8363_v56 = vld [vmem:[#allocation5 + $0x134] sm:$0xf0]  ;;  %v7642_v49 = vld [vmem:[#allocation5 + $0x138] sm:$0xf0] }
 0x3c4   : > { %6275 = vperm.xlu2 %8929, %v10123_v6   ;;  %6271 = vperm.xlu1 %8928, %v10105_v45   ;;  %v10427_v9 = vpop.permute.xlu2 %5791  ;;  %v8361_v6 = vld [vmem:[#allocation5 + $0x12c] sm:$0xf]  ;;  %v4811_v45 = vadd.f32 %v4810_v24, %v4641_v47 }
 0x3c5   : > { %11078 = vst [vmem:[#allocation62_spill] sm:$0xff] %v10427_v9  ;;  %v5306_v3 = vadd.f32 %v5147_v7, %v3606_v16  ;;  %v10432_v2 = vpop.permute.xlu1 %5741  ;;  %v10434_v42 = vpop.permute.xlu0 %5736  ;;  %v7645_v36 = vor.u32 %v8361_v6, %v7642_v49  ;;  %v5503_v49 = vld [vmem:[%s10982_s2 + $0x10] sm:$0xff] }
 0x3c6   : > { %11079 = vst [vmem:[#allocation63_spill] sm:$0xff] %v10432_v2  ;;  %v7641_v2 = vor.u32 %v8363_v56, %v7640_v39  ;;  %v7650_v39 = vld [vmem:[#allocation5 + $0x150] sm:$0xf0]  ;;  %v7656_v56 = vld [vmem:[#allocation5 + $0x148] sm:$0xf] }
 0x3c7   : > { %11080 = vst [vmem:[#allocation64_spill] sm:$0xff] %v10434_v42  ;;  %v5949_v20 = vmul.f32 %v10330_v29, %v5306_v3 }
 0x3c8   : > { %5370 = vst [vmem:[#allocation2 + $0xb0] sm:$0xff] %v5306_v3  ;;  %v4979_v9 = vpop.f32.mrf.mxu2  ;;  %v5148_v13 = vpop.f32.mrf.mxu3 }
 0x3c9   : > { %v4980_v31 = vadd.f32 %v4979_v9, %v4811_v45  ;;  %v4644_v16 = vpop.f32.mrf.mxu0  ;;  %v4813_v7 = vpop.f32.mrf.mxu1  ;;  %v6013_v42 = vadd.f32 %v5949_v20, %v5501_v23  ;;  %v8367_v45 = vld [vmem:[#allocation5 + $0x154] sm:$0xf0]  ;;  %v8365_v20 = vld [vmem:[#allocation5 + $0x14c] sm:$0xf] }
 0x3ca   : > { %v4814_v29 = vadd.f32 %v4813_v7, %v4644_v16  ;;  %v7658_v16 = vld [vmem:[#allocation5 + $0x158] sm:$0xf0] }
 0x3cb   : > { %v5149_v19 = vadd.f32 %v5148_v13, %v4980_v31  ;;  %8930 = vset.pattern.permute.xlu0 %v9088_v28  ;;  %v6077_v47 = vmax.f32 %v6013_v42, 0.0  ;;  %v5502_v31 = vld [vmem:[%s10982_s2 + $0x8] sm:$0xff]  ;;  %v8366_v42 = vld [vmem:[#allocation5 + $0x14c] sm:$0xf0] }
 0x3cc   : > { %4683 = vmatmul.bf16.gmra.mxu0 %v7633_v22  ;;  %4852 = vmatmul.bf16.gmra.mxu1 %v7637_v50  ;;  %v10437_v58 = vpop.permute.xlu2 %5806 }
 0x3cd   : > { %v5307_v24 = vadd.f32 %v5149_v19, %v3607_v33  ;;  %5021 = vmatmul.bf16.gmra.mxu2 %v7641_v2  ;;  %5190 = vmatmul.bf16.gmra.mxu3 %v7645_v36  ;;  %v10439_v57 = vpop.permute.xlu1 %5756  ;;  %v10441_v9 = vpop.permute.xlu0 %5751  ;;  %v10448_v22 = vmin.f32 %v6077_v47, 1.0  ;;  %v7648_v2 = vld [vmem:[#allocation5 + $0x140] sm:$0xf] }
 0x3ce   : > { %6287 = vperm.xlu2 %8929, %v10095_v5   ;;  %6283 = vperm.xlu1 %8928, %v10118_v18   ;;  %v3608_v18 = vld [vmem:[#allocation2 + $0xd8] sm:$0xff] }
 0x3cf   : > { %5371 = vst [vmem:[#allocation2 + $0x1b0] sm:$0xff] %v5307_v24  ;;  %6279 = vperm.xlu0 %8930, %v10100_v8   ;;  %v5950_v19 = vmul.f32 %v10345_v21, %v5307_v24 }
 0x3d0   : > { %v4982_v36 = vpop.f32.mrf.mxu2  ;;  %v5151_v33 = vpop.f32.mrf.mxu3  ;;  %6205 = vst [vmem:[#allocation8] sm:$0xff] %v10448_v22 }
 0x3d1   : > { %v4983_v50 = vadd.f32 %v4982_v36, %v4814_v29  ;;  %v4646_v13 = vpop.f32.mrf.mxu0  ;;  %v4815_v5 = vpop.f32.mrf.mxu1  ;;  %v6014_v28 = vadd.f32 %v5950_v19, %v5502_v31  ;;  %v7649_v31 = vor.u32 %v8366_v42, %v7648_v2  ;;  %v7653_v19 = vor.u32 %v8364_v61, %v7650_v39  ;;  %v5504_v42 = vld [vmem:[%s10982_s2 + $0x18] sm:$0xff] }
 0x3d2   : > { %v4816_v7 = vadd.f32 %v4815_v5, %v4646_v13 }
 0x3d3   : > { %v5152_v25 = vadd.f32 %v5151_v33, %v4983_v50  ;;  %v6078_v23 = vmax.f32 %v6014_v28, 0.0  ;;  %v7657_v50 = vor.u32 %v8367_v45, %v7656_v56 }
 0x3d4   : > { %v10453_v3 = vpop.permute.xlu2 %5821 }
 0x3d5   : > { %v5308_v32 = vadd.f32 %v5152_v25, %v3608_v18  ;;  %v10455_v8 = vpop.permute.xlu1 %5771  ;;  %v10457_v21 = vpop.permute.xlu0 %5766  ;;  %v10459_v6 = vmin.f32 %v6078_v23, 1.0  ;;  %v3609_v18 = vld [vmem:[#allocation2 + $0x18] sm:$0xff] }
 0x3d6   : > { %6295 = vperm.xlu2 %8929, %v10141_v11   ;;  %6291 = vperm.xlu1 %8928, %v10113_v48   ;;  %v7661_v48 = vor.u32 %v8365_v20, %v7658_v16 }
 0x3d7   : > { %5372 = vst [vmem:[#allocation2 + $0xd8] sm:$0xff] %v5308_v32  ;;  %6299 = vperm.xlu0 %8930, %v10136_v38   ;;  %v5951_v47 = vmul.f32 %v10328_v62, %v5308_v32 }
 0x3d8   : > { %v4984_v24 = vpop.f32.mrf.mxu2  ;;  %v5153_v29 = vpop.f32.mrf.mxu3  ;;  %6206 = vst [vmem:[#allocation8 + $0x8] sm:$0xff] %v10459_v6 }
 0x3d9   : > { %v4985_v36 = vadd.f32 %v4984_v24, %v4816_v7  ;;  %v4649_v33 = vpop.f32.mrf.mxu0  ;;  %v4818_v11 = vpop.f32.mrf.mxu1  ;;  %v6015_v28 = vadd.f32 %v5951_v47, %v5503_v49  ;;  %v7664_v24 = vld [vmem:[#allocation5 + $0x160] sm:$0xf] }
 0x3da   : > { %v4819_v5 = vadd.f32 %v4818_v11, %v4649_v33  ;;  %v7672_v33 = vld [vmem:[#allocation5 + $0x168] sm:$0xf]  ;;  %v5505_v11 = vld [vmem:[%s10982_s2 + $0x20] sm:$0xff] }
 0x3db   : > { %v5154_v25 = vadd.f32 %v5153_v29, %v4985_v36  ;;  %v6079_v38 = vmax.f32 %v6015_v28, 0.0  ;;  %v8370_v29 = vld [vmem:[#allocation5 + $0x16c] sm:$0xf0]  ;;  %v7666_v36 = vld [vmem:[#allocation5 + $0x170] sm:$0xf0] }
 0x3dc   : > { %4688 = vmatmul.bf16.gmra.mxu0 %v7649_v31  ;;  %4857 = vmatmul.bf16.gmra.mxu1 %v7653_v19  ;;  %v10469_v13 = vpop.permute.xlu2 %5836  ;;  %v8368_v31 = vld [vmem:[#allocation5 + $0x164] sm:$0xf]  ;;  %v8369_v28 = vld [vmem:[#allocation5 + $0x16c] sm:$0xf] }
 0x3dd   : > { %v5309_v62 = vadd.f32 %v5154_v25, %v3609_v18  ;;  %5026 = vmatmul.bf16.gmra.mxu2 %v7657_v50  ;;  %5195 = vmatmul.bf16.gmra.mxu3 %v7661_v48  ;;  %v10471_v23 = vpop.permute.xlu1 %5786  ;;  %v10473_v2 = vpop.permute.xlu0 %5781  ;;  %v10480_v61 = vmin.f32 %v6079_v38, 1.0  ;;  %v8371_v48 = vld [vmem:[#allocation5 + $0x174] sm:$0xf0]  ;;  %v7674_v18 = vld [vmem:[#allocation5 + $0x178] sm:$0xf0] }
 0x3de   : > { %6307 = vperm.xlu2 %8929, %v10159_v0   ;;  %6303 = vperm.xlu1 %8928, %v10131_v46   ;;  %v3610_v46 = vld [vmem:[#allocation2 + $0x50] sm:$0xff] }
 0x3df   : > { %5373 = vst [vmem:[#allocation2 + $0x18] sm:$0xff] %v5309_v62  ;;  %6311 = vperm.xlu0 %8930, %v10154_v30   ;;  %v5952_v32 = vmul.f32 %v10343_v37, %v5309_v62 }
 0x3e0   : > { %v4987_v39 = vpop.f32.mrf.mxu2  ;;  %v5156_v56 = vpop.f32.mrf.mxu3  ;;  %6207 = vst [vmem:[#allocation8 + $0x10] sm:$0xff] %v10480_v61 }
 0x3e1   : > { %v4988_v49 = vadd.f32 %v4987_v39, %v4819_v5  ;;  %v4651_v45 = vpop.f32.mrf.mxu0  ;;  %v4820_v0 = vpop.f32.mrf.mxu1  ;;  %v6016_v20 = vadd.f32 %v5952_v32, %v5504_v42  ;;  %v7665_v42 = vor.u32 %v8370_v29, %v7664_v24  ;;  %v7669_v32 = vor.u32 %v8368_v31, %v7666_v36  ;;  %v5506_v31 = vld [vmem:[%s10982_s2 + $0x28] sm:$0xff] }
 0x3e2   : > { %v4821_v25 = vadd.f32 %v4820_v0, %v4651_v45 }
 0x3e3   : > { %v5157_v16 = vadd.f32 %v5156_v56, %v4988_v49  ;;  %v6080_v7 = vmax.f32 %v6016_v20, 0.0  ;;  %v7673_v49 = vor.u32 %v8371_v48, %v7672_v33 }
 0x3e4   : > { %v10485_v47 = vpop.permute.xlu2 %5851 }
 0x3e5   : > { %v5310_v19 = vadd.f32 %v5157_v16, %v3610_v46  ;;  %v10487_v30 = vpop.permute.xlu1 %5801  ;;  %v10489_v37 = vpop.permute.xlu0 %5796  ;;  %v10494_v50 = vmin.f32 %v6080_v7, 1.0  ;;  %v3611_v46 = vld [vmem:[#allocation2 + $0x168] sm:$0xff] }
 0x3e6   : > { %6319 = vperm.xlu2 %8929, %v10177_v54   ;;  %6315 = vperm.xlu1 %8928, %v10149_v60   ;;  %v7677_v60 = vor.u32 %v8369_v28, %v7674_v18 }
 0x3e7   : > { %5374 = vst [vmem:[#allocation2 + $0x50] sm:$0xff] %v5310_v19  ;;  %6323 = vperm.xlu0 %8930, %v10172_v15   ;;  %v5953_v38 = vmul.f32 %v10293_v63, %v5310_v19 }
 0x3e8   : > { %v4989_v62 = vpop.f32.mrf.mxu2  ;;  %v5158_v5 = vpop.f32.mrf.mxu3  ;;  %6208 = vst [vmem:[#allocation8 + $0x18] sm:$0xff] %v10494_v50 }
 0x3e9   : > { %v4990_v39 = vadd.f32 %v4989_v62, %v4821_v25  ;;  %v4654_v56 = vpop.f32.mrf.mxu0  ;;  %v4823_v54 = vpop.f32.mrf.mxu1  ;;  %v6017_v20 = vadd.f32 %v5953_v38, %v5505_v11  ;;  %v7680_v62 = vld [vmem:[#allocation5 + $0x180] sm:$0xf] }
 0x3ea   : > { %v4824_v0 = vadd.f32 %v4823_v54, %v4654_v56  ;;  %v7688_v56 = vld [vmem:[#allocation5 + $0x188] sm:$0xf]  ;;  %v5507_v54 = vld [vmem:[%s10982_s2 + $0x30] sm:$0xff] }
 0x3eb   : > { %v5159_v16 = vadd.f32 %v5158_v5, %v4990_v39  ;;  %v6081_v15 = vmax.f32 %v6017_v20, 0.0  ;;  %v8374_v5 = vld [vmem:[#allocation5 + $0x18c] sm:$0xf0]  ;;  %v7682_v39 = vld [vmem:[#allocation5 + $0x190] sm:$0xf0] }
 0x3ec   : > { %4693 = vmatmul.bf16.gmra.mxu0 %v7665_v42  ;;  %4862 = vmatmul.bf16.gmra.mxu1 %v7669_v32  ;;  %v10501_v45 = vpop.permute.xlu2 %5866  ;;  %v8372_v42 = vld [vmem:[#allocation5 + $0x184] sm:$0xf]  ;;  %v8373_v20 = vld [vmem:[#allocation5 + $0x18c] sm:$0xf] }
 0x3ed   : > { %v5311_v63 = vadd.f32 %v5159_v16, %v3611_v46  ;;  %5031 = vmatmul.bf16.gmra.mxu2 %v7673_v49  ;;  %5200 = vmatmul.bf16.gmra.mxu3 %v7677_v60  ;;  %v10503_v7 = vpop.permute.xlu1 %5816  ;;  %v10505_v24 = vpop.permute.xlu0 %5811  ;;  %v10509_v29 = vmin.f32 %v6081_v15, 1.0  ;;  %v8375_v60 = vld [vmem:[#allocation5 + $0x194] sm:$0xf0]  ;;  %v7690_v46 = vld [vmem:[#allocation5 + $0x198] sm:$0xf0] }
 0x3ee   : > { %6327 = vperm.xlu1 %8928, %v10167_v53   ;;  %6331 = vperm.xlu2 %8929, %v10195_v17   ;;  %v3612_v17 = vld [vmem:[#allocation2 + $0x130] sm:$0xff] }
 0x3ef   : > { %5375 = vst [vmem:[#allocation2 + $0x168] sm:$0xff] %v5311_v63  ;;  %6335 = vperm.xlu0 %8930, %v10190_v59   ;;  %v5954_v19 = vmul.f32 %v10304_v34, %v5311_v63 }
 0x3f0   : > { %v4992_v36 = vpop.f32.mrf.mxu2  ;;  %v5161_v33 = vpop.f32.mrf.mxu3  ;;  %6209 = vst [vmem:[#allocation8 + $0x20] sm:$0xff] %v10509_v29 }
 0x3f1   : > { %v4993_v11 = vadd.f32 %v4992_v36, %v4824_v0  ;;  %v4656_v48 = vpop.f32.mrf.mxu0  ;;  %v4825_v53 = vpop.f32.mrf.mxu1  ;;  %v6018_v28 = vadd.f32 %v5954_v19, %v5506_v31  ;;  %v7681_v31 = vor.u32 %v8374_v5, %v7680_v62  ;;  %v7685_v19 = vor.u32 %v8372_v42, %v7682_v39  ;;  %v5508_v5 = vld [vmem:[%s10982_s2 + $0x38] sm:$0xff] }
 0x3f2   : > { %v4826_v16 = vadd.f32 %v4825_v53, %v4656_v48 }
 0x3f3   : > { %v5162_v18 = vadd.f32 %v5161_v33, %v4993_v11  ;;  %v6082_v25 = vmax.f32 %v6018_v28, 0.0  ;;  %v7689_v11 = vor.u32 %v8375_v60, %v7688_v56  ;;  %v7693_v28 = vor.u32 %v8373_v20, %v7690_v46  ;;  %v3614_v20 = vld [vmem:[#allocation2 + $0x180] sm:$0xff] }
 0x3f4   : > { %v10517_v38 = vpop.permute.xlu2 %5881 }
 0x3f5   : > { %11081 = vst [vmem:[#allocation65_spill] sm:$0xff] %v10517_v38  ;;  %v5312_v32 = vadd.f32 %v5162_v18, %v3612_v17  ;;  %v10519_v59 = vpop.permute.xlu1 %5831  ;;  %v10521_v34 = vpop.permute.xlu0 %5826  ;;  %v10526_v49 = vmin.f32 %v6082_v25, 1.0  ;;  %v3613_v18 = vld [vmem:[#allocation2 + $0x48] sm:$0xff] }
 0x3f6   : > { %6339 = vperm.xlu1 %8928, %v10185_v1   ;;  %6343 = vperm.xlu2 %8929, %v10213_v35  }
 0x3f7   : > { %5376 = vst [vmem:[#allocation2 + $0x130] sm:$0xff] %v5312_v32  ;;  %6347 = vperm.xlu0 %8930, %v10208_v26   ;;  %v5955_v15 = vmul.f32 %v10360_v41, %v5312_v32 }
 0x3f8   : > { %v4994_v63 = vpop.f32.mrf.mxu2  ;;  %v5163_v0 = vpop.f32.mrf.mxu3  ;;  %6210 = vst [vmem:[#allocation8 + $0x28] sm:$0xff] %v10526_v49 }
 0x3f9   : > { %v4995_v36 = vadd.f32 %v4994_v63, %v4826_v16  ;;  %v4659_v33 = vpop.f32.mrf.mxu0  ;;  %v4828_v1 = vpop.f32.mrf.mxu1  ;;  %v6019_v17 = vadd.f32 %v5955_v15, %v5507_v54  ;;  %v7696_v16 = vld [vmem:[#allocation5 + $0x1a0] sm:$0xf]  ;;  %v8378_v63 = vld [vmem:[#allocation5 + $0x1ac] sm:$0xf0] }
 0x3fa   : > { %v4829_v53 = vadd.f32 %v4828_v1, %v4659_v33  ;;  %v8379_v33 = vld [vmem:[#allocation5 + $0x1b4] sm:$0xf0] }
 0x3fb   : > { %v5164_v35 = vadd.f32 %v5163_v0, %v4995_v36  ;;  %v6083_v48 = vmax.f32 %v6019_v17, 0.0  ;;  %v8376_v0 = vld [vmem:[#allocation5 + $0x1a4] sm:$0xf] }
 0x3fc   : > { %4698 = vmatmul.bf16.gmra.mxu0 %v7681_v31  ;;  %4867 = vmatmul.bf16.gmra.mxu1 %v7685_v19  ;;  %v10544_v42 = vpop.permute.xlu2 %5896  ;;  %v7698_v31 = vld [vmem:[#allocation5 + $0x1b0] sm:$0xf0]  ;;  %v5509_v17 = vld [vmem:[%s10982_s2 + $0x40] sm:$0xff] }
 0x3fd   : > { %v5313_v26 = vadd.f32 %v5164_v35, %v3613_v18  ;;  %5036 = vmatmul.bf16.gmra.mxu2 %v7689_v11  ;;  %5205 = vmatmul.bf16.gmra.mxu3 %v7693_v28  ;;  %v10533_v41 = vpop.permute.xlu1 %5846  ;;  %v10535_v25 = vpop.permute.xlu0 %5841  ;;  %v10539_v62 = vmin.f32 %v6083_v48, 1.0  ;;  %11082 = vst [vmem:[#allocation66_spill] sm:$0xff] %v10544_v42  ;;  %v8377_v11 = vld [vmem:[#allocation5 + $0x1ac] sm:$0xf]  ;;  %v7706_v28 = vld [vmem:[#allocation5 + $0x1b8] sm:$0xf0] }
 0x3fe   : > { %6351 = vperm.xlu1 %8928, %v10203_v12   ;;  %6355 = vperm.xlu2 %8929, %v10231_v14   ;;  %v3617_v42 = vld [vmem:[#allocation2 + $0x98] sm:$0xff] }
 0x3ff   : > { %5377 = vst [vmem:[#allocation2 + $0x48] sm:$0xff] %v5313_v26  ;;  %6359 = vperm.xlu0 %8930, %v10226_v51   ;;  %v5956_v32 = vmul.f32 %v10358_v55, %v5313_v26  ;;  %v7704_v55 = vld [vmem:[#allocation5 + $0x1a8] sm:$0xf] }
 0x400   : > { %v4997_v39 = vpop.f32.mrf.mxu2  ;;  %v5166_v56 = vpop.f32.mrf.mxu3  ;;  %6211 = vst [vmem:[#allocation8 + $0x30] sm:$0xff] %v10539_v62 }
 0x401   : > { %v4998_v12 = vadd.f32 %v4997_v39, %v4829_v53  ;;  %v4661_v54 = vpop.f32.mrf.mxu0  ;;  %v4830_v14 = vpop.f32.mrf.mxu1  ;;  %v6020_v60 = vadd.f32 %v5956_v32, %v5508_v5  ;;  %v7697_v53 = vor.u32 %v8378_v63, %v7696_v16  ;;  %v7701_v5 = vor.u32 %v8376_v0, %v7698_v31  ;;  %v11085_v0 = vld [vmem:[#allocation45_spill] sm:$0xff] }
 0x402   : > { %v4831_v18 = vadd.f32 %v4830_v14, %v4661_v54 }
 0x403   : > { %v5167_v46 = vadd.f32 %v5166_v56, %v4998_v12  ;;  %v6084_v15 = vmax.f32 %v6020_v60, 0.0  ;;  %v7709_v56 = vor.u32 %v8377_v11, %v7706_v28 }
 0x404   : > { %v10563_v60 = vpop.permute.xlu2 %5911 }
 0x405   : > { %v5314_v19 = vadd.f32 %v5167_v46, %v3614_v20  ;;  %v10549_v36 = vpop.permute.xlu1 %5861  ;;  %v10551_v51 = vpop.permute.xlu0 %5856  ;;  %v10553_v1 = vmin.f32 %v6084_v15, 1.0  ;;  %11083 = vst [vmem:[#allocation67_spill] sm:$0xff] %v10563_v60  ;;  %v3615_v20 = vld [vmem:[#allocation2 + $0x110] sm:$0xff]  ;;  %v5510_v15 = vld [vmem:[%s10982_s2 + $0x48] sm:$0xff] }
 0x406   : > { %6363 = vperm.xlu1 %8928, %v10221_v27   ;;  %6367 = vperm.xlu2 %8929, %v10249_v40   ;;  %v7705_v40 = vor.u32 %v8379_v33, %v7704_v55 }
 0x407   : > { %5378 = vst [vmem:[#allocation2 + $0x180] sm:$0xff] %v5314_v19  ;;  %6371 = vperm.xlu0 %8930, %v10244_v10   ;;  %v5957_v35 = vmul.f32 %v10315_v4, %v5314_v19 }
 0x408   : > { %v4999_v48 = vpop.f32.mrf.mxu2  ;;  %v5168_v26 = vpop.f32.mrf.mxu3  ;;  %6212 = vst [vmem:[#allocation8 + $0x38] sm:$0xff] %v10553_v1 }
 0x409   : > { %v5000_v32 = vadd.f32 %v4999_v48, %v4831_v18  ;;  %v4664_v27 = vpop.f32.mrf.mxu0  ;;  %v4833_v39 = vpop.f32.mrf.mxu1  ;;  %v6021_v12 = vadd.f32 %v5957_v35, %v5509_v17  ;;  %v7712_v35 = vld [vmem:[#allocation5 + $0x1c0] sm:$0xf] }
 0x40a   : > { %v4834_v4 = vadd.f32 %v4833_v39, %v4664_v27  ;;  %v7720_v39 = vld [vmem:[#allocation5 + $0x1c8] sm:$0xf] }
 0x40b   : > { %v5169_v54 = vadd.f32 %v5168_v26, %v5000_v32  ;;  %v6085_v16 = vmax.f32 %v6021_v12, 0.0  ;;  %v8382_v26 = vld [vmem:[#allocation5 + $0x1cc] sm:$0xf0]  ;;  %v8381_v12 = vld [vmem:[#allocation5 + $0x1cc] sm:$0xf] }
 0x40c   : > { %4703 = vmatmul.bf16.gmra.mxu0 %v7697_v53  ;;  %4872 = vmatmul.bf16.gmra.mxu1 %v7701_v5  ;;  %v7714_v53 = vld [vmem:[#allocation5 + $0x1d0] sm:$0xf0] }
 0x40d   : > { %v5315_v10 = vadd.f32 %v5169_v54, %v3615_v20  ;;  %5041 = vmatmul.bf16.gmra.mxu2 %v7705_v40  ;;  %5210 = vmatmul.bf16.gmra.mxu3 %v7709_v56  ;;  %v10565_v14 = vpop.permute.xlu1 %5876  ;;  %v10567_v46 = vpop.permute.xlu0 %5871  ;;  %v10576_v31 = vmin.f32 %v6085_v16, 1.0  ;;  %v8383_v40 = vld [vmem:[#allocation5 + $0x1d4] sm:$0xf0]  ;;  %v7722_v20 = vld [vmem:[#allocation5 + $0x1d8] sm:$0xf0]  ;;  %v8931_v54 = vld [vmem:[%s10983_s3 + $0xe8] sm:$0xff] }
 0x40e   : > { %11084 = vst [vmem:[#allocation68_spill] sm:$0xff] %v10565_v14  ;;  %6375 = vperm.xlu1 %8928, %v10239_v43   ;;  %6379 = vperm.xlu2 %8929, %v10265_v44   ;;  %v3616_v43 = vld [vmem:[#allocation2 + $0x118] sm:$0xff]  ;;  %v10579_v44 = vpop.permute.xlu2 %5926 }
 0x40f   : > { %5379 = vst [vmem:[#allocation2 + $0x110] sm:$0xff] %v5315_v10  ;;  %v5958_v63 = vmul.f32 %v10375_v52, %v5315_v10  ;;  %6383 = vperm.xlu0 %8930, %v11085_v0   ;;  %v8380_v52 = vld [vmem:[#allocation5 + $0x1c4] sm:$0xf]  ;;  %v5511_v10 = vld [vmem:[%s10982_s2 + $0x50] sm:$0xff]  ;;  %v11091_v0 = vld [vmem:[#allocation46_spill] sm:$0xff] }
 0x410   : > { %v5002_v19 = vpop.f32.mrf.mxu2  ;;  %v5171_v55 = vpop.f32.mrf.mxu3  ;;  %6213 = vst [vmem:[#allocation8 + $0x40] sm:$0xff] %v10576_v31 }
 0x411   : > { %v5003_v33 = vadd.f32 %v5002_v19, %v4834_v4  ;;  %v4666_v11 = vpop.f32.mrf.mxu0  ;;  %v4835_v28 = vpop.f32.mrf.mxu1  ;;  %v6022_v17 = vadd.f32 %v5958_v63, %v5510_v15  ;;  %11086 = vst [vmem:[#allocation45_spill] sm:$0xff] %v10579_v44  ;;  %v11089_v4 = vld [vmem:[#allocation47_spill] sm:$0xff]  ;;  %v11090_v15 = vld [vmem:[#allocation52_spill] sm:$0xff]  ;;  %v7725_v44 = vor.u32 %v8381_v12, %v7722_v20 }
 0x412   : > { %v4836_v16 = vadd.f32 %v4835_v28, %v4666_v11 }
 0x413   : > { %v5172_v18 = vadd.f32 %v5171_v55, %v5003_v33  ;;  %v6086_v48 = vmax.f32 %v6022_v17, 0.0  ;;  %v7713_v33 = vor.u32 %v8382_v26, %v7712_v35  ;;  %v7717_v17 = vor.u32 %v8380_v52, %v7714_v53  ;;  %v5512_v52 = vld [vmem:[%s10982_s2 + $0x58] sm:$0xff] }
 0x414   : > { %v11095_v53 = vld [vmem:[#allocation48_spill] sm:$0xff] }
 0x415   : > { %v5316_v5 = vadd.f32 %v5172_v18, %v3616_v43  ;;  %v10581_v32 = vpop.permute.xlu1 %5891  ;;  %v10583_v27 = vpop.permute.xlu0 %5886  ;;  %v10585_v56 = vmin.f32 %v6086_v48, 1.0 }
 0x416   : > { %11087 = vst [vmem:[#allocation69_spill] sm:$0xff] %v10581_v32  ;;  %6387 = vperm.xlu1 %8928, %v8931_v54   ;;  %6391 = vperm.xlu2 %8929, %v11089_v4   ;;  %v7721_v54 = vor.u32 %v8383_v40, %v7720_v39  ;;  %v8934_v39 = vld [vmem:[%s10983_s3 + $0x110] sm:$0xff] }
 0x417   : > { %11088 = vst [vmem:[#allocation70_spill] sm:$0xff] %v10583_v27  ;;  %v5959_v63 = vmul.f32 %v11090_v15, %v5316_v5  ;;  %6395 = vperm.xlu0 %8930, %v11091_v0  }
 0x418   : > { %5380 = vst [vmem:[#allocation2 + $0x118] sm:$0xff] %v5316_v5  ;;  %v5004_v19 = vpop.f32.mrf.mxu2  ;;  %v5173_v55 = vpop.f32.mrf.mxu3 }
 0x419   : > { %6214 = vst [vmem:[#allocation8 + $0x48] sm:$0xff] %v10585_v56  ;;  %v5005_v43 = vadd.f32 %v5004_v19, %v4836_v16  ;;  %v4669_v18 = vpop.f32.mrf.mxu0  ;;  %v4838_v48 = vpop.f32.mrf.mxu1  ;;  %v6023_v60 = vadd.f32 %v5959_v63, %v5511_v10  ;;  %v3618_v63 = vld [vmem:[#allocation2 + $0x120] sm:$0xff] }
 0x41a   : > { %v4839_v28 = vadd.f32 %v4838_v48, %v4669_v18 }
 0x41b   : > { %v5174_v4 = vadd.f32 %v5173_v55, %v5005_v43  ;;  %v6087_v32 = vmax.f32 %v6023_v60, 0.0  ;;  %v8932_v60 = vld [vmem:[%s10983_s3 + $0x100] sm:$0xff] }
 0x41c   : > { %4708 = vmatmul.bf16.gmra.mxu0 %v7713_v33  ;;  %4877 = vmatmul.bf16.gmra.mxu1 %v7717_v17  ;;  %v7728_v55 = vld [vmem:[#allocation5 + $0x1e0] sm:$0xf]  ;;  %v8386_v33 = vld [vmem:[#allocation5 + $0x1ec] sm:$0xf0]  ;;  %v8384_v17 = vld [vmem:[#allocation5 + $0x1e4] sm:$0xf] }
 0x41d   : > { %v5317_v11 = vadd.f32 %v5174_v4, %v3617_v42  ;;  %5046 = vmatmul.bf16.gmra.mxu2 %v7721_v54  ;;  %5215 = vmatmul.bf16.gmra.mxu3 %v7725_v44  ;;  %v10597_v5 = vpop.permute.xlu1 %5906  ;;  %v10599_v35 = vpop.permute.xlu0 %5901  ;;  %v10601_v26 = vmin.f32 %v6087_v32, 1.0  ;;  %v8933_v42 = vld [vmem:[%s10983_s3 + $0x108] sm:$0xff]  ;;  %v7730_v54 = vld [vmem:[#allocation5 + $0x1f0] sm:$0xf0] }
 0x41e   : > { %11092 = vst [vmem:[#allocation47_spill] sm:$0xff] %v10597_v5  ;;  %6399 = vperm.xlu1 %8928, %v8932_v60   ;;  %6403 = vperm.xlu2 %8929, %v8933_v42   ;;  %v10612_v44 = vpop.permute.xlu2 %5941  ;;  %v7736_v4 = vld [vmem:[#allocation5 + $0x1e8] sm:$0xf]  ;;  %v8385_v60 = vld [vmem:[#allocation5 + $0x1ec] sm:$0xf] }
 0x41f   : > { %11093 = vst [vmem:[#allocation52_spill] sm:$0xff] %v10599_v35  ;;  %v5960_v32 = vmul.f32 %v11095_v53, %v5317_v11  ;;  %6407 = vperm.xlu0 %8930, %v8934_v39   ;;  %v7738_v42 = vld [vmem:[#allocation5 + $0x1f8] sm:$0xf0] }
 0x420   : > { %11094 = vst [vmem:[#allocation46_spill] sm:$0xff] %v10612_v44  ;;  %v5007_v40 = vpop.f32.mrf.mxu2  ;;  %v5176_v12 = vpop.f32.mrf.mxu3  ;;  %v8935_v53 = vld [vmem:[%s10983_s3 + $0x118] sm:$0xff] }
 0x421   : > { %5381 = vst [vmem:[#allocation2 + $0x98] sm:$0xff] %v5317_v11  ;;  %v5008_v20 = vadd.f32 %v5007_v40, %v4839_v28  ;;  %v4671_v10 = vpop.f32.mrf.mxu0  ;;  %v4840_v16 = vpop.f32.mrf.mxu1  ;;  %v6024_v15 = vadd.f32 %v5960_v32, %v5512_v52  ;;  %v5513_v11 = vld [vmem:[%s10982_s2 + $0x60] sm:$0xff]  ;;  %v8387_v52 = vld [vmem:[#allocation5 + $0x1f4] sm:$0xf0]  ;;  %v11098_v40 = vld [vmem:[#allocation55_spill] sm:$0xff] }
 0x422   : > { %6215 = vst [vmem:[#allocation8 + $0x50] sm:$0xff] %v10601_v26  ;;  %v8936_v32 = vld [vmem:[%s10983_s3 + $0x120] sm:$0xff]  ;;  %v4841_v39 = vadd.f32 %v4840_v16, %v4671_v10  ;;  %v3619_v10 = vld [vmem:[#allocation2 + $0x150] sm:$0xff] }
 0x423   : > { %v5177_v0 = vadd.f32 %v5176_v12, %v5008_v20  ;;  %v6088_v19 = vmax.f32 %v6024_v15, 0.0  ;;  %v8937_v20 = vld [vmem:[%s10983_s3 + $0x128] sm:$0xff] }
 0x425   : > { %v5318_v43 = vadd.f32 %v5177_v0, %v3618_v63  ;;  %v10619_v18 = vpop.permute.xlu1 %5921  ;;  %v10621_v48 = vpop.permute.xlu0 %5916  ;;  %v10626_v28 = vmin.f32 %v6088_v19, 1.0  ;;  %v7729_v63 = vor.u32 %v8386_v33, %v7728_v55  ;;  %v7733_v0 = vor.u32 %v8384_v17, %v7730_v54  ;;  %v5514_v54 = vld [vmem:[%s10982_s2 + $0x68] sm:$0xff] }
 0x426   : > { %11096 = vst [vmem:[#allocation48_spill] sm:$0xff] %v10619_v18  ;;  %6411 = vperm.xlu1 %8928, %v8935_v53   ;;  %6415 = vperm.xlu2 %8929, %v8936_v32   ;;  %v7737_v18 = vor.u32 %v8387_v52, %v7736_v4  ;;  %v6276_v5 = vpop.permute.xlu2 %6275  ;;  %v8938_v4 = vld [vmem:[%s10983_s3 + $0x130] sm:$0xff] }
 0x427   : > { %11097 = vst [vmem:[#allocation71_spill] sm:$0xff] %v10621_v48  ;;  %v5961_v12 = vmul.f32 %v11098_v40, %v5318_v43  ;;  %6419 = vperm.xlu0 %8930, %v8937_v20   ;;  %v7741_v48 = vor.u32 %v8385_v60, %v7738_v42 }
 0x428   : > { %5382 = vst [vmem:[#allocation2 + $0x120] sm:$0xff] %v5318_v43  ;;  %v5009_v15 = vpop.f32.mrf.mxu2  ;;  %v5178_v53 = vpop.f32.mrf.mxu3 }
 0x429   : > { %6216 = vst [vmem:[#allocation8 + $0x58] sm:$0xff] %v10626_v28  ;;  %v5010_v19 = vadd.f32 %v5009_v15, %v4841_v39  ;;  %v4674_v44 = vpop.f32.mrf.mxu0  ;;  %v6025_v32 = vadd.f32 %v5961_v12, %v5513_v11  ;;  %v4843_v16 = vpop.f32.mrf.mxu1  ;;  %v8940_v11 = vld [vmem:[%s10983_s3 + $0x140] sm:$0xff]  ;;  %v3620_v15 = vld [vmem:[#allocation2 + $0x108] sm:$0xff] }
 0x42a   : > { %v4844_v20 = vadd.f32 %v4843_v16, %v4674_v44  ;;  %v8939_v44 = vld [vmem:[%s10983_s3 + $0x138] sm:$0xff]  ;;  %v7746_v16 = vld [vmem:[#allocation5 + $0x210] sm:$0xf0] }
 0x42b   : > { %v5179_v43 = vadd.f32 %v5178_v53, %v5010_v19  ;;  %v6089_v40 = vmax.f32 %v6025_v32, 0.0  ;;  %v7744_v19 = vld [vmem:[#allocation5 + $0x200] sm:$0xf] }
 0x42c   : > { %4713 = vmatmul.bf16.gmra.mxu0 %v7729_v63  ;;  %4882 = vmatmul.bf16.gmra.mxu1 %v7733_v0 }
 0x42d   : > { %v5319_v35 = vadd.f32 %v5179_v43, %v3619_v10  ;;  %5051 = vmatmul.bf16.gmra.mxu2 %v7737_v18  ;;  %5220 = vmatmul.bf16.gmra.mxu3 %v7741_v48  ;;  %v10639_v55 = vpop.permute.xlu1 %5936  ;;  %v10641_v33 = vpop.permute.xlu0 %5931  ;;  %v10643_v17 = vmin.f32 %v6089_v40, 1.0  ;;  %v11101_v18 = vld [vmem:[#allocation54_spill] sm:$0xff]  ;;  %v8388_v10 = vld [vmem:[#allocation5 + $0x204] sm:$0xf] }
 0x42e   : > { %11099 = vst [vmem:[#allocation55_spill] sm:$0xff] %v10639_v55  ;;  %6423 = vperm.xlu1 %8928, %v8938_v4   ;;  %6427 = vperm.xlu2 %8929, %v8939_v44   ;;  %v10659_v32 = vpop.permute.xlu2 %6287  ;;  %v7752_v40 = vld [vmem:[#allocation5 + $0x208] sm:$0xf]  ;;  %v8391_v4 = vld [vmem:[#allocation5 + $0x214] sm:$0xf0]  ;;  %v7749_v55 = vor.u32 %v8388_v10, %v7746_v16 }
 0x42f   : > { %11100 = vst [vmem:[#allocation72_spill] sm:$0xff] %v10641_v33  ;;  %v5962_v48 = vmul.f32 %v11101_v18, %v5319_v35  ;;  %6431 = vperm.xlu0 %8930, %v8940_v11   ;;  %v8389_v11 = vld [vmem:[#allocation5 + $0x20c] sm:$0xf]  ;;  %v7753_v33 = vor.u32 %v8391_v4, %v7752_v40  ;;  %v5516_v10 = vld [vmem:[%s10982_s2 + $0x78] sm:$0xff]  ;;  %v8944_v40 = vld [vmem:[%s10983_s3 + $0x160] sm:$0xff] }
 0x430   : > { %5383 = vst [vmem:[#allocation2 + $0x150] sm:$0xff] %v5319_v35  ;;  %v5012_v52 = vpop.f32.mrf.mxu2  ;;  %v5181_v42 = vpop.f32.mrf.mxu3  ;;  %v8390_v35 = vld [vmem:[#allocation5 + $0x20c] sm:$0xf0] }
 0x431   : > { %6217 = vst [vmem:[#allocation8 + $0x60] sm:$0xff] %v10643_v17  ;;  %v5013_v60 = vadd.f32 %v5012_v52, %v4844_v20  ;;  %v4676_v39 = vpop.f32.mrf.mxu0  ;;  %v6026_v12 = vadd.f32 %v5962_v48, %v5514_v54  ;;  %v4845_v63 = vpop.f32.mrf.mxu1  ;;  %v6527_v20 = vmul.f32 %v6276_v5, %v10459_v6  ;;  %v7754_v54 = vld [vmem:[#allocation5 + $0x218] sm:$0xf0]  ;;  %v5515_v48 = vld [vmem:[%s10982_s2 + $0x70] sm:$0xff]  ;;  %v8941_v52 = vld [vmem:[%s10983_s3 + $0x148] sm:$0xff] }
 0x433   : > { %v5182_v0 = vadd.f32 %v5181_v42, %v5013_v60  ;;  %v6090_v53 = vmax.f32 %v6026_v12, 0.0  ;;  %v8942_v60 = vld [vmem:[%s10983_s3 + $0x150] sm:$0xff]  ;;  %v4846_v42 = vadd.f32 %v4845_v63, %v4676_v39  ;;  %v11103_v12 = vld [vmem:[#allocation49_spill] sm:$0xff] }
 0x435   : > { %v5320_v43 = vadd.f32 %v5182_v0, %v3620_v15  ;;  %v10661_v44 = vmin.f32 %v6090_v53, 1.0  ;;  %v10674_v5 = vpop.permute.xlu0 %5946  ;;  %v8943_v0 = vld [vmem:[%s10983_s3 + $0x158] sm:$0xff] }
 0x436   : > { %v6272_v18 = vpop.permute.xlu1 %6271  ;;  %6435 = vperm.xlu1 %8928, %v8941_v52   ;;  %6439 = vperm.xlu2 %8929, %v8942_v60   ;;  %11102 = vst [vmem:[#allocation54_spill] sm:$0xff] %v10674_v5  ;;  %v7745_v52 = vor.u32 %v8390_v35, %v7744_v19  ;;  %v3621_v5 = vld [vmem:[#allocation2 + $0x60] sm:$0xff]  ;;  %v6296_v19 = vpop.permute.xlu2 %6295 }
 0x437   : > { %5384 = vst [vmem:[#allocation2 + $0x108] sm:$0xff] %v5320_v43  ;;  %v6526_v6 = vmul.f32 %v6272_v18, %v10448_v22  ;;  %v5963_v15 = vmul.f32 %v11103_v12, %v5320_v43  ;;  %6443 = vperm.xlu0 %8930, %v8943_v0   ;;  %v7757_v22 = vor.u32 %v8389_v11, %v7754_v54 }
 0x438   : > { %v5014_v53 = vpop.f32.mrf.mxu2  ;;  %6218 = vst [vmem:[#allocation8 + $0x68] sm:$0xff] %v10661_v44  ;;  %v5183_v39 = vpop.f32.mrf.mxu3 }
 0x439   : > { %v8615_v60 = vpack.c.bf16 %v6527_v20, %v6526_v6  ;;  %v5015_v27 = vadd.f32 %v5014_v53, %v4846_v42  ;;  %v4679_v63 = vpop.f32.mrf.mxu0  ;;  %v6027_v18 = vadd.f32 %v5963_v15, %v5515_v48  ;;  %v4848_v38 = vpop.f32.mrf.mxu1  ;;  %v3622_v53 = vld [vmem:[#allocation2 + $0xe0] sm:$0xff] }
 0x43a   : > { %v4849_v35 = vadd.f32 %v4848_v38, %v4679_v63  ;;  %v8946_v38 = vld [vmem:[%s10983_s3 + $0x170] sm:$0xff] }
 0x43b   : > { %8616 = vst [vmem:[#allocation4] sm:$0xff] %v8615_v60   ;;  %v5184_v43 = vadd.f32 %v5183_v39, %v5015_v27  ;;  %v6091_v12 = vmax.f32 %v6027_v18, 0.0  ;;  %v8945_v27 = vld [vmem:[%s10983_s3 + $0x168] sm:$0xff]  ;;  %v7760_v60 = vld [vmem:[#allocation5 + $0x220] sm:$0xf] }
 0x43c   : > { %4718 = vmatmul.bf16.gmra.mxu0 %v7745_v52  ;;  %4887 = vmatmul.bf16.gmra.mxu1 %v7749_v55  ;;  %v11104_v55 = vld [vmem:[#allocation58_spill] sm:$0xff]  ;;  %v8394_v18 = vld [vmem:[#allocation5 + $0x22c] sm:$0xf0] }
 0x43d   : > { %v5321_v0 = vadd.f32 %v5184_v43, %v3621_v5  ;;  %5056 = vmatmul.bf16.gmra.mxu2 %v7753_v33  ;;  %5225 = vmatmul.bf16.gmra.mxu3 %v7757_v22  ;;  %v10684_v16 = vmin.f32 %v6091_v12, 1.0  ;;  %v8392_v43 = vld [vmem:[#allocation5 + $0x224] sm:$0xf]  ;;  %v7762_v12 = vld [vmem:[#allocation5 + $0x230] sm:$0xf0] }
 0x43e   : > { %6447 = vperm.xlu1 %8928, %v8944_v40   ;;  %6451 = vperm.xlu2 %8929, %v8945_v27   ;;  %v8395_v40 = vld [vmem:[#allocation5 + $0x234] sm:$0xf0]  ;;  %v8393_v27 = vld [vmem:[#allocation5 + $0x22c] sm:$0xf] }
 0x43f   : > { %5385 = vst [vmem:[#allocation2 + $0x60] sm:$0xff] %v5321_v0  ;;  %v5964_v33 = vmul.f32 %v11104_v55, %v5321_v0  ;;  %6455 = vperm.xlu0 %8930, %v8946_v38   ;;  %v7768_v0 = vld [vmem:[#allocation5 + $0x228] sm:$0xf]  ;;  %v8948_v55 = vld [vmem:[%s10983_s3 + $0x180] sm:$0xff] }
 0x440   : > { %v6284_v4 = vpop.permute.xlu1 %6283  ;;  %6219 = vst [vmem:[#allocation8 + $0x70] sm:$0xff] %v10684_v16  ;;  %v5017_v54 = vpop.f32.mrf.mxu2  ;;  %v8949_v38 = vld [vmem:[%s10983_s3 + $0x188] sm:$0xff] }
 0x441   : > { %v6529_v20 = vmul.f32 %v6284_v4, %v10494_v50  ;;  %v6280_v11 = vpop.permute.xlu0 %6279  ;;  %v6028_v48 = vadd.f32 %v5964_v33, %v5516_v10  ;;  %v5018_v6 = vadd.f32 %v5017_v54, %v4849_v35  ;;  %v5186_v5 = vpop.f32.mrf.mxu3  ;;  %v8947_v35 = vld [vmem:[%s10983_s3 + $0x178] sm:$0xff]  ;;  %v5517_v33 = vld [vmem:[%s10982_s2 + $0x80] sm:$0xff]  ;;  %v7761_v54 = vor.u32 %v8394_v18, %v7760_v60 }
 0x442   : > { %v6528_v42 = vmul.f32 %v6280_v11, %v10480_v61  ;;  %v4681_v15 = vpop.f32.mrf.mxu0  ;;  %v4850_v52 = vpop.f32.mrf.mxu1  ;;  %v7770_v61 = vld [vmem:[#allocation5 + $0x238] sm:$0xf0] }
 0x443   : > { %v6092_v39 = vmax.f32 %v6028_v48, 0.0  ;;  %v5187_v22 = vadd.f32 %v5186_v5, %v5018_v6  ;;  %v6308_v4 = vpop.permute.xlu2 %6307  ;;  %v7765_v48 = vor.u32 %v8392_v43, %v7762_v12  ;;  %v6530_v5 = vmul.f32 %v10659_v32, %v10509_v29  ;;  %v3623_v43 = vld [vmem:[#allocation2 + $0x188] sm:$0xff] }
 0x444   : > { %v8620_v63 = vpack.c.bf16 %v6529_v20, %v6528_v42  ;;  %v4851_v20 = vadd.f32 %v4850_v52, %v4681_v15  ;;  %v11105_v42 = vld [vmem:[#allocation57_spill] sm:$0xff] }
 0x445   : > { %v10699_v50 = vmin.f32 %v6092_v39, 1.0  ;;  %v5322_v10 = vadd.f32 %v5187_v22, %v3622_v53  ;;  %v7769_v22 = vor.u32 %v8395_v40, %v7768_v0  ;;  %v8952_v0 = vld [vmem:[%s10983_s3 + $0x1a0] sm:$0xff] }
 0x446   : > { %8803 = vst [vmem:[#allocation4 + $0x8] sm:$0xff] %v8620_v63   ;;  %6459 = vperm.xlu1 %8928, %v8947_v35   ;;  %6463 = vperm.xlu2 %8929, %v8948_v55   ;;  %v7773_v35 = vor.u32 %v8393_v27, %v7770_v61  ;;  %v6532_v55 = vmul.f32 %v6296_v19, %v10539_v62  ;;  %v5518_v19 = vld [vmem:[%s10982_s2 + $0x88] sm:$0xff] }
 0x447   : > { %6220 = vst [vmem:[#allocation8 + $0x78] sm:$0xff] %v10699_v50  ;;  %6467 = vperm.xlu0 %8930, %v8949_v38   ;;  %v5965_v6 = vmul.f32 %v11105_v42, %v5322_v10  ;;  %v11106_v27 = vld [vmem:[#allocation50_spill] sm:$0xff] }
 0x448   : > { %5386 = vst [vmem:[#allocation2 + $0xe0] sm:$0xff] %v5322_v10  ;;  %v6292_v11 = vpop.permute.xlu1 %6291  ;;  %v5019_v63 = vpop.f32.mrf.mxu2 }
 0x449   : > { %v6531_v53 = vmul.f32 %v6292_v11, %v10526_v49  ;;  %v6300_v39 = vpop.permute.xlu0 %6299  ;;  %v5020_v14 = vadd.f32 %v5019_v63, %v4851_v20  ;;  %v5188_v15 = vpop.f32.mrf.mxu3  ;;  %v6029_v60 = vadd.f32 %v5965_v6, %v5517_v33  ;;  %v6535_v33 = vmul.f32 %v6308_v4, %v10585_v56  ;;  %v3624_v63 = vld [vmem:[#allocation2 + $0x138] sm:$0xff] }
 0x44a   : > { %v6533_v38 = vmul.f32 %v6300_v39, %v10553_v1  ;;  %v4684_v52 = vpop.f32.mrf.mxu0  ;;  %v4853_v12 = vpop.f32.mrf.mxu1  ;;  %v8950_v1 = vld [vmem:[%s10983_s3 + $0x190] sm:$0xff]  ;;  %v8399_v4 = vld [vmem:[#allocation5 + $0x254] sm:$0xf0] }
 0x44b   : > { %v8625_v18 = vpack.c.bf16 %v6531_v53, %v6530_v5  ;;  %v5189_v42 = vadd.f32 %v5188_v15, %v5020_v14  ;;  %v6093_v29 = vmax.f32 %v6029_v60, 0.0  ;;  %v4854_v62 = vadd.f32 %v4853_v12, %v4684_v52  ;;  %v8951_v14 = vld [vmem:[%s10983_s3 + $0x198] sm:$0xff]  ;;  %v8396_v52 = vld [vmem:[#allocation5 + $0x244] sm:$0xf]  ;;  %v7778_v60 = vld [vmem:[#allocation5 + $0x250] sm:$0xf0] }
 0x44c   : > { %v8630_v10 = vpack.c.bf16 %v6533_v38, %v6532_v55  ;;  %4723 = vmatmul.bf16.gmra.mxu0 %v7761_v54  ;;  %4892 = vmatmul.bf16.gmra.mxu1 %v7765_v48  ;;  %v8398_v55 = vld [vmem:[#allocation5 + $0x24c] sm:$0xf0]  ;;  %v6320_v38 = vpop.permute.xlu2 %6319  ;;  %v7786_v12 = vld [vmem:[#allocation5 + $0x258] sm:$0xf0] }
 0x44d   : > { %8804 = vst [vmem:[#allocation4 + $0x10] sm:$0xff] %v8625_v18   ;;  %5061 = vmatmul.bf16.gmra.mxu2 %v7769_v22  ;;  %5230 = vmatmul.bf16.gmra.mxu3 %v7773_v35  ;;  %v5323_v49 = vadd.f32 %v5189_v42, %v3623_v43  ;;  %v10720_v32 = vmin.f32 %v6093_v29, 1.0  ;;  %v7776_v35 = vld [vmem:[#allocation5 + $0x240] sm:$0xf]  ;;  %v8397_v43 = vld [vmem:[#allocation5 + $0x24c] sm:$0xf] }
 0x44e   : > { %8805 = vst [vmem:[#allocation4 + $0x18] sm:$0xff] %v8630_v10   ;;  %6471 = vperm.xlu1 %8928, %v8950_v1   ;;  %6475 = vperm.xlu2 %8929, %v8951_v14   ;;  %v8953_v42 = vld [vmem:[%s10983_s3 + $0x1a8] sm:$0xff]  ;;  %v8954_v29 = vld [vmem:[%s10983_s3 + $0x1b0] sm:$0xff] }
 0x44f   : > { %6479 = vperm.xlu0 %8930, %v8952_v0   ;;  %5387 = vst [vmem:[#allocation2 + $0x188] sm:$0xff] %v5323_v49  ;;  %v5966_v61 = vmul.f32 %v11106_v27, %v5323_v49  ;;  %v5519_v49 = vld [vmem:[%s10982_s2 + $0x90] sm:$0xff]  ;;  %v7781_v0 = vor.u32 %v8396_v52, %v7778_v60 }
 0x450   : > { %v6304_v40 = vpop.permute.xlu1 %6303  ;;  %v5022_v54 = vpop.f32.mrf.mxu2  ;;  %6221 = vst [vmem:[#allocation8 + $0x80] sm:$0xff] %v10720_v32 }
 0x451   : > { %v6534_v20 = vmul.f32 %v6304_v40, %v10576_v31  ;;  %v6312_v11 = vpop.permute.xlu0 %6311  ;;  %v5023_v48 = vadd.f32 %v5022_v54, %v4854_v62  ;;  %v5191_v6 = vpop.f32.mrf.mxu3  ;;  %v6030_v53 = vadd.f32 %v5966_v61, %v5518_v19  ;;  %v7784_v31 = vld [vmem:[#allocation5 + $0x248] sm:$0xf]  ;;  %v8955_v62 = vld [vmem:[%s10983_s3 + $0x1b8] sm:$0xff]  ;;  %v7777_v19 = vor.u32 %v8398_v55, %v7776_v35  ;;  %v11107_v40 = vld [vmem:[#allocation61_spill] sm:$0xff] }
 0x452   : > { %v4686_v5 = vpop.f32.mrf.mxu0  ;;  %v4855_v22 = vpop.f32.mrf.mxu1  ;;  %v6536_v61 = vmul.f32 %v6312_v11, %v10601_v26 }
 0x453   : > { %v8635_v39 = vpack.c.bf16 %v6535_v33, %v6534_v20  ;;  %v5192_v15 = vadd.f32 %v5191_v6, %v5023_v48  ;;  %v6094_v56 = vmax.f32 %v6030_v53, 0.0  ;;  %v4856_v1 = vadd.f32 %v4855_v22, %v4686_v5 }
 0x454   : > { %v7785_v48 = vor.u32 %v8399_v4, %v7784_v31  ;;  %v7789_v6 = vor.u32 %v8397_v43, %v7786_v12  ;;  %v6538_v53 = vmul.f32 %v6320_v38, %v10643_v17  ;;  %v6332_v60 = vpop.permute.xlu2 %6331  ;;  %v8957_v31 = vld [vmem:[%s10983_s3 + $0x1c8] sm:$0xff]  ;;  %v5520_v4 = vld [vmem:[%s10982_s2 + $0x98] sm:$0xff] }
 0x455   : > { %8806 = vst [vmem:[#allocation4 + $0x20] sm:$0xff] %v8635_v39   ;;  %v5324_v18 = vadd.f32 %v5192_v15, %v3624_v63  ;;  %v10738_v10 = vmin.f32 %v6094_v56, 1.0  ;;  %v3625_v15 = vld [vmem:[#allocation2 + $0x140] sm:$0xff]  ;;  %v11108_v12 = vld [vmem:[#allocation60_spill] sm:$0xff] }
 0x456   : > { %6483 = vperm.xlu1 %8928, %v8953_v42   ;;  %6487 = vperm.xlu2 %8929, %v8954_v29   ;;  %v8956_v56 = vld [vmem:[%s10983_s3 + $0x1c0] sm:$0xff]  ;;  %v6541_v29 = vmul.f32 %v6332_v60, %v10699_v50  ;;  %v7800_v50 = vld [vmem:[#allocation5 + $0x268] sm:$0xf] }
 0x457   : > { %6491 = vperm.xlu0 %8930, %v8955_v62   ;;  %5388 = vst [vmem:[#allocation2 + $0x138] sm:$0xff] %v5324_v18  ;;  %v5967_v27 = vmul.f32 %v11107_v40, %v5324_v18  ;;  %v8958_v18 = vld [vmem:[%s10983_s3 + $0x1d0] sm:$0xff] }
 0x458   : > { %v6316_v14 = vpop.permute.xlu1 %6315  ;;  %v5024_v54 = vpop.f32.mrf.mxu2  ;;  %6222 = vst [vmem:[#allocation8 + $0x88] sm:$0xff] %v10738_v10 }
 0x459   : > { %v6537_v33 = vmul.f32 %v6316_v14, %v10626_v28  ;;  %v6324_v20 = vpop.permute.xlu0 %6323  ;;  %v5025_v5 = vadd.f32 %v5024_v54, %v4856_v1  ;;  %v5193_v63 = vpop.f32.mrf.mxu3  ;;  %v6031_v35 = vadd.f32 %v5967_v27, %v5519_v49  ;;  %v8402_v54 = vld [vmem:[#allocation5 + $0x26c] sm:$0xf0] }
 0x45a   : > { %v6539_v39 = vmul.f32 %v6324_v20, %v10661_v44  ;;  %v4689_v22 = vpop.f32.mrf.mxu0  ;;  %v4858_v52 = vpop.f32.mrf.mxu1  ;;  %v7792_v20 = vld [vmem:[#allocation5 + $0x260] sm:$0xf] }
 0x45b   : > { %v8640_v55 = vpack.c.bf16 %v6537_v33, %v6536_v61  ;;  %v5194_v11 = vadd.f32 %v5193_v63, %v5025_v5  ;;  %v6095_v28 = vmax.f32 %v6031_v35, 0.0  ;;  %v4859_v38 = vadd.f32 %v4858_v52, %v4689_v22  ;;  %v3626_v61 = vld [vmem:[#allocation2 + $0x80] sm:$0xff]  ;;  %v8403_v5 = vld [vmem:[#allocation5 + $0x274] sm:$0xf0]  ;;  %v8401_v63 = vld [vmem:[#allocation5 + $0x26c] sm:$0xf] }
 0x45c   : > { %v8645_v26 = vpack.c.bf16 %v6539_v39, %v6538_v53  ;;  %4728 = vmatmul.bf16.gmra.mxu0 %v7777_v19  ;;  %4897 = vmatmul.bf16.gmra.mxu1 %v7781_v0  ;;  %v7794_v53 = vld [vmem:[#allocation5 + $0x270] sm:$0xf0]  ;;  %v7802_v22 = vld [vmem:[#allocation5 + $0x278] sm:$0xf0]  ;;  %v6344_v52 = vpop.permute.xlu2 %6343 }
 0x45d   : > { %8807 = vst [vmem:[#allocation4 + $0x28] sm:$0xff] %v8640_v55   ;;  %5066 = vmatmul.bf16.gmra.mxu2 %v7785_v48  ;;  %5235 = vmatmul.bf16.gmra.mxu3 %v7789_v6  ;;  %v5325_v17 = vadd.f32 %v5194_v11, %v3625_v15  ;;  %v6159_v44 = vmin.f32 %v6095_v28, 1.0  ;;  %v8400_v6 = vld [vmem:[#allocation5 + $0x264] sm:$0xf]  ;;  %v8959_v55 = vld [vmem:[%s10983_s3 + $0x1d8] sm:$0xff]  ;;  %v8961_v11 = vld [vmem:[%s10983_s3 + $0x1e8] sm:$0xff] }
 0x45e   : > { %8808 = vst [vmem:[#allocation4 + $0x30] sm:$0xff] %v8645_v26   ;;  %6495 = vperm.xlu1 %8928, %v8956_v56   ;;  %6499 = vperm.xlu2 %8929, %v8957_v31   ;;  %v8960_v15 = vld [vmem:[%s10983_s3 + $0x1e0] sm:$0xff]  ;;  %v11109_v56 = vld [vmem:[#allocation51_spill] sm:$0xff] }
 0x45f   : > { %6503 = vperm.xlu0 %8930, %v8958_v18   ;;  %5389 = vst [vmem:[#allocation2 + $0x140] sm:$0xff] %v5325_v17  ;;  %v5968_v42 = vmul.f32 %v11108_v12, %v5325_v17  ;;  %v5521_v26 = vld [vmem:[%s10982_s2 + $0xa0] sm:$0xff]  ;;  %v7793_v17 = vor.u32 %v8402_v54, %v7792_v20  ;;  %v7801_v12 = vor.u32 %v8403_v5, %v7800_v50 }
 0x460   : > { %v6328_v43 = vpop.permute.xlu1 %6327  ;;  %v5027_v1 = vpop.f32.mrf.mxu2  ;;  %6223 = vst [vmem:[#allocation8 + $0x90] sm:$0xff] %v6159_v44 }
 0x461   : > { %v6540_v49 = vmul.f32 %v6328_v43, %v10684_v16  ;;  %v6336_v62 = vpop.permute.xlu0 %6335  ;;  %v5028_v14 = vadd.f32 %v5027_v1, %v4859_v38  ;;  %v5196_v19 = vpop.f32.mrf.mxu3  ;;  %v6032_v40 = vadd.f32 %v5968_v42, %v5520_v4  ;;  %v7797_v38 = vor.u32 %v8400_v6, %v7794_v53  ;;  %v8963_v6 = vld [vmem:[%s10983_s3 + $0x1f8] sm:$0xff]  ;;  %v5522_v53 = vld [vmem:[%s10982_s2 + $0xa8] sm:$0xff] }
 0x462   : > { %v4691_v0 = vpop.f32.mrf.mxu0  ;;  %v4860_v33 = vpop.f32.mrf.mxu1  ;;  %v6542_v4 = vmul.f32 %v6336_v62, %v10720_v32  ;;  %v7805_v42 = vor.u32 %v8401_v63, %v7802_v22 }
 0x463   : > { %v8650_v27 = vpack.c.bf16 %v6541_v29, %v6540_v49  ;;  %v5197_v48 = vadd.f32 %v5196_v19, %v5028_v14  ;;  %v6096_v39 = vmax.f32 %v6032_v40, 0.0  ;;  %v4861_v28 = vadd.f32 %v4860_v33, %v4691_v0 }
 0x464   : > { %v6544_v49 = vmul.f32 %v6344_v52, %v6159_v44  ;;  %v7808_v52 = vld [vmem:[#allocation5 + $0x280] sm:$0xf] }
 0x465   : > { %8809 = vst [vmem:[#allocation4 + $0x38] sm:$0xff] %v8650_v27   ;;  %v5326_v16 = vadd.f32 %v5197_v48, %v3626_v61  ;;  %v6160_v35 = vmin.f32 %v6096_v39, 1.0  ;;  %v3627_v61 = vld [vmem:[#allocation2 + $0x1a8] sm:$0xff]  ;;  %v8962_v48 = vld [vmem:[%s10983_s3 + $0x1f0] sm:$0xff]  ;;  %v11110_v39 = vld [vmem:[#allocation64_spill] sm:$0xff] }
 0x466   : > { %6507 = vperm.xlu1 %8928, %v8959_v55   ;;  %6511 = vperm.xlu2 %8929, %v8960_v15   ;;  %v3628_v55 = vld [vmem:[#allocation2 + $0x1b8] sm:$0xff] }
 0x467   : > { %6515 = vperm.xlu0 %8930, %v8961_v11   ;;  %5390 = vst [vmem:[#allocation2 + $0x80] sm:$0xff] %v5326_v16  ;;  %v5969_v31 = vmul.f32 %v11109_v56, %v5326_v16  ;;  %v7816_v56 = vld [vmem:[#allocation5 + $0x288] sm:$0xf] }
 0x468   : > { %v6340_v60 = vpop.permute.xlu1 %6339  ;;  %v5029_v43 = vpop.f32.mrf.mxu2  ;;  %6224 = vst [vmem:[#allocation8 + $0x98] sm:$0xff] %v6160_v35 }
 0x469   : > { %v6543_v18 = vmul.f32 %v6340_v60, %v10738_v10  ;;  %v6348_v29 = vpop.permute.xlu0 %6347  ;;  %v5030_v1 = vadd.f32 %v5029_v43, %v4861_v28  ;;  %v5198_v14 = vpop.f32.mrf.mxu3  ;;  %v6033_v0 = vadd.f32 %v5969_v31, %v5521_v26  ;;  %v8406_v26 = vld [vmem:[#allocation5 + $0x28c] sm:$0xf0]  ;;  %v8404_v28 = vld [vmem:[#allocation5 + $0x284] sm:$0xf]  ;;  %v7810_v60 = vld [vmem:[#allocation5 + $0x290] sm:$0xf0] }
 0x46a   : > { %v4694_v19 = vpop.f32.mrf.mxu0  ;;  %v6545_v40 = vmul.f32 %v6348_v29, %v6160_v35  ;;  %v4863_v33 = vpop.f32.mrf.mxu1  ;;  %v8407_v31 = vld [vmem:[#allocation5 + $0x294] sm:$0xf0]  ;;  %v8405_v43 = vld [vmem:[#allocation5 + $0x28c] sm:$0xf]  ;;  %v7809_v29 = vor.u32 %v8406_v26, %v7808_v52 }
 0x46b   : > { %v8655_v27 = vpack.c.bf16 %v6543_v18, %v6542_v4  ;;  %v5199_v20 = vadd.f32 %v5198_v14, %v5030_v1  ;;  %v6097_v62 = vmax.f32 %v6033_v0, 0.0  ;;  %v4864_v54 = vadd.f32 %v4863_v33, %v4694_v19  ;;  %v6356_v4 = vpop.permute.xlu2 %6355  ;;  %v5523_v1 = vld [vmem:[%s10982_s2 + $0xb0] sm:$0xff] }
 0x46c   : > { %4733 = vmatmul.bf16.gmra.mxu0 %v7793_v17  ;;  %4902 = vmatmul.bf16.gmra.mxu1 %v7797_v38  ;;  %v8660_v32 = vpack.c.bf16 %v6545_v40, %v6544_v49  ;;  %v7813_v49 = vor.u32 %v8404_v28, %v7810_v60  ;;  %v11111_v0 = vld [vmem:[#allocation63_spill] sm:$0xff]  ;;  %v7817_v33 = vor.u32 %v8407_v31, %v7816_v56  ;;  %v3630_v28 = vld [vmem:[#allocation2 + $0x1e8] sm:$0xff]  ;;  %v8408_v31 = vld [vmem:[#allocation5 + $0x2a4] sm:$0xf] }
 0x46d   : > { %8810 = vst [vmem:[#allocation4 + $0x40] sm:$0xff] %v8655_v27   ;;  %5071 = vmatmul.bf16.gmra.mxu2 %v7801_v12  ;;  %5240 = vmatmul.bf16.gmra.mxu3 %v7805_v42  ;;  %v5327_v10 = vadd.f32 %v5199_v20, %v3627_v61  ;;  %v6161_v44 = vmin.f32 %v6097_v62, 1.0  ;;  %v7818_v12 = vld [vmem:[#allocation5 + $0x298] sm:$0xf0] }
 0x46e   : > { %8811 = vst [vmem:[#allocation4 + $0x48] sm:$0xff] %v8660_v32   ;;  %6519 = vperm.xlu1 %8928, %v8962_v48   ;;  %6523 = vperm.xlu2 %8929, %v8963_v6   ;;  %v7821_v20 = vor.u32 %v8405_v43, %v7818_v12  ;;  %v3629_v6 = vld [vmem:[#allocation2 + $0x28] sm:$0xff] }
 0x46f   : > { %5391 = vst [vmem:[#allocation2 + $0x1a8] sm:$0xff] %v5327_v10  ;;  %v5970_v50 = vmul.f32 %v11110_v39, %v5327_v10  ;;  %v7832_v12 = vld [vmem:[#allocation5 + $0x2a8] sm:$0xf] }
 0x470   : > { %v5032_v5 = vpop.f32.mrf.mxu2  ;;  %6225 = vst [vmem:[#allocation8 + $0xa0] sm:$0xff] %v6161_v44  ;;  %v6352_v38 = vpop.permute.xlu1 %6351 }
 0x471   : > { %v5033_v16 = vadd.f32 %v5032_v5, %v4864_v54  ;;  %v5201_v63 = vpop.f32.mrf.mxu3  ;;  %v6034_v35 = vadd.f32 %v5970_v50, %v5522_v53  ;;  %v6546_v19 = vmul.f32 %v6352_v38, %v6161_v44  ;;  %v8410_v38 = vld [vmem:[#allocation5 + $0x2ac] sm:$0xf0]  ;;  %v6360_v43 = vpop.permute.xlu0 %6359 }
 0x472   : > { %v4696_v22 = vpop.f32.mrf.mxu0  ;;  %v4865_v15 = vpop.f32.mrf.mxu1 }
 0x473   : > { %v5202_v11 = vadd.f32 %v5201_v63, %v5033_v16  ;;  %v6098_v17 = vmax.f32 %v6034_v35, 0.0  ;;  %v4866_v14 = vadd.f32 %v4865_v15, %v4696_v22  ;;  %v5524_v63 = vld [vmem:[%s10982_s2 + $0xb8] sm:$0xff]  ;;  %v11112_v22 = vld [vmem:[#allocation53_spill] sm:$0xff] }
 0x475   : > { %v5328_v18 = vadd.f32 %v5202_v11, %v3628_v55  ;;  %v6162_v42 = vmin.f32 %v6098_v17, 1.0  ;;  %v7824_v17 = vld [vmem:[#allocation5 + $0x2a0] sm:$0xf] }
 0x477   : > { %5392 = vst [vmem:[#allocation2 + $0x1b8] sm:$0xff] %v5328_v18  ;;  %v6547_v40 = vmul.f32 %v6356_v4, %v6162_v42  ;;  %v5971_v27 = vmul.f32 %v11111_v0, %v5328_v18  ;;  %v7826_v4 = vld [vmem:[#allocation5 + $0x2b0] sm:$0xf0] }
 0x478   : > { %v5034_v61 = vpop.f32.mrf.mxu2  ;;  %6226 = vst [vmem:[#allocation8 + $0xa8] sm:$0xff] %v6162_v42  ;;  %v8411_v42 = vld [vmem:[#allocation5 + $0x2b4] sm:$0xf0]  ;;  %v7829_v0 = vor.u32 %v8408_v31, %v7826_v4  ;;  %v8414_v31 = vld [vmem:[#allocation5 + $0x2cc] sm:$0xf0] }
 0x479   : > { %v5035_v32 = vadd.f32 %v5034_v61, %v4866_v14  ;;  %v5203_v62 = vpop.f32.mrf.mxu3  ;;  %v8665_v54 = vpack.c.bf16 %v6547_v40, %v6546_v19  ;;  %v6035_v48 = vadd.f32 %v5971_v27, %v5523_v1  ;;  %v8409_v1 = vld [vmem:[#allocation5 + $0x2ac] sm:$0xf]  ;;  %v7834_v14 = vld [vmem:[#allocation5 + $0x2b8] sm:$0xf0]  ;;  %v7825_v40 = vor.u32 %v8410_v38, %v7824_v17  ;;  %v5525_v27 = vld [vmem:[%s10982_s2 + $0xc0] sm:$0xff] }
 0x47a   : > { %v4699_v10 = vpop.f32.mrf.mxu0  ;;  %v4868_v53 = vpop.f32.mrf.mxu1  ;;  %v3632_v17 = vld [vmem:[#allocation2 + $0x160] sm:$0xff] }
 0x47b   : > { %v5204_v39 = vadd.f32 %v5203_v62, %v5035_v32  ;;  %8812 = vst [vmem:[#allocation4 + $0x50] sm:$0xff] %v8665_v54   ;;  %v6099_v50 = vmax.f32 %v6035_v48, 0.0  ;;  %v4869_v5 = vadd.f32 %v4868_v53, %v4699_v10  ;;  %v7833_v10 = vor.u32 %v8411_v42, %v7832_v12  ;;  %v6368_v42 = vpop.permute.xlu2 %6367 }
 0x47c   : > { %4738 = vmatmul.bf16.gmra.mxu0 %v7809_v29  ;;  %4907 = vmatmul.bf16.gmra.mxu1 %v7813_v49  ;;  %v6364_v29 = vpop.permute.xlu1 %6363  ;;  %v7837_v54 = vor.u32 %v8409_v1, %v7834_v14  ;;  %v6372_v1 = vpop.permute.xlu0 %6371 }
 0x47d   : > { %5076 = vmatmul.bf16.gmra.mxu2 %v7817_v33  ;;  %5245 = vmatmul.bf16.gmra.mxu3 %v7821_v20  ;;  %v5329_v44 = vadd.f32 %v5204_v39, %v3629_v6  ;;  %v6163_v16 = vmin.f32 %v6099_v50, 1.0 }
 0x47f   : > { %5393 = vst [vmem:[#allocation2 + $0x28] sm:$0xff] %v5329_v44  ;;  %v5972_v35 = vmul.f32 %v11112_v22, %v5329_v44  ;;  %v6548_v33 = vmul.f32 %v6360_v43, %v6163_v16  ;;  %v3631_v44 = vld [vmem:[#allocation2 + $0xf8] sm:$0xff]  ;;  %v7842_v43 = vld [vmem:[#allocation5 + $0x2d0] sm:$0xf0] }
 0x480   : > { %v5037_v55 = vpop.f32.mrf.mxu2  ;;  %6227 = vst [vmem:[#allocation8 + $0xb0] sm:$0xff] %v6163_v16 }
 0x481   : > { %v5038_v15 = vadd.f32 %v5037_v55, %v4869_v5  ;;  %v5206_v52 = vpop.f32.mrf.mxu3  ;;  %v6036_v11 = vadd.f32 %v5972_v35, %v5524_v63  ;;  %v5526_v55 = vld [vmem:[%s10982_s2 + $0xc8] sm:$0xff] }
 0x482   : > { %v4701_v26 = vpop.f32.mrf.mxu0  ;;  %v4870_v60 = vpop.f32.mrf.mxu1 }
 0x483   : > { %v5207_v56 = vadd.f32 %v5206_v52, %v5038_v15  ;;  %v6100_v18 = vmax.f32 %v6036_v11, 0.0  ;;  %v4871_v61 = vadd.f32 %v4870_v60, %v4701_v26 }
 0x485   : > { %v5330_v49 = vadd.f32 %v5207_v56, %v3630_v28  ;;  %v6164_v19 = vmin.f32 %v6100_v18, 1.0  ;;  %v7840_v56 = vld [vmem:[#allocation5 + $0x2c0] sm:$0xf]  ;;  %v8412_v18 = vld [vmem:[#allocation5 + $0x2c4] sm:$0xf] }
 0x487   : > { %5394 = vst [vmem:[#allocation2 + $0x1e8] sm:$0xff] %v5330_v49  ;;  %v6549_v20 = vmul.f32 %v6364_v29, %v6164_v19  ;;  %v5973_v32 = vmul.f32 %v10441_v9, %v5330_v49  ;;  %v7848_v29 = vld [vmem:[#allocation5 + $0x2c8] sm:$0xf]  ;;  %v8415_v49 = vld [vmem:[#allocation5 + $0x2d4] sm:$0xf0] }
 0x488   : > { %v5039_v62 = vpop.f32.mrf.mxu2  ;;  %6228 = vst [vmem:[#allocation8 + $0xb8] sm:$0xff] %v6164_v19  ;;  %v7850_v19 = vld [vmem:[#allocation5 + $0x2d8] sm:$0xf0] }
 0x489   : > { %v5040_v48 = vadd.f32 %v5039_v62, %v4871_v61  ;;  %v5208_v6 = vpop.f32.mrf.mxu3  ;;  %v8670_v39 = vpack.c.bf16 %v6549_v20, %v6548_v33  ;;  %v6037_v50 = vadd.f32 %v5973_v32, %v5525_v27  ;;  %v7845_v27 = vor.u32 %v8412_v18, %v7842_v43  ;;  %v5527_v61 = vld [vmem:[%s10982_s2 + $0xd0] sm:$0xff]  ;;  %v11113_v62 = vld [vmem:[#allocation56_spill] sm:$0xff] }
 0x48a   : > { %v4704_v53 = vpop.f32.mrf.mxu0  ;;  %v4873_v5 = vpop.f32.mrf.mxu1  ;;  %v8418_v18 = vld [vmem:[#allocation5 + $0x2ec] sm:$0xf0] }
 0x48b   : > { %v5209_v63 = vadd.f32 %v5208_v6, %v5040_v48  ;;  %8813 = vst [vmem:[#allocation4 + $0x58] sm:$0xff] %v8670_v39   ;;  %v6101_v22 = vmax.f32 %v6037_v50, 0.0  ;;  %v4874_v9 = vadd.f32 %v4873_v5, %v4704_v53  ;;  %v7849_v48 = vor.u32 %v8415_v49, %v7848_v29  ;;  %v6376_v49 = vpop.permute.xlu1 %6375 }
 0x48c   : > { %4743 = vmatmul.bf16.gmra.mxu0 %v7825_v40  ;;  %4912 = vmatmul.bf16.gmra.mxu1 %v7829_v0  ;;  %v7841_v0 = vor.u32 %v8414_v31, %v7840_v56  ;;  %v3634_v56 = vld [vmem:[#allocation2 + $0x1e0] sm:$0xff] }
 0x48d   : > { %5081 = vmatmul.bf16.gmra.mxu2 %v7833_v10  ;;  %5250 = vmatmul.bf16.gmra.mxu3 %v7837_v54  ;;  %v5331_v16 = vadd.f32 %v5209_v63, %v3631_v44  ;;  %v6165_v35 = vmin.f32 %v6101_v22, 1.0  ;;  %v3633_v63 = vld [vmem:[#allocation2 + $0x30] sm:$0xff] }
 0x48f   : > { %5395 = vst [vmem:[#allocation2 + $0xf8] sm:$0xff] %v5331_v16  ;;  %v5974_v15 = vmul.f32 %v10439_v57, %v5331_v16  ;;  %v8413_v57 = vld [vmem:[#allocation5 + $0x2cc] sm:$0xf]  ;;  %v6550_v20 = vmul.f32 %v6368_v42, %v6165_v35  ;;  %v7858_v42 = vld [vmem:[#allocation5 + $0x2f0] sm:$0xf0] }
 0x490   : > { %v5042_v52 = vpop.f32.mrf.mxu2  ;;  %6229 = vst [vmem:[#allocation8 + $0xc0] sm:$0xff] %v6165_v35  ;;  %v7853_v6 = vor.u32 %v8413_v57, %v7850_v19  ;;  %v6380_v57 = vpop.permute.xlu2 %6379 }
 0x491   : > { %v5043_v26 = vadd.f32 %v5042_v52, %v4874_v9  ;;  %v5211_v11 = vpop.f32.mrf.mxu3  ;;  %v6038_v60 = vadd.f32 %v5974_v15, %v5526_v55  ;;  %v5528_v52 = vld [vmem:[%s10982_s2 + $0xd8] sm:$0xff] }
 0x492   : > { %v4706_v28 = vpop.f32.mrf.mxu0  ;;  %v4875_v38 = vpop.f32.mrf.mxu1 }
 0x493   : > { %v5212_v4 = vadd.f32 %v5211_v11, %v5043_v26  ;;  %v6102_v12 = vmax.f32 %v6038_v60, 0.0  ;;  %v4876_v33 = vadd.f32 %v4875_v38, %v4706_v28 }
 0x495   : > { %v5332_v14 = vadd.f32 %v5212_v4, %v3632_v17  ;;  %v6166_v40 = vmin.f32 %v6102_v12, 1.0  ;;  %v7856_v4 = vld [vmem:[#allocation5 + $0x2e0] sm:$0xf]  ;;  %v8416_v12 = vld [vmem:[#allocation5 + $0x2e4] sm:$0xf] }
 0x497   : > { %5396 = vst [vmem:[#allocation2 + $0x160] sm:$0xff] %v5332_v14  ;;  %v6551_v32 = vmul.f32 %v6372_v1, %v6166_v40  ;;  %v5975_v10 = vmul.f32 %v11113_v62, %v5332_v14  ;;  %v7864_v1 = vld [vmem:[#allocation5 + $0x2e8] sm:$0xf]  ;;  %v8419_v14 = vld [vmem:[#allocation5 + $0x2f4] sm:$0xf0] }
 0x498   : > { %v5044_v54 = vpop.f32.mrf.mxu2  ;;  %6230 = vst [vmem:[#allocation8 + $0xc8] sm:$0xff] %v6166_v40  ;;  %v7866_v40 = vld [vmem:[#allocation5 + $0x2f8] sm:$0xf0] }
 0x499   : > { %v5045_v53 = vadd.f32 %v5044_v54, %v4876_v33  ;;  %v5213_v39 = vpop.f32.mrf.mxu3  ;;  %v8675_v44 = vpack.c.bf16 %v6551_v32, %v6550_v20  ;;  %v6039_v5 = vadd.f32 %v5975_v10, %v5527_v61  ;;  %v7861_v61 = vor.u32 %v8416_v12, %v7858_v42  ;;  %v5529_v33 = vld [vmem:[%s10982_s2 + $0xe0] sm:$0xff]  ;;  %v7874_v42 = vld [vmem:[#allocation5 + $0x310] sm:$0xf0] }
 0x49a   : > { %v4709_v50 = vpop.f32.mrf.mxu0  ;;  %v4878_v22 = vpop.f32.mrf.mxu1  ;;  %v8420_v12 = vld [vmem:[#allocation5 + $0x304] sm:$0xf] }
 0x49b   : > { %v5214_v16 = vadd.f32 %v5213_v39, %v5045_v53  ;;  %8814 = vst [vmem:[#allocation4 + $0x60] sm:$0xff] %v8675_v44   ;;  %v6103_v9 = vmax.f32 %v6039_v5, 0.0  ;;  %v4879_v55 = vadd.f32 %v4878_v22, %v4709_v50 }
 0x49c   : > { %4748 = vmatmul.bf16.gmra.mxu0 %v7841_v0  ;;  %4917 = vmatmul.bf16.gmra.mxu1 %v7845_v27  ;;  %v7857_v27 = vor.u32 %v8418_v18, %v7856_v4  ;;  %v7872_v4 = vld [vmem:[#allocation5 + $0x300] sm:$0xf]  ;;  %v8422_v18 = vld [vmem:[#allocation5 + $0x30c] sm:$0xf0] }
 0x49d   : > { %5086 = vmatmul.bf16.gmra.mxu2 %v7849_v48  ;;  %5255 = vmatmul.bf16.gmra.mxu3 %v7853_v6  ;;  %v5333_v35 = vadd.f32 %v5214_v16, %v3633_v63  ;;  %v6167_v15 = vmin.f32 %v6103_v9, 1.0  ;;  %v7865_v48 = vor.u32 %v8419_v14, %v7864_v1  ;;  %v3635_v63 = vld [vmem:[#allocation2] sm:$0xff]  ;;  %v7880_v1 = vld [vmem:[#allocation5 + $0x308] sm:$0xf]  ;;  %v8423_v14 = vld [vmem:[#allocation5 + $0x314] sm:$0xf0] }
 0x49f   : > { %5397 = vst [vmem:[#allocation2 + $0x30] sm:$0xff] %v5333_v35  ;;  %v5976_v26 = vmul.f32 %v10457_v21, %v5333_v35  ;;  %v8417_v21 = vld [vmem:[#allocation5 + $0x2ec] sm:$0xf]  ;;  %v6552_v32 = vmul.f32 %v6376_v49, %v6167_v15  ;;  %v6384_v49 = vpop.permute.xlu0 %6383 }
 0x4a0   : > { %v5047_v11 = vpop.f32.mrf.mxu2  ;;  %6231 = vst [vmem:[#allocation8 + $0xd0] sm:$0xff] %v6167_v15  ;;  %v7869_v6 = vor.u32 %v8417_v21, %v7866_v40  ;;  %v5530_v15 = vld [vmem:[%s10982_s2 + $0xe8] sm:$0xff]  ;;  %v7882_v40 = vld [vmem:[#allocation5 + $0x318] sm:$0xf0] }
 0x4a1   : > { %v5048_v28 = vadd.f32 %v5047_v11, %v4879_v55  ;;  %v5216_v60 = vpop.f32.mrf.mxu3  ;;  %v6040_v38 = vadd.f32 %v5976_v26, %v5528_v52  ;;  %v11114_v52 = vld [vmem:[#allocation59_spill] sm:$0xff]  ;;  %v8421_v21 = vld [vmem:[#allocation5 + $0x30c] sm:$0xf] }
 0x4a2   : > { %v4711_v17 = vpop.f32.mrf.mxu0  ;;  %v4880_v31 = vpop.f32.mrf.mxu1 }
 0x4a3   : > { %v5217_v43 = vadd.f32 %v5216_v60, %v5048_v28  ;;  %v6104_v29 = vmax.f32 %v6040_v38, 0.0  ;;  %v4881_v20 = vadd.f32 %v4880_v31, %v4711_v17 }
 0x4a5   : > { %v5334_v19 = vadd.f32 %v5217_v43, %v3634_v56  ;;  %v6168_v0 = vmin.f32 %v6104_v29, 1.0  ;;  %v3636_v56 = vld [vmem:[#allocation2 + $0xf0] sm:$0xff] }
 0x4a7   : > { %5398 = vst [vmem:[#allocation2 + $0x1e0] sm:$0xff] %v5334_v19  ;;  %v6553_v62 = vmul.f32 %v6380_v57, %v6168_v0  ;;  %v5977_v10 = vmul.f32 %v10455_v8, %v5334_v19  ;;  %v6388_v57 = vpop.permute.xlu1 %6387 }
 0x4a8   : > { %v5049_v54 = vpop.f32.mrf.mxu2  ;;  %6232 = vst [vmem:[#allocation8 + $0xd8] sm:$0xff] %v6168_v0 }
 0x4a9   : > { %v5050_v53 = vadd.f32 %v5049_v54, %v4881_v20  ;;  %v5218_v39 = vpop.f32.mrf.mxu3  ;;  %v8680_v44 = vpack.c.bf16 %v6553_v62, %v6552_v32  ;;  %v6041_v5 = vadd.f32 %v5977_v10, %v5529_v33  ;;  %v5531_v33 = vld [vmem:[%s10982_s2 + $0xf0] sm:$0xff] }
 0x4aa   : > { %v4714_v50 = vpop.f32.mrf.mxu0  ;;  %v4883_v22 = vpop.f32.mrf.mxu1 }
 0x4ab   : > { %v5219_v16 = vadd.f32 %v5218_v39, %v5050_v53  ;;  %8815 = vst [vmem:[#allocation4 + $0x68] sm:$0xff] %v8680_v44   ;;  %v6105_v9 = vmax.f32 %v6041_v5, 0.0  ;;  %v4884_v8 = vadd.f32 %v4883_v22, %v4714_v50 }
 0x4ac   : > { %4753 = vmatmul.bf16.gmra.mxu0 %v7857_v27  ;;  %4922 = vmatmul.bf16.gmra.mxu1 %v7861_v61  ;;  %v7873_v27 = vor.u32 %v8422_v18, %v7872_v4  ;;  %v7877_v61 = vor.u32 %v8420_v12, %v7874_v42  ;;  %v8424_v18 = vld [vmem:[#allocation5 + $0x324] sm:$0xf]  ;;  %v6392_v42 = vpop.permute.xlu2 %6391 }
 0x4ad   : > { %5091 = vmatmul.bf16.gmra.mxu2 %v7865_v48  ;;  %5260 = vmatmul.bf16.gmra.mxu3 %v7869_v6  ;;  %v5335_v35 = vadd.f32 %v5219_v16, %v3635_v63  ;;  %v6169_v55 = vmin.f32 %v6105_v9, 1.0  ;;  %v7881_v48 = vor.u32 %v8423_v14, %v7880_v1  ;;  %v7885_v6 = vor.u32 %v8421_v21, %v7882_v40  ;;  %v3637_v63 = vld [vmem:[#allocation2 + $0x8] sm:$0xff]  ;;  %v6396_v1 = vpop.permute.xlu0 %6395 }
 0x4af   : > { %5399 = vst [vmem:[#allocation2] sm:$0xff] %v5335_v35  ;;  %v5978_v26 = vmul.f32 %v11114_v52, %v5335_v35  ;;  %v6554_v32 = vmul.f32 %v6384_v49, %v6169_v55  ;;  %v8427_v49 = vld [vmem:[#allocation5 + $0x334] sm:$0xf0] }
 0x4b0   : > { %v5052_v11 = vpop.f32.mrf.mxu2  ;;  %6233 = vst [vmem:[#allocation8 + $0xe0] sm:$0xff] %v6169_v55  ;;  %v5532_v55 = vld [vmem:[%s10982_s2 + $0xf8] sm:$0xff] }
 0x4b1   : > { %v5053_v28 = vadd.f32 %v5052_v11, %v4884_v8  ;;  %v5221_v60 = vpop.f32.mrf.mxu3  ;;  %v6042_v38 = vadd.f32 %v5978_v26, %v5530_v15 }
 0x4b2   : > { %v4716_v17 = vpop.f32.mrf.mxu0  ;;  %v4885_v31 = vpop.f32.mrf.mxu1 }
 0x4b3   : > { %v5222_v43 = vadd.f32 %v5221_v60, %v5053_v28  ;;  %v6106_v29 = vmax.f32 %v6042_v38, 0.0  ;;  %v4886_v20 = vadd.f32 %v4885_v31, %v4716_v17  ;;  %v3638_v17 = vld [vmem:[#allocation2 + $0x148] sm:$0xff]  ;;  %v8426_v31 = vld [vmem:[#allocation5 + $0x32c] sm:$0xf0] }
 0x4b5   : > { %v5336_v19 = vadd.f32 %v5222_v43, %v3636_v56  ;;  %v6170_v0 = vmin.f32 %v6106_v29, 1.0  ;;  %v7888_v56 = vld [vmem:[#allocation5 + $0x320] sm:$0xf]  ;;  %v7890_v43 = vld [vmem:[#allocation5 + $0x330] sm:$0xf0] }
 0x4b6   : > { %v7896_v29 = vld [vmem:[#allocation5 + $0x328] sm:$0xf]  ;;  %v7889_v21 = vor.u32 %v8426_v31, %v7888_v56  ;;  %v7893_v40 = vor.u32 %v8424_v18, %v7890_v43  ;;  %v7906_v18 = vld [vmem:[#allocation5 + $0x350] sm:$0xf0]  ;;  %v6400_v43 = vpop.permute.xlu1 %6399 }
 0x4b7   : > { %5400 = vst [vmem:[#allocation2 + $0xf0] sm:$0xff] %v5336_v19  ;;  %v6555_v62 = vmul.f32 %v6388_v57, %v6170_v0  ;;  %v5979_v10 = vmul.f32 %v10473_v2, %v5336_v19  ;;  %v7898_v57 = vld [vmem:[#allocation5 + $0x338] sm:$0xf0] }
 0x4b8   : > { %v5054_v54 = vpop.f32.mrf.mxu2  ;;  %6234 = vst [vmem:[#allocation8 + $0xe8] sm:$0xff] %v6170_v0  ;;  %v5533_v0 = vld [vmem:[%s10982_s2 + $0x100] sm:$0xff] }
 0x4b9   : > { %v5055_v53 = vadd.f32 %v5054_v54, %v4886_v20  ;;  %v5223_v39 = vpop.f32.mrf.mxu3  ;;  %v8685_v44 = vpack.c.bf16 %v6555_v62, %v6554_v32  ;;  %v6043_v5 = vadd.f32 %v5979_v10, %v5531_v33  ;;  %v11115_v20 = vld [vmem:[#allocation62_spill] sm:$0xff]  ;;  %v7897_v10 = vor.u32 %v8427_v49, %v7896_v29 }
 0x4ba   : > { %v4719_v50 = vpop.f32.mrf.mxu0  ;;  %v4888_v22 = vpop.f32.mrf.mxu1 }
 0x4bb   : > { %v5224_v16 = vadd.f32 %v5223_v39, %v5055_v53  ;;  %8816 = vst [vmem:[#allocation4 + $0x70] sm:$0xff] %v8685_v44   ;;  %v6107_v9 = vmax.f32 %v6043_v5, 0.0  ;;  %v4889_v2 = vadd.f32 %v4888_v22, %v4719_v50  ;;  %v3639_v44 = vld [vmem:[#allocation2 + $0x1d0] sm:$0xff] }
 0x4bc   : > { %4758 = vmatmul.bf16.gmra.mxu0 %v7873_v27  ;;  %4927 = vmatmul.bf16.gmra.mxu1 %v7877_v61 }
 0x4bd   : > { %5096 = vmatmul.bf16.gmra.mxu2 %v7881_v48  ;;  %5265 = vmatmul.bf16.gmra.mxu3 %v7885_v6  ;;  %v5337_v35 = vadd.f32 %v5224_v16, %v3637_v63  ;;  %v6171_v8 = vmin.f32 %v6107_v9, 1.0 }
 0x4bf   : > { %5401 = vst [vmem:[#allocation2 + $0x8] sm:$0xff] %v5337_v35  ;;  %v5980_v15 = vmul.f32 %v10471_v23, %v5337_v35  ;;  %v8425_v23 = vld [vmem:[#allocation5 + $0x32c] sm:$0xf]  ;;  %v6556_v61 = vmul.f32 %v6392_v42, %v6171_v8  ;;  %v8431_v42 = vld [vmem:[#allocation5 + $0x354] sm:$0xf0] }
 0x4c0   : > { %v5057_v52 = vpop.f32.mrf.mxu2  ;;  %6235 = vst [vmem:[#allocation8 + $0xf0] sm:$0xff] %v6171_v8  ;;  %v7901_v54 = vor.u32 %v8425_v23, %v7898_v57 }
 0x4c1   : > { %v5058_v26 = vadd.f32 %v5057_v52, %v4889_v2  ;;  %v5226_v11 = vpop.f32.mrf.mxu3  ;;  %v6044_v60 = vadd.f32 %v5980_v15, %v5532_v55  ;;  %v5534_v2 = vld [vmem:[%s10982_s2 + $0x108] sm:$0xff] }
 0x4c2   : > { %v4721_v28 = vpop.f32.mrf.mxu0  ;;  %v4890_v38 = vpop.f32.mrf.mxu1 }
 0x4c3   : > { %v5227_v4 = vadd.f32 %v5226_v11, %v5058_v26  ;;  %v6108_v12 = vmax.f32 %v6044_v60, 0.0  ;;  %v4891_v27 = vadd.f32 %v4890_v38, %v4721_v28  ;;  %v3640_v28 = vld [vmem:[#allocation2 + $0x100] sm:$0xff]  ;;  %v8430_v38 = vld [vmem:[#allocation5 + $0x34c] sm:$0xf0] }
 0x4c5   : > { %v5338_v14 = vadd.f32 %v5227_v4, %v3638_v17  ;;  %v6172_v19 = vmin.f32 %v6108_v12, 1.0  ;;  %v7904_v17 = vld [vmem:[#allocation5 + $0x340] sm:$0xf]  ;;  %v8428_v4 = vld [vmem:[#allocation5 + $0x344] sm:$0xf] }
 0x4c6   : > { %v7912_v12 = vld [vmem:[#allocation5 + $0x348] sm:$0xf]  ;;  %v7905_v23 = vor.u32 %v8430_v38, %v7904_v17  ;;  %v7909_v57 = vor.u32 %v8428_v4, %v7906_v18  ;;  %v7922_v17 = vld [vmem:[#allocation5 + $0x370] sm:$0xf0]  ;;  %v6408_v38 = vpop.permute.xlu0 %6407 }
 0x4c7   : > { %5402 = vst [vmem:[#allocation2 + $0x148] sm:$0xff] %v5338_v14  ;;  %v6557_v33 = vmul.f32 %v6396_v1, %v6172_v19  ;;  %v5981_v32 = vmul.f32 %v11115_v20, %v5338_v14  ;;  %v7914_v1 = vld [vmem:[#allocation5 + $0x358] sm:$0xf0]  ;;  %v6404_v14 = vpop.permute.xlu2 %6403 }
 0x4c8   : > { %v5059_v62 = vpop.f32.mrf.mxu2  ;;  %6236 = vst [vmem:[#allocation8 + $0xf8] sm:$0xff] %v6172_v19  ;;  %v5535_v19 = vld [vmem:[%s10982_s2 + $0x110] sm:$0xff] }
 0x4c9   : > { %v5060_v48 = vadd.f32 %v5059_v62, %v4891_v27  ;;  %v5228_v6 = vpop.f32.mrf.mxu3  ;;  %v8690_v39 = vpack.c.bf16 %v6557_v33, %v6556_v61  ;;  %v6045_v50 = vadd.f32 %v5981_v32, %v5533_v0  ;;  %v7913_v33 = vor.u32 %v8431_v42, %v7912_v12  ;;  %v6412_v12 = vpop.permute.xlu1 %6411 }
 0x4ca   : > { %v4724_v53 = vpop.f32.mrf.mxu0  ;;  %v4893_v5 = vpop.f32.mrf.mxu1 }
 0x4cb   : > { %v5229_v63 = vadd.f32 %v5228_v6, %v5060_v48  ;;  %8817 = vst [vmem:[#allocation4 + $0x78] sm:$0xff] %v8690_v39   ;;  %v6109_v22 = vmax.f32 %v6045_v50, 0.0  ;;  %v4894_v9 = vadd.f32 %v4893_v5, %v4724_v53  ;;  %v3641_v6 = vld [vmem:[#allocation2 + $0xc8] sm:$0xff] }
 0x4cc   : > { %4763 = vmatmul.bf16.gmra.mxu0 %v7889_v21  ;;  %4932 = vmatmul.bf16.gmra.mxu1 %v7893_v40 }
 0x4cd   : > { %5101 = vmatmul.bf16.gmra.mxu2 %v7897_v10  ;;  %5270 = vmatmul.bf16.gmra.mxu3 %v7901_v54  ;;  %v5339_v16 = vadd.f32 %v5229_v63, %v3639_v44  ;;  %v6173_v35 = vmin.f32 %v6109_v22, 1.0  ;;  %v5536_v63 = vld [vmem:[%s10982_s2 + $0x118] sm:$0xff] }
 0x4cf   : > { %5403 = vst [vmem:[#allocation2 + $0x1d0] sm:$0xff] %v5339_v16  ;;  %v5982_v8 = vmul.f32 %v10489_v37, %v5339_v16  ;;  %v8429_v37 = vld [vmem:[#allocation5 + $0x34c] sm:$0xf]  ;;  %v6558_v0 = vmul.f32 %v6400_v43, %v6173_v35  ;;  %v7930_v43 = vld [vmem:[#allocation5 + $0x378] sm:$0xf0] }
 0x4d0   : > { %v5062_v55 = vpop.f32.mrf.mxu2  ;;  %6237 = vst [vmem:[#allocation8 + $0x100] sm:$0xff] %v6173_v35  ;;  %v7917_v20 = vor.u32 %v8429_v37, %v7914_v1 }
 0x4d1   : > { %v5063_v15 = vadd.f32 %v5062_v55, %v4894_v9  ;;  %v5231_v52 = vpop.f32.mrf.mxu3  ;;  %v6046_v11 = vadd.f32 %v5982_v8, %v5534_v2  ;;  %v3642_v55 = vld [vmem:[#allocation2 + $0x40] sm:$0xff] }
 0x4d2   : > { %v4726_v26 = vpop.f32.mrf.mxu0  ;;  %v4895_v60 = vpop.f32.mrf.mxu1 }
 0x4d3   : > { %v5232_v56 = vadd.f32 %v5231_v52, %v5063_v15  ;;  %v6110_v31 = vmax.f32 %v6046_v11, 0.0  ;;  %v4896_v21 = vadd.f32 %v4895_v60, %v4726_v26  ;;  %v7920_v52 = vld [vmem:[#allocation5 + $0x360] sm:$0xf]  ;;  %v8434_v26 = vld [vmem:[#allocation5 + $0x36c] sm:$0xf0] }
 0x4d4   : > { %v8432_v60 = vld [vmem:[#allocation5 + $0x364] sm:$0xf]  ;;  %v7921_v42 = vor.u32 %v8434_v26, %v7920_v52  ;;  %v8439_v52 = vld [vmem:[#allocation5 + $0x394] sm:$0xf0] }
 0x4d5   : > { %v5340_v29 = vadd.f32 %v5232_v56, %v3640_v28  ;;  %v6174_v49 = vmin.f32 %v6110_v31, 1.0  ;;  %v7928_v56 = vld [vmem:[#allocation5 + $0x368] sm:$0xf]  ;;  %v8435_v31 = vld [vmem:[#allocation5 + $0x374] sm:$0xf0] }
 0x4d7   : > { %5404 = vst [vmem:[#allocation2 + $0x100] sm:$0xff] %v5340_v29  ;;  %v6559_v40 = vmul.f32 %v6404_v14, %v6174_v49  ;;  %v5983_v27 = vmul.f32 %v10487_v30, %v5340_v29  ;;  %v7925_v29 = vor.u32 %v8432_v60, %v7922_v17  ;;  %v6416_v60 = vpop.permute.xlu2 %6415  ;;  %v5539_v17 = vld [vmem:[%s10982_s2 + $0x130] sm:$0xff] }
 0x4d8   : > { %6238 = vst [vmem:[#allocation8 + $0x108] sm:$0xff] %v6174_v49  ;;  %v5064_v61 = vpop.f32.mrf.mxu2  ;;  %v5537_v49 = vld [vmem:[%s10982_s2 + $0x120] sm:$0xff] }
 0x4d9   : > { %v8695_v32 = vpack.c.bf16 %v6559_v40, %v6558_v0  ;;  %v5065_v62 = vadd.f32 %v5064_v61, %v4896_v21  ;;  %v5233_v10 = vpop.f32.mrf.mxu3  ;;  %v6047_v48 = vadd.f32 %v5983_v27, %v5535_v19  ;;  %v7929_v19 = vor.u32 %v8435_v31, %v7928_v56 }
 0x4da   : > { %v4729_v54 = vpop.f32.mrf.mxu0  ;;  %v4898_v53 = vpop.f32.mrf.mxu1 }
 0x4db   : > { %8818 = vst [vmem:[#allocation4 + $0x80] sm:$0xff] %v8695_v32   ;;  %v5234_v39 = vadd.f32 %v5233_v10, %v5065_v62  ;;  %v6111_v50 = vmax.f32 %v6047_v48, 0.0  ;;  %v4899_v30 = vadd.f32 %v4898_v53, %v4729_v54 }
 0x4dc   : > { %4768 = vmatmul.bf16.gmra.mxu0 %v7905_v23  ;;  %4937 = vmatmul.bf16.gmra.mxu1 %v7909_v57 }
 0x4dd   : > { %5106 = vmatmul.bf16.gmra.mxu2 %v7913_v33  ;;  %5275 = vmatmul.bf16.gmra.mxu3 %v7917_v20  ;;  %v5341_v44 = vadd.f32 %v5234_v39, %v3641_v6  ;;  %v6175_v5 = vmin.f32 %v6111_v50, 1.0  ;;  %v3643_v20 = vld [vmem:[#allocation2 + $0x1f8] sm:$0xff]  ;;  %v5538_v6 = vld [vmem:[%s10982_s2 + $0x128] sm:$0xff] }
 0x4df   : > { %5405 = vst [vmem:[#allocation2 + $0xc8] sm:$0xff] %v5341_v44  ;;  %v5984_v22 = vmul.f32 %v10437_v58, %v5341_v44  ;;  %v8433_v58 = vld [vmem:[#allocation5 + $0x36c] sm:$0xf]  ;;  %v6560_v14 = vmul.f32 %v6408_v38, %v6175_v5  ;;  %v6420_v38 = vpop.permute.xlu0 %6419 }
 0x4e0   : > { %v5067_v16 = vpop.f32.mrf.mxu2  ;;  %6239 = vst [vmem:[#allocation8 + $0x110] sm:$0xff] %v6175_v5  ;;  %v7933_v21 = vor.u32 %v8433_v58, %v7930_v43 }
 0x4e1   : > { %v6048_v9 = vadd.f32 %v5984_v22, %v5536_v63  ;;  %v5068_v35 = vadd.f32 %v5067_v16, %v4899_v30  ;;  %v5236_v2 = vpop.f32.mrf.mxu3  ;;  %v3644_v63 = vld [vmem:[#allocation2 + $0x20] sm:$0xff] }
 0x4e2   : > { %v4731_v8 = vpop.f32.mrf.mxu0  ;;  %v4900_v15 = vpop.f32.mrf.mxu1  ;;  %v7936_v16 = vld [vmem:[#allocation5 + $0x380] sm:$0xf] }
 0x4e3   : > { %v6112_v11 = vmax.f32 %v6048_v9, 0.0  ;;  %v5237_v28 = vadd.f32 %v5236_v2, %v5068_v35  ;;  %v4901_v1 = vadd.f32 %v4900_v15, %v4731_v8  ;;  %v8438_v9 = vld [vmem:[#allocation5 + $0x38c] sm:$0xf0]  ;;  %v8436_v8 = vld [vmem:[#allocation5 + $0x384] sm:$0xf] }
 0x4e4   : > { %v7944_v15 = vld [vmem:[#allocation5 + $0x388] sm:$0xf]  ;;  %v7937_v56 = vor.u32 %v8438_v9, %v7936_v16  ;;  %v8441_v9 = vld [vmem:[#allocation5 + $0x3ac] sm:$0xf] }
 0x4e5   : > { %v6176_v4 = vmin.f32 %v6112_v11, 1.0  ;;  %v5342_v18 = vadd.f32 %v5237_v28, %v3642_v55  ;;  %v7938_v55 = vld [vmem:[#allocation5 + $0x390] sm:$0xf0]  ;;  %v8437_v28 = vld [vmem:[#allocation5 + $0x38c] sm:$0xf] }
 0x4e6   : > { %v7941_v31 = vor.u32 %v8436_v8, %v7938_v55  ;;  %v5541_v8 = vld [vmem:[%s10982_s2 + $0x140] sm:$0xff] }
 0x4e7   : > { %6240 = vst [vmem:[#allocation8 + $0x118] sm:$0xff] %v6176_v4  ;;  %v6561_v37 = vmul.f32 %v6412_v12, %v6176_v4  ;;  %v5985_v23 = vmul.f32 %v10505_v24, %v5342_v18 }
 0x4e8   : > { %5406 = vst [vmem:[#allocation2 + $0x40] sm:$0xff] %v5342_v18  ;;  %v5069_v57 = vpop.f32.mrf.mxu2 }
 0x4e9   : > { %v8700_v40 = vpack.c.bf16 %v6561_v37, %v6560_v14  ;;  %v5070_v0 = vadd.f32 %v5069_v57, %v4901_v1  ;;  %v5238_v27 = vpop.f32.mrf.mxu3  ;;  %v6049_v33 = vadd.f32 %v5985_v23, %v5537_v49  ;;  %v3645_v57 = vld [vmem:[#allocation2 + $0x128] sm:$0xff] }
 0x4ea   : > { %v4734_v61 = vpop.f32.mrf.mxu0  ;;  %v4903_v32 = vpop.f32.mrf.mxu1 }
 0x4eb   : > { %8819 = vst [vmem:[#allocation4 + $0x88] sm:$0xff] %v8700_v40   ;;  %v5239_v62 = vadd.f32 %v5238_v27, %v5070_v0  ;;  %v6113_v10 = vmax.f32 %v6049_v33, 0.0  ;;  %v4904_v24 = vadd.f32 %v4903_v32, %v4734_v61  ;;  %v5540_v61 = vld [vmem:[%s10982_s2 + $0x138] sm:$0xff] }
 0x4ec   : > { %4773 = vmatmul.bf16.gmra.mxu0 %v7921_v42  ;;  %4942 = vmatmul.bf16.gmra.mxu1 %v7925_v29  ;;  %v7945_v42 = vor.u32 %v8439_v52, %v7944_v15 }
 0x4ed   : > { %5111 = vmatmul.bf16.gmra.mxu2 %v7929_v19  ;;  %5280 = vmatmul.bf16.gmra.mxu3 %v7933_v21  ;;  %v5343_v54 = vadd.f32 %v5239_v62, %v3643_v20  ;;  %v6177_v48 = vmin.f32 %v6113_v10, 1.0 }
 0x4ef   : > { %5407 = vst [vmem:[#allocation2 + $0x1f8] sm:$0xff] %v5343_v54  ;;  %v5986_v53 = vmul.f32 %v10503_v7, %v5343_v54  ;;  %v7946_v7 = vld [vmem:[#allocation5 + $0x398] sm:$0xf0]  ;;  %v6562_v58 = vmul.f32 %v6416_v60, %v6177_v48 }
 0x4f0   : > { %v5072_v39 = vpop.f32.mrf.mxu2  ;;  %6241 = vst [vmem:[#allocation8 + $0x120] sm:$0xff] %v6177_v48  ;;  %v7949_v29 = vor.u32 %v8437_v28, %v7946_v7 }
 0x4f1   : > { %v5073_v50 = vadd.f32 %v5072_v39, %v4904_v24  ;;  %v5241_v44 = vpop.f32.mrf.mxu3  ;;  %v6050_v5 = vadd.f32 %v5986_v53, %v5538_v6  ;;  %v3646_v24 = vld [vmem:[#allocation2 + $0x1a0] sm:$0xff]  ;;  %v8442_v53 = vld [vmem:[#allocation5 + $0x3ac] sm:$0xf0] }
 0x4f2   : > { %v4736_v30 = vpop.f32.mrf.mxu0  ;;  %v4905_v22 = vpop.f32.mrf.mxu1  ;;  %v7952_v6 = vld [vmem:[#allocation5 + $0x3a0] sm:$0xf] }
 0x4f3   : > { %v5242_v35 = vadd.f32 %v5241_v44, %v5073_v50  ;;  %v6114_v2 = vmax.f32 %v6050_v5, 0.0  ;;  %v4906_v18 = vadd.f32 %v4905_v22, %v4736_v30  ;;  %v8440_v44 = vld [vmem:[#allocation5 + $0x3a4] sm:$0xf]  ;;  %v7954_v30 = vld [vmem:[#allocation5 + $0x3b0] sm:$0xf0]  ;;  %v7953_v55 = vor.u32 %v8442_v53, %v7952_v6  ;;  %v6432_v53 = vpop.permute.xlu0 %6431 }
 0x4f4   : > { %v7960_v5 = vld [vmem:[#allocation5 + $0x3a8] sm:$0xf]  ;;  %v7957_v15 = vor.u32 %v8440_v44, %v7954_v30 }
 0x4f5   : > { %v5344_v26 = vadd.f32 %v5242_v35, %v3644_v63  ;;  %v6178_v11 = vmin.f32 %v6114_v2, 1.0  ;;  %v8443_v63 = vld [vmem:[#allocation5 + $0x3b4] sm:$0xf0]  ;;  %v6428_v35 = vpop.permute.xlu2 %6427  ;;  %v6424_v2 = vpop.permute.xlu1 %6423 }
 0x4f6   : > { %v7961_v60 = vor.u32 %v8443_v63, %v7960_v5 }
 0x4f7   : > { %5408 = vst [vmem:[#allocation2 + $0x20] sm:$0xff] %v5344_v26  ;;  %v5987_v4 = vmul.f32 %v10453_v3, %v5344_v26  ;;  %v6563_v43 = vmul.f32 %v6420_v38, %v6178_v11 }
 0x4f8   : > { %6242 = vst [vmem:[#allocation8 + $0x128] sm:$0xff] %v6178_v11  ;;  %v5074_v12 = vpop.f32.mrf.mxu2 }
 0x4f9   : > { %v6051_v49 = vadd.f32 %v5987_v4, %v5539_v17  ;;  %v8705_v37 = vpack.c.bf16 %v6563_v43, %v6562_v58  ;;  %v5075_v1 = vadd.f32 %v5074_v12, %v4906_v18  ;;  %v5243_v14 = vpop.f32.mrf.mxu3  ;;  %v3647_v58 = vld [vmem:[#allocation2 + $0x1f0] sm:$0xff] }
 0x4fa   : > { %v4739_v23 = vpop.f32.mrf.mxu0  ;;  %v4908_v19 = vpop.f32.mrf.mxu1 }
 0x4fb   : > { %v6115_v21 = vmax.f32 %v6051_v49, 0.0  ;;  %8820 = vst [vmem:[#allocation4 + $0x90] sm:$0xff] %v8705_v37   ;;  %v5244_v40 = vadd.f32 %v5243_v14, %v5075_v1  ;;  %v4909_v27 = vadd.f32 %v4908_v19, %v4739_v23  ;;  %v5542_v37 = vld [vmem:[%s10982_s2 + $0x148] sm:$0xff] }
 0x4fc   : > { %4778 = vmatmul.bf16.gmra.mxu0 %v7937_v56  ;;  %4947 = vmatmul.bf16.gmra.mxu1 %v7941_v31 }
 0x4fd   : > { %5116 = vmatmul.bf16.gmra.mxu2 %v7945_v42  ;;  %5285 = vmatmul.bf16.gmra.mxu3 %v7949_v29  ;;  %v6179_v3 = vmin.f32 %v6115_v21, 1.0  ;;  %v5345_v0 = vadd.f32 %v5244_v40, %v3645_v57  ;;  %v3648_v40 = vld [vmem:[#allocation2 + $0xe8] sm:$0xff]  ;;  %v6436_v6 = vpop.permute.xlu1 %6435 }
 0x4ff   : > { %6243 = vst [vmem:[#allocation8 + $0x130] sm:$0xff] %v6179_v3  ;;  %v5988_v33 = vmul.f32 %v10521_v34, %v5345_v0  ;;  %v7962_v34 = vld [vmem:[#allocation5 + $0x3b8] sm:$0xf0]  ;;  %v6564_v52 = vmul.f32 %v6424_v2, %v6179_v3 }
 0x500   : > { %5409 = vst [vmem:[#allocation2 + $0x128] sm:$0xff] %v5345_v0  ;;  %v5077_v20 = vpop.f32.mrf.mxu2  ;;  %v7965_v17 = vor.u32 %v8441_v9, %v7962_v34  ;;  %v7968_v0 = vld [vmem:[#allocation5 + $0x3c0] sm:$0xf] }
 0x501   : > { %v6052_v32 = vadd.f32 %v5988_v33, %v5540_v61  ;;  %v5078_v62 = vadd.f32 %v5077_v20, %v4909_v27  ;;  %v5246_v10 = vpop.f32.mrf.mxu3  ;;  %v8446_v27 = vld [vmem:[#allocation5 + $0x3cc] sm:$0xf0]  ;;  %v8444_v20 = vld [vmem:[#allocation5 + $0x3c4] sm:$0xf] }
 0x502   : > { %v4741_v54 = vpop.f32.mrf.mxu0  ;;  %v4910_v48 = vpop.f32.mrf.mxu1 }
 0x503   : > { %v6116_v39 = vmax.f32 %v6052_v32, 0.0  ;;  %v5247_v50 = vadd.f32 %v5246_v10, %v5078_v62  ;;  %v4911_v28 = vadd.f32 %v4910_v48, %v4741_v54  ;;  %v7970_v32 = vld [vmem:[#allocation5 + $0x3d0] sm:$0xf0]  ;;  %v7976_v62 = vld [vmem:[#allocation5 + $0x3c8] sm:$0xf] }
 0x504   : > { %v8447_v10 = vld [vmem:[#allocation5 + $0x3d4] sm:$0xf0]  ;;  %v8445_v48 = vld [vmem:[#allocation5 + $0x3cc] sm:$0xf]  ;;  %v7973_v44 = vor.u32 %v8444_v20, %v7970_v32 }
 0x505   : > { %v6180_v22 = vmin.f32 %v6116_v39, 1.0  ;;  %v5346_v16 = vadd.f32 %v5247_v50, %v3646_v24  ;;  %v5543_v39 = vld [vmem:[%s10982_s2 + $0x150] sm:$0xff]  ;;  %v7969_v50 = vor.u32 %v8446_v27, %v7968_v0  ;;  %v7977_v9 = vor.u32 %v8447_v10, %v7976_v62  ;;  %v5545_v0 = vld [vmem:[%s10982_s2 + $0x160] sm:$0xff] }
 0x507   : > { %6244 = vst [vmem:[#allocation8 + $0x138] sm:$0xff] %v6180_v22  ;;  %v6565_v26 = vmul.f32 %v6428_v35, %v6180_v22  ;;  %v5989_v11 = vmul.f32 %v10519_v59, %v5346_v16 }
 0x508   : > { %5410 = vst [vmem:[#allocation2 + $0x1a0] sm:$0xff] %v5346_v16  ;;  %v5079_v7 = vpop.f32.mrf.mxu2 }
 0x509   : > { %v8710_v38 = vpack.c.bf16 %v6565_v26, %v6564_v52  ;;  %v6053_v56 = vadd.f32 %v5989_v11, %v5541_v8  ;;  %v5080_v31 = vadd.f32 %v5079_v7, %v4911_v28  ;;  %v5248_v4 = vpop.f32.mrf.mxu3  ;;  %v3649_v52 = vld [vmem:[#allocation2 + $0x78] sm:$0xff] }
 0x50a   : > { %v4744_v18 = vpop.f32.mrf.mxu0  ;;  %v4913_v43 = vpop.f32.mrf.mxu1 }
 0x50b   : > { %8821 = vst [vmem:[#allocation4 + $0x98] sm:$0xff] %v8710_v38   ;;  %v6117_v12 = vmax.f32 %v6053_v56, 0.0  ;;  %v5249_v42 = vadd.f32 %v5248_v4, %v5080_v31  ;;  %v4914_v49 = vadd.f32 %v4913_v43, %v4744_v18  ;;  %v3650_v43 = vld [vmem:[#allocation2 + $0x70] sm:$0xff] }
 0x50c   : > { %4783 = vmatmul.bf16.gmra.mxu0 %v7953_v55  ;;  %4952 = vmatmul.bf16.gmra.mxu1 %v7957_v15 }
 0x50d   : > { %5121 = vmatmul.bf16.gmra.mxu2 %v7961_v60  ;;  %5290 = vmatmul.bf16.gmra.mxu3 %v7965_v17  ;;  %v6181_v59 = vmin.f32 %v6117_v12, 1.0  ;;  %v5347_v29 = vadd.f32 %v5249_v42, %v3647_v58  ;;  %v5544_v17 = vld [vmem:[%s10982_s2 + $0x158] sm:$0xff]  ;;  %v7984_v42 = vld [vmem:[#allocation5 + $0x3e0] sm:$0xf] }
 0x50f   : > { %6245 = vst [vmem:[#allocation8 + $0x140] sm:$0xff] %v6181_v59  ;;  %v5990_v1 = vmul.f32 %v10469_v13, %v5347_v29  ;;  %v7978_v13 = vld [vmem:[#allocation5 + $0x3d8] sm:$0xf0]  ;;  %v6566_v30 = vmul.f32 %v6432_v53, %v6181_v59  ;;  %v8450_v59 = vld [vmem:[#allocation5 + $0x3ec] sm:$0xf0] }
 0x510   : > { %5411 = vst [vmem:[#allocation2 + $0x1f0] sm:$0xff] %v5347_v29  ;;  %v5082_v14 = vpop.f32.mrf.mxu2  ;;  %v7981_v34 = vor.u32 %v8445_v48, %v7978_v13  ;;  %v7985_v27 = vor.u32 %v8450_v59, %v7984_v42  ;;  %v3653_v59 = vld [vmem:[#allocation2 + $0xd0] sm:$0xff] }
 0x511   : > { %v6054_v23 = vadd.f32 %v5990_v1, %v5542_v37  ;;  %v5083_v57 = vadd.f32 %v5082_v14, %v4914_v49  ;;  %v5251_v19 = vpop.f32.mrf.mxu3  ;;  %v8448_v37 = vld [vmem:[#allocation5 + $0x3e4] sm:$0xf]  ;;  %v7986_v1 = vld [vmem:[#allocation5 + $0x3f0] sm:$0xf0]  ;;  %v7992_v14 = vld [vmem:[#allocation5 + $0x3e8] sm:$0xf] }
 0x512   : > { %v4746_v21 = vpop.f32.mrf.mxu0  ;;  %v4915_v3 = vpop.f32.mrf.mxu1 }
 0x513   : > { %v6118_v61 = vmax.f32 %v6054_v23, 0.0  ;;  %v5252_v33 = vadd.f32 %v5251_v19, %v5083_v57  ;;  %v4916_v22 = vadd.f32 %v4915_v3, %v4746_v21  ;;  %v8451_v23 = vld [vmem:[#allocation5 + $0x3f4] sm:$0xf0]  ;;  %v8449_v21 = vld [vmem:[#allocation5 + $0x3ec] sm:$0xf]  ;;  %v6444_v3 = vpop.permute.xlu0 %6443 }
 0x515   : > { %v6182_v54 = vmin.f32 %v6118_v61, 1.0  ;;  %v5348_v24 = vadd.f32 %v5252_v33, %v3648_v40  ;;  %v6440_v40 = vpop.permute.xlu2 %6439  ;;  %v7989_v61 = vor.u32 %v8448_v37, %v7986_v1 }
 0x517   : > { %6246 = vst [vmem:[#allocation8 + $0x148] sm:$0xff] %v6182_v54  ;;  %v6567_v5 = vmul.f32 %v6436_v6, %v6182_v54  ;;  %v5991_v63 = vmul.f32 %v10535_v25, %v5348_v24  ;;  %v7993_v54 = vor.u32 %v8451_v23, %v7992_v14 }
 0x518   : > { %5412 = vst [vmem:[#allocation2 + $0xe8] sm:$0xff] %v5348_v24  ;;  %v5084_v16 = vpop.f32.mrf.mxu2 }
 0x519   : > { %v8715_v35 = vpack.c.bf16 %v6567_v5, %v6566_v30  ;;  %v6055_v2 = vadd.f32 %v5991_v63, %v5543_v39  ;;  %v5085_v8 = vadd.f32 %v5084_v16, %v4916_v22  ;;  %v5253_v55 = vpop.f32.mrf.mxu3  ;;  %v5546_v16 = vld [vmem:[%s10982_s2 + $0x168] sm:$0xff] }
 0x51a   : > { %v4749_v15 = vpop.f32.mrf.mxu0  ;;  %v4918_v26 = vpop.f32.mrf.mxu1 }
 0x51b   : > { %8822 = vst [vmem:[#allocation4 + $0xa0] sm:$0xff] %v8715_v35   ;;  %v6119_v11 = vmax.f32 %v6055_v2, 0.0  ;;  %v5254_v28 = vadd.f32 %v5253_v55, %v5085_v8  ;;  %v4919_v60 = vadd.f32 %v4918_v26, %v4749_v15  ;;  %v3652_v15 = vld [vmem:[#allocation2 + $0x1d8] sm:$0xff] }
 0x51c   : > { %4788 = vmatmul.bf16.gmra.mxu0 %v7969_v50  ;;  %4957 = vmatmul.bf16.gmra.mxu1 %v7973_v44  ;;  %v3651_v50 = vld [vmem:[#allocation2 + $0x90] sm:$0xff] }
 0x51d   : > { %5126 = vmatmul.bf16.gmra.mxu2 %v7977_v9  ;;  %5295 = vmatmul.bf16.gmra.mxu3 %v7981_v34  ;;  %v6183_v25 = vmin.f32 %v6119_v11, 1.0  ;;  %v5349_v7 = vadd.f32 %v5254_v28, %v3649_v52 }
 0x51f   : > { %6247 = vst [vmem:[#allocation8 + $0x150] sm:$0xff] %v6183_v25  ;;  %v5992_v38 = vmul.f32 %v10533_v41, %v5349_v7  ;;  %v7994_v41 = vld [vmem:[#allocation5 + $0x3f8] sm:$0xf0]  ;;  %v6568_v33 = vmul.f32 %v6440_v40, %v6183_v25 }
 0x520   : > { %5413 = vst [vmem:[#allocation2 + $0x78] sm:$0xff] %v5349_v7  ;;  %v5087_v56 = vpop.f32.mrf.mxu2  ;;  %v7997_v24 = vor.u32 %v8449_v21, %v7994_v41  ;;  %v6452_v7 = vpop.permute.xlu2 %6451 }
 0x521   : > { %v6056_v31 = vadd.f32 %v5992_v38, %v5544_v17  ;;  %v5088_v4 = vadd.f32 %v5087_v56, %v4919_v60  ;;  %v5256_v18 = vpop.f32.mrf.mxu3  ;;  %v6448_v60 = vpop.permute.xlu1 %6447  ;;  %v5547_v17 = vld [vmem:[%s10982_s2 + $0x170] sm:$0xff] }
 0x522   : > { %v4751_v58 = vpop.f32.mrf.mxu0  ;;  %v4920_v12 = vpop.f32.mrf.mxu1 }
 0x523   : > { %v6120_v29 = vmax.f32 %v6056_v31, 0.0  ;;  %v5257_v49 = vadd.f32 %v5256_v18, %v5088_v4  ;;  %v4921_v62 = vadd.f32 %v4920_v12, %v4751_v58 }
 0x525   : > { %v6184_v57 = vmin.f32 %v6120_v29, 1.0  ;;  %v5350_v19 = vadd.f32 %v5257_v49, %v3650_v43 }
 0x527   : > { %6248 = vst [vmem:[#allocation8 + $0x158] sm:$0xff] %v6184_v57  ;;  %v6569_v20 = vmul.f32 %v6444_v3, %v6184_v57  ;;  %v5993_v32 = vmul.f32 %v10485_v47, %v5350_v19 }
 0x528   : > { %5414 = vst [vmem:[#allocation2 + $0x70] sm:$0xff] %v5350_v19  ;;  %v5089_v10 = vpop.f32.mrf.mxu2 }
 0x529   : > { %v8720_v48 = vpack.c.bf16 %v6569_v20, %v6568_v33  ;;  %v6057_v13 = vadd.f32 %v5993_v32, %v5545_v0  ;;  %v5090_v6 = vadd.f32 %v5089_v10, %v4921_v62  ;;  %v5258_v53 = vpop.f32.mrf.mxu3  ;;  %v3654_v0 = vld [vmem:[#allocation2 + $0xb8] sm:$0xff]  ;;  %v6460_v62 = vpop.permute.xlu1 %6459 }
 0x52a   : > { %v4754_v39 = vpop.f32.mrf.mxu0  ;;  %v4923_v44 = vpop.f32.mrf.mxu1 }
 0x52b   : > { %8823 = vst [vmem:[#allocation4 + $0xa8] sm:$0xff] %v8720_v48   ;;  %v6121_v30 = vmax.f32 %v6057_v13, 0.0  ;;  %v5259_v5 = vadd.f32 %v5258_v53, %v5090_v6  ;;  %v4924_v22 = vadd.f32 %v4923_v44, %v4754_v39  ;;  %v6456_v10 = vpop.permute.xlu0 %6455 }
 0x52c   : > { %4793 = vmatmul.bf16.gmra.mxu0 %v7985_v27  ;;  %4962 = vmatmul.bf16.gmra.mxu1 %v7989_v61 }
 0x52d   : > { %5131 = vmatmul.bf16.gmra.mxu2 %v7993_v54  ;;  %5300 = vmatmul.bf16.gmra.mxu3 %v7997_v24  ;;  %v6185_v47 = vmin.f32 %v6121_v30, 1.0  ;;  %v5351_v63 = vadd.f32 %v5259_v5, %v3651_v50  ;;  %v5549_v54 = vld [vmem:[%s10982_s2 + $0x180] sm:$0xff]  ;;  %v3655_v5 = vld [vmem:[#allocation2 + $0x88] sm:$0xff] }
 0x52f   : > { %6249 = vst [vmem:[#allocation8 + $0x160] sm:$0xff] %v6185_v47  ;;  %v5994_v9 = vmul.f32 %v10551_v51, %v5351_v63  ;;  %v6570_v38 = vmul.f32 %v6448_v60, %v6185_v47 }
 0x530   : > { %5415 = vst [vmem:[#allocation2 + $0x90] sm:$0xff] %v5351_v63  ;;  %v5092_v34 = vpop.f32.mrf.mxu2 }
 0x531   : > { %v6058_v35 = vadd.f32 %v5994_v9, %v5546_v16  ;;  %v5093_v2 = vadd.f32 %v5092_v34, %v4924_v22  ;;  %v5261_v8 = vpop.f32.mrf.mxu3 }
 0x532   : > { %v4756_v55 = vpop.f32.mrf.mxu0  ;;  %v4925_v52 = vpop.f32.mrf.mxu1 }
 0x533   : > { %v6122_v26 = vmax.f32 %v6058_v35, 0.0  ;;  %v5262_v11 = vadd.f32 %v5261_v8, %v5093_v2  ;;  %v4926_v31 = vadd.f32 %v4925_v52, %v4756_v55  ;;  %v11116_v35 = vld [vmem:[#allocation68_spill] sm:$0xff] }
 0x535   : > { %v6186_v28 = vmin.f32 %v6122_v26, 1.0  ;;  %v5352_v25 = vadd.f32 %v5262_v11, %v3652_v15  ;;  %v3656_v11 = vld [vmem:[#allocation2 + $0xa8] sm:$0xff] }
 0x537   : > { %6250 = vst [vmem:[#allocation8 + $0x168] sm:$0xff] %v6186_v28  ;;  %v6571_v51 = vmul.f32 %v6452_v7, %v6186_v28  ;;  %v5995_v56 = vmul.f32 %v10549_v36, %v5352_v25  ;;  %v5548_v36 = vld [vmem:[%s10982_s2 + $0x178] sm:$0xff] }
 0x538   : > { %5416 = vst [vmem:[#allocation2 + $0x1d8] sm:$0xff] %v5352_v25  ;;  %v5094_v4 = vpop.f32.mrf.mxu2 }
 0x539   : > { %v8725_v18 = vpack.c.bf16 %v6571_v51, %v6570_v38  ;;  %v6059_v58 = vadd.f32 %v5995_v56, %v5547_v17  ;;  %v5095_v43 = vadd.f32 %v5094_v4, %v4926_v31  ;;  %v5263_v12 = vpop.f32.mrf.mxu3  ;;  %v6464_v38 = vpop.permute.xlu2 %6463  ;;  %v5551_v56 = vld [vmem:[%s10982_s2 + $0x190] sm:$0xff] }
 0x53a   : > { %v4759_v42 = vpop.f32.mrf.mxu0  ;;  %v4928_v29 = vpop.f32.mrf.mxu1 }
 0x53b   : > { %8824 = vst [vmem:[#allocation4 + $0xb0] sm:$0xff] %v8725_v18   ;;  %v6123_v49 = vmax.f32 %v6059_v58, 0.0  ;;  %v5264_v37 = vadd.f32 %v5263_v12, %v5095_v43  ;;  %v4929_v23 = vadd.f32 %v4928_v29, %v4759_v42  ;;  %v6468_v51 = vpop.permute.xlu0 %6467  ;;  %v11117_v18 = vld [vmem:[#allocation65_spill] sm:$0xff] }
 0x53d   : > { %v6187_v1 = vmin.f32 %v6123_v49, 1.0  ;;  %v5353_v14 = vadd.f32 %v5264_v37, %v3653_v59 }
 0x53f   : > { %6251 = vst [vmem:[#allocation8 + $0x170] sm:$0xff] %v6187_v1  ;;  %v5996_v57 = vmul.f32 %v10501_v45, %v5353_v14  ;;  %v6572_v24 = vmul.f32 %v6456_v10, %v6187_v1  ;;  %v3657_v1 = vld [vmem:[#allocation2 + $0x1c8] sm:$0xff] }
 0x540   : > { %5417 = vst [vmem:[#allocation2 + $0xd0] sm:$0xff] %v5353_v14  ;;  %v5097_v19 = vpop.f32.mrf.mxu2 }
 0x541   : > { %v6060_v21 = vadd.f32 %v5996_v57, %v5548_v36  ;;  %v5098_v41 = vadd.f32 %v5097_v19, %v4929_v23  ;;  %v5266_v40 = vpop.f32.mrf.mxu3 }
 0x542   : > { %v4761_v3 = vpop.f32.mrf.mxu0  ;;  %v4930_v27 = vpop.f32.mrf.mxu1 }
 0x543   : > { %v6124_v61 = vmax.f32 %v6060_v21, 0.0  ;;  %v5267_v33 = vadd.f32 %v5266_v40, %v5098_v41  ;;  %v4931_v13 = vadd.f32 %v4930_v27, %v4761_v3  ;;  %v5552_v41 = vld [vmem:[%s10982_s2 + $0x198] sm:$0xff]  ;;  %v11118_v40 = vld [vmem:[#allocation70_spill] sm:$0xff] }
 0x545   : > { %v6188_v20 = vmin.f32 %v6124_v61, 1.0  ;;  %v5354_v32 = vadd.f32 %v5267_v33, %v3654_v0 }
 0x547   : > { %6252 = vst [vmem:[#allocation8 + $0x178] sm:$0xff] %v6188_v20  ;;  %v6573_v45 = vmul.f32 %v6460_v62, %v6188_v20  ;;  %v5997_v48 = vmul.f32 %v10567_v46, %v5354_v32  ;;  %v5550_v46 = vld [vmem:[%s10982_s2 + $0x188] sm:$0xff] }
 0x548   : > { %5418 = vst [vmem:[#allocation2 + $0xb8] sm:$0xff] %v5354_v32  ;;  %v5099_v6 = vpop.f32.mrf.mxu2  ;;  %v3658_v32 = vld [vmem:[#allocation2 + $0x170] sm:$0xff] }
 0x549   : > { %v8730_v53 = vpack.c.bf16 %v6573_v45, %v6572_v24  ;;  %v6061_v39 = vadd.f32 %v5997_v48, %v5549_v54  ;;  %v5100_v50 = vadd.f32 %v5099_v6, %v4931_v13  ;;  %v5268_v44 = vpop.f32.mrf.mxu3  ;;  %v6476_v48 = vpop.permute.xlu2 %6475  ;;  %v5553_v6 = vld [vmem:[%s10982_s2 + $0x1a0] sm:$0xff] }
 0x54a   : > { %v4764_v30 = vpop.f32.mrf.mxu0  ;;  %v4933_v47 = vpop.f32.mrf.mxu1 }
 0x54b   : > { %8825 = vst [vmem:[#allocation4 + $0xb8] sm:$0xff] %v8730_v53   ;;  %v6125_v63 = vmax.f32 %v6061_v39, 0.0  ;;  %v5269_v22 = vadd.f32 %v5268_v44, %v5100_v50  ;;  %v4934_v34 = vadd.f32 %v4933_v47, %v4764_v30  ;;  %v6472_v13 = vpop.permute.xlu1 %6471  ;;  %v11119_v50 = vld [vmem:[#allocation69_spill] sm:$0xff] }
 0x54d   : > { %v6189_v16 = vmin.f32 %v6125_v63, 1.0  ;;  %v5355_v9 = vadd.f32 %v5269_v22, %v3655_v5 }
 0x54f   : > { %6253 = vst [vmem:[#allocation8 + $0x180] sm:$0xff] %v6189_v16  ;;  %v5998_v2 = vmul.f32 %v11116_v35, %v5355_v9  ;;  %v6574_v31 = vmul.f32 %v6464_v38, %v6189_v16  ;;  %v3660_v38 = vld [vmem:[#allocation2 + $0x68] sm:$0xff] }
 0x550   : > { %5419 = vst [vmem:[#allocation2 + $0x88] sm:$0xff] %v5355_v9  ;;  %v5102_v8 = vpop.f32.mrf.mxu2 }
 0x551   : > { %v6062_v55 = vadd.f32 %v5998_v2, %v5550_v46  ;;  %v5103_v15 = vadd.f32 %v5102_v8, %v4934_v34  ;;  %v5271_v52 = vpop.f32.mrf.mxu3  ;;  %v3659_v34 = vld [vmem:[#allocation2 + $0x178] sm:$0xff] }
 0x552   : > { %v4766_v26 = vpop.f32.mrf.mxu0  ;;  %v4935_v28 = vpop.f32.mrf.mxu1 }
 0x553   : > { %v6126_v25 = vmax.f32 %v6062_v55, 0.0  ;;  %v5272_v7 = vadd.f32 %v5271_v52, %v5103_v15  ;;  %v4936_v43 = vadd.f32 %v4935_v28, %v4766_v26  ;;  %v5554_v52 = vld [vmem:[%s10982_s2 + $0x1a8] sm:$0xff] }
 0x554   : > { %v11120_v26 = vld [vmem:[#allocation66_spill] sm:$0xff] }
 0x555   : > { %v6190_v60 = vmin.f32 %v6126_v25, 1.0  ;;  %v5356_v17 = vadd.f32 %v5272_v7, %v3656_v11 }
 0x557   : > { %6254 = vst [vmem:[#allocation8 + $0x188] sm:$0xff] %v6190_v60  ;;  %v6575_v4 = vmul.f32 %v6468_v51, %v6190_v60  ;;  %v5999_v58 = vmul.f32 %v11117_v18, %v5356_v17 }
 0x558   : > { %5420 = vst [vmem:[#allocation2 + $0xa8] sm:$0xff] %v5356_v17  ;;  %v5104_v12 = vpop.f32.mrf.mxu2 }
 0x559   : > { %v8735_v42 = vpack.c.bf16 %v6575_v4, %v6574_v31  ;;  %v6063_v59 = vadd.f32 %v5999_v58, %v5551_v56  ;;  %v5105_v29 = vadd.f32 %v5104_v12, %v4936_v43  ;;  %v5273_v49 = vpop.f32.mrf.mxu3  ;;  %v6484_v58 = vpop.permute.xlu1 %6483  ;;  %v5555_v12 = vld [vmem:[%s10982_s2 + $0x1b0] sm:$0xff] }
 0x55a   : > { %v4769_v37 = vpop.f32.mrf.mxu0  ;;  %v4938_v14 = vpop.f32.mrf.mxu1 }
 0x55b   : > { %8826 = vst [vmem:[#allocation4 + $0xc0] sm:$0xff] %v8735_v42   ;;  %v6127_v23 = vmax.f32 %v6063_v59, 0.0  ;;  %v5274_v36 = vadd.f32 %v5273_v49, %v5105_v29  ;;  %v4939_v21 = vadd.f32 %v4938_v14, %v4769_v37  ;;  %v6480_v43 = vpop.permute.xlu0 %6479  ;;  %v11121_v29 = vld [vmem:[#allocation52_spill] sm:$0xff] }
 0x55d   : > { %v6191_v57 = vmin.f32 %v6127_v23, 1.0  ;;  %v5357_v19 = vadd.f32 %v5274_v36, %v3657_v1 }
 0x55f   : > { %6255 = vst [vmem:[#allocation8 + $0x190] sm:$0xff] %v6191_v57  ;;  %v6000_v3 = vmul.f32 %v11118_v40, %v5357_v19  ;;  %v6576_v53 = vmul.f32 %v6472_v13, %v6191_v57 }
 0x560   : > { %5421 = vst [vmem:[#allocation2 + $0x1c8] sm:$0xff] %v5357_v19  ;;  %v5107_v0 = vpop.f32.mrf.mxu2 }
 0x561   : > { %v6064_v27 = vadd.f32 %v6000_v3, %v5552_v41  ;;  %v5108_v61 = vadd.f32 %v5107_v0, %v4939_v21  ;;  %v5276_v33 = vpop.f32.mrf.mxu3  ;;  %v3661_v21 = vld [vmem:[#allocation2 + $0x190] sm:$0xff] }
 0x562   : > { %v4771_v20 = vpop.f32.mrf.mxu0  ;;  %v4940_v62 = vpop.f32.mrf.mxu1 }
 0x563   : > { %v6128_v10 = vmax.f32 %v6064_v27, 0.0  ;;  %v5277_v54 = vadd.f32 %v5276_v33, %v5108_v61  ;;  %v4941_v30 = vadd.f32 %v4940_v62, %v4771_v20  ;;  %v5556_v33 = vld [vmem:[%s10982_s2 + $0x1b8] sm:$0xff]  ;;  %v11122_v20 = vld [vmem:[#allocation47_spill] sm:$0xff] }
 0x565   : > { %v6192_v24 = vmin.f32 %v6128_v10, 1.0  ;;  %v5358_v45 = vadd.f32 %v5277_v54, %v3658_v32 }
 0x567   : > { %6256 = vst [vmem:[#allocation8 + $0x198] sm:$0xff] %v6192_v24  ;;  %v6577_v39 = vmul.f32 %v6476_v48, %v6192_v24  ;;  %v6001_v44 = vmul.f32 %v11119_v50, %v5358_v45  ;;  %v3662_v48 = vld [vmem:[#allocation2 + $0x198] sm:$0xff] }
 0x568   : > { %5422 = vst [vmem:[#allocation2 + $0x170] sm:$0xff] %v5358_v45  ;;  %v5109_v5 = vpop.f32.mrf.mxu2 }
 0x569   : > { %v8740_v47 = vpack.c.bf16 %v6577_v39, %v6576_v53  ;;  %v6065_v63 = vadd.f32 %v6001_v44, %v5553_v6  ;;  %v5110_v22 = vadd.f32 %v5109_v5, %v4941_v30  ;;  %v5278_v16 = vpop.f32.mrf.mxu3  ;;  %v6488_v44 = vpop.permute.xlu2 %6487  ;;  %v5557_v5 = vld [vmem:[%s10982_s2 + $0x1c0] sm:$0xff] }
 0x56a   : > { %v4774_v9 = vpop.f32.mrf.mxu0  ;;  %v4943_v46 = vpop.f32.mrf.mxu1 }
 0x56b   : > { %8827 = vst [vmem:[#allocation4 + $0xc8] sm:$0xff] %v8740_v47   ;;  %v6129_v35 = vmax.f32 %v6065_v63, 0.0  ;;  %v5279_v2 = vadd.f32 %v5278_v16, %v5110_v22  ;;  %v4944_v15 = vadd.f32 %v4943_v46, %v4774_v9  ;;  %v6492_v30 = vpop.permute.xlu0 %6491  ;;  %v11123_v22 = vld [vmem:[#allocation67_spill] sm:$0xff] }
 0x56d   : > { %v6193_v8 = vmin.f32 %v6129_v35, 1.0  ;;  %v5359_v55 = vadd.f32 %v5279_v2, %v3659_v34 }
 0x56f   : > { %6257 = vst [vmem:[#allocation8 + $0x1a0] sm:$0xff] %v6193_v8  ;;  %v6002_v11 = vmul.f32 %v11120_v26, %v5359_v55  ;;  %v6578_v42 = vmul.f32 %v6480_v43, %v6193_v8 }
 0x570   : > { %5423 = vst [vmem:[#allocation2 + $0x178] sm:$0xff] %v5359_v55  ;;  %v5112_v28 = vpop.f32.mrf.mxu2 }
 0x571   : > { %v6066_v25 = vadd.f32 %v6002_v11, %v5554_v52  ;;  %v5113_v7 = vadd.f32 %v5112_v28, %v4944_v15  ;;  %v5281_v60 = vpop.f32.mrf.mxu3  ;;  %v3663_v15 = vld [vmem:[#allocation2 + $0x38] sm:$0xff] }
 0x572   : > { %v4776_v17 = vpop.f32.mrf.mxu0  ;;  %v4945_v51 = vpop.f32.mrf.mxu1 }
 0x573   : > { %v6130_v56 = vmax.f32 %v6066_v25, 0.0  ;;  %v5282_v31 = vadd.f32 %v5281_v60, %v5113_v7  ;;  %v4946_v37 = vadd.f32 %v4945_v51, %v4776_v17  ;;  %v5558_v60 = vld [vmem:[%s10982_s2 + $0x1c8] sm:$0xff]  ;;  %v11124_v17 = vld [vmem:[#allocation71_spill] sm:$0xff] }
 0x575   : > { %v6194_v4 = vmin.f32 %v6130_v56, 1.0  ;;  %v5360_v18 = vadd.f32 %v5282_v31, %v3660_v38 }
 0x577   : > { %6258 = vst [vmem:[#allocation8 + $0x1a8] sm:$0xff] %v6194_v4  ;;  %v6579_v59 = vmul.f32 %v6484_v58, %v6194_v4  ;;  %v6003_v49 = vmul.f32 %v11121_v29, %v5360_v18  ;;  %v3664_v58 = vld [vmem:[#allocation2 + $0xc0] sm:$0xff] }
 0x578   : > { %5424 = vst [vmem:[#allocation2 + $0x68] sm:$0xff] %v5360_v18  ;;  %v5114_v1 = vpop.f32.mrf.mxu2 }
 0x579   : > { %v8745_v14 = vpack.c.bf16 %v6579_v59, %v6578_v42  ;;  %v6067_v23 = vadd.f32 %v6003_v49, %v5555_v12  ;;  %v5115_v36 = vadd.f32 %v5114_v1, %v4946_v37  ;;  %v5283_v57 = vpop.f32.mrf.mxu3  ;;  %v6500_v49 = vpop.permute.xlu2 %6499  ;;  %v5559_v1 = vld [vmem:[%s10982_s2 + $0x1d0] sm:$0xff] }
 0x57a   : > { %v4779_v19 = vpop.f32.mrf.mxu0  ;;  %v4948_v41 = vpop.f32.mrf.mxu1 }
 0x57b   : > { %8828 = vst [vmem:[#allocation4 + $0xd0] sm:$0xff] %v8745_v14   ;;  %v6131_v40 = vmax.f32 %v6067_v23, 0.0  ;;  %v5284_v3 = vadd.f32 %v5283_v57, %v5115_v36  ;;  %v4949_v61 = vadd.f32 %v4948_v41, %v4779_v19  ;;  %v6496_v37 = vpop.permute.xlu1 %6495  ;;  %v11125_v36 = vld [vmem:[#allocation48_spill] sm:$0xff] }
 0x57d   : > { %v6195_v0 = vmin.f32 %v6131_v40, 1.0  ;;  %v5361_v27 = vadd.f32 %v5284_v3, %v3661_v21 }
 0x57f   : > { %6259 = vst [vmem:[#allocation8 + $0x1b0] sm:$0xff] %v6195_v0  ;;  %v6004_v32 = vmul.f32 %v11122_v20, %v5361_v27  ;;  %v6580_v47 = vmul.f32 %v6488_v44, %v6195_v0  ;;  %v3666_v44 = vld [vmem:[#allocation2 + $0x158] sm:$0xff] }
 0x580   : > { %5425 = vst [vmem:[#allocation2 + $0x190] sm:$0xff] %v5361_v27  ;;  %v5117_v62 = vpop.f32.mrf.mxu2 }
 0x581   : > { %v6068_v10 = vadd.f32 %v6004_v32, %v5556_v33  ;;  %v5118_v54 = vadd.f32 %v5117_v62, %v4949_v61  ;;  %v5286_v24 = vpop.f32.mrf.mxu3  ;;  %v3665_v61 = vld [vmem:[#allocation2 + $0x1c0] sm:$0xff] }
 0x582   : > { %v4781_v45 = vpop.f32.mrf.mxu0  ;;  %v4950_v13 = vpop.f32.mrf.mxu1 }
 0x583   : > { %v6132_v6 = vmax.f32 %v6068_v10, 0.0  ;;  %v5287_v53 = vadd.f32 %v5286_v24, %v5118_v54  ;;  %v4951_v9 = vadd.f32 %v4950_v13, %v4781_v45  ;;  %v5560_v24 = vld [vmem:[%s10982_s2 + $0x1d8] sm:$0xff]  ;;  %v11126_v45 = vld [vmem:[#allocation45_spill] sm:$0xff] }
 0x585   : > { %v6196_v39 = vmin.f32 %v6132_v6, 1.0  ;;  %v5362_v50 = vadd.f32 %v5287_v53, %v3662_v48 }
 0x587   : > { %6260 = vst [vmem:[#allocation8 + $0x1b8] sm:$0xff] %v6196_v39  ;;  %v6581_v63 = vmul.f32 %v6492_v30, %v6196_v39  ;;  %v6005_v16 = vmul.f32 %v11123_v22, %v5362_v50 }
 0x588   : > { %5426 = vst [vmem:[#allocation2 + $0x198] sm:$0xff] %v5362_v50  ;;  %v5119_v34 = vpop.f32.mrf.mxu2 }
 0x589   : > { %v8750_v46 = vpack.c.bf16 %v6581_v63, %v6580_v47  ;;  %v6069_v35 = vadd.f32 %v6005_v16, %v5557_v5  ;;  %v5120_v2 = vadd.f32 %v5119_v34, %v4951_v9  ;;  %v5288_v8 = vpop.f32.mrf.mxu3  ;;  %v6508_v16 = vpop.permute.xlu1 %6507  ;;  %v5561_v34 = vld [vmem:[%s10982_s2 + $0x1e0] sm:$0xff] }
 0x58a   : > { %v4784_v55 = vpop.f32.mrf.mxu0  ;;  %v4953_v52 = vpop.f32.mrf.mxu1 }
 0x58b   : > { %8829 = vst [vmem:[#allocation4 + $0xd8] sm:$0xff] %v8750_v46   ;;  %v6133_v26 = vmax.f32 %v6069_v35, 0.0  ;;  %v5289_v11 = vadd.f32 %v5288_v8, %v5120_v2  ;;  %v4954_v7 = vadd.f32 %v4953_v52, %v4784_v55  ;;  %v6504_v9 = vpop.permute.xlu0 %6503  ;;  %v11127_v2 = vld [vmem:[#allocation72_spill] sm:$0xff] }
 0x58d   : > { %v6197_v28 = vmin.f32 %v6133_v26, 1.0  ;;  %v5363_v25 = vadd.f32 %v5289_v11, %v3663_v15 }
 0x58f   : > { %6261 = vst [vmem:[#allocation8 + $0x1c0] sm:$0xff] %v6197_v28  ;;  %v6006_v38 = vmul.f32 %v11124_v17, %v5363_v25  ;;  %v6582_v14 = vmul.f32 %v6496_v37, %v6197_v28 }
 0x590   : > { %5427 = vst [vmem:[#allocation2 + $0x38] sm:$0xff] %v5363_v25  ;;  %v5122_v51 = vpop.f32.mrf.mxu2  ;;  %v3667_v25 = vld [vmem:[#allocation2 + $0x10] sm:$0xff] }
 0x591   : > { %v6070_v56 = vadd.f32 %v6006_v38, %v5558_v60  ;;  %v5123_v31 = vadd.f32 %v5122_v51, %v4954_v7  ;;  %v5291_v4 = vpop.f32.mrf.mxu3 }
 0x592   : > { %v4786_v18 = vpop.f32.mrf.mxu0  ;;  %v4955_v43 = vpop.f32.mrf.mxu1 }
 0x593   : > { %v6134_v12 = vmax.f32 %v6070_v56, 0.0  ;;  %v5292_v42 = vadd.f32 %v5291_v4, %v5123_v31  ;;  %v4956_v19 = vadd.f32 %v4955_v43, %v4786_v18  ;;  %v5562_v4 = vld [vmem:[%s10982_s2 + $0x1e8] sm:$0xff]  ;;  %v11128_v18 = vld [vmem:[#allocation55_spill] sm:$0xff] }
 0x595   : > { %v6198_v59 = vmin.f32 %v6134_v12, 1.0  ;;  %v5364_v29 = vadd.f32 %v5292_v42, %v3664_v58 }
 0x597   : > { %6262 = vst [vmem:[#allocation8 + $0x1c8] sm:$0xff] %v6198_v59  ;;  %v6583_v23 = vmul.f32 %v6500_v49, %v6198_v59  ;;  %v6007_v57 = vmul.f32 %v11125_v36, %v5364_v29 }
 0x598   : > { %5428 = vst [vmem:[#allocation2 + $0xc0] sm:$0xff] %v5364_v29  ;;  %v5124_v21 = vpop.f32.mrf.mxu2  ;;  %v3668_v29 = vld [vmem:[#allocation2 + $0x58] sm:$0xff] }
 0x599   : > { %v8755_v41 = vpack.c.bf16 %v6583_v23, %v6582_v14  ;;  %v6071_v40 = vadd.f32 %v6007_v57, %v5559_v1  ;;  %v5125_v3 = vadd.f32 %v5124_v21, %v4956_v19  ;;  %v5293_v0 = vpop.f32.mrf.mxu3  ;;  %v6512_v57 = vpop.permute.xlu2 %6511  ;;  %v5563_v21 = vld [vmem:[%s10982_s2 + $0x1f0] sm:$0xff] }
 0x59a   : > { %v4789_v27 = vpop.f32.mrf.mxu0  ;;  %v4958_v33 = vpop.f32.mrf.mxu1 }
 0x59b   : > { %8830 = vst [vmem:[#allocation4 + $0xe0] sm:$0xff] %v8755_v41   ;;  %v6135_v20 = vmax.f32 %v6071_v40, 0.0  ;;  %v5294_v32 = vadd.f32 %v5293_v0, %v5125_v3  ;;  %v4959_v54 = vadd.f32 %v4958_v33, %v4789_v27  ;;  %v6516_v19 = vpop.permute.xlu0 %6515  ;;  %v11129_v3 = vld [vmem:[#allocation46_spill] sm:$0xff] }
 0x59d   : > { %v6199_v62 = vmin.f32 %v6135_v20, 1.0  ;;  %v5365_v10 = vadd.f32 %v5294_v32, %v3665_v61 }
 0x59f   : > { %6263 = vst [vmem:[#allocation8 + $0x1d0] sm:$0xff] %v6199_v62  ;;  %v6008_v48 = vmul.f32 %v11126_v45, %v5365_v10  ;;  %v6584_v46 = vmul.f32 %v6504_v9, %v6199_v62  ;;  %v3669_v62 = vld [vmem:[#allocation2 + $0xa0] sm:$0xff] }
 0x5a0   : > { %5429 = vst [vmem:[#allocation2 + $0x1c0] sm:$0xff] %v5365_v10  ;;  %v5127_v13 = vpop.f32.mrf.mxu2 }
 0x5a1   : > { %v6072_v6 = vadd.f32 %v6008_v48, %v5560_v24  ;;  %v5128_v53 = vadd.f32 %v5127_v13, %v4959_v54  ;;  %v5296_v39 = vpop.f32.mrf.mxu3  ;;  %v5564_v13 = vld [vmem:[%s10982_s2 + $0x1f8] sm:$0xff] }
 0x5a2   : > { %v4791_v50 = vpop.f32.mrf.mxu0  ;;  %v4960_v30 = vpop.f32.mrf.mxu1 }
 0x5a3   : > { %v6136_v5 = vmax.f32 %v6072_v6, 0.0  ;;  %v5297_v47 = vadd.f32 %v5296_v39, %v5128_v53  ;;  %v4961_v55 = vadd.f32 %v4960_v30, %v4791_v50  ;;  %v11130_v6 = vld [vmem:[#allocation54_spill] sm:$0xff]  ;;  %v6524_v30 = vpop.permute.xlu2 %6523 }
 0x5a5   : > { %v6200_v63 = vmin.f32 %v6136_v5, 1.0  ;;  %v5366_v22 = vadd.f32 %v5297_v47, %v3666_v44  ;;  %v6520_v5 = vpop.permute.xlu1 %6519 }
 0x5a7   : > { %6264 = vst [vmem:[#allocation8 + $0x1d8] sm:$0xff] %v6200_v63  ;;  %v6585_v35 = vmul.f32 %v6508_v16, %v6200_v63  ;;  %v6009_v8 = vmul.f32 %v11127_v2, %v5366_v22 }
 0x5a8   : > { %5430 = vst [vmem:[#allocation2 + $0x158] sm:$0xff] %v5366_v22  ;;  %v5129_v15 = vpop.f32.mrf.mxu2 }
 0x5a9   : > { %v8760_v52 = vpack.c.bf16 %v6585_v35, %v6584_v46  ;;  %v6073_v26 = vadd.f32 %v6009_v8, %v5561_v34  ;;  %v5130_v11 = vadd.f32 %v5129_v15, %v4961_v55  ;;  %v5298_v28 = vpop.f32.mrf.mxu3 }
 0x5aa   : > { %v4794_v7 = vpop.f32.mrf.mxu0  ;;  %v4963_v60 = vpop.f32.mrf.mxu1 }
 0x5ab   : > { %8831 = vst [vmem:[#allocation4 + $0xe8] sm:$0xff] %v8760_v52   ;;  %v6137_v17 = vmax.f32 %v6073_v26, 0.0  ;;  %v5299_v38 = vadd.f32 %v5298_v28, %v5130_v11  ;;  %v4964_v31 = vadd.f32 %v4963_v60, %v4794_v7 }
 0x5ad   : > { %v6201_v51 = vmin.f32 %v6137_v17, 1.0  ;;  %v5367_v56 = vadd.f32 %v5299_v38, %v3667_v25 }
 0x5af   : > { %6265 = vst [vmem:[#allocation8 + $0x1e0] sm:$0xff] %v6201_v51  ;;  %v6010_v58 = vmul.f32 %v11128_v18, %v5367_v56  ;;  %v6586_v41 = vmul.f32 %v6512_v57, %v6201_v51 }
 0x5b0   : > { %5431 = vst [vmem:[#allocation2 + $0x10] sm:$0xff] %v5367_v56  ;;  %v5132_v43 = vpop.f32.mrf.mxu2 }
 0x5b1   : > { %v6074_v12 = vadd.f32 %v6010_v58, %v5562_v4  ;;  %v5133_v42 = vadd.f32 %v5132_v43, %v4964_v31  ;;  %v5301_v59 = vpop.f32.mrf.mxu3 }
 0x5b2   : > { %v4796_v1 = vpop.f32.mrf.mxu0  ;;  %v4965_v14 = vpop.f32.mrf.mxu1 }
 0x5b3   : > { %v6138_v49 = vmax.f32 %v6074_v12, 0.0  ;;  %v5302_v37 = vadd.f32 %v5301_v59, %v5133_v42  ;;  %v4966_v27 = vadd.f32 %v4965_v14, %v4796_v1 }
 0x5b5   : > { %v6202_v23 = vmin.f32 %v6138_v49, 1.0  ;;  %v5368_v36 = vadd.f32 %v5302_v37, %v3668_v29 }
 0x5b7   : > { %6266 = vst [vmem:[#allocation8 + $0x1e8] sm:$0xff] %v6202_v23  ;;  %v6587_v40 = vmul.f32 %v6516_v19, %v6202_v23  ;;  %v6011_v0 = vmul.f32 %v11129_v3, %v5368_v36 }
 0x5b8   : > { %5432 = vst [vmem:[#allocation2 + $0x58] sm:$0xff] %v5368_v36  ;;  %v5134_v61 = vpop.f32.mrf.mxu2 }
 0x5b9   : > { %v8765_v33 = vpack.c.bf16 %v6587_v40, %v6586_v41  ;;  %v6075_v20 = vadd.f32 %v6011_v0, %v5563_v21  ;;  %v5135_v32 = vadd.f32 %v5134_v61, %v4966_v27  ;;  %v5303_v10 = vpop.f32.mrf.mxu3 }
 0x5bb   : > { %8832 = vst [vmem:[#allocation4 + $0xf0] sm:$0xff] %v8765_v33   ;;  %v6139_v54 = vmax.f32 %v6075_v20, 0.0  ;;  %v5304_v24 = vadd.f32 %v5303_v10, %v5135_v32 }
 0x5bd   : > { %v6203_v45 = vmin.f32 %v6139_v54, 1.0  ;;  %v5369_v48 = vadd.f32 %v5304_v24, %v3669_v62 }
 0x5bf   : > { %6267 = vst [vmem:[#allocation8 + $0x1f0] sm:$0xff] %v6203_v45  ;;  %v6012_v53 = vmul.f32 %v11130_v6, %v5369_v48  ;;  %v6588_v47 = vmul.f32 %v6520_v5, %v6203_v45 }
 0x5c0   : > { %5433 = vst [vmem:[#allocation2 + $0xa0] sm:$0xff] %v5369_v48 }
 0x5c1   : > { %v6076_v39 = vadd.f32 %v6012_v53, %v5564_v13 }
 0x5c3   : > { %v6140_v50 = vmax.f32 %v6076_v39, 0.0 }
 0x5c5   : > { %v6204_v44 = vmin.f32 %v6140_v50, 1.0 }
 0x5c7   : > { %6268 = vst [vmem:[#allocation8 + $0x1f8] sm:$0xff] %v6204_v44  ;;  %v6589_v63 = vmul.f32 %v6524_v30, %v6204_v44 }
 0x5c9   : > { %v8770_v22 = vpack.c.bf16 %v6589_v63, %v6588_v47 }
 0x5cb   : > { %8833 = vst [vmem:[#allocation4 + $0xf8] sm:$0xff] %v8770_v22  }
 0x5cc PF: > { %p8848_p12 = scmp.eq.s32.totalorder %s6832_s18, 2  ;;  %s6732_s12 = sshll.u32 %s10984_s4, 4  ;;  %s6733_s12 = int_to_ptr.hbm [resolvable:$true] %s6732_s12 }
 0x5cd   : > { %s9089_s13 = smov [#allocation8]   ;;  %s9090_s15 = smov 128  }
 0x5ce   : > { %s6730_s14 = sshll.u32 %s9089_s13, 4  ;;  %s9091_s20 = smov 8   ;;  %s6731_s14 = int_to_ptr.vmem [resolvable:$true] %s6730_s14 }
 0x5cf   : > { %8839 = dma.vmem_to_hbm [thread:$0]  (%p8848_p12), %s6731_s14, 8192, %s6733_s12, [#allocation7], %s9090_s15, %s9090_s15, %s9091_s20  }
 0x5d0   : > { %9065 = dma.done.wait (%p8848_p12), [#allocation7], 8192  }
 0x5d1   : > { %9067 = vsyncadd (%p8848_p12), [#allocation7], 4294959104 }
 0x5d2 PF: > { %s16_s17 = sadd.s32 1, %s9078_s17   ;;  %s11131_s15 = smov %s9074_s16 }
 0x5d3   : > { %p13_p13 = scmp.ge.s32.totalorder %s16_s17, 5   ;;  %s11132_s16 = smov %s11134_s19 }
 0x5d5   :  { %15 = sbr.rel (!%p13_p13) target bundleno = 3 (0x3), region = 102 }
 0x5da   :  { %6749 = vsyncpa [#allocation6], 1 }
 0x5db   :  { %6751 = vsyncpa [#allocation6 + $0x1], 1 }
 0x5dc   :  { %6752 = vsyncpa [#allocation7], 1 }
 0x5dd   :  { %6754 = vsyncpa [#allocation7 + $0x1], 1 }

</bundles_post_ra>
